<compile_context>
chip_gen: v7x
topology: tpu7x:2x2x1
jax: 0.10.0
libtpu: 0.0.40
codegen_flags: <defaults>
</compile_context>

<pallas_src>
import functools

import numpy as np
import jax
import jax.numpy as jnp
from jax.experimental import pallas as pl
from jax.experimental.pallas import tpu as pltpu

EPS = 1e-5


def _round_up(x, m):
    return (x + m - 1) // m * m


def _cdiv(a, b):
    return -(-a // b)


def _detect_nblk_big():
    """2-way row split only where a second TensorCore exists (v7x)."""
    try:
        kind = jax.devices()[0].device_kind.lower()
        if "v7" in kind:
            return 2
    except Exception:
        pass
    return 1


_NBLK_BIG = _detect_nblk_big()


# ----------------------------- Pallas kernels -----------------------------

def _fused_matmul_kernel(*refs, act, has_bn, has_resid):
    """o = act(x @ w + b) [* s + t] [- r]   (b/s/t broadcast per output lane)."""
    if has_resid:
        x_ref, w_ref, bst_ref, r_ref, o_ref = refs
    else:
        x_ref, w_ref, bst_ref, o_ref = refs
    y = jnp.dot(x_ref[...], w_ref[...], preferred_element_type=jnp.float32)
    bst = bst_ref[...]
    y = y + bst[0:1, :]
    if act == "relu":
        y = jnp.maximum(y, 0.0)
    elif act == "sigmoid":
        y = jax.nn.sigmoid(y)
    if has_bn:
        y = y * bst[1:2, :] + bst[2:3, :]
    if has_resid:
        y = y - r_ref[...]                      # lane-dense residual (e = f - x)
    o_ref[...] = y


def fused_matmul(x, w_pad, bst_pad, *, act="none", has_bn=False, resid=None, nblk=1):
    """Row-tiled, lane-dense fused matmul.

    `w_pad` (Kp, Np) bf16 and `bst_pad` (8, Np) f32 are prepared ONCE at param-prep
    time.  Only the activation `x` (and optional residual) are cast/padded here.
    Returns the padded (Mp, Np) f32 output; the caller slices what it needs.
    """
    M, K = x.shape
    Kp, Np = w_pad.shape
    if M < 256:
        nblk = 1
    TM = _round_up(_cdiv(M, nblk), 16)
    Mp = TM * nblk

    xp = jnp.pad(x.astype(jnp.bfloat16), ((0, Mp - M), (0, Kp - K)))

    in_specs = [
        pl.BlockSpec((TM, Kp), lambda i: (i, 0)),
        pl.BlockSpec((Kp, Np), lambda i: (0, 0)),
        pl.BlockSpec((8, Np), lambda i: (0, 0)),
    ]
    args = [xp, w_pad, bst_pad]
    has_resid = resid is not None
    if has_resid:
        rp = jnp.pad(resid.astype(jnp.float32),
                     ((0, Mp - M), (0, Np - resid.shape[1])))
        in_specs.append(pl.BlockSpec((TM, Np), lambda i: (i, 0)))
        args.append(rp)

    return pl.pallas_call(
        functools.partial(_fused_matmul_kernel, act=act,
                          has_bn=has_bn, has_resid=has_resid),
        out_shape=jax.ShapeDtypeStruct((Mp, Np), jnp.float32),
        grid=(nblk,),
        in_specs=in_specs,
        out_specs=pl.BlockSpec((TM, Np), lambda i: (i, 0)),
        compiler_params=pltpu.CompilerParams(
            dimension_semantics=("parallel",)),
    )(*args)


def _dense_chain_kernel(x_ref, w1_ref, bst1_ref, w2_ref, b2_ref, noise_ref,
                        w3_ref, bst3_ref, w4_ref, bst4_ref,
                        z_ref, g2_ref, *, enc_mode):
    """fc1+BN -> fc2 (z) -> noise mix -> dlin1+BN -> dlin2+BN, all in one kernel."""
    bf16 = jnp.bfloat16

    def relu_bn(y, bst):
        y = jnp.maximum(y + bst[0:1, :], 0.0)
        return y * bst[1:2, :] + bst[2:3, :]

    # Linear(500,250) + ReLU + BatchNorm1d(250)   (maxpool-BN2 folded into w1/b1)
    h = jnp.dot(x_ref[...], w1_ref[...], preferred_element_type=jnp.float32)
    h = relu_bn(h, bst1_ref[...])
    # Linear(250,10) -> latent z
    z = jnp.dot(h.astype(bf16), w2_ref[...],
                preferred_element_type=jnp.float32) + b2_ref[...][0:1, :]
    z_ref[...] = z
    # z2 = enc_mode*z + (2-enc_mode)*noise   (matches PyTorch forward literally)
    z2 = float(enc_mode) * z + float(2 - enc_mode) * noise_ref[...]
    # Linear(10,360) + ReLU + BatchNorm1d(360)
    g = jnp.dot(z2.astype(bf16), w3_ref[...], preferred_element_type=jnp.float32)
    g = relu_bn(g, bst3_ref[...])
    # Linear(360,720) + ReLU + BatchNorm1d(720)
    g2 = jnp.dot(g.astype(bf16), w4_ref[...], preferred_element_type=jnp.float32)
    g2_ref[...] = relu_bn(g2, bst4_ref[...])


def dense_chain(flat, noise, prep, enc_mode):
    """Single fused kernel for the whole encoder-bottleneck-decoder dense chain."""
    N, Din = flat.shape                                     # (N, 500)
    Nb = max(8, _round_up(N, 8))
    K1 = prep["w_fc1"].shape[0]                             # 512

    xp = jnp.pad(flat.astype(jnp.bfloat16), ((0, Nb - N), (0, K1 - Din)))
    npad = jnp.pad(noise.astype(jnp.float32),
                   ((0, Nb - N), (0, 128 - noise.shape[1])))

    def full(shape):
        return pl.BlockSpec(shape, lambda i: (0, 0))

    z_pad, g2_pad = pl.pallas_call(
        functools.partial(_dense_chain_kernel, enc_mode=enc_mode),
        out_shape=(jax.ShapeDtypeStruct((Nb, 128), jnp.float32),
                   jax.ShapeDtypeStruct((Nb, 768), jnp.float32)),
        grid=(1,),
        in_specs=[full((Nb, 512)), full((512, 256)), full((8, 256)),
                  full((256, 128)), full((8, 128)), full((Nb, 128)),
                  full((128, 384)), full((8, 384)),
                  full((384, 768)), full((8, 768))],
        out_specs=(full((Nb, 128)), full((Nb, 768))),
    )(xp, prep["w_fc1"], prep["bst_fc1"], prep["w_fc2"], prep["b_fc2"], npad,
      prep["w_dl1"], prep["bst_dl1"], prep["w_dl2"], prep["bst_dl2"])
    return z_pad[:N, :10], g2_pad[:N, :720]


# ----------------------------- XLA glue (layout only, runs under jit) -----------------------------

def _im2col_nhwc(x, k, s):
    """x: (N,H,W,C) -> patches (N*Ho*Wo, k*k*C); patch feature order (ky, kx, c)."""
    N, H, W, C = x.shape
    Ho = (H - k) // s + 1
    Wo = (W - k) // s + 1
    cols = []
    for ky in range(k):
        for kx in range(k):
            cols.append(x[:, ky:ky + s * (Ho - 1) + 1:s,
                          kx:kx + s * (Wo - 1) + 1:s, :])
    p = jnp.stack(cols, axis=3)                              # (N, Ho, Wo, k*k, C)
    return p.reshape(N * Ho * Wo, k * k * C), Ho, Wo


def bicubic_upsample_matrix(in_size, scale):
    """PyTorch Upsample(scale, mode='bicubic', align_corners=False) as (out^2, in^2)."""
    A = -0.75

    def cc1(t):
        return ((A + 2.0) * t - (A + 3.0)) * t * t + 1.0

    def cc2(t):
        return ((A * t - 5.0 * A) * t + 8.0 * A) * t - 4.0 * A

    out_size = in_size * scale
    U = np.zeros((out_size, in_size), dtype=np.float64)
    for i in range(out_size):
        src = (i + 0.5) / scale - 0.5
        fl = int(np.floor(src))
        t = src - fl
        w = [cc2(t + 1.0), cc1(t), cc1(1.0 - t), cc2(2.0 - t)]
        for m in range(4):
            idx = min(max(fl - 1 + m, 0), in_size - 1)       # border replication
            U[i, idx] += w[m]
    return np.kron(U, U).astype(np.float32)


# ----------------------------- Parameters -----------------------------

def init_params(key):
    keys = jax.random.split(key, 16)

    def W(k, shape, scale=0.1):
        return jax.random.normal(k, shape, jnp.float32) * scale

    p = {
        "conv1_w": W(keys[0], (20, 1, 4, 4)),   "conv1_b": W(keys[1], (20,)),
        "conv2_w": W(keys[2], (20, 20, 4, 4)),  "conv2_b": W(keys[3], (20,)),
        "fc1_w":   W(keys[4], (250, 500)),      "fc1_b":   W(keys[5], (250,)),
        "fc2_w":   W(keys[6], (10, 250)),       "fc2_b":   W(keys[7], (10,)),
        "dlin1_w": W(keys[8], (360, 10)),       "dlin1_b": W(keys[9], (360,)),
        "dlin2_w": W(keys[10], (720, 360)),     "dlin2_b": W(keys[11], (720,)),
        "convt1_w": W(keys[12], (20, 20, 4, 4)), "convt1_b": W(keys[13], (20,)),  # (Cin,Cout,k,k)
        "convt2_w": W(keys[14], (20, 1, 4, 4)),  "convt2_b": W(keys[15], (1,)),
    }
    for name, n in [("bn1", 20), ("bn2", 20), ("bn3", 250),
                    ("dbn1", 360), ("dbn2", 720), ("dbn3", 20)]:
        p[name] = dict(gamma=jnp.ones(n), beta=jnp.zeros(n),
                       mean=jnp.zeros(n), var=jnp.ones(n))
    return p


def prepare_params(params):
    """One-time parameter preparation (numpy, outside jit): padding, bf16 casts,
    weight permutations/flips, BN folding, upsample/Toeplitz matrices."""
    f32 = np.float32

    def npa(a):
        return np.asarray(a, f32)

    def bn_fold(bn):
        g, b, m, v = npa(bn["gamma"]), npa(bn["beta"]), npa(bn["mean"]), npa(bn["var"])
        s = g / np.sqrt(v + EPS)
        return s, b - m * s

    def pad_w(w, Kp, Np_):
        out = np.zeros((Kp, Np_), f32)
        out[:w.shape[0], :w.shape[1]] = w
        return jnp.asarray(out, jnp.bfloat16)

    def make_bst(bias, scale=None, shift=None, Np_=128):
        out = np.zeros((8, Np_), f32)
        n = bias.shape[0]
        out[0, :n] = bias
        if scale is not None:
            out[1, :n] = scale
            out[2, :n] = shift
        return jnp.asarray(out)

    prep = {}

    # conv1: weight rows (ky,kx) (C_in = 1), BN1 folded as output affine.
    w1 = npa(params["conv1_w"]).reshape(20, 16).T
    s1, t1 = bn_fold(params["bn1"])
    prep["w_c1"] = pad_w(w1, 16, 128)
    prep["bst_c1"] = make_bst(npa(params["conv1_b"]), s1, t1, 128)

    # conv2: weight rows (ky,kx,ci).
    w2 = npa(params["conv2_w"]).transpose(2, 3, 1, 0).reshape(320, 20)
    prep["w_c2"] = pad_w(w2, 384, 128)
    prep["bst_c2"] = make_bst(npa(params["conv2_b"]), None, None, 128)

    # fc1: permute columns from PyTorch's (c,h,w) flatten to our NHWC (h,w,c) flatten,
    # fold the post-maxpool BN2 (input affine) and BN3 (output affine).
    s2, t2 = bn_fold(params["bn2"])
    s3, t3 = bn_fold(params["bn3"])
    W1 = npa(params["fc1_w"]).reshape(250, 20, 5, 5).transpose(0, 2, 3, 1).reshape(250, 500)
    b1 = npa(params["fc1_b"]) + W1 @ np.tile(t2, 25)
    W1 = W1 * np.tile(s2, 25)[None, :]
    prep["w_fc1"] = pad_w(W1.T, 512, 256)
    prep["bst_fc1"] = make_bst(b1, s3, t3, 256)

    # fc2 / dlin1 / dlin2 (+ folded BatchNorm1d affines)
    prep["w_fc2"] = pad_w(npa(params["fc2_w"]).T, 256, 128)
    prep["b_fc2"] = make_bst(npa(params["fc2_b"]), None, None, 128)
    ds1, dt1 = bn_fold(params["dbn1"])
    prep["w_dl1"] = pad_w(npa(params["dlin1_w"]).T, 128, 384)
    prep["bst_dl1"] = make_bst(npa(params["dlin1_b"]), ds1, dt1, 384)
    ds2, dt2 = bn_fold(params["dbn2"])
    prep["w_dl2"] = pad_w(npa(params["dlin2_w"]).T, 384, 768)
    prep["bst_dl2"] = make_bst(npa(params["dlin2_b"]), ds2, dt2, 768)

    # Bicubic Upsample(x2) combined with dilation(stride 2) + pad(3, 3+output_padding)
    # for the first ConvTranspose: a single per-channel (36 -> 30*30) linear map.
    M_up = bicubic_upsample_matrix(6, 2)                     # (144, 36)
    M_comb = np.zeros((900, 36), f32)
    for iy in range(12):
        for ix in range(12):
            M_comb[(3 + 2 * iy) * 30 + (3 + 2 * ix), :] = M_up[iy * 12 + ix, :]
    prep["w_up"] = pad_w(M_comb.T, 36, 1024)
    prep["bst_up"] = jnp.zeros((8, 1024), jnp.float32)

    # convt1 as a stride-1 conv: flipped kernel, rows (ky,kx,ci), dBN3 folded.
    wt1 = np.flip(npa(params["convt1_w"]), (2, 3)).transpose(1, 0, 2, 3)  # (co,ci,ky,kx)
    wt1 = wt1.transpose(2, 3, 1, 0).reshape(320, 20)
    ds3, dt3 = bn_fold(params["dbn3"])
    prep["w_t1"] = pad_w(wt1, 384, 128)
    prep["bst_t1"] = make_bst(npa(params["convt1_b"]), ds3, dt3, 128)

    # convt2 (20->1) as a lane-dense Toeplitz matmul over the 28 output columns:
    # Wt[(ky, x', ci), x] = w_conv[ci, ky, x'-x] for 0 <= x'-x < 4.
    wt2 = np.flip(npa(params["convt2_w"]), (2, 3)).transpose(1, 0, 2, 3)  # (1,20,4,4)
    Wt = np.zeros((4, 31, 20, 28), f32)
    for x in range(28):
        for kx in range(4):
            Wt[:, x + kx, :, x] = wt2[0, :, :, kx].T         # (ky, ci)
    prep["w_t2"] = pad_w(Wt.reshape(4 * 31 * 20, 28), 2560, 128)
    prep["bst_t2"] = make_bst(np.full((28,), npa(params["convt2_b"])[0], f32),
                              None, None, 128)
    return prep


# ----------------------------- Forward pass -----------------------------

def _forward(prep, x, noise, enc_mode):
    N = x.shape[0]

    # -------- Encoder (NHWC throughout; x has C=1 so the NHWC view is a reshape) ----
    xi = x.reshape(N, 28, 28, 1)

    # Conv2d(1,20,4,1) + ReLU + BatchNorm2d(20)          [Dropout = identity]
    p1, H1, W1 = _im2col_nhwc(xi, 4, 1)                         # (N*625, 16)
    y1 = fused_matmul(p1, prep["w_c1"], prep["bst_c1"],
                      act="relu", has_bn=True, nblk=_NBLK_BIG)
    h1 = y1[:N * H1 * W1, :20].reshape(N, H1, W1, 20)           # (N,25,25,20) NHWC

    # Conv2d(20,20,4,2) + ReLU
    p2, H2, W2 = _im2col_nhwc(h1, 4, 2)                         # (N*121, 320)
    y2 = fused_matmul(p2, prep["w_c2"], prep["bst_c2"], act="relu")
    h2 = y2[:N * H2 * W2, :20].reshape(N, H2, W2, 20)           # (N,11,11,20)

    # MaxPool2d(2) (tiny -> XLA glue); BN2 is folded into fc1.
    Hp, Wp = H2 // 2, W2 // 2
    pooled = h2[:, :2 * Hp, :2 * Wp, :].reshape(N, Hp, 2, Wp, 2, 20).max(axis=(2, 4))
    flat = pooled.reshape(N, Hp * Wp * 20)                      # (N,500) (h,w,c) order

    # fc1+BN3 -> fc2 -> z -> noise mix -> dlin1+BN -> dlin2+BN : one fused kernel.
    z, g2 = dense_chain(flat, noise, prep, enc_mode)            # (N,10), (N,720)

    # -------- Decoder --------
    # Unflatten(1,(20,6,6)) + bicubic Upsample x2 + dilate/pad for convt1 : one matmul.
    up = fused_matmul(g2.reshape(N * 20, 36), prep["w_up"], prep["bst_up"], act="none")
    xt1 = up[:N * 20, :900].reshape(N, 20, 30, 30).transpose(0, 2, 3, 1)  # (N,30,30,20)

    # ConvTranspose2d(20,20,4,stride=2,output_padding=1) + ReLU + BatchNorm2d(20)
    pt1, Ht1, Wt1 = _im2col_nhwc(xt1, 4, 1)                     # (N*729, 320)
    y3 = fused_matmul(pt1, prep["w_t1"], prep["bst_t1"],
                      act="relu", has_bn=True, nblk=_NBLK_BIG)
    h4 = y3[:N * Ht1 * Wt1, :20].reshape(N, Ht1, Wt1, 20)       # (N,27,27,20)

    # ConvTranspose2d(20,1,4,stride=1,padding=1) + Sigmoid, fused with e = f - x.
    # Lane-dense: 28 output columns on the lane axis (row-wise im2col + Toeplitz W).
    xt2 = jnp.pad(h4, ((0, 0), (2, 2), (2, 2), (0, 0)))         # (N,31,31,20)
    S = jnp.stack([xt2[:, ky:ky + 28] for ky in range(4)], axis=2)  # (N,28,4,31,20)
    S = S.reshape(N * 28, 4 * 31 * 20)                          # (56, 2480)
    resid = x.reshape(N * 28, 28)                               # rows (n,y), lanes x
    e = fused_matmul(S, prep["w_t2"], prep["bst_t2"], act="sigmoid", resid=resid)
    e = e[:N * 28, :28].reshape(N, 28 * 28)                     # (N, 784)

    # cat([z, e], dim=1)
    return jnp.concatenate([z, e], axis=1)                      # (N, 794)


forward = jax.jit(_forward, static_argnames=("enc_mode",))


# ----------------------------- Main -----------------------------

if __name__ == "__main__":
    key = jax.random.PRNGKey(0)
    pkey, xkey, nkey = jax.random.split(key, 3)
    params = init_params(pkey)
    prep = prepare_params(params)        # one-time prep, outside the jitted path
    # The module hard-wires 28x28x1 inputs (Linear(500) after the encoder, f - x at the end).
    x = jax.random.uniform(xkey, (2, 1, 28, 28), jnp.float32)
    # torch.randn(z.shape) replaced by deterministic JAX noise, shape (N, 10).
    noise = jax.random.normal(nkey, (2, 10), jnp.float32)
    out = forward(prep, x, noise, enc_mode=1)
    out = jax.block_until_ready(out)
    assert out.shape == (2, 794), out.shape
    assert bool(jnp.all(jnp.isfinite(out)))
    print("KERNEL_OK")
</pallas_src>

<mosaic_0001>
module attributes {stable_mosaic.version = 11 : i64} {
  func.func @_fused_matmul_kernel(%arg0: i32, %arg1: memref<1264x16xbf16, #tpu.memory_space<vmem>>, %arg2: memref<16x128xbf16, #tpu.memory_space<vmem>>, %arg3: memref<8x128xf32, #tpu.memory_space<vmem>>, %arg4: memref<1264x128xf32, #tpu.memory_space<vmem>>) attributes {dimension_semantics = [#tpu.dimension_semantics<parallel>], iteration_bounds = array<i64: 1>, scalar_prefetch = 0 : i64, scratch_operands = 0 : i64, tpu.core_type = #tpu.core_type<tc>, window_params = [{transform_indices = @transform_0, window_bounds = array<i64: 1264, 16>}, {pipeline_mode = #tpu.pipeline_mode<synchronous>, transform_indices = @transform_1, window_bounds = array<i64: 16, 128>}, {pipeline_mode = #tpu.pipeline_mode<synchronous>, transform_indices = @transform_2, window_bounds = array<i64: 8, 128>}, {transform_indices = @transform_3, window_bounds = array<i64: 1264, 128>}]} {
    %c0 = arith.constant 0 : index
    %c0_0 = arith.constant 0 : index
    %0 = vector.load %arg1[%c0, %c0_0] : memref<1264x16xbf16, #tpu.memory_space<vmem>>, vector<1264x16xbf16>
    %c0_1 = arith.constant 0 : index
    %c0_2 = arith.constant 0 : index
    %1 = vector.load %arg2[%c0_1, %c0_2] : memref<16x128xbf16, #tpu.memory_space<vmem>>, vector<16x128xbf16>
    %cst = arith.constant dense<0.000000e+00> : vector<1264x128xf32>
    %2 = tpu.matmul %0, %1, %cst {dimension_numbers = #tpu.dot_dimension_numbers<[1], [0], [0], [1], [0, 0, 1, 1], [], []>} : vector<1264x16xbf16>, vector<16x128xbf16>, vector<1264x128xf32> -> vector<1264x128xf32>
    %c0_3 = arith.constant 0 : index
    %c0_4 = arith.constant 0 : index
    %3 = vector.load %arg3[%c0_3, %c0_4] : memref<8x128xf32, #tpu.memory_space<vmem>>, vector<8x128xf32>
    %4 = vector.extract_strided_slice %3 {offsets = [0, 0], sizes = [1, 128], strides = [1, 1]} : vector<8x128xf32> to vector<1x128xf32>
    %5 = vector.broadcast %4 : vector<1x128xf32> to vector<1264x128xf32>
    %6 = arith.addf %2, %5 : vector<1264x128xf32>
    %cst_5 = arith.constant 0.000000e+00 : f32
    %7 = vector.broadcast %cst_5 : f32 to vector<1264x128xf32>
    %8 = arith.maximumf %6, %7 : vector<1264x128xf32>
    %9 = vector.extract_strided_slice %3 {offsets = [1, 0], sizes = [1, 128], strides = [1, 1]} : vector<8x128xf32> to vector<1x128xf32>
    %10 = vector.broadcast %9 : vector<1x128xf32> to vector<1264x128xf32>
    %11 = arith.mulf %8, %10 : vector<1264x128xf32>
    %12 = vector.extract_strided_slice %3 {offsets = [2, 0], sizes = [1, 128], strides = [1, 1]} : vector<8x128xf32> to vector<1x128xf32>
    %13 = vector.broadcast %12 : vector<1x128xf32> to vector<1264x128xf32>
    %14 = arith.addf %11, %13 : vector<1264x128xf32>
    %c0_6 = arith.constant 0 : index
    %c0_7 = arith.constant 0 : index
    %15 = vector.load %arg4[%c0_6, %c0_7] : memref<1264x128xf32, #tpu.memory_space<vmem>>, vector<1264x128xf32>
    tpu.vector_store %arg4[%c0_6, %c0_7], %14 {strides = array<i32>} : memref<1264x128xf32, #tpu.memory_space<vmem>>, vector<1264x128xf32>,
    return
  }
  func.func @transform_0(%arg0: i32) -> (i32, i32) {
    %c0_i32 = arith.constant 0 : i32
    %c0_i32_0 = arith.constant 0 : i32
    return %arg0, %c0_i32 : i32, i32
  }
  func.func @transform_1(%arg0: i32) -> (i32, i32) {
    %c0_i32 = arith.constant 0 : i32
    %c0_i32_0 = arith.constant 0 : i32
    %c0_i32_1 = arith.constant 0 : i32
    return %c0_i32, %c0_i32_0 : i32, i32
  }
  func.func @transform_2(%arg0: i32) -> (i32, i32) {
    %c0_i32 = arith.constant 0 : i32
    %c0_i32_0 = arith.constant 0 : i32
    %c0_i32_1 = arith.constant 0 : i32
    return %c0_i32, %c0_i32_0 : i32, i32
  }
  func.func @transform_3(%arg0: i32) -> (i32, i32) {
    %c0_i32 = arith.constant 0 : i32
    %c0_i32_0 = arith.constant 0 : i32
    return %arg0, %c0_i32 : i32, i32
  }
}

module attributes {stable_mosaic.version = 11 : i64} {
  func.func @_fused_matmul_kernel(%arg0: i32, %arg1: memref<256x384xbf16, #tpu.memory_space<vmem>>, %arg2: memref<384x128xbf16, #tpu.memory_space<vmem>>, %arg3: memref<8x128xf32, #tpu.memory_space<vmem>>, %arg4: memref<256x128xf32, #tpu.memory_space<vmem>>) attributes {dimension_semantics = [#tpu.dimension_semantics<parallel>], iteration_bounds = array<i64: 1>, scalar_prefetch = 0 : i64, scratch_operands = 0 : i64, tpu.core_type = #tpu.core_type<tc>, window_params = [{transform_indices = @transform_0, window_bounds = array<i64: 256, 384>}, {pipeline_mode = #tpu.pipeline_mode<synchronous>, transform_indices = @transform_1, window_bounds = array<i64: 384, 128>}, {pipeline_mode = #tpu.pipeline_mode<synchronous>, transform_indices = @transform_2, window_bounds = array<i64: 8, 128>}, {transform_indices = @transform_3, window_bounds = array<i64: 256, 128>}]} {
    %c0 = arith.constant 0 : index
    %c0_0 = arith.constant 0 : index
    %0 = vector.load %arg1[%c0, %c0_0] : memref<256x384xbf16, #tpu.memory_space<vmem>>, vector<256x384xbf16>
    %c0_1 = arith.constant 0 : index
    %c0_2 = arith.constant 0 : index
    %1 = vector.load %arg2[%c0_1, %c0_2] : memref<384x128xbf16, #tpu.memory_space<vmem>>, vector<384x128xbf16>
    %cst = arith.constant dense<0.000000e+00> : vector<256x128xf32>
    %2 = tpu.matmul %0, %1, %cst {dimension_numbers = #tpu.dot_dimension_numbers<[1], [0], [0], [1], [0, 0, 1, 1], [], []>} : vector<256x384xbf16>, vector<384x128xbf16>, vector<256x128xf32> -> vector<256x128xf32>
    %c0_3 = arith.constant 0 : index
    %c0_4 = arith.constant 0 : index
    %3 = vector.load %arg3[%c0_3, %c0_4] : memref<8x128xf32, #tpu.memory_space<vmem>>, vector<8x128xf32>
    %4 = vector.extract_strided_slice %3 {offsets = [0, 0], sizes = [1, 128], strides = [1, 1]} : vector<8x128xf32> to vector<1x128xf32>
    %5 = vector.broadcast %4 : vector<1x128xf32> to vector<256x128xf32>
    %6 = arith.addf %2, %5 : vector<256x128xf32>
    %cst_5 = arith.constant 0.000000e+00 : f32
    %7 = vector.broadcast %cst_5 : f32 to vector<256x128xf32>
    %8 = arith.maximumf %6, %7 : vector<256x128xf32>
    %c0_6 = arith.constant 0 : index
    %c0_7 = arith.constant 0 : index
    %9 = vector.load %arg4[%c0_6, %c0_7] : memref<256x128xf32, #tpu.memory_space<vmem>>, vector<256x128xf32>
    tpu.vector_store %arg4[%c0_6, %c0_7], %8 {strides = array<i32>} : memref<256x128xf32, #tpu.memory_space<vmem>>, vector<256x128xf32>,
    return
  }
  func.func @transform_0(%arg0: i32) -> (i32, i32) {
    %c0_i32 = arith.constant 0 : i32
    %c0_i32_0 = arith.constant 0 : i32
    return %arg0, %c0_i32 : i32, i32
  }
  func.func @transform_1(%arg0: i32) -> (i32, i32) {
    %c0_i32 = arith.constant 0 : i32
    %c0_i32_0 = arith.constant 0 : i32
    %c0_i32_1 = arith.constant 0 : i32
    return %c0_i32, %c0_i32_0 : i32, i32
  }
  func.func @transform_2(%arg0: i32) -> (i32, i32) {
    %c0_i32 = arith.constant 0 : i32
    %c0_i32_0 = arith.constant 0 : i32
    %c0_i32_1 = arith.constant 0 : i32
    return %c0_i32, %c0_i32_0 : i32, i32
  }
  func.func @transform_3(%arg0: i32) -> (i32, i32) {
    %c0_i32 = arith.constant 0 : i32
    %c0_i32_0 = arith.constant 0 : i32
    return %arg0, %c0_i32 : i32, i32
  }
}

module attributes {stable_mosaic.version = 11 : i64} {
  func.func @_dense_chain_kernel(%arg0: i32, %arg1: memref<8x512xbf16, #tpu.memory_space<vmem>>, %arg2: memref<512x256xbf16, #tpu.memory_space<vmem>>, %arg3: memref<8x256xf32, #tpu.memory_space<vmem>>, %arg4: memref<256x128xbf16, #tpu.memory_space<vmem>>, %arg5: memref<8x128xf32, #tpu.memory_space<vmem>>, %arg6: memref<8x128xf32, #tpu.memory_space<vmem>>, %arg7: memref<128x384xbf16, #tpu.memory_space<vmem>>, %arg8: memref<8x384xf32, #tpu.memory_space<vmem>>, %arg9: memref<384x768xbf16, #tpu.memory_space<vmem>>, %arg10: memref<8x768xf32, #tpu.memory_space<vmem>>, %arg11: memref<8x128xf32, #tpu.memory_space<vmem>>, %arg12: memref<8x768xf32, #tpu.memory_space<vmem>>) attributes {dimension_semantics = [#tpu.dimension_semantics<arbitrary>], iteration_bounds = array<i64: 1>, scalar_prefetch = 0 : i64, scratch_operands = 0 : i64, tpu.core_type = #tpu.core_type<tc>, window_params = [{pipeline_mode = #tpu.pipeline_mode<synchronous>, transform_indices = @transform_0, window_bounds = array<i64: 8, 512>}, {pipeline_mode = #tpu.pipeline_mode<synchronous>, transform_indices = @transform_1, window_bounds = array<i64: 512, 256>}, {pipeline_mode = #tpu.pipeline_mode<synchronous>, transform_indices = @transform_2, window_bounds = array<i64: 8, 256>}, {pipeline_mode = #tpu.pipeline_mode<synchronous>, transform_indices = @transform_3, window_bounds = array<i64: 256, 128>}, {pipeline_mode = #tpu.pipeline_mode<synchronous>, transform_indices = @transform_4, window_bounds = array<i64: 8, 128>}, {pipeline_mode = #tpu.pipeline_mode<synchronous>, transform_indices = @transform_5, window_bounds = array<i64: 8, 128>}, {pipeline_mode = #tpu.pipeline_mode<synchronous>, transform_indices = @transform_6, window_bounds = array<i64: 128, 384>}, {pipeline_mode = #tpu.pipeline_mode<synchronous>, transform_indices = @transform_7, window_bounds = array<i64: 8, 384>}, {pipeline_mode = #tpu.pipeline_mode<synchronous>, transform_indices = @transform_8, window_bounds = array<i64: 384, 768>}, {pipeline_mode = #tpu.pipeline_mode<synchronous>, transform_indices = @transform_9, window_bounds = array<i64: 8, 768>}, {pipeline_mode = #tpu.pipeline_mode<synchronous>, transform_indices = @transform_10, window_bounds = array<i64: 8, 128>}, {pipeline_mode = #tpu.pipeline_mode<synchronous>, transform_indices = @transform_11, window_bounds = array<i64: 8, 768>}]} {
    %c0 = arith.constant 0 : index
    %c0_0 = arith.constant 0 : index
    %0 = vector.load %arg1[%c0, %c0_0] : memref<8x512xbf16, #tpu.memory_space<vmem>>, vector<8x512xbf16>
    %c0_1 = arith.constant 0 : index
    %c0_2 = arith.constant 0 : index
    %1 = vector.load %arg2[%c0_1, %c0_2] : memref<512x256xbf16, #tpu.memory_space<vmem>>, vector<512x256xbf16>
    %cst = arith.constant dense<0.000000e+00> : vector<8x256xf32>
    %2 = tpu.matmul %0, %1, %cst {dimension_numbers = #tpu.dot_dimension_numbers<[1], [0], [0], [1], [0, 0, 1, 1], [], []>} : vector<8x512xbf16>, vector<512x256xbf16>, vector<8x256xf32> -> vector<8x256xf32>
    %c0_3 = arith.constant 0 : index
    %c0_4 = arith.constant 0 : index
    %3 = vector.load %arg3[%c0_3, %c0_4] : memref<8x256xf32, #tpu.memory_space<vmem>>, vector<8x256xf32>
    %4 = vector.extract_strided_slice %3 {offsets = [0, 0], sizes = [1, 256], strides = [1, 1]} : vector<8x256xf32> to vector<1x256xf32>
    %5 = vector.broadcast %4 : vector<1x256xf32> to vector<8x256xf32>
    %6 = arith.addf %2, %5 : vector<8x256xf32>
    %cst_5 = arith.constant 0.000000e+00 : f32
    %7 = vector.broadcast %cst_5 : f32 to vector<8x256xf32>
    %8 = arith.maximumf %6, %7 : vector<8x256xf32>
    %9 = vector.extract_strided_slice %3 {offsets = [1, 0], sizes = [1, 256], strides = [1, 1]} : vector<8x256xf32> to vector<1x256xf32>
    %10 = vector.broadcast %9 : vector<1x256xf32> to vector<8x256xf32>
    %11 = arith.mulf %8, %10 : vector<8x256xf32>
    %12 = vector.extract_strided_slice %3 {offsets = [2, 0], sizes = [1, 256], strides = [1, 1]} : vector<8x256xf32> to vector<1x256xf32>
    %13 = vector.broadcast %12 : vector<1x256xf32> to vector<8x256xf32>
    %14 = arith.addf %11, %13 : vector<8x256xf32>
    %15 = arith.truncf %14 : vector<8x256xf32> to vector<8x256xbf16>
    %c0_6 = arith.constant 0 : index
    %c0_7 = arith.constant 0 : index
    %16 = vector.load %arg4[%c0_6, %c0_7] : memref<256x128xbf16, #tpu.memory_space<vmem>>, vector<256x128xbf16>
    %cst_8 = arith.constant dense<0.000000e+00> : vector<8x128xf32>
    %17 = tpu.matmul %15, %16, %cst_8 {dimension_numbers = #tpu.dot_dimension_numbers<[1], [0], [0], [1], [0, 0, 1, 1], [], []>} : vector<8x256xbf16>, vector<256x128xbf16>, vector<8x128xf32> -> vector<8x128xf32>
    %c0_9 = arith.constant 0 : index
    %c0_10 = arith.constant 0 : index
    %18 = vector.load %arg5[%c0_9, %c0_10] : memref<8x128xf32, #tpu.memory_space<vmem>>, vector<8x128xf32>
    %19 = vector.extract_strided_slice %18 {offsets = [0, 0], sizes = [1, 128], strides = [1, 1]} : vector<8x128xf32> to vector<1x128xf32>
    %20 = vector.broadcast %19 : vector<1x128xf32> to vector<8x128xf32>
    %21 = arith.addf %17, %20 : vector<8x128xf32>
    %c0_11 = arith.constant 0 : index
    %c0_12 = arith.constant 0 : index
    %22 = vector.load %arg11[%c0_11, %c0_12] : memref<8x128xf32, #tpu.memory_space<vmem>>, vector<8x128xf32>
    tpu.vector_store %arg11[%c0_11, %c0_12], %21 {strides = array<i32>} : memref<8x128xf32, #tpu.memory_space<vmem>>, vector<8x128xf32>,
    %cst_13 = arith.constant 1.000000e+00 : f32
    %23 = vector.broadcast %cst_13 : f32 to vector<8x128xf32>
    %24 = arith.mulf %23, %21 : vector<8x128xf32>
    %c0_14 = arith.constant 0 : index
    %c0_15 = arith.constant 0 : index
    %25 = vector.load %arg6[%c0_14, %c0_15] : memref<8x128xf32, #tpu.memory_space<vmem>>, vector<8x128xf32>
    %cst_16 = arith.constant 1.000000e+00 : f32
    %26 = vector.broadcast %cst_16 : f32 to vector<8x128xf32>
    %27 = arith.mulf %26, %25 : vector<8x128xf32>
    %28 = arith.addf %24, %27 : vector<8x128xf32>
    %29 = arith.truncf %28 : vector<8x128xf32> to vector<8x128xbf16>
    %c0_17 = arith.constant 0 : index
    %c0_18 = arith.constant 0 : index
    %30 = vector.load %arg7[%c0_17, %c0_18] : memref<128x384xbf16, #tpu.memory_space<vmem>>, vector<128x384xbf16>
    %cst_19 = arith.constant dense<0.000000e+00> : vector<8x384xf32>
    %31 = tpu.matmul %29, %30, %cst_19 {dimension_numbers = #tpu.dot_dimension_numbers<[1], [0], [0], [1], [0, 0, 1, 1], [], []>} : vector<8x128xbf16>, vector<128x384xbf16>, vector<8x384xf32> -> vector<8x384xf32>
    %c0_20 = arith.constant 0 : index
    %c0_21 = arith.constant 0 : index
    %32 = vector.load %arg8[%c0_20, %c0_21] : memref<8x384xf32, #tpu.memory_space<vmem>>, vector<8x384xf32>
    %33 = vector.extract_strided_slice %32 {offsets = [0, 0], sizes = [1, 384], strides = [1, 1]} : vector<8x384xf32> to vector<1x384xf32>
    %34 = vector.broadcast %33 : vector<1x384xf32> to vector<8x384xf32>
    %35 = arith.addf %31, %34 : vector<8x384xf32>
    %cst_22 = arith.constant 0.000000e+00 : f32
    %36 = vector.broadcast %cst_22 : f32 to vector<8x384xf32>
    %37 = arith.maximumf %35, %36 : vector<8x384xf32>
    %38 = vector.extract_strided_slice %32 {offsets = [1, 0], sizes = [1, 384], strides = [1, 1]} : vector<8x384xf32> to vector<1x384xf32>
    %39 = vector.broadcast %38 : vector<1x384xf32> to vector<8x384xf32>
    %40 = arith.mulf %37, %39 : vector<8x384xf32>
    %41 = vector.extract_strided_slice %32 {offsets = [2, 0], sizes = [1, 384], strides = [1, 1]} : vector<8x384xf32> to vector<1x384xf32>
    %42 = vector.broadcast %41 : vector<1x384xf32> to vector<8x384xf32>
    %43 = arith.addf %40, %42 : vector<8x384xf32>
    %44 = arith.truncf %43 : vector<8x384xf32> to vector<8x384xbf16>
    %c0_23 = arith.constant 0 : index
    %c0_24 = arith.constant 0 : index
    %45 = vector.load %arg9[%c0_23, %c0_24] : memref<384x768xbf16, #tpu.memory_space<vmem>>, vector<384x768xbf16>
    %cst_25 = arith.constant dense<0.000000e+00> : vector<8x768xf32>
    %46 = tpu.matmul %44, %45, %cst_25 {dimension_numbers = #tpu.dot_dimension_numbers<[1], [0], [0], [1], [0, 0, 1, 1], [], []>} : vector<8x384xbf16>, vector<384x768xbf16>, vector<8x768xf32> -> vector<8x768xf32>
    %c0_26 = arith.constant 0 : index
    %c0_27 = arith.constant 0 : index
    %47 = vector.load %arg10[%c0_26, %c0_27] : memref<8x768xf32, #tpu.memory_space<vmem>>, vector<8x768xf32>
    %48 = vector.extract_strided_slice %47 {offsets = [0, 0], sizes = [1, 768], strides = [1, 1]} : vector<8x768xf32> to vector<1x768xf32>
    %49 = vector.broadcast %48 : vector<1x768xf32> to vector<8x768xf32>
    %50 = arith.addf %46, %49 : vector<8x768xf32>
    %cst_28 = arith.constant 0.000000e+00 : f32
    %51 = vector.broadcast %cst_28 : f32 to vector<8x768xf32>
    %52 = arith.maximumf %50, %51 : vector<8x768xf32>
    %53 = vector.extract_strided_slice %47 {offsets = [1, 0], sizes = [1, 768], strides = [1, 1]} : vector<8x768xf32> to vector<1x768xf32>
    %54 = vector.broadcast %53 : vector<1x768xf32> to vector<8x768xf32>
    %55 = arith.mulf %52, %54 : vector<8x768xf32>
    %56 = vector.extract_strided_slice %47 {offsets = [2, 0], sizes = [1, 768], strides = [1, 1]} : vector<8x768xf32> to vector<1x768xf32>
    %57 = vector.broadcast %56 : vector<1x768xf32> to vector<8x768xf32>
    %58 = arith.addf %55, %57 : vector<8x768xf32>
    %c0_29 = arith.constant 0 : index
    %c0_30 = arith.constant 0 : index
    %59 = vector.load %arg12[%c0_29, %c0_30] : memref<8x768xf32, #tpu.memory_space<vmem>>, vector<8x768xf32>
    tpu.vector_store %arg12[%c0_29, %c0_30], %58 {strides = array<i32>} : memref<8x768xf32, #tpu.memory_space<vmem>>, vector<8x768xf32>,
    return
  }
  func.func @transform_0(%arg0: i32) -> (i32, i32) {
    %c0_i32 = arith.constant 0 : i32
    %c0_i32_0 = arith.constant 0 : i32
    %c0_i32_1 = arith.constant 0 : i32
    return %c0_i32, %c0_i32_0 : i32, i32
  }
  func.func @transform_1(%arg0: i32) -> (i32, i32) {
    %c0_i32 = arith.constant 0 : i32
    %c0_i32_0 = arith.constant 0 : i32
    %c0_i32_1 = arith.constant 0 : i32
    return %c0_i32, %c0_i32_0 : i32, i32
  }
  func.func @transform_2(%arg0: i32) -> (i32, i32) {
    %c0_i32 = arith.constant 0 : i32
    %c0_i32_0 = arith.constant 0 : i32
    %c0_i32_1 = arith.constant 0 : i32
    return %c0_i32, %c0_i32_0 : i32, i32
  }
  func.func @transform_3(%arg0: i32) -> (i32, i32) {
    %c0_i32 = arith.constant 0 : i32
    %c0_i32_0 = arith.constant 0 : i32
    %c0_i32_1 = arith.constant 0 : i32
    return %c0_i32, %c0_i32_0 : i32, i32
  }
  func.func @transform_4(%arg0: i32) -> (i32, i32) {
    %c0_i32 = arith.constant 0 : i32
    %c0_i32_0 = arith.constant 0 : i32
    %c0_i32_1 = arith.constant 0 : i32
    return %c0_i32, %c0_i32_0 : i32, i32
  }
  func.func @transform_5(%arg0: i32) -> (i32, i32) {
    %c0_i32 = arith.constant 0 : i32
    %c0_i32_0 = arith.constant 0 : i32
    %c0_i32_1 = arith.constant 0 : i32
    return %c0_i32, %c0_i32_0 : i32, i32
  }
  func.func @transform_6(%arg0: i32) -> (i32, i32) {
    %c0_i32 = arith.constant 0 : i32
    %c0_i32_0 = arith.constant 0 : i32
    %c0_i32_1 = arith.constant 0 : i32
    return %c0_i32, %c0_i32_0 : i32, i32
  }
  func.func @transform_7(%arg0: i32) -> (i32, i32) {
    %c0_i32 = arith.constant 0 : i32
    %c0_i32_0 = arith.constant 0 : i32
    %c0_i32_1 = arith.constant 0 : i32
    return %c0_i32, %c0_i32_0 : i32, i32
  }
  func.func @transform_8(%arg0: i32) -> (i32, i32) {
    %c0_i32 = arith.constant 0 : i32
    %c0_i32_0 = arith.constant 0 : i32
    %c0_i32_1 = arith.constant 0 : i32
    return %c0_i32, %c0_i32_0 : i32, i32
  }
  func.func @transform_9(%arg0: i32) -> (i32, i32) {
    %c0_i32 = arith.constant 0 : i32
    %c0_i32_0 = arith.constant 0 : i32
    %c0_i32_1 = arith.constant 0 : i32
    return %c0_i32, %c0_i32_0 : i32, i32
  }
  func.func @transform_10(%arg0: i32) -> (i32, i32) {
    %c0_i32 = arith.constant 0 : i32
    %c0_i32_0 = arith.constant 0 : i32
    %c0_i32_1 = arith.constant 0 : i32
    return %c0_i32, %c0_i32_0 : i32, i32
  }
  func.func @transform_11(%arg0: i32) -> (i32, i32) {
    %c0_i32 = arith.constant 0 : i32
    %c0_i32_0 = arith.constant 0 : i32
    %c0_i32_1 = arith.constant 0 : i32
    return %c0_i32, %c0_i32_0 : i32, i32
  }
}

module attributes {stable_mosaic.version = 11 : i64} {
  func.func @_fused_matmul_kernel(%arg0: i32, %arg1: memref<48x36xbf16, #tpu.memory_space<vmem>>, %arg2: memref<36x1024xbf16, #tpu.memory_space<vmem>>, %arg3: memref<8x1024xf32, #tpu.memory_space<vmem>>, %arg4: memref<48x1024xf32, #tpu.memory_space<vmem>>) attributes {dimension_semantics = [#tpu.dimension_semantics<parallel>], iteration_bounds = array<i64: 1>, scalar_prefetch = 0 : i64, scratch_operands = 0 : i64, tpu.core_type = #tpu.core_type<tc>, window_params = [{transform_indices = @transform_0, window_bounds = array<i64: 48, 36>}, {pipeline_mode = #tpu.pipeline_mode<synchronous>, transform_indices = @transform_1, window_bounds = array<i64: 36, 1024>}, {pipeline_mode = #tpu.pipeline_mode<synchronous>, transform_indices = @transform_2, window_bounds = array<i64: 8, 1024>}, {transform_indices = @transform_3, window_bounds = array<i64: 48, 1024>}]} {
    %c0 = arith.constant 0 : index
    %c0_0 = arith.constant 0 : index
    %0 = vector.load %arg1[%c0, %c0_0] : memref<48x36xbf16, #tpu.memory_space<vmem>>, vector<48x36xbf16>
    %c0_1 = arith.constant 0 : index
    %c0_2 = arith.constant 0 : index
    %1 = vector.load %arg2[%c0_1, %c0_2] : memref<36x1024xbf16, #tpu.memory_space<vmem>>, vector<36x1024xbf16>
    %cst = arith.constant dense<0.000000e+00> : vector<48x1024xf32>
    %2 = tpu.matmul %0, %1, %cst {dimension_numbers = #tpu.dot_dimension_numbers<[1], [0], [0], [1], [0, 0, 1, 1], [], []>} : vector<48x36xbf16>, vector<36x1024xbf16>, vector<48x1024xf32> -> vector<48x1024xf32>
    %c0_3 = arith.constant 0 : index
    %c0_4 = arith.constant 0 : index
    %3 = vector.load %arg3[%c0_3, %c0_4] : memref<8x1024xf32, #tpu.memory_space<vmem>>, vector<8x1024xf32>
    %4 = vector.extract_strided_slice %3 {offsets = [0, 0], sizes = [1, 1024], strides = [1, 1]} : vector<8x1024xf32> to vector<1x1024xf32>
    %5 = vector.broadcast %4 : vector<1x1024xf32> to vector<48x1024xf32>
    %6 = arith.addf %2, %5 : vector<48x1024xf32>
    %c0_5 = arith.constant 0 : index
    %c0_6 = arith.constant 0 : index
    %7 = vector.load %arg4[%c0_5, %c0_6] : memref<48x1024xf32, #tpu.memory_space<vmem>>, vector<48x1024xf32>
    tpu.vector_store %arg4[%c0_5, %c0_6], %6 {strides = array<i32>} : memref<48x1024xf32, #tpu.memory_space<vmem>>, vector<48x1024xf32>,
    return
  }
  func.func @transform_0(%arg0: i32) -> (i32, i32) {
    %c0_i32 = arith.constant 0 : i32
    %c0_i32_0 = arith.constant 0 : i32
    return %arg0, %c0_i32 : i32, i32
  }
  func.func @transform_1(%arg0: i32) -> (i32, i32) {
    %c0_i32 = arith.constant 0 : i32
    %c0_i32_0 = arith.constant 0 : i32
    %c0_i32_1 = arith.constant 0 : i32
    return %c0_i32, %c0_i32_0 : i32, i32
  }
  func.func @transform_2(%arg0: i32) -> (i32, i32) {
    %c0_i32 = arith.constant 0 : i32
    %c0_i32_0 = arith.constant 0 : i32
    %c0_i32_1 = arith.constant 0 : i32
    return %c0_i32, %c0_i32_0 : i32, i32
  }
  func.func @transform_3(%arg0: i32) -> (i32, i32) {
    %c0_i32 = arith.constant 0 : i32
    %c0_i32_0 = arith.constant 0 : i32
    return %arg0, %c0_i32 : i32, i32
  }
}

module attributes {stable_mosaic.version = 11 : i64} {
  func.func @_fused_matmul_kernel(%arg0: i32, %arg1: memref<1472x384xbf16, #tpu.memory_space<vmem>>, %arg2: memref<384x128xbf16, #tpu.memory_space<vmem>>, %arg3: memref<8x128xf32, #tpu.memory_space<vmem>>, %arg4: memref<1472x128xf32, #tpu.memory_space<vmem>>) attributes {dimension_semantics = [#tpu.dimension_semantics<parallel>], iteration_bounds = array<i64: 1>, scalar_prefetch = 0 : i64, scratch_operands = 0 : i64, tpu.core_type = #tpu.core_type<tc>, window_params = [{transform_indices = @transform_0, window_bounds = array<i64: 1472, 384>}, {pipeline_mode = #tpu.pipeline_mode<synchronous>, transform_indices = @transform_1, window_bounds = array<i64: 384, 128>}, {pipeline_mode = #tpu.pipeline_mode<synchronous>, transform_indices = @transform_2, window_bounds = array<i64: 8, 128>}, {transform_indices = @transform_3, window_bounds = array<i64: 1472, 128>}]} {
    %c0 = arith.constant 0 : index
    %c0_0 = arith.constant 0 : index
    %0 = vector.load %arg1[%c0, %c0_0] : memref<1472x384xbf16, #tpu.memory_space<vmem>>, vector<1472x384xbf16>
    %c0_1 = arith.constant 0 : index
    %c0_2 = arith.constant 0 : index
    %1 = vector.load %arg2[%c0_1, %c0_2] : memref<384x128xbf16, #tpu.memory_space<vmem>>, vector<384x128xbf16>
    %cst = arith.constant dense<0.000000e+00> : vector<1472x128xf32>
    %2 = tpu.matmul %0, %1, %cst {dimension_numbers = #tpu.dot_dimension_numbers<[1], [0], [0], [1], [0, 0, 1, 1], [], []>} : vector<1472x384xbf16>, vector<384x128xbf16>, vector<1472x128xf32> -> vector<1472x128xf32>
    %c0_3 = arith.constant 0 : index
    %c0_4 = arith.constant 0 : index
    %3 = vector.load %arg3[%c0_3, %c0_4] : memref<8x128xf32, #tpu.memory_space<vmem>>, vector<8x128xf32>
    %4 = vector.extract_strided_slice %3 {offsets = [0, 0], sizes = [1, 128], strides = [1, 1]} : vector<8x128xf32> to vector<1x128xf32>
    %5 = vector.broadcast %4 : vector<1x128xf32> to vector<1472x128xf32>
    %6 = arith.addf %2, %5 : vector<1472x128xf32>
    %cst_5 = arith.constant 0.000000e+00 : f32
    %7 = vector.broadcast %cst_5 : f32 to vector<1472x128xf32>
    %8 = arith.maximumf %6, %7 : vector<1472x128xf32>
    %9 = vector.extract_strided_slice %3 {offsets = [1, 0], sizes = [1, 128], strides = [1, 1]} : vector<8x128xf32> to vector<1x128xf32>
    %10 = vector.broadcast %9 : vector<1x128xf32> to vector<1472x128xf32>
    %11 = arith.mulf %8, %10 : vector<1472x128xf32>
    %12 = vector.extract_strided_slice %3 {offsets = [2, 0], sizes = [1, 128], strides = [1, 1]} : vector<8x128xf32> to vector<1x128xf32>
    %13 = vector.broadcast %12 : vector<1x128xf32> to vector<1472x128xf32>
    %14 = arith.addf %11, %13 : vector<1472x128xf32>
    %c0_6 = arith.constant 0 : index
    %c0_7 = arith.constant 0 : index
    %15 = vector.load %arg4[%c0_6, %c0_7] : memref<1472x128xf32, #tpu.memory_space<vmem>>, vector<1472x128xf32>
    tpu.vector_store %arg4[%c0_6, %c0_7], %14 {strides = array<i32>} : memref<1472x128xf32, #tpu.memory_space<vmem>>, vector<1472x128xf32>,
    return
  }
  func.func @transform_0(%arg0: i32) -> (i32, i32) {
    %c0_i32 = arith.constant 0 : i32
    %c0_i32_0 = arith.constant 0 : i32
    return %arg0, %c0_i32 : i32, i32
  }
  func.func @transform_1(%arg0: i32) -> (i32, i32) {
    %c0_i32 = arith.constant 0 : i32
    %c0_i32_0 = arith.constant 0 : i32
    %c0_i32_1 = arith.constant 0 : i32
    return %c0_i32, %c0_i32_0 : i32, i32
  }
  func.func @transform_2(%arg0: i32) -> (i32, i32) {
    %c0_i32 = arith.constant 0 : i32
    %c0_i32_0 = arith.constant 0 : i32
    %c0_i32_1 = arith.constant 0 : i32
    return %c0_i32, %c0_i32_0 : i32, i32
  }
  func.func @transform_3(%arg0: i32) -> (i32, i32) {
    %c0_i32 = arith.constant 0 : i32
    %c0_i32_0 = arith.constant 0 : i32
    return %arg0, %c0_i32 : i32, i32
  }
}

module attributes {stable_mosaic.version = 11 : i64} {
  func.func @_fused_matmul_kernel(%arg0: i32, %arg1: memref<64x2560xbf16, #tpu.memory_space<vmem>>, %arg2: memref<2560x128xbf16, #tpu.memory_space<vmem>>, %arg3: memref<8x128xf32, #tpu.memory_space<vmem>>, %arg4: memref<64x128xf32, #tpu.memory_space<vmem>>, %arg5: memref<64x128xf32, #tpu.memory_space<vmem>>) attributes {dimension_semantics = [#tpu.dimension_semantics<parallel>], iteration_bounds = array<i64: 1>, scalar_prefetch = 0 : i64, scratch_operands = 0 : i64, tpu.core_type = #tpu.core_type<tc>, window_params = [{transform_indices = @transform_0, window_bounds = array<i64: 64, 2560>}, {pipeline_mode = #tpu.pipeline_mode<synchronous>, transform_indices = @transform_1, window_bounds = array<i64: 2560, 128>}, {pipeline_mode = #tpu.pipeline_mode<synchronous>, transform_indices = @transform_2, window_bounds = array<i64: 8, 128>}, {transform_indices = @transform_3, window_bounds = array<i64: 64, 128>}, {transform_indices = @transform_4, window_bounds = array<i64: 64, 128>}]} {
    %c0 = arith.constant 0 : index
    %c0_0 = arith.constant 0 : index
    %0 = vector.load %arg1[%c0, %c0_0] : memref<64x2560xbf16, #tpu.memory_space<vmem>>, vector<64x2560xbf16>
    %c0_1 = arith.constant 0 : index
    %c0_2 = arith.constant 0 : index
    %1 = vector.load %arg2[%c0_1, %c0_2] : memref<2560x128xbf16, #tpu.memory_space<vmem>>, vector<2560x128xbf16>
    %cst = arith.constant dense<0.000000e+00> : vector<64x128xf32>
    %2 = tpu.matmul %0, %1, %cst {dimension_numbers = #tpu.dot_dimension_numbers<[1], [0], [0], [1], [0, 0, 1, 1], [], []>} : vector<64x2560xbf16>, vector<2560x128xbf16>, vector<64x128xf32> -> vector<64x128xf32>
    %c0_3 = arith.constant 0 : index
    %c0_4 = arith.constant 0 : index
    %3 = vector.load %arg3[%c0_3, %c0_4] : memref<8x128xf32, #tpu.memory_space<vmem>>, vector<8x128xf32>
    %4 = vector.extract_strided_slice %3 {offsets = [0, 0], sizes = [1, 128], strides = [1, 1]} : vector<8x128xf32> to vector<1x128xf32>
    %5 = vector.broadcast %4 : vector<1x128xf32> to vector<64x128xf32>
    %6 = arith.addf %2, %5 : vector<64x128xf32>
    %7 = arith.negf %6 : vector<64x128xf32>
    %8 = math.exp %7 : vector<64x128xf32>
    %cst_5 = arith.constant 1.000000e+00 : f32
    %9 = vector.broadcast %cst_5 : f32 to vector<64x128xf32>
    %10 = arith.addf %9, %8 : vector<64x128xf32>
    %11 = arith.divf %9, %10 : vector<64x128xf32>
    %c0_6 = arith.constant 0 : index
    %c0_7 = arith.constant 0 : index
    %12 = vector.load %arg4[%c0_6, %c0_7] : memref<64x128xf32, #tpu.memory_space<vmem>>, vector<64x128xf32>
    %13 = arith.subf %11, %12 : vector<64x128xf32>
    %c0_8 = arith.constant 0 : index
    %c0_9 = arith.constant 0 : index
    %14 = vector.load %arg5[%c0_8, %c0_9] : memref<64x128xf32, #tpu.memory_space<vmem>>, vector<64x128xf32>
    tpu.vector_store %arg5[%c0_8, %c0_9], %13 {strides = array<i32>} : memref<64x128xf32, #tpu.memory_space<vmem>>, vector<64x128xf32>,
    return
  }
  func.func @transform_0(%arg0: i32) -> (i32, i32) {
    %c0_i32 = arith.constant 0 : i32
    %c0_i32_0 = arith.constant 0 : i32
    return %arg0, %c0_i32 : i32, i32
  }
  func.func @transform_1(%arg0: i32) -> (i32, i32) {
    %c0_i32 = arith.constant 0 : i32
    %c0_i32_0 = arith.constant 0 : i32
    %c0_i32_1 = arith.constant 0 : i32
    return %c0_i32, %c0_i32_0 : i32, i32
  }
  func.func @transform_2(%arg0: i32) -> (i32, i32) {
    %c0_i32 = arith.constant 0 : i32
    %c0_i32_0 = arith.constant 0 : i32
    %c0_i32_1 = arith.constant 0 : i32
    return %c0_i32, %c0_i32_0 : i32, i32
  }
  func.func @transform_3(%arg0: i32) -> (i32, i32) {
    %c0_i32 = arith.constant 0 : i32
    %c0_i32_0 = arith.constant 0 : i32
    return %arg0, %c0_i32 : i32, i32
  }
  func.func @transform_4(%arg0: i32) -> (i32, i32) {
    %c0_i32 = arith.constant 0 : i32
    %c0_i32_0 = arith.constant 0 : i32
    return %arg0, %c0_i32 : i32, i32
  }
}

</mosaic_0001>

<bundles_post_ra>
// kernel: _forward.6
= control target key start
LH: loop header
LB: loop body
LE: loop exit
PB: predicated region body
PF: predicated region fallthrough
CT: control target
= control target key end

     0   :  { %8 = vsyncpa [#allocation3], 0  ;;  %s4329_s0 = inlined_call_operand.vmem [shape: bf16[1264,16], index: 0, kind: input, shape index: {}]   ;;  %s4330_s1 = inlined_call_operand.hbm [shape: bf16[16,128], index: 1, kind: input, shape index: {}]   ;;  %s4331_s2 = inlined_call_operand.hbm [shape: f32[8,128], index: 2, kind: input, shape index: {}]   ;;  %s4332_s3 = inlined_call_operand.vmem [shape: f32[1264,128], index: 3, kind: output, shape index: {}]  }
   0x1   :  { %9 = vsyncpa [#allocation5], 0  ;;  %s2849_s12 = smov [#allocation2]   ;;  %s2801_s16 = scalar_lea.hbm %s4330_s1, 128 }
   0x2   :  { %s17_s13 = sshll.u32 %s2849_s12, 4  ;;  %p2802_p0 = scmp.ne.s32.totalorder %s4330_s1, %s2801_s16  ;;  %s18_s13 = int_to_ptr.vmem [resolvable:$true] %s17_s13 }
   0x3   :  { %p2805_p1 = scmp.lt.u32.totalorder %s2801_s16, %s4330_s1 }
   0x5   :  { %p2807_p2 = pnand %p2805_p1, %p2802_p0 }
   0x7   :  { %2810 = shalt.err (!%p2807_p2)
}
   0x8   :  { %s2811_s21 = scalar_lea.vmem %s18_s13, 128  ;;  %p2816_p4 = scmp.lt.s32.totalorder %s18_s13, %s18_s13 }
   0x9   :  { %p2812_p3 = scmp.ne.s32.totalorder %s18_s13, %s2811_s21  ;;  %p2817_p5 = scmp.lt.s32.totalorder %s2811_s21, %s2811_s21 }
   0xb   :  { %p2818_p6 = por %p2817_p5, %p2816_p4 }
   0xd   :  { %p2819_p7 = pnand %p2818_p6, %p2812_p3 }
   0xf   :  { %2822 = shalt.err (!%p2819_p7)
}
  0x10   :  { %s2850_s22 = smov 64   ;;  %s2851_s23 = smov 4  }
  0x11   :  { %23 = dma.hbm_to_vmem [thread:$0]  %s4330_s1, 128, %s18_s13, [#allocation3], %s2850_s22, %s2850_s22, %s2851_s23  }
  0x12   :  { %s2852_s26 = smov [#allocation4]   ;;  %s2823_s30 = scalar_lea.hbm %s4331_s2, 128 }
  0x13   :  { %s30_s27 = sshll.u32 %s2852_s26, 4  ;;  %p2824_p8 = scmp.ne.s32.totalorder %s4331_s2, %s2823_s30  ;;  %s31_s27 = int_to_ptr.vmem [resolvable:$true] %s30_s27 }
  0x14   :  { %p2827_p9 = scmp.lt.u32.totalorder %s2823_s30, %s4331_s2 }
  0x16   :  { %p2829_p10 = pnand %p2827_p9, %p2824_p8 }
  0x18   :  { %2832 = shalt.err (!%p2829_p10)
}
  0x19   :  { %s2833_s8 = scalar_lea.vmem %s31_s27, 128  ;;  %p2838_p12 = scmp.lt.s32.totalorder %s31_s27, %s31_s27 }
  0x1a   :  { %p2834_p11 = scmp.ne.s32.totalorder %s31_s27, %s2833_s8  ;;  %p2839_p13 = scmp.lt.s32.totalorder %s2833_s8, %s2833_s8 }
  0x1c   :  { %p2840_p0 = por %p2839_p13, %p2838_p12 }
  0x1e   :  { %p2841_p1 = pnand %p2840_p0, %p2834_p11 }
  0x20   :  { %2844 = shalt.err (!%p2841_p1)
}
  0x21   :  { %33 = dma.hbm_to_vmem [thread:$0]  %s4331_s2, 128, %s31_s27, [#allocation5]  }
  0x22   :  { %2845 = dma.done.wait [#allocation3], 128  }
  0x23   :  { %2846 = vsyncadd [#allocation3], 4294967168 }
  0x24   :  { %2847 = dma.done.wait [#allocation5], 128  }
  0x25   :  { %2848 = vsyncadd [#allocation5], 4294967168  ;;  %v2853_v0 = vmov 0.0   ;;  %vm2854_vm0 = vmmov 0   ;;  %v2721_v1 = vld [vmem:[#allocation2] sm:$0xff]   ;;  %vm607_vm1 = vcmask 130048   ;;  %v202_v54 = vlaneseq }
  0x26   :  { %2395 = vmatprep.subr.bf16.mxu0 %v2853_v0  ;;  %2397 = vmatprep.mubr.msk.bf16.mxu0 %vm2854_vm0, %v2853_v0  ;;  %v2722_v2 = vld [vmem:[%s4329_s0] sm:$0xff]   ;;  %v2724_v4 = vld [vmem:[%s4329_s0 + $0x8] sm:$0xff]   ;;  %v2726_v6 = vld [vmem:[%s4329_s0 + $0x10] sm:$0xff]  }
  0x27   :  { %2713 = vmatprep.subr.bf16.mxu1 %v2853_v0  ;;  %2557 = vmatprep.mubr.msk.bf16.mxu1 %vm2854_vm0, %v2853_v0  ;;  %v2723_v3 = vld [vmem:[%s4329_s0 + $0x140] sm:$0xff]   ;;  %v2725_v5 = vld [vmem:[%s4329_s0 + $0x148] sm:$0xff]   ;;  %v2727_v7 = vld [vmem:[%s4329_s0 + $0x150] sm:$0xff]   ;;  %v203_v55 = vshrl.u32 %v202_v54, 7 }
  0x28   :  { %2396 = vmatpush3.bf16.msra.mxu0 %v2721_v1  ;;  %2714 = vmatpush3.bf16.msra.mxu1 %v2721_v1  ;;  %v2728_v8 = vld [vmem:[%s4329_s0 + $0x18] sm:$0xff]   ;;  %v2730_v10 = vld [vmem:[%s4329_s0 + $0x20] sm:$0xff]   ;;  %v2732_v12 = vld [vmem:[%s4329_s0 + $0x28] sm:$0xff]  }
  0x29   :  { %v2729_v9 = vld [vmem:[%s4329_s0 + $0x158] sm:$0xff]   ;;  %v2731_v11 = vld [vmem:[%s4329_s0 + $0x160] sm:$0xff]   ;;  %v2733_v13 = vld [vmem:[%s4329_s0 + $0x168] sm:$0xff]   ;;  %v204_v57 = vsub.s32 0, %v203_v55  ;;  %v1670_v61 = vsub.s32 1, %v203_v55  ;;  %v1832_v62 = vsub.s32 2, %v203_v55 }
  0x2a   :  { %v2734_v14 = vld [vmem:[%s4329_s0 + $0x30] sm:$0xff]   ;;  %v2736_v16 = vld [vmem:[%s4329_s0 + $0x38] sm:$0xff]   ;;  %v2738_v18 = vld [vmem:[%s4329_s0 + $0x40] sm:$0xff]  }
  0x2b   :  { %2398 = vmatmul.mubr.msk.bf16.vlgmr.msra.gmra.mrb[0].mxu0 %vm607_vm1, %v2722_v2  ;;  %2558 = vmatmul.mubr.msk.bf16.vlgmr.msra.gmra.mrb[0].mxu1 %vm607_vm1, %v2723_v3  ;;  %v2735_v15 = vld [vmem:[%s4329_s0 + $0x170] sm:$0xff]   ;;  %v2737_v17 = vld [vmem:[%s4329_s0 + $0x178] sm:$0xff]   ;;  %v2739_v19 = vld [vmem:[%s4329_s0 + $0x180] sm:$0xff]  }
  0x2c   :  { %2401 = vmatprep.mubr.msk.bf16.mxu0 %vm2854_vm0, %v2853_v0  ;;  %2561 = vmatprep.mubr.msk.bf16.mxu1 %vm2854_vm0, %v2853_v0  ;;  %v2740_v20 = vld [vmem:[%s4329_s0 + $0x48] sm:$0xff]   ;;  %v2742_v22 = vld [vmem:[%s4329_s0 + $0x50] sm:$0xff]   ;;  %v2744_v24 = vld [vmem:[%s4329_s0 + $0x58] sm:$0xff]  }
  0x2d   :  { %v2741_v21 = vld [vmem:[%s4329_s0 + $0x188] sm:$0xff]   ;;  %v2743_v23 = vld [vmem:[%s4329_s0 + $0x190] sm:$0xff]   ;;  %v2745_v25 = vld [vmem:[%s4329_s0 + $0x198] sm:$0xff]  }
  0x2e   :  { %v2746_v26 = vld [vmem:[%s4329_s0 + $0x60] sm:$0xff]   ;;  %v2748_v28 = vld [vmem:[%s4329_s0 + $0x68] sm:$0xff]   ;;  %v2750_v30 = vld [vmem:[%s4329_s0 + $0x70] sm:$0xff]  }
  0x2f   :  { %v2747_v27 = vld [vmem:[%s4329_s0 + $0x1a0] sm:$0xff]   ;;  %v2749_v29 = vld [vmem:[%s4329_s0 + $0x1a8] sm:$0xff]   ;;  %v2751_v31 = vld [vmem:[%s4329_s0 + $0x1b0] sm:$0xff]  }
  0x30   :  { %v2752_v32 = vld [vmem:[%s4329_s0 + $0x78] sm:$0xff]   ;;  %v2754_v34 = vld [vmem:[%s4329_s0 + $0x80] sm:$0xff]   ;;  %v2756_v36 = vld [vmem:[%s4329_s0 + $0x88] sm:$0xff]  }
  0x31   :  { %v2753_v33 = vld [vmem:[%s4329_s0 + $0x1b8] sm:$0xff]   ;;  %v2755_v35 = vld [vmem:[%s4329_s0 + $0x1c0] sm:$0xff]   ;;  %v2757_v37 = vld [vmem:[%s4329_s0 + $0x1c8] sm:$0xff]  }
  0x32   :  { %v2758_v38 = vld [vmem:[%s4329_s0 + $0x90] sm:$0xff]   ;;  %v2760_v40 = vld [vmem:[%s4329_s0 + $0x98] sm:$0xff]   ;;  %v2762_v42 = vld [vmem:[%s4329_s0 + $0xa0] sm:$0xff]  }
  0x33   :  { %2402 = vmatmul.mubr.msk.bf16.gmra.mrb[4].mxu0 %vm607_vm1, %v2724_v4  ;;  %2562 = vmatmul.mubr.msk.bf16.gmra.mrb[4].mxu1 %vm607_vm1, %v2725_v5  ;;  %v2759_v39 = vld [vmem:[%s4329_s0 + $0x1d0] sm:$0xff]   ;;  %v2761_v41 = vld [vmem:[%s4329_s0 + $0x1d8] sm:$0xff]   ;;  %v2763_v43 = vld [vmem:[%s4329_s0 + $0x1e0] sm:$0xff]  }
  0x34   :  { %2405 = vmatprep.mubr.msk.bf16.mxu0 %vm2854_vm0, %v2853_v0  ;;  %2565 = vmatprep.mubr.msk.bf16.mxu1 %vm2854_vm0, %v2853_v0  ;;  %v2764_v44 = vld [vmem:[%s4329_s0 + $0xa8] sm:$0xff]   ;;  %v2766_v46 = vld [vmem:[%s4329_s0 + $0xb0] sm:$0xff]   ;;  %v2768_v48 = vld [vmem:[%s4329_s0 + $0xb8] sm:$0xff]  }
  0x35   :  { %v2765_v45 = vld [vmem:[%s4329_s0 + $0x1e8] sm:$0xff]   ;;  %v2767_v47 = vld [vmem:[%s4329_s0 + $0x1f0] sm:$0xff]   ;;  %v2769_v49 = vld [vmem:[%s4329_s0 + $0x1f8] sm:$0xff]  }
  0x36   :  { %v2770_v50 = vld [vmem:[%s4329_s0 + $0xc0] sm:$0xff]   ;;  %v2772_v52 = vld [vmem:[%s4329_s0 + $0xc8] sm:$0xff]   ;;  %v2774_v56 = vld [vmem:[%s4329_s0 + $0xd0] sm:$0xff]  }
  0x37   :  { %v2771_v51 = vld [vmem:[%s4329_s0 + $0x200] sm:$0xff]   ;;  %v2773_v53 = vld [vmem:[%s4329_s0 + $0x208] sm:$0xff]   ;;  %v2775_v58 = vld [vmem:[%s4329_s0 + $0x210] sm:$0xff]  }
  0x38   :  { %v201_v59 = vld [vmem:[#allocation4] sm:$0xff]  ;;  %v2776_v5 = vld [vmem:[%s4329_s0 + $0xd8] sm:$0xff]  }
  0x39   :  { %v3224_v60 = vrot.slane %v201_v59, %v204_v57  ;;  %v3232_v3 = vrot.slane %v201_v59, %v1670_v61 }
  0x3b   :  { %2406 = vmatmul.mubr.msk.bf16.gmra.mrb[8].mxu0 %vm607_vm1, %v2726_v6  ;;  %2566 = vmatmul.mubr.msk.bf16.gmra.mrb[8].mxu1 %vm607_vm1, %v2727_v7 }
  0x3c   :  { %2409 = vmatprep.mubr.msk.bf16.mxu0 %vm2854_vm0, %v2853_v0  ;;  %2569 = vmatprep.mubr.msk.bf16.mxu1 %vm2854_vm0, %v2853_v0 }
  0x43   :  { %2410 = vmatmul.mubr.msk.bf16.gmra.mrb[12].mxu0 %vm607_vm1, %v2728_v8  ;;  %2570 = vmatmul.mubr.msk.bf16.gmra.mrb[12].mxu1 %vm607_vm1, %v2729_v9  ;;  %v2777_v8 = vld [vmem:[%s4329_s0 + $0x218] sm:$0xff]   ;;  %v3241_v9 = vrot.slane %v201_v59, %v1832_v62  ;;  %v2781_v62 = vld [vmem:[%s4329_s0 + $0x228] sm:$0xff]  }
  0x44   :  { %2413 = vmatprep.mubr.msk.bf16.mxu0 %vm2854_vm0, %v2853_v0  ;;  %2573 = vmatprep.mubr.msk.bf16.mxu1 %vm2854_vm0, %v2853_v0 }
  0x4b   :  { %2414 = vmatmul.mubr.msk.bf16.gmra.mrb[16].mxu0 %vm607_vm1, %v2730_v10  ;;  %2574 = vmatmul.mubr.msk.bf16.gmra.mrb[16].mxu1 %vm607_vm1, %v2731_v11 }
  0x4c   :  { %2417 = vmatprep.mubr.msk.bf16.mxu0 %vm2854_vm0, %v2853_v0  ;;  %2577 = vmatprep.mubr.msk.bf16.mxu1 %vm2854_vm0, %v2853_v0 }
  0x53   :  { %2418 = vmatmul.mubr.msk.bf16.gmra.mrb[20].mxu0 %vm607_vm1, %v2732_v12  ;;  %2578 = vmatmul.mubr.msk.bf16.gmra.mrb[20].mxu1 %vm607_vm1, %v2733_v13 }
  0x54   :  { %2421 = vmatprep.mubr.msk.bf16.mxu0 %vm2854_vm0, %v2853_v0  ;;  %2581 = vmatprep.mubr.msk.bf16.mxu1 %vm2854_vm0, %v2853_v0 }
  0x5b   :  { %2422 = vmatmul.mubr.msk.bf16.gmra.mrb[24].mxu0 %vm607_vm1, %v2734_v14  ;;  %2582 = vmatmul.mubr.msk.bf16.gmra.mrb[24].mxu1 %vm607_vm1, %v2735_v15 }
  0x5c   :  { %2425 = vmatprep.mubr.msk.bf16.mxu0 %vm2854_vm0, %v2853_v0  ;;  %2585 = vmatprep.mubr.msk.bf16.mxu1 %vm2854_vm0, %v2853_v0 }
  0x63   :  { %2426 = vmatmul.mubr.msk.bf16.gmra.mrb[28].mxu0 %vm607_vm1, %v2736_v16  ;;  %2586 = vmatmul.mubr.msk.bf16.gmra.mrb[28].mxu1 %vm607_vm1, %v2737_v17 }
  0x64   :  { %2429 = vmatprep.mubr.msk.bf16.mxu0 %vm2854_vm0, %v2853_v0  ;;  %2589 = vmatprep.mubr.msk.bf16.mxu1 %vm2854_vm0, %v2853_v0 }
  0x6b   :  { %2430 = vmatmul.mubr.msk.bf16.gmra.mrb[32].mxu0 %vm607_vm1, %v2738_v18  ;;  %2590 = vmatmul.mubr.msk.bf16.gmra.mrb[32].mxu1 %vm607_vm1, %v2739_v19 }
  0x6c   :  { %2433 = vmatprep.mubr.msk.bf16.mxu0 %vm2854_vm0, %v2853_v0  ;;  %2593 = vmatprep.mubr.msk.bf16.mxu1 %vm2854_vm0, %v2853_v0 }
  0x73   :  { %2434 = vmatmul.mubr.msk.bf16.gmra.mrb[36].mxu0 %vm607_vm1, %v2740_v20  ;;  %2594 = vmatmul.mubr.msk.bf16.gmra.mrb[36].mxu1 %vm607_vm1, %v2741_v21 }
  0x74   :  { %2437 = vmatprep.mubr.msk.bf16.mxu0 %vm2854_vm0, %v2853_v0  ;;  %2597 = vmatprep.mubr.msk.bf16.mxu1 %vm2854_vm0, %v2853_v0 }
  0x7b   :  { %2438 = vmatmul.mubr.msk.bf16.gmra.mrb[40].mxu0 %vm607_vm1, %v2742_v22  ;;  %2598 = vmatmul.mubr.msk.bf16.gmra.mrb[40].mxu1 %vm607_vm1, %v2743_v23 }
  0x7c   :  { %2441 = vmatprep.mubr.msk.bf16.mxu0 %vm2854_vm0, %v2853_v0  ;;  %2601 = vmatprep.mubr.msk.bf16.mxu1 %vm2854_vm0, %v2853_v0 }
  0x83   :  { %2442 = vmatmul.mubr.msk.bf16.gmra.mrb[44].mxu0 %vm607_vm1, %v2744_v24  ;;  %2602 = vmatmul.mubr.msk.bf16.gmra.mrb[44].mxu1 %vm607_vm1, %v2745_v25 }
  0x84   :  { %2445 = vmatprep.mubr.msk.bf16.mxu0 %vm2854_vm0, %v2853_v0  ;;  %2605 = vmatprep.mubr.msk.bf16.mxu1 %vm2854_vm0, %v2853_v0 }
  0x8b   :  { %2446 = vmatmul.mubr.msk.bf16.gmra.mrb[48].mxu0 %vm607_vm1, %v2746_v26  ;;  %2606 = vmatmul.mubr.msk.bf16.gmra.mrb[48].mxu1 %vm607_vm1, %v2747_v27 }
  0x8c   :  { %2449 = vmatprep.mubr.msk.bf16.mxu0 %vm2854_vm0, %v2853_v0  ;;  %2609 = vmatprep.mubr.msk.bf16.mxu1 %vm2854_vm0, %v2853_v0 }
  0x93   :  { %2450 = vmatmul.mubr.msk.bf16.gmra.mrb[52].mxu0 %vm607_vm1, %v2748_v28  ;;  %2610 = vmatmul.mubr.msk.bf16.gmra.mrb[52].mxu1 %vm607_vm1, %v2749_v29 }
  0x94   :  { %2453 = vmatprep.mubr.msk.bf16.mxu0 %vm2854_vm0, %v2853_v0  ;;  %2613 = vmatprep.mubr.msk.bf16.mxu1 %vm2854_vm0, %v2853_v0 }
  0x9b   :  { %2454 = vmatmul.mubr.msk.bf16.gmra.mrb[56].mxu0 %vm607_vm1, %v2750_v30  ;;  %2614 = vmatmul.mubr.msk.bf16.gmra.mrb[56].mxu1 %vm607_vm1, %v2751_v31 }
  0x9c   :  { %2457 = vmatprep.mubr.msk.bf16.mxu0 %vm2854_vm0, %v2853_v0  ;;  %2617 = vmatprep.mubr.msk.bf16.mxu1 %vm2854_vm0, %v2853_v0 }
  0xa3   :  { %2458 = vmatmul.mubr.msk.bf16.gmra.mrb[60].mxu0 %vm607_vm1, %v2752_v32  ;;  %2618 = vmatmul.mubr.msk.bf16.gmra.mrb[60].mxu1 %vm607_vm1, %v2753_v33  ;;  %v2778_v32 = vld [vmem:[%s4329_s0 + $0xe0] sm:$0xff]  }
  0xa4   :  { %2461 = vmatprep.mubr.msk.bf16.mxu0 %vm2854_vm0, %v2853_v0  ;;  %2621 = vmatprep.mubr.msk.bf16.mxu1 %vm2854_vm0, %v2853_v0 }
  0xab   :  { %2462 = vmatmul.mubr.msk.bf16.gmra.mrb[64].mxu0 %vm607_vm1, %v2754_v34  ;;  %2622 = vmatmul.mubr.msk.bf16.gmra.mrb[64].mxu1 %vm607_vm1, %v2755_v35  ;;  %v2779_v35 = vld [vmem:[%s4329_s0 + $0x220] sm:$0xff]  }
  0xac   :  { %2465 = vmatprep.mubr.msk.bf16.mxu0 %vm2854_vm0, %v2853_v0  ;;  %2625 = vmatprep.mubr.msk.bf16.mxu1 %vm2854_vm0, %v2853_v0 }
  0xb3   :  { %2466 = vmatmul.mubr.msk.bf16.gmra.mrb[68].mxu0 %vm607_vm1, %v2756_v36  ;;  %2626 = vmatmul.mubr.msk.bf16.gmra.mrb[68].mxu1 %vm607_vm1, %v2757_v37 }
  0xb4   :  { %2469 = vmatprep.mubr.msk.bf16.mxu0 %vm2854_vm0, %v2853_v0  ;;  %2629 = vmatprep.mubr.msk.bf16.mxu1 %vm2854_vm0, %v2853_v0 }
  0xbb   :  { %2470 = vmatmul.mubr.msk.bf16.gmra.mrb[72].mxu0 %vm607_vm1, %v2758_v38  ;;  %2630 = vmatmul.mubr.msk.bf16.gmra.mrb[72].mxu1 %vm607_vm1, %v2759_v39 }
  0xbc   :  { %2473 = vmatprep.mubr.msk.bf16.mxu0 %vm2854_vm0, %v2853_v0  ;;  %2633 = vmatprep.mubr.msk.bf16.mxu1 %vm2854_vm0, %v2853_v0 }
  0xc3   :  { %2474 = vmatmul.mubr.msk.bf16.gmra.mrb[76].mxu0 %vm607_vm1, %v2760_v40  ;;  %2634 = vmatmul.mubr.msk.bf16.gmra.mrb[76].mxu1 %vm607_vm1, %v2761_v41 }
  0xc4   :  { %2477 = vmatprep.mubr.msk.bf16.mxu0 %vm2854_vm0, %v2853_v0  ;;  %2637 = vmatprep.mubr.msk.bf16.mxu1 %vm2854_vm0, %v2853_v0 }
  0xcb   :  { %2478 = vmatmul.mubr.msk.bf16.gmra.mrb[80].mxu0 %vm607_vm1, %v2762_v42  ;;  %2638 = vmatmul.mubr.msk.bf16.gmra.mrb[80].mxu1 %vm607_vm1, %v2763_v43 }
  0xcc   :  { %2481 = vmatprep.mubr.msk.bf16.mxu0 %vm2854_vm0, %v2853_v0  ;;  %2641 = vmatprep.mubr.msk.bf16.mxu1 %vm2854_vm0, %v2853_v0 }
  0xd3   :  { %2482 = vmatmul.mubr.msk.bf16.gmra.mrb[84].mxu0 %vm607_vm1, %v2764_v44  ;;  %2642 = vmatmul.mubr.msk.bf16.gmra.mrb[84].mxu1 %vm607_vm1, %v2765_v45 }
  0xd4   :  { %2485 = vmatprep.mubr.msk.bf16.mxu0 %vm2854_vm0, %v2853_v0  ;;  %2645 = vmatprep.mubr.msk.bf16.mxu1 %vm2854_vm0, %v2853_v0 }
  0xdb   :  { %2486 = vmatmul.mubr.msk.bf16.gmra.mrb[88].mxu0 %vm607_vm1, %v2766_v46  ;;  %2646 = vmatmul.mubr.msk.bf16.gmra.mrb[88].mxu1 %vm607_vm1, %v2767_v47 }
  0xdc   :  { %2489 = vmatprep.mubr.msk.bf16.mxu0 %vm2854_vm0, %v2853_v0  ;;  %2649 = vmatprep.mubr.msk.bf16.mxu1 %vm2854_vm0, %v2853_v0 }
  0xe3   :  { %2490 = vmatmul.mubr.msk.bf16.gmra.mrb[92].mxu0 %vm607_vm1, %v2768_v48  ;;  %2650 = vmatmul.mubr.msk.bf16.gmra.mrb[92].mxu1 %vm607_vm1, %v2769_v49 }
  0xe4   :  { %2493 = vmatprep.mubr.msk.bf16.mxu0 %vm2854_vm0, %v2853_v0  ;;  %2653 = vmatprep.mubr.msk.bf16.mxu1 %vm2854_vm0, %v2853_v0 }
  0xeb   :  { %2494 = vmatmul.mubr.msk.bf16.gmra.mrb[96].mxu0 %vm607_vm1, %v2770_v50  ;;  %2654 = vmatmul.mubr.msk.bf16.gmra.mrb[96].mxu1 %vm607_vm1, %v2771_v51 }
  0xec   :  { %2497 = vmatprep.mubr.msk.bf16.mxu0 %vm2854_vm0, %v2853_v0  ;;  %2657 = vmatprep.mubr.msk.bf16.mxu1 %vm2854_vm0, %v2853_v0 }
  0xf3   :  { %2498 = vmatmul.mubr.msk.bf16.gmra.mrb[100].mxu0 %vm607_vm1, %v2772_v52  ;;  %2658 = vmatmul.mubr.msk.bf16.gmra.mrb[100].mxu1 %vm607_vm1, %v2773_v53 }
  0xf4   :  { %2501 = vmatprep.mubr.msk.bf16.mxu0 %vm2854_vm0, %v2853_v0  ;;  %2661 = vmatprep.mubr.msk.bf16.mxu1 %vm2854_vm0, %v2853_v0 }
  0xfb   :  { %2502 = vmatmul.mubr.msk.bf16.gmra.mrb[104].mxu0 %vm607_vm1, %v2774_v56  ;;  %2662 = vmatmul.mubr.msk.bf16.gmra.mrb[104].mxu1 %vm607_vm1, %v2775_v58  ;;  %v2780_v58 = vld [vmem:[%s4329_s0 + $0xe8] sm:$0xff]  }
  0xfc   :  { %2505 = vmatprep.mubr.msk.bf16.mxu0 %vm2854_vm0, %v2853_v0  ;;  %2665 = vmatprep.mubr.msk.bf16.mxu1 %vm2854_vm0, %v2853_v0 }
  0xfe   :  { %v879_v63 = vpop.f32.mrb[0].mxu0  ;;  %v1199_v1 = vpop.f32.mrb[0].mxu1 }
  0xff   :  { %v880_v2 = vadd.f32 %v879_v63, %v3224_v60  ;;  %v2399_v4 = vpop.f32.mrb[1].mxu0  ;;  %v1200_v6 = vadd.f32 %v1199_v1, %v3224_v60  ;;  %v2559_v7 = vpop.f32.mrb[1].mxu1 }
 0x100   :  { %v882_v10 = vpop.f32.mrb[2].mxu0  ;;  %v1202_v11 = vpop.f32.mrb[2].mxu1 }
 0x101   :  { %v1510_v12 = vmax.f32 %v880_v2, 0.0  ;;  %v883_v13 = vadd.f32 %v882_v10, %v3224_v60  ;;  %v2400_v14 = vpop.f32.mrb[3].mxu0  ;;  %v1590_v15 = vmax.f32 %v1200_v6, 0.0  ;;  %v1203_v16 = vadd.f32 %v1202_v11, %v3224_v60  ;;  %v2560_v17 = vpop.f32.mrb[3].mxu1 }
 0x103   :  { %v1672_v18 = vmul.f32 %v3232_v3, %v1510_v12  ;;  %v1511_v19 = vmax.f32 %v883_v13, 0.0  ;;  %2506 = vmatmul.mubr.msk.bf16.gmra.mrb[108].mxu0 %vm607_vm1, %v2776_v5  ;;  %v1752_v20 = vmul.f32 %v3232_v3, %v1590_v15  ;;  %v1591_v21 = vmax.f32 %v1203_v16, 0.0  ;;  %2666 = vmatmul.mubr.msk.bf16.gmra.mrb[108].mxu1 %vm607_vm1, %v2777_v8 }
 0x104   :  { %2509 = vmatprep.mubr.msk.bf16.mxu0 %vm2854_vm0, %v2853_v0  ;;  %2669 = vmatprep.mubr.msk.bf16.mxu1 %vm2854_vm0, %v2853_v0 }
 0x105   :  { %v1834_v22 = vadd.f32 %v3241_v9, %v1672_v18  ;;  %v1673_v23 = vmul.f32 %v3232_v3, %v1511_v19  ;;  %v1914_v24 = vadd.f32 %v3241_v9, %v1752_v20  ;;  %v1753_v25 = vmul.f32 %v3232_v3, %v1591_v21 }
 0x106   :  { %v887_v26 = vpop.f32.mrb[4].mxu0  ;;  %v1207_v27 = vpop.f32.mrb[4].mxu1 }
 0x107   :  { %1992 = vst [vmem:[%s4332_s3] sm:$0xff] %v1834_v22  ;;  %v1835_v28 = vadd.f32 %v3241_v9, %v1673_v23  ;;  %2072 = vst [vmem:[%s4332_s3 + $0x280] sm:$0xff] %v1914_v24  ;;  %v1915_v29 = vadd.f32 %v3241_v9, %v1753_v25  ;;  %v888_v30 = vadd.f32 %v887_v26, %v3224_v60  ;;  %v2403_v31 = vpop.f32.mrb[5].mxu0  ;;  %v2563_v34 = vpop.f32.mrb[5].mxu1  ;;  %v2782_v24 = vld [vmem:[%s4329_s0 + $0xf0] sm:$0xff]  }
 0x108   :  { %v1208_v33 = vadd.f32 %v1207_v27, %v3224_v60  ;;  %v890_v36 = vpop.f32.mrb[6].mxu0  ;;  %v1210_v37 = vpop.f32.mrb[6].mxu1  ;;  %v2783_v27 = vld [vmem:[%s4329_s0 + $0x230] sm:$0xff]  }
 0x109   :  { %1993 = vst [vmem:[%s4332_s3 + $0x8] sm:$0xff] %v1835_v28  ;;  %2073 = vst [vmem:[%s4332_s3 + $0x288] sm:$0xff] %v1915_v29  ;;  %v1512_v38 = vmax.f32 %v888_v30, 0.0  ;;  %v891_v39 = vadd.f32 %v890_v36, %v3224_v60  ;;  %v2404_v40 = vpop.f32.mrb[7].mxu0  ;;  %v1211_v42 = vadd.f32 %v1210_v37, %v3224_v60  ;;  %v2564_v43 = vpop.f32.mrb[7].mxu1 }
 0x10a   :  { %v1592_v41 = vmax.f32 %v1208_v33, 0.0 }
 0x10b   :  { %v1674_v44 = vmul.f32 %v3232_v3, %v1512_v38  ;;  %v1513_v45 = vmax.f32 %v891_v39, 0.0  ;;  %2510 = vmatmul.mubr.msk.bf16.gmra.mrb[112].mxu0 %vm607_vm1, %v2778_v32  ;;  %v1593_v47 = vmax.f32 %v1211_v42, 0.0  ;;  %2670 = vmatmul.mubr.msk.bf16.gmra.mrb[112].mxu1 %vm607_vm1, %v2779_v35 }
 0x10c   :  { %v1754_v46 = vmul.f32 %v3232_v3, %v1592_v41  ;;  %2513 = vmatprep.mubr.msk.bf16.mxu0 %vm2854_vm0, %v2853_v0  ;;  %2673 = vmatprep.mubr.msk.bf16.mxu1 %vm2854_vm0, %v2853_v0 }
 0x10d   :  { %v1836_v48 = vadd.f32 %v3241_v9, %v1674_v44  ;;  %v1675_v49 = vmul.f32 %v3232_v3, %v1513_v45  ;;  %v1755_v51 = vmul.f32 %v3232_v3, %v1593_v47 }
 0x10e   :  { %v1916_v50 = vadd.f32 %v3241_v9, %v1754_v46  ;;  %v895_v52 = vpop.f32.mrb[8].mxu0  ;;  %v1215_v53 = vpop.f32.mrb[8].mxu1 }
 0x10f   :  { %1994 = vst [vmem:[%s4332_s3 + $0x10] sm:$0xff] %v1836_v48  ;;  %v1837_v54 = vadd.f32 %v3241_v9, %v1675_v49  ;;  %v1917_v55 = vadd.f32 %v3241_v9, %v1755_v51  ;;  %v896_v56 = vadd.f32 %v895_v52, %v3224_v60  ;;  %v2407_v57 = vpop.f32.mrb[9].mxu0  ;;  %v1216_v59 = vadd.f32 %v1215_v53, %v3224_v60  ;;  %v2567_v61 = vpop.f32.mrb[9].mxu1  ;;  %v2785_v53 = vld [vmem:[%s4329_s0 + $0x238] sm:$0xff]  }
 0x110   :  { %2074 = vst [vmem:[%s4332_s3 + $0x290] sm:$0xff] %v1916_v50  ;;  %v898_v63 = vpop.f32.mrb[10].mxu0  ;;  %v1218_v1 = vpop.f32.mrb[10].mxu1  ;;  %v2784_v50 = vld [vmem:[%s4329_s0 + $0xf8] sm:$0xff]  }
 0x111   :  { %1995 = vst [vmem:[%s4332_s3 + $0x18] sm:$0xff] %v1837_v54  ;;  %2075 = vst [vmem:[%s4332_s3 + $0x298] sm:$0xff] %v1917_v55  ;;  %v1514_v2 = vmax.f32 %v896_v56, 0.0  ;;  %v899_v4 = vadd.f32 %v898_v63, %v3224_v60  ;;  %v2408_v5 = vpop.f32.mrb[11].mxu0  ;;  %v1594_v6 = vmax.f32 %v1216_v59, 0.0  ;;  %v1219_v7 = vadd.f32 %v1218_v1, %v3224_v60  ;;  %v2568_v8 = vpop.f32.mrb[11].mxu1 }
 0x113   :  { %v1676_v10 = vmul.f32 %v3232_v3, %v1514_v2  ;;  %v1515_v11 = vmax.f32 %v899_v4, 0.0  ;;  %2514 = vmatmul.mubr.msk.bf16.gmra.mrb[116].mxu0 %vm607_vm1, %v2780_v58  ;;  %v1756_v12 = vmul.f32 %v3232_v3, %v1594_v6  ;;  %v1595_v13 = vmax.f32 %v1219_v7, 0.0  ;;  %2674 = vmatmul.mubr.msk.bf16.gmra.mrb[116].mxu1 %vm607_vm1, %v2781_v62 }
 0x114   :  { %2517 = vmatprep.mubr.msk.bf16.mxu0 %vm2854_vm0, %v2853_v0  ;;  %2677 = vmatprep.mubr.msk.bf16.mxu1 %vm2854_vm0, %v2853_v0 }
 0x115   :  { %v1838_v14 = vadd.f32 %v3241_v9, %v1676_v10  ;;  %v1677_v15 = vmul.f32 %v3232_v3, %v1515_v11  ;;  %v1918_v16 = vadd.f32 %v3241_v9, %v1756_v12  ;;  %v1757_v17 = vmul.f32 %v3232_v3, %v1595_v13 }
 0x116   :  { %v903_v18 = vpop.f32.mrb[12].mxu0  ;;  %v1223_v19 = vpop.f32.mrb[12].mxu1 }
 0x117   :  { %1996 = vst [vmem:[%s4332_s3 + $0x20] sm:$0xff] %v1838_v14  ;;  %v1839_v20 = vadd.f32 %v3241_v9, %v1677_v15  ;;  %2076 = vst [vmem:[%s4332_s3 + $0x2a0] sm:$0xff] %v1918_v16  ;;  %v1919_v21 = vadd.f32 %v3241_v9, %v1757_v17  ;;  %v904_v22 = vadd.f32 %v903_v18, %v3224_v60  ;;  %v2411_v23 = vpop.f32.mrb[13].mxu0  ;;  %v2571_v26 = vpop.f32.mrb[13].mxu1  ;;  %v2786_v16 = vld [vmem:[%s4329_s0 + $0x100] sm:$0xff]  }
 0x118   :  { %v1224_v25 = vadd.f32 %v1223_v19, %v3224_v60  ;;  %v906_v28 = vpop.f32.mrb[14].mxu0  ;;  %v1226_v29 = vpop.f32.mrb[14].mxu1  ;;  %v2787_v19 = vld [vmem:[%s4329_s0 + $0x240] sm:$0xff]  }
 0x119   :  { %1997 = vst [vmem:[%s4332_s3 + $0x28] sm:$0xff] %v1839_v20  ;;  %2077 = vst [vmem:[%s4332_s3 + $0x2a8] sm:$0xff] %v1919_v21  ;;  %v1516_v30 = vmax.f32 %v904_v22, 0.0  ;;  %v907_v31 = vadd.f32 %v906_v28, %v3224_v60  ;;  %v2412_v32 = vpop.f32.mrb[15].mxu0  ;;  %v1227_v34 = vadd.f32 %v1226_v29, %v3224_v60  ;;  %v2572_v35 = vpop.f32.mrb[15].mxu1 }
 0x11a   :  { %v1596_v33 = vmax.f32 %v1224_v25, 0.0 }
 0x11b   :  { %v1678_v36 = vmul.f32 %v3232_v3, %v1516_v30  ;;  %v1517_v37 = vmax.f32 %v907_v31, 0.0  ;;  %2518 = vmatmul.mubr.msk.bf16.gmra.mrb[120].mxu0 %vm607_vm1, %v2782_v24  ;;  %v1597_v39 = vmax.f32 %v1227_v34, 0.0  ;;  %2678 = vmatmul.mubr.msk.bf16.gmra.mrb[120].mxu1 %vm607_vm1, %v2783_v27 }
 0x11c   :  { %v1758_v38 = vmul.f32 %v3232_v3, %v1596_v33  ;;  %2521 = vmatprep.mubr.msk.bf16.mxu0 %vm2854_vm0, %v2853_v0  ;;  %2681 = vmatprep.mubr.msk.bf16.mxu1 %vm2854_vm0, %v2853_v0 }
 0x11d   :  { %v1840_v40 = vadd.f32 %v3241_v9, %v1678_v36  ;;  %v1679_v41 = vmul.f32 %v3232_v3, %v1517_v37  ;;  %v1759_v43 = vmul.f32 %v3232_v3, %v1597_v39 }
 0x11e   :  { %v1920_v42 = vadd.f32 %v3241_v9, %v1758_v38  ;;  %v911_v44 = vpop.f32.mrb[16].mxu0  ;;  %v1231_v45 = vpop.f32.mrb[16].mxu1 }
 0x11f   :  { %1998 = vst [vmem:[%s4332_s3 + $0x30] sm:$0xff] %v1840_v40  ;;  %v1841_v46 = vadd.f32 %v3241_v9, %v1679_v41  ;;  %v1921_v47 = vadd.f32 %v3241_v9, %v1759_v43  ;;  %v912_v48 = vadd.f32 %v911_v44, %v3224_v60  ;;  %v2415_v49 = vpop.f32.mrb[17].mxu0  ;;  %v1232_v51 = vadd.f32 %v1231_v45, %v3224_v60  ;;  %v2575_v52 = vpop.f32.mrb[17].mxu1  ;;  %v2789_v45 = vld [vmem:[%s4329_s0 + $0x248] sm:$0xff]  }
 0x120   :  { %2078 = vst [vmem:[%s4332_s3 + $0x2b0] sm:$0xff] %v1920_v42  ;;  %v914_v54 = vpop.f32.mrb[18].mxu0  ;;  %v1234_v55 = vpop.f32.mrb[18].mxu1  ;;  %v2788_v42 = vld [vmem:[%s4329_s0 + $0x108] sm:$0xff]  }
 0x121   :  { %1999 = vst [vmem:[%s4332_s3 + $0x38] sm:$0xff] %v1841_v46  ;;  %2079 = vst [vmem:[%s4332_s3 + $0x2b8] sm:$0xff] %v1921_v47  ;;  %v1518_v56 = vmax.f32 %v912_v48, 0.0  ;;  %v915_v57 = vadd.f32 %v914_v54, %v3224_v60  ;;  %v2416_v58 = vpop.f32.mrb[19].mxu0  ;;  %v1598_v59 = vmax.f32 %v1232_v51, 0.0  ;;  %v1235_v61 = vadd.f32 %v1234_v55, %v3224_v60  ;;  %v2576_v62 = vpop.f32.mrb[19].mxu1 }
 0x123   :  { %v1680_v63 = vmul.f32 %v3232_v3, %v1518_v56  ;;  %v1519_v1 = vmax.f32 %v915_v57, 0.0  ;;  %2522 = vmatmul.mubr.msk.bf16.gmra.mrb[124].mxu0 %vm607_vm1, %v2784_v50  ;;  %v1760_v2 = vmul.f32 %v3232_v3, %v1598_v59  ;;  %v1599_v4 = vmax.f32 %v1235_v61, 0.0  ;;  %2682 = vmatmul.mubr.msk.bf16.gmra.mrb[124].mxu1 %vm607_vm1, %v2785_v53 }
 0x124   :  { %2525 = vmatprep.mubr.msk.bf16.mxu0 %vm2854_vm0, %v2853_v0  ;;  %2685 = vmatprep.mubr.msk.bf16.mxu1 %vm2854_vm0, %v2853_v0 }
 0x125   :  { %v1842_v5 = vadd.f32 %v3241_v9, %v1680_v63  ;;  %v1681_v6 = vmul.f32 %v3232_v3, %v1519_v1  ;;  %v1922_v7 = vadd.f32 %v3241_v9, %v1760_v2  ;;  %v1761_v8 = vmul.f32 %v3232_v3, %v1599_v4 }
 0x126   :  { %v919_v10 = vpop.f32.mrb[20].mxu0  ;;  %v1239_v11 = vpop.f32.mrb[20].mxu1 }
 0x127   :  { %2000 = vst [vmem:[%s4332_s3 + $0x40] sm:$0xff] %v1842_v5  ;;  %v1843_v12 = vadd.f32 %v3241_v9, %v1681_v6  ;;  %2080 = vst [vmem:[%s4332_s3 + $0x2c0] sm:$0xff] %v1922_v7  ;;  %v1923_v13 = vadd.f32 %v3241_v9, %v1761_v8  ;;  %v920_v14 = vadd.f32 %v919_v10, %v3224_v60  ;;  %v2419_v15 = vpop.f32.mrb[21].mxu0  ;;  %v2579_v18 = vpop.f32.mrb[21].mxu1  ;;  %v2790_v7 = vld [vmem:[%s4329_s0 + $0x110] sm:$0xff]  }
 0x128   :  { %v1240_v17 = vadd.f32 %v1239_v11, %v3224_v60  ;;  %v922_v20 = vpop.f32.mrb[22].mxu0  ;;  %v1242_v21 = vpop.f32.mrb[22].mxu1  ;;  %v2791_v11 = vld [vmem:[%s4329_s0 + $0x250] sm:$0xff]  }
 0x129   :  { %2001 = vst [vmem:[%s4332_s3 + $0x48] sm:$0xff] %v1843_v12  ;;  %2081 = vst [vmem:[%s4332_s3 + $0x2c8] sm:$0xff] %v1923_v13  ;;  %v1520_v22 = vmax.f32 %v920_v14, 0.0  ;;  %v923_v23 = vadd.f32 %v922_v20, %v3224_v60  ;;  %v2420_v24 = vpop.f32.mrb[23].mxu0  ;;  %v1243_v26 = vadd.f32 %v1242_v21, %v3224_v60  ;;  %v2580_v27 = vpop.f32.mrb[23].mxu1 }
 0x12a   :  { %v1600_v25 = vmax.f32 %v1240_v17, 0.0 }
 0x12b   :  { %v1682_v28 = vmul.f32 %v3232_v3, %v1520_v22  ;;  %v1521_v29 = vmax.f32 %v923_v23, 0.0  ;;  %2526 = vmatmul.mubr.msk.bf16.gmra.mrb[128].mxu0 %vm607_vm1, %v2786_v16  ;;  %v1601_v31 = vmax.f32 %v1243_v26, 0.0  ;;  %2686 = vmatmul.mubr.msk.bf16.gmra.mrb[128].mxu1 %vm607_vm1, %v2787_v19 }
 0x12c   :  { %v1762_v30 = vmul.f32 %v3232_v3, %v1600_v25  ;;  %2529 = vmatprep.mubr.msk.bf16.mxu0 %vm2854_vm0, %v2853_v0  ;;  %2689 = vmatprep.mubr.msk.bf16.mxu1 %vm2854_vm0, %v2853_v0 }
 0x12d   :  { %v1844_v32 = vadd.f32 %v3241_v9, %v1682_v28  ;;  %v1683_v33 = vmul.f32 %v3232_v3, %v1521_v29  ;;  %v1763_v35 = vmul.f32 %v3232_v3, %v1601_v31 }
 0x12e   :  { %v1924_v34 = vadd.f32 %v3241_v9, %v1762_v30  ;;  %v927_v36 = vpop.f32.mrb[24].mxu0  ;;  %v1247_v37 = vpop.f32.mrb[24].mxu1 }
 0x12f   :  { %2002 = vst [vmem:[%s4332_s3 + $0x50] sm:$0xff] %v1844_v32  ;;  %v1845_v38 = vadd.f32 %v3241_v9, %v1683_v33  ;;  %v1925_v39 = vadd.f32 %v3241_v9, %v1763_v35  ;;  %v928_v40 = vadd.f32 %v927_v36, %v3224_v60  ;;  %v2423_v41 = vpop.f32.mrb[25].mxu0  ;;  %v1248_v43 = vadd.f32 %v1247_v37, %v3224_v60  ;;  %v2583_v44 = vpop.f32.mrb[25].mxu1  ;;  %v2793_v37 = vld [vmem:[%s4329_s0 + $0x258] sm:$0xff]  }
 0x130   :  { %2082 = vst [vmem:[%s4332_s3 + $0x2d0] sm:$0xff] %v1924_v34  ;;  %v930_v46 = vpop.f32.mrb[26].mxu0  ;;  %v1250_v47 = vpop.f32.mrb[26].mxu1  ;;  %v2792_v34 = vld [vmem:[%s4329_s0 + $0x118] sm:$0xff]  }
 0x131   :  { %2003 = vst [vmem:[%s4332_s3 + $0x58] sm:$0xff] %v1845_v38  ;;  %2083 = vst [vmem:[%s4332_s3 + $0x2d8] sm:$0xff] %v1925_v39  ;;  %v1522_v48 = vmax.f32 %v928_v40, 0.0  ;;  %v931_v49 = vadd.f32 %v930_v46, %v3224_v60  ;;  %v2424_v50 = vpop.f32.mrb[27].mxu0  ;;  %v1602_v51 = vmax.f32 %v1248_v43, 0.0  ;;  %v1251_v52 = vadd.f32 %v1250_v47, %v3224_v60  ;;  %v2584_v53 = vpop.f32.mrb[27].mxu1 }
 0x133   :  { %v1684_v54 = vmul.f32 %v3232_v3, %v1522_v48  ;;  %v1523_v55 = vmax.f32 %v931_v49, 0.0  ;;  %2530 = vmatmul.mubr.msk.bf16.gmra.mrb[132].mxu0 %vm607_vm1, %v2788_v42  ;;  %v1764_v56 = vmul.f32 %v3232_v3, %v1602_v51  ;;  %v1603_v57 = vmax.f32 %v1251_v52, 0.0  ;;  %2690 = vmatmul.mubr.msk.bf16.gmra.mrb[132].mxu1 %vm607_vm1, %v2789_v45 }
 0x134   :  { %2533 = vmatprep.mubr.msk.bf16.mxu0 %vm2854_vm0, %v2853_v0  ;;  %2693 = vmatprep.mubr.msk.bf16.mxu1 %vm2854_vm0, %v2853_v0 }
 0x135   :  { %v1846_v58 = vadd.f32 %v3241_v9, %v1684_v54  ;;  %v1685_v59 = vmul.f32 %v3232_v3, %v1523_v55  ;;  %v1926_v61 = vadd.f32 %v3241_v9, %v1764_v56  ;;  %v1765_v62 = vmul.f32 %v3232_v3, %v1603_v57 }
 0x136   :  { %v935_v63 = vpop.f32.mrb[28].mxu0  ;;  %v1255_v1 = vpop.f32.mrb[28].mxu1 }
 0x137   :  { %2004 = vst [vmem:[%s4332_s3 + $0x60] sm:$0xff] %v1846_v58  ;;  %v1847_v2 = vadd.f32 %v3241_v9, %v1685_v59  ;;  %2084 = vst [vmem:[%s4332_s3 + $0x2e0] sm:$0xff] %v1926_v61  ;;  %v1927_v4 = vadd.f32 %v3241_v9, %v1765_v62  ;;  %v936_v5 = vadd.f32 %v935_v63, %v3224_v60  ;;  %v2427_v6 = vpop.f32.mrb[29].mxu0  ;;  %v2587_v10 = vpop.f32.mrb[29].mxu1  ;;  %v2794_v61 = vld [vmem:[%s4329_s0 + $0x120] sm:$0xff]  }
 0x138   :  { %v1256_v8 = vadd.f32 %v1255_v1, %v3224_v60  ;;  %v938_v12 = vpop.f32.mrb[30].mxu0  ;;  %v1258_v13 = vpop.f32.mrb[30].mxu1  ;;  %v2795_v1 = vld [vmem:[%s4329_s0 + $0x260] sm:$0xff]  }
 0x139   :  { %2005 = vst [vmem:[%s4332_s3 + $0x68] sm:$0xff] %v1847_v2  ;;  %2085 = vst [vmem:[%s4332_s3 + $0x2e8] sm:$0xff] %v1927_v4  ;;  %v1524_v14 = vmax.f32 %v936_v5, 0.0  ;;  %v939_v15 = vadd.f32 %v938_v12, %v3224_v60  ;;  %v2428_v16 = vpop.f32.mrb[31].mxu0  ;;  %v1259_v18 = vadd.f32 %v1258_v13, %v3224_v60  ;;  %v2588_v19 = vpop.f32.mrb[31].mxu1 }
 0x13a   :  { %v1604_v17 = vmax.f32 %v1256_v8, 0.0 }
 0x13b   :  { %v1686_v20 = vmul.f32 %v3232_v3, %v1524_v14  ;;  %v1525_v21 = vmax.f32 %v939_v15, 0.0  ;;  %2534 = vmatmul.mubr.msk.bf16.gmra.mrb[136].mxu0 %vm607_vm1, %v2790_v7  ;;  %v1605_v23 = vmax.f32 %v1259_v18, 0.0  ;;  %2694 = vmatmul.mubr.msk.bf16.gmra.mrb[136].mxu1 %vm607_vm1, %v2791_v11 }
 0x13c   :  { %v1766_v22 = vmul.f32 %v3232_v3, %v1604_v17  ;;  %2537 = vmatprep.mubr.msk.bf16.mxu0 %vm2854_vm0, %v2853_v0  ;;  %2697 = vmatprep.mubr.msk.bf16.mxu1 %vm2854_vm0, %v2853_v0 }
 0x13d   :  { %v1848_v24 = vadd.f32 %v3241_v9, %v1686_v20  ;;  %v1687_v25 = vmul.f32 %v3232_v3, %v1525_v21  ;;  %v1767_v27 = vmul.f32 %v3232_v3, %v1605_v23 }
 0x13e   :  { %v1928_v26 = vadd.f32 %v3241_v9, %v1766_v22  ;;  %v943_v28 = vpop.f32.mrb[32].mxu0  ;;  %v1263_v29 = vpop.f32.mrb[32].mxu1 }
 0x13f   :  { %2006 = vst [vmem:[%s4332_s3 + $0x70] sm:$0xff] %v1848_v24  ;;  %v1849_v30 = vadd.f32 %v3241_v9, %v1687_v25  ;;  %v1929_v31 = vadd.f32 %v3241_v9, %v1767_v27  ;;  %v944_v32 = vadd.f32 %v943_v28, %v3224_v60  ;;  %v2431_v33 = vpop.f32.mrb[33].mxu0  ;;  %v1264_v35 = vadd.f32 %v1263_v29, %v3224_v60  ;;  %v2591_v36 = vpop.f32.mrb[33].mxu1  ;;  %v2797_v29 = vld [vmem:[%s4329_s0 + $0x268] sm:$0xff]  }
 0x140   :  { %2086 = vst [vmem:[%s4332_s3 + $0x2f0] sm:$0xff] %v1928_v26  ;;  %v946_v38 = vpop.f32.mrb[34].mxu0  ;;  %v1266_v39 = vpop.f32.mrb[34].mxu1  ;;  %v2796_v26 = vld [vmem:[%s4329_s0 + $0x128] sm:$0xff]  }
 0x141   :  { %2007 = vst [vmem:[%s4332_s3 + $0x78] sm:$0xff] %v1849_v30  ;;  %2087 = vst [vmem:[%s4332_s3 + $0x2f8] sm:$0xff] %v1929_v31  ;;  %v1526_v40 = vmax.f32 %v944_v32, 0.0  ;;  %v947_v41 = vadd.f32 %v946_v38, %v3224_v60  ;;  %v2432_v42 = vpop.f32.mrb[35].mxu0  ;;  %v1606_v43 = vmax.f32 %v1264_v35, 0.0  ;;  %v1267_v44 = vadd.f32 %v1266_v39, %v3224_v60  ;;  %v2592_v45 = vpop.f32.mrb[35].mxu1 }
 0x143   :  { %v1688_v46 = vmul.f32 %v3232_v3, %v1526_v40  ;;  %v1527_v47 = vmax.f32 %v947_v41, 0.0  ;;  %2538 = vmatmul.mubr.msk.bf16.gmra.mrb[140].mxu0 %vm607_vm1, %v2792_v34  ;;  %v1768_v48 = vmul.f32 %v3232_v3, %v1606_v43  ;;  %v1607_v49 = vmax.f32 %v1267_v44, 0.0  ;;  %2698 = vmatmul.mubr.msk.bf16.gmra.mrb[140].mxu1 %vm607_vm1, %v2793_v37 }
 0x144   :  { %2541 = vmatprep.mubr.msk.bf16.mxu0 %vm2854_vm0, %v2853_v0  ;;  %2701 = vmatprep.mubr.msk.bf16.mxu1 %vm2854_vm0, %v2853_v0 }
 0x145   :  { %v1850_v50 = vadd.f32 %v3241_v9, %v1688_v46  ;;  %v1689_v51 = vmul.f32 %v3232_v3, %v1527_v47  ;;  %v1930_v52 = vadd.f32 %v3241_v9, %v1768_v48  ;;  %v1769_v53 = vmul.f32 %v3232_v3, %v1607_v49 }
 0x146   :  { %v951_v54 = vpop.f32.mrb[36].mxu0  ;;  %v1271_v55 = vpop.f32.mrb[36].mxu1 }
 0x147   :  { %2008 = vst [vmem:[%s4332_s3 + $0x80] sm:$0xff] %v1850_v50  ;;  %v1851_v56 = vadd.f32 %v3241_v9, %v1689_v51  ;;  %2088 = vst [vmem:[%s4332_s3 + $0x300] sm:$0xff] %v1930_v52  ;;  %v1931_v57 = vadd.f32 %v3241_v9, %v1769_v53  ;;  %v952_v58 = vadd.f32 %v951_v54, %v3224_v60  ;;  %v2435_v59 = vpop.f32.mrb[37].mxu0  ;;  %v2595_v63 = vpop.f32.mrb[37].mxu1  ;;  %v2798_v52 = vld [vmem:[%s4329_s0 + $0x130] sm:$0xff]  }
 0x148   :  { %v1272_v62 = vadd.f32 %v1271_v55, %v3224_v60  ;;  %v954_v2 = vpop.f32.mrb[38].mxu0  ;;  %v1274_v4 = vpop.f32.mrb[38].mxu1  ;;  %v2799_v55 = vld [vmem:[%s4329_s0 + $0x270] sm:$0xff]  }
 0x149   :  { %2009 = vst [vmem:[%s4332_s3 + $0x88] sm:$0xff] %v1851_v56  ;;  %2089 = vst [vmem:[%s4332_s3 + $0x308] sm:$0xff] %v1931_v57  ;;  %v1528_v5 = vmax.f32 %v952_v58, 0.0  ;;  %v955_v6 = vadd.f32 %v954_v2, %v3224_v60  ;;  %v2436_v7 = vpop.f32.mrb[39].mxu0  ;;  %v1275_v10 = vadd.f32 %v1274_v4, %v3224_v60  ;;  %v2596_v11 = vpop.f32.mrb[39].mxu1 }
 0x14a   :  { %v1608_v8 = vmax.f32 %v1272_v62, 0.0 }
 0x14b   :  { %v1690_v12 = vmul.f32 %v3232_v3, %v1528_v5  ;;  %v1529_v13 = vmax.f32 %v955_v6, 0.0  ;;  %2542 = vmatmul.mubr.msk.bf16.gmra.mrb[144].mxu0 %vm607_vm1, %v2794_v61  ;;  %v1609_v15 = vmax.f32 %v1275_v10, 0.0  ;;  %2702 = vmatmul.mubr.msk.bf16.gmra.mrb[144].mxu1 %vm607_vm1, %v2795_v1 }
 0x14c   :  { %v1770_v14 = vmul.f32 %v3232_v3, %v1608_v8  ;;  %2545 = vmatprep.mubr.msk.bf16.mxu0 %vm2854_vm0, %v2853_v0  ;;  %2705 = vmatprep.mubr.msk.bf16.mxu1 %vm2854_vm0, %v2853_v0 }
 0x14d   :  { %v1852_v16 = vadd.f32 %v3241_v9, %v1690_v12  ;;  %v1691_v17 = vmul.f32 %v3232_v3, %v1529_v13  ;;  %v1771_v19 = vmul.f32 %v3232_v3, %v1609_v15 }
 0x14e   :  { %v1932_v18 = vadd.f32 %v3241_v9, %v1770_v14  ;;  %v959_v20 = vpop.f32.mrb[40].mxu0  ;;  %v1279_v21 = vpop.f32.mrb[40].mxu1 }
 0x14f   :  { %2010 = vst [vmem:[%s4332_s3 + $0x90] sm:$0xff] %v1852_v16  ;;  %v1853_v22 = vadd.f32 %v3241_v9, %v1691_v17  ;;  %v1933_v23 = vadd.f32 %v3241_v9, %v1771_v19  ;;  %v960_v24 = vadd.f32 %v959_v20, %v3224_v60  ;;  %v2439_v25 = vpop.f32.mrb[41].mxu0  ;;  %v1280_v27 = vadd.f32 %v1279_v21, %v3224_v60  ;;  %v2599_v28 = vpop.f32.mrb[41].mxu1  ;;  %v2800_v17 = vld [vmem:[%s4329_s0 + $0x138] sm:$0xff]  }
 0x150   :  { %2090 = vst [vmem:[%s4332_s3 + $0x310] sm:$0xff] %v1932_v18  ;;  %v962_v30 = vpop.f32.mrb[42].mxu0  ;;  %v1282_v31 = vpop.f32.mrb[42].mxu1 }
 0x151   :  { %2011 = vst [vmem:[%s4332_s3 + $0x98] sm:$0xff] %v1853_v22  ;;  %2091 = vst [vmem:[%s4332_s3 + $0x318] sm:$0xff] %v1933_v23  ;;  %v1530_v32 = vmax.f32 %v960_v24, 0.0  ;;  %v963_v33 = vadd.f32 %v962_v30, %v3224_v60  ;;  %v2440_v34 = vpop.f32.mrb[43].mxu0  ;;  %v1610_v35 = vmax.f32 %v1280_v27, 0.0  ;;  %v1283_v36 = vadd.f32 %v1282_v31, %v3224_v60  ;;  %v2600_v37 = vpop.f32.mrb[43].mxu1 }
 0x153   :  { %v1692_v38 = vmul.f32 %v3232_v3, %v1530_v32  ;;  %v1531_v39 = vmax.f32 %v963_v33, 0.0  ;;  %2546 = vmatmul.mubr.msk.bf16.gmra.mrb[148].mxu0 %vm607_vm1, %v2796_v26  ;;  %v1772_v40 = vmul.f32 %v3232_v3, %v1610_v35  ;;  %v1611_v41 = vmax.f32 %v1283_v36, 0.0  ;;  %2706 = vmatmul.mubr.msk.bf16.gmra.mrb[148].mxu1 %vm607_vm1, %v2797_v29 }
 0x154   :  { %2549 = vmatprep.mubr.msk.bf16.mxu0 %vm2854_vm0, %v2853_v0  ;;  %2709 = vmatprep.mubr.msk.bf16.mxu1 %vm2854_vm0, %v2853_v0 }
 0x155   :  { %v1854_v42 = vadd.f32 %v3241_v9, %v1692_v38  ;;  %v1693_v43 = vmul.f32 %v3232_v3, %v1531_v39  ;;  %v1934_v44 = vadd.f32 %v3241_v9, %v1772_v40  ;;  %v1773_v45 = vmul.f32 %v3232_v3, %v1611_v41 }
 0x156   :  { %v967_v46 = vpop.f32.mrb[44].mxu0  ;;  %v1287_v47 = vpop.f32.mrb[44].mxu1 }
 0x157   :  { %2012 = vst [vmem:[%s4332_s3 + $0xa0] sm:$0xff] %v1854_v42  ;;  %v1855_v48 = vadd.f32 %v3241_v9, %v1693_v43  ;;  %2092 = vst [vmem:[%s4332_s3 + $0x320] sm:$0xff] %v1934_v44  ;;  %v1935_v49 = vadd.f32 %v3241_v9, %v1773_v45  ;;  %v968_v50 = vadd.f32 %v967_v46, %v3224_v60  ;;  %v2443_v51 = vpop.f32.mrb[45].mxu0  ;;  %v2603_v54 = vpop.f32.mrb[45].mxu1 }
 0x158   :  { %v1288_v53 = vadd.f32 %v1287_v47, %v3224_v60  ;;  %v970_v56 = vpop.f32.mrb[46].mxu0  ;;  %v1290_v57 = vpop.f32.mrb[46].mxu1 }
 0x159   :  { %2013 = vst [vmem:[%s4332_s3 + $0xa8] sm:$0xff] %v1855_v48  ;;  %2093 = vst [vmem:[%s4332_s3 + $0x328] sm:$0xff] %v1935_v49  ;;  %v1532_v58 = vmax.f32 %v968_v50, 0.0  ;;  %v971_v59 = vadd.f32 %v970_v56, %v3224_v60  ;;  %v2444_v61 = vpop.f32.mrb[47].mxu0  ;;  %v1291_v63 = vadd.f32 %v1290_v57, %v3224_v60  ;;  %v2604_v1 = vpop.f32.mrb[47].mxu1 }
 0x15a   :  { %v1612_v62 = vmax.f32 %v1288_v53, 0.0 }
 0x15b   :  { %v1694_v2 = vmul.f32 %v3232_v3, %v1532_v58  ;;  %v1533_v4 = vmax.f32 %v971_v59, 0.0  ;;  %2550 = vmatmul.mubr.msk.bf16.gmra.mrb[152].mxu0 %vm607_vm1, %v2798_v52  ;;  %v1613_v6 = vmax.f32 %v1291_v63, 0.0  ;;  %2710 = vmatmul.mubr.msk.bf16.gmra.mrb[152].mxu1 %vm607_vm1, %v2799_v55 }
 0x15c   :  { %v1774_v5 = vmul.f32 %v3232_v3, %v1612_v62  ;;  %2553 = vmatprep.mubr.msk.bf16.mxu0 %vm2854_vm0, %v2853_v0 }
 0x15d   :  { %v1856_v7 = vadd.f32 %v3241_v9, %v1694_v2  ;;  %v1695_v8 = vmul.f32 %v3232_v3, %v1533_v4  ;;  %v1775_v11 = vmul.f32 %v3232_v3, %v1613_v6 }
 0x15e   :  { %v1936_v10 = vadd.f32 %v3241_v9, %v1774_v5  ;;  %v975_v12 = vpop.f32.mrb[48].mxu0  ;;  %v1295_v13 = vpop.f32.mrb[48].mxu1 }
 0x15f   :  { %2014 = vst [vmem:[%s4332_s3 + $0xb0] sm:$0xff] %v1856_v7  ;;  %v1857_v14 = vadd.f32 %v3241_v9, %v1695_v8  ;;  %v1937_v0 = vadd.f32 %v3241_v9, %v1775_v11  ;;  %v976_v15 = vadd.f32 %v975_v12, %v3224_v60  ;;  %v2447_v16 = vpop.f32.mrb[49].mxu0  ;;  %v1296_v18 = vadd.f32 %v1295_v13, %v3224_v60  ;;  %v2607_v19 = vpop.f32.mrb[49].mxu1 }
 0x160   :  { %2094 = vst [vmem:[%s4332_s3 + $0x330] sm:$0xff] %v1936_v10  ;;  %v978_v20 = vpop.f32.mrb[50].mxu0  ;;  %v1298_v21 = vpop.f32.mrb[50].mxu1 }
 0x161   :  { %2015 = vst [vmem:[%s4332_s3 + $0xb8] sm:$0xff] %v1857_v14  ;;  %2095 = vst [vmem:[%s4332_s3 + $0x338] sm:$0xff] %v1937_v0  ;;  %v1534_v22 = vmax.f32 %v976_v15, 0.0  ;;  %v979_v23 = vadd.f32 %v978_v20, %v3224_v60  ;;  %v2448_v24 = vpop.f32.mrb[51].mxu0  ;;  %v1614_v25 = vmax.f32 %v1296_v18, 0.0  ;;  %v1299_v26 = vadd.f32 %v1298_v21, %v3224_v60  ;;  %v2608_v27 = vpop.f32.mrb[51].mxu1 }
 0x163   :  { %v1696_v28 = vmul.f32 %v3232_v3, %v1534_v22  ;;  %v1535_v29 = vmax.f32 %v979_v23, 0.0  ;;  %2554 = vmatmul.mubr.msk.bf16.gmra.mrb[156].mxu0 %vm607_vm1, %v2800_v17  ;;  %v1776_v30 = vmul.f32 %v3232_v3, %v1614_v25  ;;  %v1615_v31 = vmax.f32 %v1299_v26, 0.0 }
 0x165   :  { %v1858_v32 = vadd.f32 %v3241_v9, %v1696_v28  ;;  %v1697_v33 = vmul.f32 %v3232_v3, %v1535_v29  ;;  %v1938_v34 = vadd.f32 %v3241_v9, %v1776_v30  ;;  %v1777_v35 = vmul.f32 %v3232_v3, %v1615_v31 }
 0x166   :  { %v983_v36 = vpop.f32.mrb[52].mxu0  ;;  %v1303_v37 = vpop.f32.mrb[52].mxu1 }
 0x167   :  { %2016 = vst [vmem:[%s4332_s3 + $0xc0] sm:$0xff] %v1858_v32  ;;  %v1859_v38 = vadd.f32 %v3241_v9, %v1697_v33  ;;  %2096 = vst [vmem:[%s4332_s3 + $0x340] sm:$0xff] %v1938_v34  ;;  %v1939_v39 = vadd.f32 %v3241_v9, %v1777_v35  ;;  %v984_v40 = vadd.f32 %v983_v36, %v3224_v60  ;;  %v2451_v41 = vpop.f32.mrb[53].mxu0  ;;  %v2611_v43 = vpop.f32.mrb[53].mxu1 }
 0x168   :  { %v1304_v42 = vadd.f32 %v1303_v37, %v3224_v60  ;;  %v986_v44 = vpop.f32.mrb[54].mxu0  ;;  %v1306_v45 = vpop.f32.mrb[54].mxu1 }
 0x169   :  { %2017 = vst [vmem:[%s4332_s3 + $0xc8] sm:$0xff] %v1859_v38  ;;  %2097 = vst [vmem:[%s4332_s3 + $0x348] sm:$0xff] %v1939_v39  ;;  %v1536_v46 = vmax.f32 %v984_v40, 0.0  ;;  %v987_v47 = vadd.f32 %v986_v44, %v3224_v60  ;;  %v2452_v48 = vpop.f32.mrb[55].mxu0  ;;  %v1307_v50 = vadd.f32 %v1306_v45, %v3224_v60  ;;  %v2612_v51 = vpop.f32.mrb[55].mxu1 }
 0x16a   :  { %v1616_v49 = vmax.f32 %v1304_v42, 0.0 }
 0x16b   :  { %v1698_v52 = vmul.f32 %v3232_v3, %v1536_v46  ;;  %v1537_v53 = vmax.f32 %v987_v47, 0.0  ;;  %v1617_v55 = vmax.f32 %v1307_v50, 0.0 }
 0x16c   :  { %v1778_v54 = vmul.f32 %v3232_v3, %v1616_v49 }
 0x16d   :  { %v1860_v56 = vadd.f32 %v3241_v9, %v1698_v52  ;;  %v1699_v57 = vmul.f32 %v3232_v3, %v1537_v53  ;;  %v1779_v59 = vmul.f32 %v3232_v3, %v1617_v55 }
 0x16e   :  { %v1940_v58 = vadd.f32 %v3241_v9, %v1778_v54  ;;  %v991_v61 = vpop.f32.mrb[56].mxu0  ;;  %v1311_v62 = vpop.f32.mrb[56].mxu1 }
 0x16f   :  { %2018 = vst [vmem:[%s4332_s3 + $0xd0] sm:$0xff] %v1860_v56  ;;  %v1861_v63 = vadd.f32 %v3241_v9, %v1699_v57  ;;  %v1941_v1 = vadd.f32 %v3241_v9, %v1779_v59  ;;  %v992_v2 = vadd.f32 %v991_v61, %v3224_v60  ;;  %v2455_v4 = vpop.f32.mrb[57].mxu0  ;;  %v1312_v5 = vadd.f32 %v1311_v62, %v3224_v60  ;;  %v2615_v6 = vpop.f32.mrb[57].mxu1 }
 0x170   :  { %2098 = vst [vmem:[%s4332_s3 + $0x350] sm:$0xff] %v1940_v58  ;;  %v994_v7 = vpop.f32.mrb[58].mxu0  ;;  %v1314_v8 = vpop.f32.mrb[58].mxu1 }
 0x171   :  { %2019 = vst [vmem:[%s4332_s3 + $0xd8] sm:$0xff] %v1861_v63  ;;  %2099 = vst [vmem:[%s4332_s3 + $0x358] sm:$0xff] %v1941_v1  ;;  %v1538_v10 = vmax.f32 %v992_v2, 0.0  ;;  %v995_v11 = vadd.f32 %v994_v7, %v3224_v60  ;;  %v2456_v12 = vpop.f32.mrb[59].mxu0  ;;  %v1618_v13 = vmax.f32 %v1312_v5, 0.0  ;;  %v1315_v14 = vadd.f32 %v1314_v8, %v3224_v60  ;;  %v2616_v0 = vpop.f32.mrb[59].mxu1 }
 0x173   :  { %v1700_v15 = vmul.f32 %v3232_v3, %v1538_v10  ;;  %v1539_v16 = vmax.f32 %v995_v11, 0.0  ;;  %v1780_v17 = vmul.f32 %v3232_v3, %v1618_v13  ;;  %v1619_v18 = vmax.f32 %v1315_v14, 0.0 }
 0x175   :  { %v1862_v19 = vadd.f32 %v3241_v9, %v1700_v15  ;;  %v1701_v20 = vmul.f32 %v3232_v3, %v1539_v16  ;;  %v1942_v21 = vadd.f32 %v3241_v9, %v1780_v17  ;;  %v1781_v22 = vmul.f32 %v3232_v3, %v1619_v18 }
 0x176   :  { %v999_v23 = vpop.f32.mrb[60].mxu0  ;;  %v1319_v24 = vpop.f32.mrb[60].mxu1 }
 0x177   :  { %2020 = vst [vmem:[%s4332_s3 + $0xe0] sm:$0xff] %v1862_v19  ;;  %v1863_v25 = vadd.f32 %v3241_v9, %v1701_v20  ;;  %2100 = vst [vmem:[%s4332_s3 + $0x360] sm:$0xff] %v1942_v21  ;;  %v1943_v26 = vadd.f32 %v3241_v9, %v1781_v22  ;;  %v1000_v27 = vadd.f32 %v999_v23, %v3224_v60  ;;  %v2459_v28 = vpop.f32.mrb[61].mxu0  ;;  %v2619_v30 = vpop.f32.mrb[61].mxu1 }
 0x178   :  { %v1320_v29 = vadd.f32 %v1319_v24, %v3224_v60  ;;  %v1002_v31 = vpop.f32.mrb[62].mxu0  ;;  %v1322_v32 = vpop.f32.mrb[62].mxu1 }
 0x179   :  { %2021 = vst [vmem:[%s4332_s3 + $0xe8] sm:$0xff] %v1863_v25  ;;  %2101 = vst [vmem:[%s4332_s3 + $0x368] sm:$0xff] %v1943_v26  ;;  %v1540_v33 = vmax.f32 %v1000_v27, 0.0  ;;  %v1003_v34 = vadd.f32 %v1002_v31, %v3224_v60  ;;  %v2460_v35 = vpop.f32.mrb[63].mxu0  ;;  %v1323_v37 = vadd.f32 %v1322_v32, %v3224_v60  ;;  %v2620_v38 = vpop.f32.mrb[63].mxu1 }
 0x17a   :  { %v1620_v36 = vmax.f32 %v1320_v29, 0.0 }
 0x17b   :  { %v1702_v39 = vmul.f32 %v3232_v3, %v1540_v33  ;;  %v1541_v40 = vmax.f32 %v1003_v34, 0.0  ;;  %v1621_v42 = vmax.f32 %v1323_v37, 0.0 }
 0x17c   :  { %v1782_v41 = vmul.f32 %v3232_v3, %v1620_v36 }
 0x17d   :  { %v1864_v43 = vadd.f32 %v3241_v9, %v1702_v39  ;;  %v1703_v44 = vmul.f32 %v3232_v3, %v1541_v40  ;;  %v1783_v46 = vmul.f32 %v3232_v3, %v1621_v42 }
 0x17e   :  { %v1944_v45 = vadd.f32 %v3241_v9, %v1782_v41  ;;  %v1007_v47 = vpop.f32.mrb[64].mxu0  ;;  %v1327_v48 = vpop.f32.mrb[64].mxu1 }
 0x17f   :  { %2022 = vst [vmem:[%s4332_s3 + $0xf0] sm:$0xff] %v1864_v43  ;;  %v1865_v49 = vadd.f32 %v3241_v9, %v1703_v44  ;;  %v1945_v50 = vadd.f32 %v3241_v9, %v1783_v46  ;;  %v1008_v51 = vadd.f32 %v1007_v47, %v3224_v60  ;;  %v2463_v52 = vpop.f32.mrb[65].mxu0  ;;  %v1328_v53 = vadd.f32 %v1327_v48, %v3224_v60  ;;  %v2623_v54 = vpop.f32.mrb[65].mxu1 }
 0x180   :  { %2102 = vst [vmem:[%s4332_s3 + $0x370] sm:$0xff] %v1944_v45  ;;  %v1010_v55 = vpop.f32.mrb[66].mxu0  ;;  %v1330_v56 = vpop.f32.mrb[66].mxu1 }
 0x181   :  { %2023 = vst [vmem:[%s4332_s3 + $0xf8] sm:$0xff] %v1865_v49  ;;  %2103 = vst [vmem:[%s4332_s3 + $0x378] sm:$0xff] %v1945_v50  ;;  %v1542_v57 = vmax.f32 %v1008_v51, 0.0  ;;  %v1011_v58 = vadd.f32 %v1010_v55, %v3224_v60  ;;  %v2464_v59 = vpop.f32.mrb[67].mxu0  ;;  %v1622_v61 = vmax.f32 %v1328_v53, 0.0  ;;  %v1331_v62 = vadd.f32 %v1330_v56, %v3224_v60  ;;  %v2624_v63 = vpop.f32.mrb[67].mxu1 }
 0x183   :  { %v1704_v1 = vmul.f32 %v3232_v3, %v1542_v57  ;;  %v1543_v2 = vmax.f32 %v1011_v58, 0.0  ;;  %v1784_v4 = vmul.f32 %v3232_v3, %v1622_v61  ;;  %v1623_v5 = vmax.f32 %v1331_v62, 0.0 }
 0x185   :  { %v1866_v6 = vadd.f32 %v3241_v9, %v1704_v1  ;;  %v1705_v7 = vmul.f32 %v3232_v3, %v1543_v2  ;;  %v1946_v8 = vadd.f32 %v3241_v9, %v1784_v4  ;;  %v1785_v10 = vmul.f32 %v3232_v3, %v1623_v5 }
 0x186   :  { %v1015_v11 = vpop.f32.mrb[68].mxu0  ;;  %v1335_v12 = vpop.f32.mrb[68].mxu1 }
 0x187   :  { %2024 = vst [vmem:[%s4332_s3 + $0x100] sm:$0xff] %v1866_v6  ;;  %v1867_v13 = vadd.f32 %v3241_v9, %v1705_v7  ;;  %2104 = vst [vmem:[%s4332_s3 + $0x380] sm:$0xff] %v1946_v8  ;;  %v1947_v14 = vadd.f32 %v3241_v9, %v1785_v10  ;;  %v1016_v0 = vadd.f32 %v1015_v11, %v3224_v60  ;;  %v2467_v15 = vpop.f32.mrb[69].mxu0  ;;  %v2627_v17 = vpop.f32.mrb[69].mxu1 }
 0x188   :  { %v1336_v16 = vadd.f32 %v1335_v12, %v3224_v60  ;;  %v1018_v18 = vpop.f32.mrb[70].mxu0  ;;  %v1338_v19 = vpop.f32.mrb[70].mxu1 }
 0x189   :  { %2025 = vst [vmem:[%s4332_s3 + $0x108] sm:$0xff] %v1867_v13  ;;  %2105 = vst [vmem:[%s4332_s3 + $0x388] sm:$0xff] %v1947_v14  ;;  %v1544_v20 = vmax.f32 %v1016_v0, 0.0  ;;  %v1019_v21 = vadd.f32 %v1018_v18, %v3224_v60  ;;  %v2468_v22 = vpop.f32.mrb[71].mxu0  ;;  %v1339_v24 = vadd.f32 %v1338_v19, %v3224_v60  ;;  %v2628_v25 = vpop.f32.mrb[71].mxu1 }
 0x18a   :  { %v1624_v23 = vmax.f32 %v1336_v16, 0.0 }
 0x18b   :  { %v1706_v26 = vmul.f32 %v3232_v3, %v1544_v20  ;;  %v1545_v27 = vmax.f32 %v1019_v21, 0.0  ;;  %v1625_v29 = vmax.f32 %v1339_v24, 0.0 }
 0x18c   :  { %v1786_v28 = vmul.f32 %v3232_v3, %v1624_v23 }
 0x18d   :  { %v1868_v30 = vadd.f32 %v3241_v9, %v1706_v26  ;;  %v1707_v31 = vmul.f32 %v3232_v3, %v1545_v27  ;;  %v1787_v33 = vmul.f32 %v3232_v3, %v1625_v29 }
 0x18e   :  { %v1948_v32 = vadd.f32 %v3241_v9, %v1786_v28  ;;  %v1023_v34 = vpop.f32.mrb[72].mxu0  ;;  %v1343_v35 = vpop.f32.mrb[72].mxu1 }
 0x18f   :  { %2026 = vst [vmem:[%s4332_s3 + $0x110] sm:$0xff] %v1868_v30  ;;  %v1869_v36 = vadd.f32 %v3241_v9, %v1707_v31  ;;  %v1949_v37 = vadd.f32 %v3241_v9, %v1787_v33  ;;  %v1024_v38 = vadd.f32 %v1023_v34, %v3224_v60  ;;  %v2471_v39 = vpop.f32.mrb[73].mxu0  ;;  %v1344_v40 = vadd.f32 %v1343_v35, %v3224_v60  ;;  %v2631_v41 = vpop.f32.mrb[73].mxu1 }
 0x190   :  { %2106 = vst [vmem:[%s4332_s3 + $0x390] sm:$0xff] %v1948_v32  ;;  %v1026_v42 = vpop.f32.mrb[74].mxu0  ;;  %v1346_v43 = vpop.f32.mrb[74].mxu1 }
 0x191   :  { %2027 = vst [vmem:[%s4332_s3 + $0x118] sm:$0xff] %v1869_v36  ;;  %2107 = vst [vmem:[%s4332_s3 + $0x398] sm:$0xff] %v1949_v37  ;;  %v1546_v44 = vmax.f32 %v1024_v38, 0.0  ;;  %v1027_v45 = vadd.f32 %v1026_v42, %v3224_v60  ;;  %v2472_v46 = vpop.f32.mrb[75].mxu0  ;;  %v1626_v47 = vmax.f32 %v1344_v40, 0.0  ;;  %v1347_v48 = vadd.f32 %v1346_v43, %v3224_v60  ;;  %v2632_v49 = vpop.f32.mrb[75].mxu1 }
 0x193   :  { %v1708_v50 = vmul.f32 %v3232_v3, %v1546_v44  ;;  %v1547_v51 = vmax.f32 %v1027_v45, 0.0  ;;  %v1788_v52 = vmul.f32 %v3232_v3, %v1626_v47  ;;  %v1627_v53 = vmax.f32 %v1347_v48, 0.0 }
 0x195   :  { %v1870_v54 = vadd.f32 %v3241_v9, %v1708_v50  ;;  %v1709_v55 = vmul.f32 %v3232_v3, %v1547_v51  ;;  %v1950_v56 = vadd.f32 %v3241_v9, %v1788_v52  ;;  %v1789_v57 = vmul.f32 %v3232_v3, %v1627_v53 }
 0x196   :  { %v1031_v58 = vpop.f32.mrb[76].mxu0  ;;  %v1351_v59 = vpop.f32.mrb[76].mxu1 }
 0x197   :  { %2028 = vst [vmem:[%s4332_s3 + $0x120] sm:$0xff] %v1870_v54  ;;  %v1871_v61 = vadd.f32 %v3241_v9, %v1709_v55  ;;  %2108 = vst [vmem:[%s4332_s3 + $0x3a0] sm:$0xff] %v1950_v56  ;;  %v1951_v62 = vadd.f32 %v3241_v9, %v1789_v57  ;;  %v1032_v63 = vadd.f32 %v1031_v58, %v3224_v60  ;;  %v2475_v1 = vpop.f32.mrb[77].mxu0  ;;  %v2635_v4 = vpop.f32.mrb[77].mxu1 }
 0x198   :  { %v1352_v2 = vadd.f32 %v1351_v59, %v3224_v60  ;;  %v1034_v5 = vpop.f32.mrb[78].mxu0  ;;  %v1354_v6 = vpop.f32.mrb[78].mxu1 }
 0x199   :  { %2029 = vst [vmem:[%s4332_s3 + $0x128] sm:$0xff] %v1871_v61  ;;  %2109 = vst [vmem:[%s4332_s3 + $0x3a8] sm:$0xff] %v1951_v62  ;;  %v1548_v7 = vmax.f32 %v1032_v63, 0.0  ;;  %v1035_v8 = vadd.f32 %v1034_v5, %v3224_v60  ;;  %v2476_v10 = vpop.f32.mrb[79].mxu0  ;;  %v1355_v12 = vadd.f32 %v1354_v6, %v3224_v60  ;;  %v2636_v13 = vpop.f32.mrb[79].mxu1 }
 0x19a   :  { %v1628_v11 = vmax.f32 %v1352_v2, 0.0 }
 0x19b   :  { %v1710_v14 = vmul.f32 %v3232_v3, %v1548_v7  ;;  %v1549_v0 = vmax.f32 %v1035_v8, 0.0  ;;  %v1629_v16 = vmax.f32 %v1355_v12, 0.0 }
 0x19c   :  { %v1790_v15 = vmul.f32 %v3232_v3, %v1628_v11 }
 0x19d   :  { %v1872_v17 = vadd.f32 %v3241_v9, %v1710_v14  ;;  %v1711_v18 = vmul.f32 %v3232_v3, %v1549_v0  ;;  %v1791_v20 = vmul.f32 %v3232_v3, %v1629_v16 }
 0x19e   :  { %v1952_v19 = vadd.f32 %v3241_v9, %v1790_v15  ;;  %v1039_v21 = vpop.f32.mrb[80].mxu0  ;;  %v1359_v22 = vpop.f32.mrb[80].mxu1 }
 0x19f   :  { %2030 = vst [vmem:[%s4332_s3 + $0x130] sm:$0xff] %v1872_v17  ;;  %v1873_v23 = vadd.f32 %v3241_v9, %v1711_v18  ;;  %v1953_v24 = vadd.f32 %v3241_v9, %v1791_v20  ;;  %v1040_v25 = vadd.f32 %v1039_v21, %v3224_v60  ;;  %v2479_v26 = vpop.f32.mrb[81].mxu0  ;;  %v1360_v27 = vadd.f32 %v1359_v22, %v3224_v60  ;;  %v2639_v28 = vpop.f32.mrb[81].mxu1 }
 0x1a0   :  { %2110 = vst [vmem:[%s4332_s3 + $0x3b0] sm:$0xff] %v1952_v19  ;;  %v1042_v29 = vpop.f32.mrb[82].mxu0  ;;  %v1362_v30 = vpop.f32.mrb[82].mxu1 }
 0x1a1   :  { %2031 = vst [vmem:[%s4332_s3 + $0x138] sm:$0xff] %v1873_v23  ;;  %2111 = vst [vmem:[%s4332_s3 + $0x3b8] sm:$0xff] %v1953_v24  ;;  %v1550_v31 = vmax.f32 %v1040_v25, 0.0  ;;  %v1043_v32 = vadd.f32 %v1042_v29, %v3224_v60  ;;  %v2480_v33 = vpop.f32.mrb[83].mxu0  ;;  %v1630_v34 = vmax.f32 %v1360_v27, 0.0  ;;  %v1363_v35 = vadd.f32 %v1362_v30, %v3224_v60  ;;  %v2640_v36 = vpop.f32.mrb[83].mxu1 }
 0x1a3   :  { %v1712_v37 = vmul.f32 %v3232_v3, %v1550_v31  ;;  %v1551_v38 = vmax.f32 %v1043_v32, 0.0  ;;  %v1792_v39 = vmul.f32 %v3232_v3, %v1630_v34  ;;  %v1631_v40 = vmax.f32 %v1363_v35, 0.0 }
 0x1a5   :  { %v1874_v41 = vadd.f32 %v3241_v9, %v1712_v37  ;;  %v1713_v42 = vmul.f32 %v3232_v3, %v1551_v38  ;;  %v1954_v43 = vadd.f32 %v3241_v9, %v1792_v39  ;;  %v1793_v44 = vmul.f32 %v3232_v3, %v1631_v40 }
 0x1a6   :  { %v1047_v45 = vpop.f32.mrb[84].mxu0  ;;  %v1367_v46 = vpop.f32.mrb[84].mxu1 }
 0x1a7   :  { %2032 = vst [vmem:[%s4332_s3 + $0x140] sm:$0xff] %v1874_v41  ;;  %v1875_v47 = vadd.f32 %v3241_v9, %v1713_v42  ;;  %2112 = vst [vmem:[%s4332_s3 + $0x3c0] sm:$0xff] %v1954_v43  ;;  %v1955_v48 = vadd.f32 %v3241_v9, %v1793_v44  ;;  %v1048_v49 = vadd.f32 %v1047_v45, %v3224_v60  ;;  %v2483_v50 = vpop.f32.mrb[85].mxu0  ;;  %v2643_v52 = vpop.f32.mrb[85].mxu1 }
 0x1a8   :  { %v1368_v51 = vadd.f32 %v1367_v46, %v3224_v60  ;;  %v1050_v53 = vpop.f32.mrb[86].mxu0  ;;  %v1370_v54 = vpop.f32.mrb[86].mxu1 }
 0x1a9   :  { %2033 = vst [vmem:[%s4332_s3 + $0x148] sm:$0xff] %v1875_v47  ;;  %2113 = vst [vmem:[%s4332_s3 + $0x3c8] sm:$0xff] %v1955_v48  ;;  %v1552_v55 = vmax.f32 %v1048_v49, 0.0  ;;  %v1051_v56 = vadd.f32 %v1050_v53, %v3224_v60  ;;  %v2484_v57 = vpop.f32.mrb[87].mxu0  ;;  %v1371_v59 = vadd.f32 %v1370_v54, %v3224_v60  ;;  %v2644_v61 = vpop.f32.mrb[87].mxu1 }
 0x1aa   :  { %v1632_v58 = vmax.f32 %v1368_v51, 0.0 }
 0x1ab   :  { %v1714_v62 = vmul.f32 %v3232_v3, %v1552_v55  ;;  %v1553_v63 = vmax.f32 %v1051_v56, 0.0  ;;  %v1633_v2 = vmax.f32 %v1371_v59, 0.0 }
 0x1ac   :  { %v1794_v1 = vmul.f32 %v3232_v3, %v1632_v58 }
 0x1ad   :  { %v1876_v4 = vadd.f32 %v3241_v9, %v1714_v62  ;;  %v1715_v5 = vmul.f32 %v3232_v3, %v1553_v63  ;;  %v1795_v7 = vmul.f32 %v3232_v3, %v1633_v2 }
 0x1ae   :  { %v1956_v6 = vadd.f32 %v3241_v9, %v1794_v1  ;;  %v1055_v8 = vpop.f32.mrb[88].mxu0  ;;  %v1375_v10 = vpop.f32.mrb[88].mxu1 }
 0x1af   :  { %2034 = vst [vmem:[%s4332_s3 + $0x150] sm:$0xff] %v1876_v4  ;;  %v1877_v11 = vadd.f32 %v3241_v9, %v1715_v5  ;;  %v1957_v12 = vadd.f32 %v3241_v9, %v1795_v7  ;;  %v1056_v13 = vadd.f32 %v1055_v8, %v3224_v60  ;;  %v2487_v14 = vpop.f32.mrb[89].mxu0  ;;  %v1376_v0 = vadd.f32 %v1375_v10, %v3224_v60  ;;  %v2647_v15 = vpop.f32.mrb[89].mxu1 }
 0x1b0   :  { %2114 = vst [vmem:[%s4332_s3 + $0x3d0] sm:$0xff] %v1956_v6  ;;  %v1058_v16 = vpop.f32.mrb[90].mxu0  ;;  %v1378_v17 = vpop.f32.mrb[90].mxu1 }
 0x1b1   :  { %2035 = vst [vmem:[%s4332_s3 + $0x158] sm:$0xff] %v1877_v11  ;;  %2115 = vst [vmem:[%s4332_s3 + $0x3d8] sm:$0xff] %v1957_v12  ;;  %v1554_v18 = vmax.f32 %v1056_v13, 0.0  ;;  %v1059_v19 = vadd.f32 %v1058_v16, %v3224_v60  ;;  %v2488_v20 = vpop.f32.mrb[91].mxu0  ;;  %v1634_v21 = vmax.f32 %v1376_v0, 0.0  ;;  %v1379_v22 = vadd.f32 %v1378_v17, %v3224_v60  ;;  %v2648_v23 = vpop.f32.mrb[91].mxu1 }
 0x1b3   :  { %v1716_v24 = vmul.f32 %v3232_v3, %v1554_v18  ;;  %v1555_v25 = vmax.f32 %v1059_v19, 0.0  ;;  %v1796_v26 = vmul.f32 %v3232_v3, %v1634_v21  ;;  %v1635_v27 = vmax.f32 %v1379_v22, 0.0 }
 0x1b5   :  { %v1878_v28 = vadd.f32 %v3241_v9, %v1716_v24  ;;  %v1717_v29 = vmul.f32 %v3232_v3, %v1555_v25  ;;  %v1958_v30 = vadd.f32 %v3241_v9, %v1796_v26  ;;  %v1797_v31 = vmul.f32 %v3232_v3, %v1635_v27 }
 0x1b6   :  { %v1063_v32 = vpop.f32.mrb[92].mxu0  ;;  %v1383_v33 = vpop.f32.mrb[92].mxu1 }
 0x1b7   :  { %2036 = vst [vmem:[%s4332_s3 + $0x160] sm:$0xff] %v1878_v28  ;;  %v1879_v34 = vadd.f32 %v3241_v9, %v1717_v29  ;;  %2116 = vst [vmem:[%s4332_s3 + $0x3e0] sm:$0xff] %v1958_v30  ;;  %v1959_v35 = vadd.f32 %v3241_v9, %v1797_v31  ;;  %v1064_v36 = vadd.f32 %v1063_v32, %v3224_v60  ;;  %v2491_v37 = vpop.f32.mrb[93].mxu0  ;;  %v2651_v39 = vpop.f32.mrb[93].mxu1 }
 0x1b8   :  { %v1384_v38 = vadd.f32 %v1383_v33, %v3224_v60  ;;  %v1066_v40 = vpop.f32.mrb[94].mxu0  ;;  %v1386_v41 = vpop.f32.mrb[94].mxu1 }
 0x1b9   :  { %2037 = vst [vmem:[%s4332_s3 + $0x168] sm:$0xff] %v1879_v34  ;;  %2117 = vst [vmem:[%s4332_s3 + $0x3e8] sm:$0xff] %v1959_v35  ;;  %v1556_v42 = vmax.f32 %v1064_v36, 0.0  ;;  %v1067_v43 = vadd.f32 %v1066_v40, %v3224_v60  ;;  %v2492_v44 = vpop.f32.mrb[95].mxu0  ;;  %v1387_v46 = vadd.f32 %v1386_v41, %v3224_v60  ;;  %v2652_v47 = vpop.f32.mrb[95].mxu1 }
 0x1ba   :  { %v1636_v45 = vmax.f32 %v1384_v38, 0.0 }
 0x1bb   :  { %v1718_v48 = vmul.f32 %v3232_v3, %v1556_v42  ;;  %v1557_v49 = vmax.f32 %v1067_v43, 0.0  ;;  %v1637_v51 = vmax.f32 %v1387_v46, 0.0 }
 0x1bc   :  { %v1798_v50 = vmul.f32 %v3232_v3, %v1636_v45 }
 0x1bd   :  { %v1880_v52 = vadd.f32 %v3241_v9, %v1718_v48  ;;  %v1719_v53 = vmul.f32 %v3232_v3, %v1557_v49  ;;  %v1799_v55 = vmul.f32 %v3232_v3, %v1637_v51 }
 0x1be   :  { %v1960_v54 = vadd.f32 %v3241_v9, %v1798_v50  ;;  %v1071_v56 = vpop.f32.mrb[96].mxu0  ;;  %v1391_v57 = vpop.f32.mrb[96].mxu1 }
 0x1bf   :  { %2038 = vst [vmem:[%s4332_s3 + $0x170] sm:$0xff] %v1880_v52  ;;  %v1881_v58 = vadd.f32 %v3241_v9, %v1719_v53  ;;  %v1961_v59 = vadd.f32 %v3241_v9, %v1799_v55  ;;  %v1072_v61 = vadd.f32 %v1071_v56, %v3224_v60  ;;  %v2495_v62 = vpop.f32.mrb[97].mxu0  ;;  %v1392_v63 = vadd.f32 %v1391_v57, %v3224_v60  ;;  %v2655_v1 = vpop.f32.mrb[97].mxu1 }
 0x1c0   :  { %2118 = vst [vmem:[%s4332_s3 + $0x3f0] sm:$0xff] %v1960_v54  ;;  %v1074_v2 = vpop.f32.mrb[98].mxu0  ;;  %v1394_v4 = vpop.f32.mrb[98].mxu1 }
 0x1c1   :  { %2039 = vst [vmem:[%s4332_s3 + $0x178] sm:$0xff] %v1881_v58  ;;  %2119 = vst [vmem:[%s4332_s3 + $0x3f8] sm:$0xff] %v1961_v59  ;;  %v1558_v5 = vmax.f32 %v1072_v61, 0.0  ;;  %v1075_v6 = vadd.f32 %v1074_v2, %v3224_v60  ;;  %v2496_v7 = vpop.f32.mrb[99].mxu0  ;;  %v1638_v8 = vmax.f32 %v1392_v63, 0.0  ;;  %v1395_v10 = vadd.f32 %v1394_v4, %v3224_v60  ;;  %v2656_v11 = vpop.f32.mrb[99].mxu1 }
 0x1c3   :  { %v1720_v12 = vmul.f32 %v3232_v3, %v1558_v5  ;;  %v1559_v13 = vmax.f32 %v1075_v6, 0.0  ;;  %v1800_v14 = vmul.f32 %v3232_v3, %v1638_v8  ;;  %v1639_v0 = vmax.f32 %v1395_v10, 0.0 }
 0x1c5   :  { %v1882_v15 = vadd.f32 %v3241_v9, %v1720_v12  ;;  %v1721_v16 = vmul.f32 %v3232_v3, %v1559_v13  ;;  %v1962_v17 = vadd.f32 %v3241_v9, %v1800_v14  ;;  %v1801_v18 = vmul.f32 %v3232_v3, %v1639_v0 }
 0x1c6   :  { %v1079_v19 = vpop.f32.mrb[100].mxu0  ;;  %v1399_v20 = vpop.f32.mrb[100].mxu1 }
 0x1c7   :  { %2040 = vst [vmem:[%s4332_s3 + $0x180] sm:$0xff] %v1882_v15  ;;  %v1883_v21 = vadd.f32 %v3241_v9, %v1721_v16  ;;  %2120 = vst [vmem:[%s4332_s3 + $0x400] sm:$0xff] %v1962_v17  ;;  %v1963_v22 = vadd.f32 %v3241_v9, %v1801_v18  ;;  %v1080_v23 = vadd.f32 %v1079_v19, %v3224_v60  ;;  %v2499_v24 = vpop.f32.mrb[101].mxu0  ;;  %v2659_v26 = vpop.f32.mrb[101].mxu1 }
 0x1c8   :  { %v1400_v25 = vadd.f32 %v1399_v20, %v3224_v60  ;;  %v1082_v27 = vpop.f32.mrb[102].mxu0  ;;  %v1402_v28 = vpop.f32.mrb[102].mxu1 }
 0x1c9   :  { %2041 = vst [vmem:[%s4332_s3 + $0x188] sm:$0xff] %v1883_v21  ;;  %2121 = vst [vmem:[%s4332_s3 + $0x408] sm:$0xff] %v1963_v22  ;;  %v1560_v29 = vmax.f32 %v1080_v23, 0.0  ;;  %v1083_v30 = vadd.f32 %v1082_v27, %v3224_v60  ;;  %v2500_v31 = vpop.f32.mrb[103].mxu0  ;;  %v1403_v33 = vadd.f32 %v1402_v28, %v3224_v60  ;;  %v2660_v34 = vpop.f32.mrb[103].mxu1 }
 0x1ca   :  { %v1640_v32 = vmax.f32 %v1400_v25, 0.0 }
 0x1cb   :  { %v1722_v35 = vmul.f32 %v3232_v3, %v1560_v29  ;;  %v1561_v36 = vmax.f32 %v1083_v30, 0.0  ;;  %v1641_v38 = vmax.f32 %v1403_v33, 0.0 }
 0x1cc   :  { %v1802_v37 = vmul.f32 %v3232_v3, %v1640_v32 }
 0x1cd   :  { %v1884_v39 = vadd.f32 %v3241_v9, %v1722_v35  ;;  %v1723_v40 = vmul.f32 %v3232_v3, %v1561_v36  ;;  %v1803_v42 = vmul.f32 %v3232_v3, %v1641_v38 }
 0x1ce   :  { %v1964_v41 = vadd.f32 %v3241_v9, %v1802_v37  ;;  %v1087_v43 = vpop.f32.mrb[104].mxu0  ;;  %v1407_v44 = vpop.f32.mrb[104].mxu1 }
 0x1cf   :  { %2042 = vst [vmem:[%s4332_s3 + $0x190] sm:$0xff] %v1884_v39  ;;  %v1885_v45 = vadd.f32 %v3241_v9, %v1723_v40  ;;  %v1965_v46 = vadd.f32 %v3241_v9, %v1803_v42  ;;  %v1088_v47 = vadd.f32 %v1087_v43, %v3224_v60  ;;  %v2503_v48 = vpop.f32.mrb[105].mxu0  ;;  %v1408_v49 = vadd.f32 %v1407_v44, %v3224_v60  ;;  %v2663_v50 = vpop.f32.mrb[105].mxu1 }
 0x1d0   :  { %2122 = vst [vmem:[%s4332_s3 + $0x410] sm:$0xff] %v1964_v41  ;;  %v1090_v51 = vpop.f32.mrb[106].mxu0  ;;  %v1410_v52 = vpop.f32.mrb[106].mxu1 }
 0x1d1   :  { %2043 = vst [vmem:[%s4332_s3 + $0x198] sm:$0xff] %v1885_v45  ;;  %2123 = vst [vmem:[%s4332_s3 + $0x418] sm:$0xff] %v1965_v46  ;;  %v1562_v53 = vmax.f32 %v1088_v47, 0.0  ;;  %v1091_v54 = vadd.f32 %v1090_v51, %v3224_v60  ;;  %v2504_v55 = vpop.f32.mrb[107].mxu0  ;;  %v1642_v56 = vmax.f32 %v1408_v49, 0.0  ;;  %v1411_v57 = vadd.f32 %v1410_v52, %v3224_v60  ;;  %v2664_v58 = vpop.f32.mrb[107].mxu1 }
 0x1d3   :  { %v1724_v59 = vmul.f32 %v3232_v3, %v1562_v53  ;;  %v1563_v61 = vmax.f32 %v1091_v54, 0.0  ;;  %v1804_v62 = vmul.f32 %v3232_v3, %v1642_v56  ;;  %v1643_v63 = vmax.f32 %v1411_v57, 0.0 }
 0x1d5   :  { %v1886_v1 = vadd.f32 %v3241_v9, %v1724_v59  ;;  %v1725_v2 = vmul.f32 %v3232_v3, %v1563_v61  ;;  %v1966_v4 = vadd.f32 %v3241_v9, %v1804_v62  ;;  %v1805_v5 = vmul.f32 %v3232_v3, %v1643_v63 }
 0x1d6   :  { %v1095_v6 = vpop.f32.mrb[108].mxu0  ;;  %v1415_v7 = vpop.f32.mrb[108].mxu1 }
 0x1d7   :  { %2044 = vst [vmem:[%s4332_s3 + $0x1a0] sm:$0xff] %v1886_v1  ;;  %v1887_v8 = vadd.f32 %v3241_v9, %v1725_v2  ;;  %2124 = vst [vmem:[%s4332_s3 + $0x420] sm:$0xff] %v1966_v4  ;;  %v1967_v10 = vadd.f32 %v3241_v9, %v1805_v5  ;;  %v1096_v11 = vadd.f32 %v1095_v6, %v3224_v60  ;;  %v2507_v12 = vpop.f32.mrb[109].mxu0  ;;  %v2667_v14 = vpop.f32.mrb[109].mxu1 }
 0x1d8   :  { %v1416_v13 = vadd.f32 %v1415_v7, %v3224_v60  ;;  %v1098_v0 = vpop.f32.mrb[110].mxu0  ;;  %v1418_v15 = vpop.f32.mrb[110].mxu1 }
 0x1d9   :  { %2045 = vst [vmem:[%s4332_s3 + $0x1a8] sm:$0xff] %v1887_v8  ;;  %2125 = vst [vmem:[%s4332_s3 + $0x428] sm:$0xff] %v1967_v10  ;;  %v1564_v16 = vmax.f32 %v1096_v11, 0.0  ;;  %v1099_v17 = vadd.f32 %v1098_v0, %v3224_v60  ;;  %v2508_v18 = vpop.f32.mrb[111].mxu0  ;;  %v1419_v20 = vadd.f32 %v1418_v15, %v3224_v60  ;;  %v2668_v21 = vpop.f32.mrb[111].mxu1 }
 0x1da   :  { %v1644_v19 = vmax.f32 %v1416_v13, 0.0 }
 0x1db   :  { %v1726_v22 = vmul.f32 %v3232_v3, %v1564_v16  ;;  %v1565_v23 = vmax.f32 %v1099_v17, 0.0  ;;  %v1645_v25 = vmax.f32 %v1419_v20, 0.0 }
 0x1dc   :  { %v1806_v24 = vmul.f32 %v3232_v3, %v1644_v19 }
 0x1dd   :  { %v1888_v26 = vadd.f32 %v3241_v9, %v1726_v22  ;;  %v1727_v27 = vmul.f32 %v3232_v3, %v1565_v23  ;;  %v1807_v29 = vmul.f32 %v3232_v3, %v1645_v25 }
 0x1de   :  { %v1968_v28 = vadd.f32 %v3241_v9, %v1806_v24  ;;  %v1103_v30 = vpop.f32.mrb[112].mxu0  ;;  %v1423_v31 = vpop.f32.mrb[112].mxu1 }
 0x1df   :  { %2046 = vst [vmem:[%s4332_s3 + $0x1b0] sm:$0xff] %v1888_v26  ;;  %v1889_v32 = vadd.f32 %v3241_v9, %v1727_v27  ;;  %v1969_v33 = vadd.f32 %v3241_v9, %v1807_v29  ;;  %v1104_v34 = vadd.f32 %v1103_v30, %v3224_v60  ;;  %v2511_v35 = vpop.f32.mrb[113].mxu0  ;;  %v1424_v36 = vadd.f32 %v1423_v31, %v3224_v60  ;;  %v2671_v37 = vpop.f32.mrb[113].mxu1 }
 0x1e0   :  { %2126 = vst [vmem:[%s4332_s3 + $0x430] sm:$0xff] %v1968_v28  ;;  %v1106_v38 = vpop.f32.mrb[114].mxu0  ;;  %v1426_v39 = vpop.f32.mrb[114].mxu1 }
 0x1e1   :  { %2047 = vst [vmem:[%s4332_s3 + $0x1b8] sm:$0xff] %v1889_v32  ;;  %2127 = vst [vmem:[%s4332_s3 + $0x438] sm:$0xff] %v1969_v33  ;;  %v1566_v40 = vmax.f32 %v1104_v34, 0.0  ;;  %v1107_v41 = vadd.f32 %v1106_v38, %v3224_v60  ;;  %v2512_v42 = vpop.f32.mrb[115].mxu0  ;;  %v1646_v43 = vmax.f32 %v1424_v36, 0.0  ;;  %v1427_v44 = vadd.f32 %v1426_v39, %v3224_v60  ;;  %v2672_v45 = vpop.f32.mrb[115].mxu1 }
 0x1e3   :  { %v1728_v46 = vmul.f32 %v3232_v3, %v1566_v40  ;;  %v1567_v47 = vmax.f32 %v1107_v41, 0.0  ;;  %v1808_v48 = vmul.f32 %v3232_v3, %v1646_v43  ;;  %v1647_v49 = vmax.f32 %v1427_v44, 0.0 }
 0x1e5   :  { %v1890_v50 = vadd.f32 %v3241_v9, %v1728_v46  ;;  %v1729_v51 = vmul.f32 %v3232_v3, %v1567_v47  ;;  %v1970_v52 = vadd.f32 %v3241_v9, %v1808_v48  ;;  %v1809_v53 = vmul.f32 %v3232_v3, %v1647_v49 }
 0x1e6   :  { %v1111_v54 = vpop.f32.mrb[116].mxu0  ;;  %v1431_v55 = vpop.f32.mrb[116].mxu1 }
 0x1e7   :  { %2048 = vst [vmem:[%s4332_s3 + $0x1c0] sm:$0xff] %v1890_v50  ;;  %v1891_v56 = vadd.f32 %v3241_v9, %v1729_v51  ;;  %2128 = vst [vmem:[%s4332_s3 + $0x440] sm:$0xff] %v1970_v52  ;;  %v1971_v57 = vadd.f32 %v3241_v9, %v1809_v53  ;;  %v1112_v58 = vadd.f32 %v1111_v54, %v3224_v60  ;;  %v2515_v59 = vpop.f32.mrb[117].mxu0  ;;  %v2675_v62 = vpop.f32.mrb[117].mxu1 }
 0x1e8   :  { %v1432_v61 = vadd.f32 %v1431_v55, %v3224_v60  ;;  %v1114_v63 = vpop.f32.mrb[118].mxu0  ;;  %v1434_v1 = vpop.f32.mrb[118].mxu1 }
 0x1e9   :  { %2049 = vst [vmem:[%s4332_s3 + $0x1c8] sm:$0xff] %v1891_v56  ;;  %2129 = vst [vmem:[%s4332_s3 + $0x448] sm:$0xff] %v1971_v57  ;;  %v1568_v2 = vmax.f32 %v1112_v58, 0.0  ;;  %v1115_v4 = vadd.f32 %v1114_v63, %v3224_v60  ;;  %v2516_v5 = vpop.f32.mrb[119].mxu0  ;;  %v1435_v7 = vadd.f32 %v1434_v1, %v3224_v60  ;;  %v2676_v8 = vpop.f32.mrb[119].mxu1 }
 0x1ea   :  { %v1648_v6 = vmax.f32 %v1432_v61, 0.0 }
 0x1eb   :  { %v1730_v10 = vmul.f32 %v3232_v3, %v1568_v2  ;;  %v1569_v11 = vmax.f32 %v1115_v4, 0.0  ;;  %v1649_v13 = vmax.f32 %v1435_v7, 0.0 }
 0x1ec   :  { %v1810_v12 = vmul.f32 %v3232_v3, %v1648_v6 }
 0x1ed   :  { %v1892_v14 = vadd.f32 %v3241_v9, %v1730_v10  ;;  %v1731_v0 = vmul.f32 %v3232_v3, %v1569_v11  ;;  %v1811_v16 = vmul.f32 %v3232_v3, %v1649_v13 }
 0x1ee   :  { %v1972_v15 = vadd.f32 %v3241_v9, %v1810_v12  ;;  %v1119_v17 = vpop.f32.mrb[120].mxu0  ;;  %v1439_v18 = vpop.f32.mrb[120].mxu1 }
 0x1ef   :  { %2050 = vst [vmem:[%s4332_s3 + $0x1d0] sm:$0xff] %v1892_v14  ;;  %v1893_v19 = vadd.f32 %v3241_v9, %v1731_v0  ;;  %v1973_v20 = vadd.f32 %v3241_v9, %v1811_v16  ;;  %v1120_v21 = vadd.f32 %v1119_v17, %v3224_v60  ;;  %v2519_v22 = vpop.f32.mrb[121].mxu0  ;;  %v1440_v23 = vadd.f32 %v1439_v18, %v3224_v60  ;;  %v2679_v24 = vpop.f32.mrb[121].mxu1 }
 0x1f0   :  { %2130 = vst [vmem:[%s4332_s3 + $0x450] sm:$0xff] %v1972_v15  ;;  %v1122_v25 = vpop.f32.mrb[122].mxu0  ;;  %v1442_v26 = vpop.f32.mrb[122].mxu1 }
 0x1f1   :  { %2051 = vst [vmem:[%s4332_s3 + $0x1d8] sm:$0xff] %v1893_v19  ;;  %2131 = vst [vmem:[%s4332_s3 + $0x458] sm:$0xff] %v1973_v20  ;;  %v1570_v27 = vmax.f32 %v1120_v21, 0.0  ;;  %v1123_v28 = vadd.f32 %v1122_v25, %v3224_v60  ;;  %v2520_v29 = vpop.f32.mrb[123].mxu0  ;;  %v1650_v30 = vmax.f32 %v1440_v23, 0.0  ;;  %v1443_v31 = vadd.f32 %v1442_v26, %v3224_v60  ;;  %v2680_v32 = vpop.f32.mrb[123].mxu1 }
 0x1f3   :  { %v1732_v33 = vmul.f32 %v3232_v3, %v1570_v27  ;;  %v1571_v34 = vmax.f32 %v1123_v28, 0.0  ;;  %v1812_v35 = vmul.f32 %v3232_v3, %v1650_v30  ;;  %v1651_v36 = vmax.f32 %v1443_v31, 0.0 }
 0x1f5   :  { %v1894_v37 = vadd.f32 %v3241_v9, %v1732_v33  ;;  %v1733_v38 = vmul.f32 %v3232_v3, %v1571_v34  ;;  %v1974_v39 = vadd.f32 %v3241_v9, %v1812_v35  ;;  %v1813_v40 = vmul.f32 %v3232_v3, %v1651_v36 }
 0x1f6   :  { %v1127_v41 = vpop.f32.mrb[124].mxu0  ;;  %v1447_v42 = vpop.f32.mrb[124].mxu1 }
 0x1f7   :  { %2052 = vst [vmem:[%s4332_s3 + $0x1e0] sm:$0xff] %v1894_v37  ;;  %v1895_v43 = vadd.f32 %v3241_v9, %v1733_v38  ;;  %2132 = vst [vmem:[%s4332_s3 + $0x460] sm:$0xff] %v1974_v39  ;;  %v1975_v44 = vadd.f32 %v3241_v9, %v1813_v40  ;;  %v1128_v45 = vadd.f32 %v1127_v41, %v3224_v60  ;;  %v2523_v46 = vpop.f32.mrb[125].mxu0  ;;  %v2683_v48 = vpop.f32.mrb[125].mxu1 }
 0x1f8   :  { %v1448_v47 = vadd.f32 %v1447_v42, %v3224_v60  ;;  %v1130_v49 = vpop.f32.mrb[126].mxu0  ;;  %v1450_v50 = vpop.f32.mrb[126].mxu1 }
 0x1f9   :  { %2053 = vst [vmem:[%s4332_s3 + $0x1e8] sm:$0xff] %v1895_v43  ;;  %2133 = vst [vmem:[%s4332_s3 + $0x468] sm:$0xff] %v1975_v44  ;;  %v1572_v51 = vmax.f32 %v1128_v45, 0.0  ;;  %v1131_v52 = vadd.f32 %v1130_v49, %v3224_v60  ;;  %v2524_v53 = vpop.f32.mrb[127].mxu0  ;;  %v1451_v55 = vadd.f32 %v1450_v50, %v3224_v60  ;;  %v2684_v56 = vpop.f32.mrb[127].mxu1 }
 0x1fa   :  { %v1652_v54 = vmax.f32 %v1448_v47, 0.0 }
 0x1fb   :  { %v1734_v57 = vmul.f32 %v3232_v3, %v1572_v51  ;;  %v1573_v58 = vmax.f32 %v1131_v52, 0.0  ;;  %v1653_v61 = vmax.f32 %v1451_v55, 0.0 }
 0x1fc   :  { %v1814_v59 = vmul.f32 %v3232_v3, %v1652_v54 }
 0x1fd   :  { %v1896_v62 = vadd.f32 %v3241_v9, %v1734_v57  ;;  %v1735_v63 = vmul.f32 %v3232_v3, %v1573_v58  ;;  %v1815_v2 = vmul.f32 %v3232_v3, %v1653_v61 }
 0x1fe   :  { %v1976_v1 = vadd.f32 %v3241_v9, %v1814_v59  ;;  %v1135_v4 = vpop.f32.mrb[128].mxu0  ;;  %v1455_v5 = vpop.f32.mrb[128].mxu1 }
 0x1ff   :  { %2054 = vst [vmem:[%s4332_s3 + $0x1f0] sm:$0xff] %v1896_v62  ;;  %v1897_v6 = vadd.f32 %v3241_v9, %v1735_v63  ;;  %v1977_v7 = vadd.f32 %v3241_v9, %v1815_v2  ;;  %v1136_v8 = vadd.f32 %v1135_v4, %v3224_v60  ;;  %v2527_v10 = vpop.f32.mrb[129].mxu0  ;;  %v1456_v11 = vadd.f32 %v1455_v5, %v3224_v60  ;;  %v2687_v12 = vpop.f32.mrb[129].mxu1 }
 0x200   :  { %2134 = vst [vmem:[%s4332_s3 + $0x470] sm:$0xff] %v1976_v1  ;;  %v1138_v13 = vpop.f32.mrb[130].mxu0  ;;  %v1458_v14 = vpop.f32.mrb[130].mxu1 }
 0x201   :  { %2055 = vst [vmem:[%s4332_s3 + $0x1f8] sm:$0xff] %v1897_v6  ;;  %2135 = vst [vmem:[%s4332_s3 + $0x478] sm:$0xff] %v1977_v7  ;;  %v1574_v0 = vmax.f32 %v1136_v8, 0.0  ;;  %v1139_v15 = vadd.f32 %v1138_v13, %v3224_v60  ;;  %v2528_v16 = vpop.f32.mrb[131].mxu0  ;;  %v1654_v17 = vmax.f32 %v1456_v11, 0.0  ;;  %v1459_v18 = vadd.f32 %v1458_v14, %v3224_v60  ;;  %v2688_v19 = vpop.f32.mrb[131].mxu1 }
 0x203   :  { %v1736_v20 = vmul.f32 %v3232_v3, %v1574_v0  ;;  %v1575_v21 = vmax.f32 %v1139_v15, 0.0  ;;  %v1816_v22 = vmul.f32 %v3232_v3, %v1654_v17  ;;  %v1655_v23 = vmax.f32 %v1459_v18, 0.0 }
 0x205   :  { %v1898_v24 = vadd.f32 %v3241_v9, %v1736_v20  ;;  %v1737_v25 = vmul.f32 %v3232_v3, %v1575_v21  ;;  %v1978_v26 = vadd.f32 %v3241_v9, %v1816_v22  ;;  %v1817_v27 = vmul.f32 %v3232_v3, %v1655_v23 }
 0x206   :  { %v1143_v28 = vpop.f32.mrb[132].mxu0  ;;  %v1463_v29 = vpop.f32.mrb[132].mxu1 }
 0x207   :  { %2056 = vst [vmem:[%s4332_s3 + $0x200] sm:$0xff] %v1898_v24  ;;  %v1899_v30 = vadd.f32 %v3241_v9, %v1737_v25  ;;  %2136 = vst [vmem:[%s4332_s3 + $0x480] sm:$0xff] %v1978_v26  ;;  %v1979_v31 = vadd.f32 %v3241_v9, %v1817_v27  ;;  %v1144_v32 = vadd.f32 %v1143_v28, %v3224_v60  ;;  %v2531_v33 = vpop.f32.mrb[133].mxu0  ;;  %v2691_v35 = vpop.f32.mrb[133].mxu1 }
 0x208   :  { %v1464_v34 = vadd.f32 %v1463_v29, %v3224_v60  ;;  %v1146_v36 = vpop.f32.mrb[134].mxu0  ;;  %v1466_v37 = vpop.f32.mrb[134].mxu1 }
 0x209   :  { %2057 = vst [vmem:[%s4332_s3 + $0x208] sm:$0xff] %v1899_v30  ;;  %2137 = vst [vmem:[%s4332_s3 + $0x488] sm:$0xff] %v1979_v31  ;;  %v1576_v38 = vmax.f32 %v1144_v32, 0.0  ;;  %v1147_v39 = vadd.f32 %v1146_v36, %v3224_v60  ;;  %v2532_v40 = vpop.f32.mrb[135].mxu0  ;;  %v1467_v42 = vadd.f32 %v1466_v37, %v3224_v60  ;;  %v2692_v43 = vpop.f32.mrb[135].mxu1 }
 0x20a   :  { %v1656_v41 = vmax.f32 %v1464_v34, 0.0 }
 0x20b   :  { %v1738_v44 = vmul.f32 %v3232_v3, %v1576_v38  ;;  %v1577_v45 = vmax.f32 %v1147_v39, 0.0  ;;  %v1657_v47 = vmax.f32 %v1467_v42, 0.0 }
 0x20c   :  { %v1818_v46 = vmul.f32 %v3232_v3, %v1656_v41 }
 0x20d   :  { %v1900_v48 = vadd.f32 %v3241_v9, %v1738_v44  ;;  %v1739_v49 = vmul.f32 %v3232_v3, %v1577_v45  ;;  %v1819_v51 = vmul.f32 %v3232_v3, %v1657_v47 }
 0x20e   :  { %v1980_v50 = vadd.f32 %v3241_v9, %v1818_v46  ;;  %v1151_v52 = vpop.f32.mrb[136].mxu0  ;;  %v1471_v53 = vpop.f32.mrb[136].mxu1 }
 0x20f   :  { %2058 = vst [vmem:[%s4332_s3 + $0x210] sm:$0xff] %v1900_v48  ;;  %v1901_v54 = vadd.f32 %v3241_v9, %v1739_v49  ;;  %v1981_v55 = vadd.f32 %v3241_v9, %v1819_v51  ;;  %v1152_v56 = vadd.f32 %v1151_v52, %v3224_v60  ;;  %v2535_v57 = vpop.f32.mrb[137].mxu0  ;;  %v1472_v58 = vadd.f32 %v1471_v53, %v3224_v60  ;;  %v2695_v59 = vpop.f32.mrb[137].mxu1 }
 0x210   :  { %2138 = vst [vmem:[%s4332_s3 + $0x490] sm:$0xff] %v1980_v50  ;;  %v1154_v61 = vpop.f32.mrb[138].mxu0  ;;  %v1474_v62 = vpop.f32.mrb[138].mxu1 }
 0x211   :  { %2059 = vst [vmem:[%s4332_s3 + $0x218] sm:$0xff] %v1901_v54  ;;  %2139 = vst [vmem:[%s4332_s3 + $0x498] sm:$0xff] %v1981_v55  ;;  %v1578_v63 = vmax.f32 %v1152_v56, 0.0  ;;  %v1155_v1 = vadd.f32 %v1154_v61, %v3224_v60  ;;  %v2536_v2 = vpop.f32.mrb[139].mxu0  ;;  %v1658_v4 = vmax.f32 %v1472_v58, 0.0  ;;  %v1475_v5 = vadd.f32 %v1474_v62, %v3224_v60  ;;  %v2696_v6 = vpop.f32.mrb[139].mxu1 }
 0x213   :  { %v1740_v7 = vmul.f32 %v3232_v3, %v1578_v63  ;;  %v1579_v8 = vmax.f32 %v1155_v1, 0.0  ;;  %v1820_v10 = vmul.f32 %v3232_v3, %v1658_v4  ;;  %v1659_v11 = vmax.f32 %v1475_v5, 0.0 }
 0x215   :  { %v1902_v12 = vadd.f32 %v3241_v9, %v1740_v7  ;;  %v1741_v13 = vmul.f32 %v3232_v3, %v1579_v8  ;;  %v1982_v14 = vadd.f32 %v3241_v9, %v1820_v10  ;;  %v1821_v0 = vmul.f32 %v3232_v3, %v1659_v11 }
 0x216   :  { %v1159_v15 = vpop.f32.mrb[140].mxu0  ;;  %v1479_v16 = vpop.f32.mrb[140].mxu1 }
 0x217   :  { %2060 = vst [vmem:[%s4332_s3 + $0x220] sm:$0xff] %v1902_v12  ;;  %v1903_v17 = vadd.f32 %v3241_v9, %v1741_v13  ;;  %2140 = vst [vmem:[%s4332_s3 + $0x4a0] sm:$0xff] %v1982_v14  ;;  %v1983_v18 = vadd.f32 %v3241_v9, %v1821_v0  ;;  %v1160_v19 = vadd.f32 %v1159_v15, %v3224_v60  ;;  %v2539_v20 = vpop.f32.mrb[141].mxu0  ;;  %v2699_v22 = vpop.f32.mrb[141].mxu1 }
 0x218   :  { %v1480_v21 = vadd.f32 %v1479_v16, %v3224_v60  ;;  %v1162_v23 = vpop.f32.mrb[142].mxu0  ;;  %v1482_v24 = vpop.f32.mrb[142].mxu1 }
 0x219   :  { %2061 = vst [vmem:[%s4332_s3 + $0x228] sm:$0xff] %v1903_v17  ;;  %2141 = vst [vmem:[%s4332_s3 + $0x4a8] sm:$0xff] %v1983_v18  ;;  %v1580_v25 = vmax.f32 %v1160_v19, 0.0  ;;  %v1163_v26 = vadd.f32 %v1162_v23, %v3224_v60  ;;  %v2540_v27 = vpop.f32.mrb[143].mxu0  ;;  %v1483_v29 = vadd.f32 %v1482_v24, %v3224_v60  ;;  %v2700_v30 = vpop.f32.mrb[143].mxu1 }
 0x21a   :  { %v1660_v28 = vmax.f32 %v1480_v21, 0.0 }
 0x21b   :  { %v1742_v31 = vmul.f32 %v3232_v3, %v1580_v25  ;;  %v1581_v32 = vmax.f32 %v1163_v26, 0.0  ;;  %v1661_v34 = vmax.f32 %v1483_v29, 0.0 }
 0x21c   :  { %v1822_v33 = vmul.f32 %v3232_v3, %v1660_v28 }
 0x21d   :  { %v1904_v35 = vadd.f32 %v3241_v9, %v1742_v31  ;;  %v1743_v36 = vmul.f32 %v3232_v3, %v1581_v32  ;;  %v1823_v38 = vmul.f32 %v3232_v3, %v1661_v34 }
 0x21e   :  { %v1984_v37 = vadd.f32 %v3241_v9, %v1822_v33  ;;  %v1167_v39 = vpop.f32.mrb[144].mxu0  ;;  %v1487_v40 = vpop.f32.mrb[144].mxu1 }
 0x21f   :  { %2062 = vst [vmem:[%s4332_s3 + $0x230] sm:$0xff] %v1904_v35  ;;  %v1905_v41 = vadd.f32 %v3241_v9, %v1743_v36  ;;  %v1985_v42 = vadd.f32 %v3241_v9, %v1823_v38  ;;  %v1168_v43 = vadd.f32 %v1167_v39, %v3224_v60  ;;  %v2543_v44 = vpop.f32.mrb[145].mxu0  ;;  %v1488_v45 = vadd.f32 %v1487_v40, %v3224_v60  ;;  %v2703_v46 = vpop.f32.mrb[145].mxu1 }
 0x220   :  { %2142 = vst [vmem:[%s4332_s3 + $0x4b0] sm:$0xff] %v1984_v37  ;;  %v1170_v47 = vpop.f32.mrb[146].mxu0  ;;  %v1490_v48 = vpop.f32.mrb[146].mxu1 }
 0x221   :  { %2063 = vst [vmem:[%s4332_s3 + $0x238] sm:$0xff] %v1905_v41  ;;  %2143 = vst [vmem:[%s4332_s3 + $0x4b8] sm:$0xff] %v1985_v42  ;;  %v1582_v49 = vmax.f32 %v1168_v43, 0.0  ;;  %v1171_v50 = vadd.f32 %v1170_v47, %v3224_v60  ;;  %v2544_v51 = vpop.f32.mrb[147].mxu0  ;;  %v1662_v52 = vmax.f32 %v1488_v45, 0.0  ;;  %v1491_v53 = vadd.f32 %v1490_v48, %v3224_v60  ;;  %v2704_v54 = vpop.f32.mrb[147].mxu1 }
 0x223   :  { %v1744_v55 = vmul.f32 %v3232_v3, %v1582_v49  ;;  %v1583_v56 = vmax.f32 %v1171_v50, 0.0  ;;  %v1824_v57 = vmul.f32 %v3232_v3, %v1662_v52  ;;  %v1663_v58 = vmax.f32 %v1491_v53, 0.0 }
 0x225   :  { %v1906_v59 = vadd.f32 %v3241_v9, %v1744_v55  ;;  %v1745_v61 = vmul.f32 %v3232_v3, %v1583_v56  ;;  %v1986_v62 = vadd.f32 %v3241_v9, %v1824_v57  ;;  %v1825_v63 = vmul.f32 %v3232_v3, %v1663_v58 }
 0x226   :  { %v1175_v1 = vpop.f32.mrb[148].mxu0  ;;  %v1495_v2 = vpop.f32.mrb[148].mxu1 }
 0x227   :  { %2064 = vst [vmem:[%s4332_s3 + $0x240] sm:$0xff] %v1906_v59  ;;  %v1907_v4 = vadd.f32 %v3241_v9, %v1745_v61  ;;  %2144 = vst [vmem:[%s4332_s3 + $0x4c0] sm:$0xff] %v1986_v62  ;;  %v1987_v5 = vadd.f32 %v3241_v9, %v1825_v63  ;;  %v1176_v6 = vadd.f32 %v1175_v1, %v3224_v60  ;;  %v2547_v7 = vpop.f32.mrb[149].mxu0  ;;  %v2707_v10 = vpop.f32.mrb[149].mxu1 }
 0x228   :  { %v1496_v8 = vadd.f32 %v1495_v2, %v3224_v60  ;;  %v1178_v11 = vpop.f32.mrb[150].mxu0  ;;  %v1498_v12 = vpop.f32.mrb[150].mxu1 }
 0x229   :  { %2065 = vst [vmem:[%s4332_s3 + $0x248] sm:$0xff] %v1907_v4  ;;  %2145 = vst [vmem:[%s4332_s3 + $0x4c8] sm:$0xff] %v1987_v5  ;;  %v1584_v13 = vmax.f32 %v1176_v6, 0.0  ;;  %v1179_v14 = vadd.f32 %v1178_v11, %v3224_v60  ;;  %v2548_v0 = vpop.f32.mrb[151].mxu0  ;;  %v1499_v16 = vadd.f32 %v1498_v12, %v3224_v60  ;;  %v2708_v17 = vpop.f32.mrb[151].mxu1 }
 0x22a   :  { %v1664_v15 = vmax.f32 %v1496_v8, 0.0 }
 0x22b   :  { %v1746_v18 = vmul.f32 %v3232_v3, %v1584_v13  ;;  %v1585_v19 = vmax.f32 %v1179_v14, 0.0  ;;  %v1665_v21 = vmax.f32 %v1499_v16, 0.0 }
 0x22c   :  { %v1826_v20 = vmul.f32 %v3232_v3, %v1664_v15 }
 0x22d   :  { %v1908_v22 = vadd.f32 %v3241_v9, %v1746_v18  ;;  %v1747_v23 = vmul.f32 %v3232_v3, %v1585_v19  ;;  %v1827_v25 = vmul.f32 %v3232_v3, %v1665_v21 }
 0x22e   :  { %v1988_v24 = vadd.f32 %v3241_v9, %v1826_v20  ;;  %v1183_v26 = vpop.f32.mrb[152].mxu0  ;;  %v1503_v27 = vpop.f32.mrb[152].mxu1 }
 0x22f   :  { %2066 = vst [vmem:[%s4332_s3 + $0x250] sm:$0xff] %v1908_v22  ;;  %v1909_v28 = vadd.f32 %v3241_v9, %v1747_v23  ;;  %v1989_v29 = vadd.f32 %v3241_v9, %v1827_v25  ;;  %v1184_v30 = vadd.f32 %v1183_v26, %v3224_v60  ;;  %v2551_v31 = vpop.f32.mrb[153].mxu0  ;;  %v1504_v32 = vadd.f32 %v1503_v27, %v3224_v60  ;;  %v2711_v33 = vpop.f32.mrb[153].mxu1 }
 0x230   :  { %2146 = vst [vmem:[%s4332_s3 + $0x4d0] sm:$0xff] %v1988_v24  ;;  %v1186_v34 = vpop.f32.mrb[154].mxu0  ;;  %v1506_v35 = vpop.f32.mrb[154].mxu1 }
 0x231   :  { %2067 = vst [vmem:[%s4332_s3 + $0x258] sm:$0xff] %v1909_v28  ;;  %2147 = vst [vmem:[%s4332_s3 + $0x4d8] sm:$0xff] %v1989_v29  ;;  %v1586_v36 = vmax.f32 %v1184_v30, 0.0  ;;  %v1187_v37 = vadd.f32 %v1186_v34, %v3224_v60  ;;  %v2552_v38 = vpop.f32.mrb[155].mxu0  ;;  %v1666_v39 = vmax.f32 %v1504_v32, 0.0  ;;  %v1507_v40 = vadd.f32 %v1506_v35, %v3224_v60  ;;  %v2712_v41 = vpop.f32.mrb[155].mxu1 }
 0x233   :  { %v1748_v42 = vmul.f32 %v3232_v3, %v1586_v36  ;;  %v1587_v43 = vmax.f32 %v1187_v37, 0.0  ;;  %v1828_v44 = vmul.f32 %v3232_v3, %v1666_v39  ;;  %v1667_v45 = vmax.f32 %v1507_v40, 0.0 }
 0x235   :  { %v1910_v46 = vadd.f32 %v3241_v9, %v1748_v42  ;;  %v1749_v47 = vmul.f32 %v3232_v3, %v1587_v43  ;;  %v1990_v48 = vadd.f32 %v3241_v9, %v1828_v44  ;;  %v1829_v49 = vmul.f32 %v3232_v3, %v1667_v45 }
 0x236   :  { %v1191_v50 = vpop.f32.mrb[156].mxu0 }
 0x237   :  { %2068 = vst [vmem:[%s4332_s3 + $0x260] sm:$0xff] %v1910_v46  ;;  %v1911_v51 = vadd.f32 %v3241_v9, %v1749_v47  ;;  %2148 = vst [vmem:[%s4332_s3 + $0x4e0] sm:$0xff] %v1990_v48  ;;  %v1991_v52 = vadd.f32 %v3241_v9, %v1829_v49  ;;  %v1192_v53 = vadd.f32 %v1191_v50, %v3224_v60  ;;  %v2555_v54 = vpop.f32.mrb[157].mxu0 }
 0x238   :  { %v1194_v55 = vpop.f32.mrb[158].mxu0 }
 0x239   :  { %2069 = vst [vmem:[%s4332_s3 + $0x268] sm:$0xff] %v1911_v51  ;;  %2149 = vst [vmem:[%s4332_s3 + $0x4e8] sm:$0xff] %v1991_v52  ;;  %v1588_v56 = vmax.f32 %v1192_v53, 0.0  ;;  %v1195_v57 = vadd.f32 %v1194_v55, %v3224_v60  ;;  %v2556_v58 = vpop.f32.mrb[159].mxu0 }
 0x23b   :  { %v1750_v59 = vmul.f32 %v3232_v3, %v1588_v56  ;;  %v1589_v61 = vmax.f32 %v1195_v57, 0.0 }
 0x23d   :  { %v1912_v62 = vadd.f32 %v3241_v9, %v1750_v59  ;;  %v1751_v63 = vmul.f32 %v3232_v3, %v1589_v61 }
 0x23f   :  { %2070 = vst [vmem:[%s4332_s3 + $0x270] sm:$0xff] %v1912_v62  ;;  %v1913_v1 = vadd.f32 %v3241_v9, %v1751_v63 }
 0x241   :  { %2071 = vst [vmem:[%s4332_s3 + $0x278] sm:$0xff] %v1913_v1 }
 0x242   :  { %2154 = vsyncpa [#allocation3], 1 }
 0x243   :  { %2155 = vsyncpa [#allocation5], 1 }

// kernel: _forward.7
= control target key start
LH: loop header
LB: loop body
LE: loop exit
PB: predicated region body
PF: predicated region fallthrough
CT: control target
= control target key end

     0   :  { %s1681_s1 = inlined_call_operand.vmem [shape: bf16[384,128], index: 1, kind: input, shape index: {}]   ;;  %s1682_s0 = inlined_call_operand.vmem [shape: bf16[256,384], index: 0, kind: input, shape index: {}]   ;;  %s1683_s2 = inlined_call_operand.vmem [shape: f32[8,128], index: 2, kind: input, shape index: {}]   ;;  %s1684_s3 = inlined_call_operand.vmem [shape: f32[256,128], index: 3, kind: output, shape index: {}]  }
   0x1   :  { %v1194_v0 = vld [vmem:[%s1681_s1 + $0x40] sm:$0xff]   ;;  %v1196_v2 = vld [vmem:[%s1681_s1 + $0x48] sm:$0xff]   ;;  %v1198_v4 = vld [vmem:[%s1681_s1 + $0x50] sm:$0xff]  }
   0x2   :  { %v1195_v1 = vld [vmem:[%s1681_s1] sm:$0xff]   ;;  %994 = vmatprep.subr.bf16.mxu0 %v1194_v0  ;;  %1178 = vmatprep.subr.bf16.mxu1 %v1194_v0  ;;  %v1197_v3 = vld [vmem:[%s1681_s1 + $0x8] sm:$0xff]   ;;  %v1199_v5 = vld [vmem:[%s1681_s1 + $0x10] sm:$0xff]  }
   0x3   :  { %995 = vmatpush3.bf16.msra.mxu0 %v1195_v1  ;;  %1186 = vmatpush3.bf16.msra.mxu1 %v1195_v1  ;;  %v1200_v6 = vld [vmem:[%s1681_s1 + $0x58] sm:$0xff]   ;;  %v1202_v8 = vld [vmem:[%s1681_s1 + $0x60] sm:$0xff]   ;;  %v1204_v10 = vld [vmem:[%s1681_s1 + $0x68] sm:$0xff]  }
   0x4   :  { %996 = vmatprep.subr.bf16.mxu0 %v1196_v2  ;;  %1179 = vmatprep.subr.bf16.mxu1 %v1196_v2  ;;  %v1201_v7 = vld [vmem:[%s1681_s1 + $0x18] sm:$0xff]   ;;  %v1203_v9 = vld [vmem:[%s1681_s1 + $0x20] sm:$0xff]   ;;  %v1205_v13 = vld [vmem:[%s1681_s1 + $0x28] sm:$0xff]  }
   0x5   :  { %v1212_v11 = vld [vmem:[%s1682_s0 + $0x4] ss:$12 sps:$4 sm:$0xff]   ;;  %v1208_v16 = vld [vmem:[%s1681_s1 + $0x78] sm:$0xff]   ;;  %v1210_v19 = vld [vmem:[%s1682_s0] ss:$12 sps:$4 sm:$0xff]  }
   0x6   :  { %v1215_v12 = vld [vmem:[%s1682_s0 + $0x124] ss:$12 sps:$4 sm:$0xff]   ;;  %564 = vmatprep.mubr.bf16.mxu0 %v1212_v11  ;;  %v1209_v17 = vld [vmem:[%s1681_s1 + $0x38] sm:$0xff]   ;;  %v1213_v20 = vld [vmem:[%s1682_s0 + $0x120] ss:$12 sps:$4 sm:$0xff]  }
   0x7   :  { %997 = vmatpush3.bf16.msra.mxu0 %v1197_v3  ;;  %1187 = vmatpush3.bf16.msra.mxu1 %v1197_v3  ;;  %v1206_v14 = vld [vmem:[%s1681_s1 + $0x70] sm:$0xff]   ;;  %v1216_v18 = vld [vmem:[%s1681_s1 + $0x80] sm:$0xff]   ;;  %v1218_v21 = vld [vmem:[%s1682_s0 + $0x1c] ss:$12 sps:$4 sm:$0xff]  }
   0x8   :  { %998 = vmatprep.subr.bf16.mxu0 %v1198_v4  ;;  %1180 = vmatprep.subr.bf16.mxu1 %v1198_v4  ;;  %v1207_v15 = vld [vmem:[%s1681_s1 + $0x30] sm:$0xff]   ;;  %v1217_v22 = vld [vmem:[%s1681_s1 + $0x88] sm:$0xff]   ;;  %v1222_v24 = vld [vmem:[%s1682_s0 + $0x18] ss:$12 sps:$4 sm:$0xff]  }
   0x9   :  { %660 = vmatprep.mubr.bf16.mxu1 %v1215_v12  ;;  %v1220_v23 = vld [vmem:[%s1682_s0 + $0x13c] ss:$12 sps:$4 sm:$0xff]   ;;  %v1224_v25 = vld [vmem:[%s1681_s1 + $0x90] sm:$0xff]   ;;  %v1223_v26 = vld [vmem:[%s1682_s0 + $0x138] ss:$12 sps:$4 sm:$0xff]  }
   0xa   :  { %v1225_v27 = vld [vmem:[%s1681_s1 + $0x98] sm:$0xff]   ;;  %v1226_v28 = vld [vmem:[%s1682_s0 + $0x34] ss:$12 sps:$4 sm:$0xff]   ;;  %v1233_v33 = vld [vmem:[%s1681_s1 + $0xa8] sm:$0xff]  }
   0xb   :  { %999 = vmatpush3.bf16.msra.mxu0 %v1199_v5  ;;  %1188 = vmatpush3.bf16.msra.mxu1 %v1199_v5  ;;  %v1228_v29 = vld [vmem:[%s1682_s0 + $0x154] ss:$12 sps:$4 sm:$0xff]   ;;  %v1230_v31 = vld [vmem:[%s1682_s0 + $0x30] ss:$12 sps:$4 sm:$0xff]   ;;  %v1234_v34 = vld [vmem:[%s1682_s0 + $0x4c] ss:$12 sps:$4 sm:$0xff]  }
   0xc   :  { %1000 = vmatprep.subr.bf16.mxu0 %v1200_v6  ;;  %1181 = vmatprep.subr.bf16.mxu1 %v1200_v6  ;;  %v1232_v30 = vld [vmem:[%s1681_s1 + $0xa0] sm:$0xff]   ;;  %v1231_v32 = vld [vmem:[%s1682_s0 + $0x150] ss:$12 sps:$4 sm:$0xff]   ;;  %v1236_v35 = vld [vmem:[%s1682_s0 + $0x16c] ss:$12 sps:$4 sm:$0xff]  }
   0xd   :  { %v1240_v36 = vld [vmem:[%s1681_s1 + $0xb0] sm:$0xff]   ;;  %v1241_v40 = vld [vmem:[%s1681_s1 + $0xb8] sm:$0xff]   ;;  %v1245_v42 = vld [vmem:[%s1682_s0 + $0x60] ss:$12 sps:$4 sm:$0xff]  }
   0xe   :  { %v1238_v37 = vld [vmem:[%s1682_s0 + $0x48] ss:$12 sps:$4 sm:$0xff]   ;;  %v1242_v39 = vld [vmem:[%s1682_s0 + $0x64] ss:$12 sps:$4 sm:$0xff]   ;;  %v1246_v43 = vld [vmem:[%s1682_s0 + $0x20] ss:$12 sps:$4 sm:$0xff]  }
   0xf   :  { %1001 = vmatpush3.bf16.msra.mxu0 %v1201_v7  ;;  %1189 = vmatpush3.bf16.msra.mxu1 %v1201_v7  ;;  %v1239_v38 = vld [vmem:[%s1682_s0 + $0x168] ss:$12 sps:$4 sm:$0xff]   ;;  %v1249_v45 = vld [vmem:[%s1682_s0 + $0x38] ss:$12 sps:$4 sm:$0xff]   ;;  %v1251_v47 = vld [vmem:[%s1682_s0 + $0x50] ss:$12 sps:$4 sm:$0xff]  }
  0x10   :  { %1002 = vmatprep.subr.bf16.mxu0 %v1202_v8  ;;  %1182 = vmatprep.subr.bf16.mxu1 %v1202_v8  ;;  %v1244_v41 = vld [vmem:[%s1682_s0 + $0x8] ss:$12 sps:$4 sm:$0xff]   ;;  %v1250_v46 = vld [vmem:[%s1682_s0 + $0x78] ss:$12 sps:$4 sm:$0xff]   ;;  %v1255_v50 = vld [vmem:[%s1682_s0 + $0x90] ss:$12 sps:$4 sm:$0xff]  }
  0x11   :  { %v1247_v44 = vld [vmem:[%s1682_s0 + $0x7c] ss:$12 sps:$4 sm:$0xff]   ;;  %v1252_v48 = vld [vmem:[%s1682_s0 + $0x94] ss:$12 sps:$4 sm:$0xff]   ;;  %v1257_v52 = vld [vmem:[%s1682_s0 + $0xac] ss:$12 sps:$4 sm:$0xff]  }
  0x12   :  { %v1254_v49 = vld [vmem:[%s1682_s0 + $0x68] ss:$12 sps:$4 sm:$0xff]   ;;  %v1256_v51 = vld [vmem:[%s1682_s0 + $0x80] ss:$12 sps:$4 sm:$0xff]   ;;  %v1259_v53 = vld [vmem:[%s1682_s0 + $0x98] ss:$12 sps:$4 sm:$0xff]  }
  0x13   :  { %1003 = vmatpush3.bf16.msra.mxu0 %v1203_v9  ;;  %1190 = vmatpush3.bf16.msra.mxu1 %v1203_v9  ;;  %v1260_v54 = vld [vmem:[%s1682_s0 + $0xa8] ss:$12 sps:$4 sm:$0xff]   ;;  %v1261_v55 = vld [vmem:[%s1682_s0 + $0xb0] ss:$12 sps:$4 sm:$0xff]   ;;  %v1265_v58 = vld [vmem:[%s1682_s0 + $0xc0] ss:$12 sps:$4 sm:$0xff]  }
  0x14   :  { %1004 = vmatprep.subr.bf16.mxu0 %v1204_v10  ;;  %1183 = vmatprep.subr.bf16.mxu1 %v1204_v10  ;;  %v1262_v56 = vld [vmem:[%s1682_s0 + $0xc4] ss:$12 sps:$4 sm:$0xff]   ;;  %v1264_v57 = vld [vmem:[%s1682_s0 + $0xc8] ss:$12 sps:$4 sm:$0xff]   ;;  %v1266_v59 = vld [vmem:[%s1682_s0 + $0xe0] ss:$12 sps:$4 sm:$0xff]  }
  0x15   :  { %v1267_v60 = vld [vmem:[%s1682_s0 + $0xdc] ss:$12 sps:$4 sm:$0xff]   ;;  %v1269_v61 = vld [vmem:[%s1682_s0 + $0xf8] ss:$12 sps:$4 sm:$0xff]   ;;  %v1272_v0 = vld [vmem:[%s1682_s0 + $0xf4] ss:$12 sps:$4 sm:$0xff]  }
  0x16   :  { %v1270_v62 = vld [vmem:[%s1682_s0 + $0xd8] ss:$12 sps:$4 sm:$0xff]   ;;  %v1271_v63 = vld [vmem:[%s1682_s0 + $0x110] ss:$12 sps:$4 sm:$0xff]   ;;  %v1274_v1 = vld [vmem:[%s1682_s0 + $0x128] ss:$12 sps:$4 sm:$0xff]  }
  0x17   :  { %1005 = vmatpush3.bf16.msra.mxu0 %v1205_v13  ;;  %1191 = vmatpush3.bf16.msra.mxu1 %v1205_v13  ;;  %v1275_v2 = vld [vmem:[%s1682_s0 + $0xf0] ss:$12 sps:$4 sm:$0xff]   ;;  %v1276_v3 = vld [vmem:[%s1682_s0 + $0x140] ss:$12 sps:$4 sm:$0xff]   ;;  %v1279_v5 = vld [vmem:[%s1682_s0 + $0x158] ss:$12 sps:$4 sm:$0xff]  }
  0x18   :  { %1006 = vmatprep.subr.bf16.mxu0 %v1206_v14  ;;  %1184 = vmatprep.subr.bf16.mxu1 %v1206_v14  ;;  %v1277_v4 = vld [vmem:[%s1682_s0 + $0x10c] ss:$12 sps:$4 sm:$0xff]   ;;  %v1280_v6 = vld [vmem:[%s1682_s0 + $0x108] ss:$12 sps:$4 sm:$0xff]   ;;  %v1281_v7 = vld [vmem:[%s1682_s0 + $0x170] ss:$12 sps:$4 sm:$0xff]  }
  0x1b   :  { %1007 = vmatpush3.bf16.msra.mxu0 %v1207_v15  ;;  %1192 = vmatpush3.bf16.msra.mxu1 %v1207_v15 }
  0x1c   :  { %1008 = vmatprep.subr.bf16.mxu0 %v1208_v16  ;;  %1185 = vmatprep.subr.bf16.mxu1 %v1208_v16 }
  0x1f   :  { %1009 = vmatpush3.bf16.msra.mxu0 %v1209_v17  ;;  %1193 = vmatpush3.bf16.msra.mxu1 %v1209_v17 }
  0x20   :  { %1130 = vmatprep.subr.bf16.mxu1 %v1216_v18 }
  0x22   :  { %565 = vmatmul.mubr.bf16.vlgmr.msra.gmra.mrb[0].mxu0 %v1210_v19  ;;  %661 = vmatmul.mubr.bf16.vlgmr.msra.gmra.mrb[0].mxu1 %v1213_v20 }
  0x23   :  { %1131 = vmatpush3.bf16.msra.mxu1 %v1216_v18  ;;  %572 = vmatprep.mubr.bf16.mxu0 %v1218_v21 }
  0x24   :  { %1132 = vmatprep.subr.bf16.mxu1 %v1217_v22  ;;  %668 = vmatprep.mubr.bf16.mxu1 %v1220_v23 }
  0x27   :  { %1133 = vmatpush3.bf16.msra.mxu1 %v1217_v22 }
  0x28   :  { %1134 = vmatprep.subr.bf16.mxu1 %v1224_v25 }
  0x2a   :  { %573 = vmatmul.mubr.bf16.gmra.mrb[4].mxu0 %v1222_v24  ;;  %669 = vmatmul.mubr.bf16.gmra.mrb[4].mxu1 %v1223_v26 }
  0x2b   :  { %1135 = vmatpush3.bf16.msra.mxu1 %v1224_v25  ;;  %580 = vmatprep.mubr.bf16.mxu0 %v1226_v28 }
  0x2c   :  { %1136 = vmatprep.subr.bf16.mxu1 %v1225_v27  ;;  %676 = vmatprep.mubr.bf16.mxu1 %v1228_v29 }
  0x2f   :  { %1137 = vmatpush3.bf16.msra.mxu1 %v1225_v27 }
  0x30   :  { %1138 = vmatprep.subr.bf16.mxu1 %v1232_v30 }
  0x32   :  { %581 = vmatmul.mubr.bf16.gmra.mrb[8].mxu0 %v1230_v31  ;;  %677 = vmatmul.mubr.bf16.gmra.mrb[8].mxu1 %v1231_v32 }
  0x33   :  { %1139 = vmatpush3.bf16.msra.mxu1 %v1232_v30  ;;  %588 = vmatprep.mubr.bf16.mxu0 %v1234_v34  ;;  %v128_v34 = vlaneseq }
  0x34   :  { %1140 = vmatprep.subr.bf16.mxu1 %v1233_v33  ;;  %684 = vmatprep.mubr.bf16.mxu1 %v1236_v35 }
  0x37   :  { %1141 = vmatpush3.bf16.msra.mxu1 %v1233_v33 }
  0x38   :  { %1142 = vmatprep.subr.bf16.mxu1 %v1240_v36 }
  0x3a   :  { %589 = vmatmul.mubr.bf16.gmra.mrb[12].mxu0 %v1238_v37  ;;  %685 = vmatmul.mubr.bf16.gmra.mrb[12].mxu1 %v1239_v38 }
  0x3b   :  { %1143 = vmatpush3.bf16.msra.mxu1 %v1240_v36  ;;  %596 = vmatprep.mubr.bf16.mxu0 %v1242_v39 }
  0x3c   :  { %1144 = vmatprep.subr.bf16.mxu1 %v1241_v40  ;;  %1146 = vmatprep.mubr.bf16.mxu1 %v1244_v41 }
  0x3f   :  { %1145 = vmatpush3.bf16.msra.mxu1 %v1241_v40 }
  0x42   :  { %597 = vmatmul.mubr.bf16.gmra.mrb[16].mxu0 %v1245_v42  ;;  %1147 = vmatmul.mubr.bf16.vlgmr.msra.gmra.mrb[16].mxu1 %v1246_v43 }
  0x43   :  { %604 = vmatprep.mubr.bf16.mxu0 %v1247_v44  ;;  %1150 = vmatprep.mubr.bf16.mxu1 %v1249_v45  ;;  %v129_v45 = vshrl.u32 %v128_v34, 7 }
  0x4a   :  { %605 = vmatmul.mubr.bf16.gmra.mrb[20].mxu0 %v1250_v46  ;;  %1151 = vmatmul.mubr.bf16.gmra.mrb[20].mxu1 %v1251_v47 }
  0x4b   :  { %612 = vmatprep.mubr.bf16.mxu0 %v1252_v48  ;;  %1154 = vmatprep.mubr.bf16.mxu1 %v1254_v49  ;;  %v130_v48 = vsub.s32 0, %v129_v45 }
  0x52   :  { %613 = vmatmul.mubr.bf16.gmra.mrb[24].mxu0 %v1255_v50  ;;  %1155 = vmatmul.mubr.bf16.gmra.mrb[24].mxu1 %v1256_v51  ;;  %v127_v51 = vld [vmem:[%s1683_s2] sm:$0xff] }
  0x53   :  { %620 = vmatprep.mubr.bf16.mxu0 %v1257_v52  ;;  %1158 = vmatprep.mubr.bf16.mxu1 %v1259_v53 }
  0x5a   :  { %621 = vmatmul.mubr.bf16.gmra.mrb[28].mxu0 %v1260_v54  ;;  %1159 = vmatmul.mubr.bf16.gmra.mrb[28].mxu1 %v1261_v55 }
  0x5b   :  { %628 = vmatprep.mubr.bf16.mxu0 %v1262_v56  ;;  %1162 = vmatprep.mubr.bf16.mxu1 %v1264_v57 }
  0x62   :  { %629 = vmatmul.mubr.bf16.gmra.mrb[32].mxu0 %v1265_v58  ;;  %1163 = vmatmul.mubr.bf16.gmra.mrb[32].mxu1 %v1266_v59 }
  0x63   :  { %636 = vmatprep.mubr.bf16.mxu0 %v1267_v60  ;;  %1166 = vmatprep.mubr.bf16.mxu1 %v1269_v61  ;;  %v1537_v60 = vrot.slane %v127_v51, %v130_v48 }
  0x6a   :  { %637 = vmatmul.mubr.bf16.gmra.mrb[36].mxu0 %v1270_v62  ;;  %1167 = vmatmul.mubr.bf16.gmra.mrb[36].mxu1 %v1271_v63 }
  0x6b   :  { %644 = vmatprep.mubr.bf16.mxu0 %v1272_v0  ;;  %1170 = vmatprep.mubr.bf16.mxu1 %v1274_v1 }
  0x72   :  { %645 = vmatmul.mubr.bf16.gmra.mrb[40].mxu0 %v1275_v2  ;;  %1171 = vmatmul.mubr.bf16.gmra.mrb[40].mxu1 %v1276_v3 }
  0x73   :  { %652 = vmatprep.mubr.bf16.mxu0 %v1277_v4  ;;  %1174 = vmatprep.mubr.bf16.mxu1 %v1279_v5 }
  0x7a   :  { %653 = vmatmul.mubr.bf16.gmra.mrb[44].mxu0 %v1280_v6  ;;  %1175 = vmatmul.mubr.bf16.gmra.mrb[44].mxu1 %v1281_v7 }
  0xf5   :  { %v1010_v8 = vpop.f32.mrb[0].mxu0  ;;  %v1082_v9 = vpop.f32.mrb[0].mxu1 }
  0xf6   :  { %v1011_v10 = vpop.f32.mrb[1].mxu0  ;;  %v1083_v11 = vpop.f32.mrb[1].mxu1 }
  0xf7   :  { %v1012_v12 = vadd.f32 %v1011_v10, %v1010_v8  ;;  %v1013_v13 = vpop.f32.mrb[2].mxu0  ;;  %v1518_v14 = vadd.f32 %v1083_v11, %v1082_v9  ;;  %v1085_v15 = vpop.f32.mrb[2].mxu1 }
  0xf8   :  { %v1014_v16 = vpop.f32.mrb[3].mxu0  ;;  %v1086_v17 = vpop.f32.mrb[3].mxu1 }
  0xf9   :  { %v1015_v18 = vadd.f32 %v1014_v16, %v1013_v13  ;;  %v1520_v19 = vadd.f32 %v1086_v17, %v1085_v15  ;;  %v567_v0 = vadd.f32 %v1012_v12, %v1537_v60 }
  0xfb   :  { %v570_v9 = vadd.f32 %v1015_v18, %v1537_v60 }
  0xfd   :  { %v1016_v20 = vpop.f32.mrb[4].mxu0  ;;  %v1088_v21 = vpop.f32.mrb[4].mxu1 }
  0xfe   :  { %v1017_v22 = vpop.f32.mrb[5].mxu0  ;;  %v1089_v23 = vpop.f32.mrb[5].mxu1 }
  0xff   :  { %v1018_v24 = vadd.f32 %v1017_v22, %v1016_v20  ;;  %v1019_v25 = vpop.f32.mrb[6].mxu0  ;;  %v1522_v26 = vadd.f32 %v1089_v23, %v1088_v21  ;;  %v1091_v27 = vpop.f32.mrb[6].mxu1 }
 0x100   :  { %v1020_v28 = vpop.f32.mrb[7].mxu0  ;;  %v1092_v29 = vpop.f32.mrb[7].mxu1 }
 0x101   :  { %v1021_v30 = vadd.f32 %v1020_v28, %v1019_v25  ;;  %v1524_v31 = vadd.f32 %v1092_v29, %v1091_v27  ;;  %v575_v61 = vadd.f32 %v1018_v24, %v1537_v60 }
 0x103   :  { %v578_v4 = vadd.f32 %v1021_v30, %v1537_v60 }
 0x105   :  { %v1022_v32 = vpop.f32.mrb[8].mxu0  ;;  %v1094_v33 = vpop.f32.mrb[8].mxu1 }
 0x106   :  { %v1023_v35 = vpop.f32.mrb[9].mxu0  ;;  %v1095_v36 = vpop.f32.mrb[9].mxu1 }
 0x107   :  { %v1024_v37 = vadd.f32 %v1023_v35, %v1022_v32  ;;  %v1025_v38 = vpop.f32.mrb[10].mxu0  ;;  %v1526_v39 = vadd.f32 %v1095_v36, %v1094_v33  ;;  %v1097_v40 = vpop.f32.mrb[10].mxu1 }
 0x108   :  { %v1026_v41 = vpop.f32.mrb[11].mxu0  ;;  %v1098_v42 = vpop.f32.mrb[11].mxu1 }
 0x109   :  { %v1027_v43 = vadd.f32 %v1026_v41, %v1025_v38  ;;  %v1528_v44 = vadd.f32 %v1098_v42, %v1097_v40  ;;  %v583_v24 = vadd.f32 %v1024_v37, %v1537_v60 }
 0x10b   :  { %v586_v35 = vadd.f32 %v1027_v43, %v1537_v60 }
 0x10d   :  { %v1028_v46 = vpop.f32.mrb[12].mxu0  ;;  %v1100_v47 = vpop.f32.mrb[12].mxu1 }
 0x10e   :  { %v1029_v49 = vpop.f32.mrb[13].mxu0  ;;  %v1101_v50 = vpop.f32.mrb[13].mxu1 }
 0x10f   :  { %v1030_v52 = vadd.f32 %v1029_v49, %v1028_v46  ;;  %v1031_v53 = vpop.f32.mrb[14].mxu0  ;;  %v1533_v54 = vadd.f32 %v1101_v50, %v1100_v47  ;;  %v1103_v55 = vpop.f32.mrb[14].mxu1 }
 0x110   :  { %v1032_v56 = vpop.f32.mrb[15].mxu0  ;;  %v1104_v57 = vpop.f32.mrb[15].mxu1 }
 0x111   :  { %v1033_v58 = vadd.f32 %v1032_v56, %v1031_v53  ;;  %v1535_v59 = vadd.f32 %v1104_v57, %v1103_v55  ;;  %v591_v18 = vadd.f32 %v1030_v52, %v1537_v60 }
 0x113   :  { %v594_v29 = vadd.f32 %v1033_v58, %v1537_v60 }
 0x115   :  { %v1034_v62 = vpop.f32.mrb[16].mxu0  ;;  %v1148_v63 = vpop.f32.mrb[16].mxu1 }
 0x116   :  { %v736_v1 = vadd.f32 %v1148_v63, %v575_v61  ;;  %v1035_v2 = vpop.f32.mrb[17].mxu0  ;;  %v727_v3 = vpop.f32.mrb[17].mxu1 }
 0x117   :  { %v1036_v5 = vadd.f32 %v1035_v2, %v1034_v62  ;;  %v728_v6 = vadd.f32 %v727_v3, %v567_v0  ;;  %v1037_v7 = vpop.f32.mrb[18].mxu0  ;;  %v1149_v8 = vpop.f32.mrb[18].mxu1 }
 0x118   :  { %v856_v10 = vmax.f32 %v736_v1, 0.0  ;;  %v739_v11 = vadd.f32 %v1149_v8, %v578_v4  ;;  %v1038_v13 = vpop.f32.mrb[19].mxu0  ;;  %v730_v15 = vpop.f32.mrb[19].mxu1 }
 0x119   :  { %v854_v16 = vmax.f32 %v728_v6, 0.0  ;;  %v1039_v17 = vadd.f32 %v1038_v13, %v1037_v7  ;;  %v731_v20 = vadd.f32 %v730_v15, %v570_v9  ;;  %v599_v50 = vadd.f32 %v1036_v5, %v1537_v60 }
 0x11a   :  { %888 = vst [vmem:[%s1684_s3 + $0x10] sm:$0xff] %v856_v10  ;;  %v857_v12 = vmax.f32 %v739_v11, 0.0 }
 0x11b   :  { %886 = vst [vmem:[%s1684_s3] sm:$0xff] %v854_v16  ;;  %v855_v21 = vmax.f32 %v731_v20, 0.0  ;;  %v602_v62 = vadd.f32 %v1039_v17, %v1537_v60 }
 0x11c   :  { %889 = vst [vmem:[%s1684_s3 + $0x18] sm:$0xff] %v857_v12 }
 0x11d   :  { %887 = vst [vmem:[%s1684_s3 + $0x8] sm:$0xff] %v855_v21  ;;  %v1040_v22 = vpop.f32.mrb[20].mxu0  ;;  %v1152_v23 = vpop.f32.mrb[20].mxu1 }
 0x11e   :  { %v752_v25 = vadd.f32 %v1152_v23, %v591_v18  ;;  %v1041_v27 = vpop.f32.mrb[21].mxu0  ;;  %v743_v28 = vpop.f32.mrb[21].mxu1 }
 0x11f   :  { %v1042_v30 = vadd.f32 %v1041_v27, %v1040_v22  ;;  %v744_v32 = vadd.f32 %v743_v28, %v583_v24  ;;  %v1043_v33 = vpop.f32.mrb[22].mxu0  ;;  %v1153_v34 = vpop.f32.mrb[22].mxu1 }
 0x120   :  { %v860_v36 = vmax.f32 %v752_v25, 0.0  ;;  %v755_v38 = vadd.f32 %v1153_v34, %v594_v29  ;;  %v1044_v40 = vpop.f32.mrb[23].mxu0  ;;  %v746_v41 = vpop.f32.mrb[23].mxu1 }
 0x121   :  { %v858_v42 = vmax.f32 %v744_v32, 0.0  ;;  %v1045_v45 = vadd.f32 %v1044_v40, %v1043_v33  ;;  %v747_v46 = vadd.f32 %v746_v41, %v586_v35  ;;  %v607_v43 = vadd.f32 %v1042_v30, %v1537_v60 }
 0x122   :  { %892 = vst [vmem:[%s1684_s3 + $0x30] sm:$0xff] %v860_v36  ;;  %v861_v37 = vmax.f32 %v755_v38, 0.0 }
 0x123   :  { %890 = vst [vmem:[%s1684_s3 + $0x20] sm:$0xff] %v858_v42  ;;  %v859_v47 = vmax.f32 %v747_v46, 0.0  ;;  %v610_v55 = vadd.f32 %v1045_v45, %v1537_v60 }
 0x124   :  { %893 = vst [vmem:[%s1684_s3 + $0x38] sm:$0xff] %v861_v37 }
 0x125   :  { %891 = vst [vmem:[%s1684_s3 + $0x28] sm:$0xff] %v859_v47  ;;  %v1046_v48 = vpop.f32.mrb[24].mxu0  ;;  %v1156_v49 = vpop.f32.mrb[24].mxu1 }
 0x126   :  { %v768_v51 = vadd.f32 %v1156_v49, %v607_v43  ;;  %v1047_v52 = vpop.f32.mrb[25].mxu0  ;;  %v759_v53 = vpop.f32.mrb[25].mxu1 }
 0x127   :  { %v1048_v56 = vadd.f32 %v1047_v52, %v1046_v48  ;;  %v760_v57 = vadd.f32 %v759_v53, %v599_v50  ;;  %v1049_v58 = vpop.f32.mrb[26].mxu0  ;;  %v1157_v61 = vpop.f32.mrb[26].mxu1 }
 0x128   :  { %v864_v63 = vmax.f32 %v768_v51, 0.0  ;;  %v771_v0 = vadd.f32 %v1157_v61, %v610_v55  ;;  %v1050_v1 = vpop.f32.mrb[27].mxu0  ;;  %v762_v2 = vpop.f32.mrb[27].mxu1 }
 0x129   :  { %v862_v3 = vmax.f32 %v760_v57, 0.0  ;;  %v1051_v4 = vadd.f32 %v1050_v1, %v1049_v58  ;;  %v763_v6 = vadd.f32 %v762_v2, %v602_v62  ;;  %v615_v10 = vadd.f32 %v1048_v56, %v1537_v60 }
 0x12a   :  { %896 = vst [vmem:[%s1684_s3 + $0x50] sm:$0xff] %v864_v63  ;;  %v865_v5 = vmax.f32 %v771_v0, 0.0 }
 0x12b   :  { %894 = vst [vmem:[%s1684_s3 + $0x40] sm:$0xff] %v862_v3  ;;  %v863_v7 = vmax.f32 %v763_v6, 0.0  ;;  %v618_v12 = vadd.f32 %v1051_v4, %v1537_v60  ;;  %v671_v4 = vadd.f32 %v1522_v26, %v1537_v60 }
 0x12c   :  { %897 = vst [vmem:[%s1684_s3 + $0x58] sm:$0xff] %v865_v5 }
 0x12d   :  { %895 = vst [vmem:[%s1684_s3 + $0x48] sm:$0xff] %v863_v7  ;;  %v1052_v8 = vpop.f32.mrb[28].mxu0  ;;  %v1160_v9 = vpop.f32.mrb[28].mxu1 }
 0x12e   :  { %v1053_v11 = vpop.f32.mrb[29].mxu0  ;;  %v775_v13 = vpop.f32.mrb[29].mxu1 }
 0x12f   :  { %v1054_v15 = vadd.f32 %v1053_v11, %v1052_v8  ;;  %v776_v16 = vadd.f32 %v775_v13, %v615_v10  ;;  %v1055_v17 = vpop.f32.mrb[30].mxu0  ;;  %v1161_v20 = vpop.f32.mrb[30].mxu1 }
 0x130   :  { %v1056_v21 = vpop.f32.mrb[31].mxu0  ;;  %v778_v18 = vpop.f32.mrb[31].mxu1 }
 0x131   :  { %v623_v22 = vadd.f32 %v1054_v15, %v1537_v60  ;;  %v866_v23 = vmax.f32 %v776_v16, 0.0  ;;  %v1057_v24 = vadd.f32 %v1056_v21, %v1055_v17  ;;  %v779_v25 = vadd.f32 %v778_v18, %v618_v12 }
 0x132   :  { %v674_v15 = vadd.f32 %v1524_v31, %v1537_v60  ;;  %v666_v21 = vadd.f32 %v1520_v19, %v1537_v60 }
 0x133   :  { %v784_v27 = vadd.f32 %v1160_v9, %v623_v22  ;;  %898 = vst [vmem:[%s1684_s3 + $0x60] sm:$0xff] %v866_v23  ;;  %v626_v28 = vadd.f32 %v1057_v24, %v1537_v60  ;;  %v867_v29 = vmax.f32 %v779_v25, 0.0  ;;  %v663_v9 = vadd.f32 %v1518_v14, %v1537_v60 }
 0x135   :  { %v868_v30 = vmax.f32 %v784_v27, 0.0  ;;  %v787_v32 = vadd.f32 %v1161_v20, %v626_v28  ;;  %899 = vst [vmem:[%s1684_s3 + $0x68] sm:$0xff] %v867_v29  ;;  %v1058_v33 = vpop.f32.mrb[32].mxu0  ;;  %v1164_v34 = vpop.f32.mrb[32].mxu1 }
 0x136   :  { %v1059_v35 = vpop.f32.mrb[33].mxu0  ;;  %v791_v36 = vpop.f32.mrb[33].mxu1 }
 0x137   :  { %900 = vst [vmem:[%s1684_s3 + $0x70] sm:$0xff] %v868_v30  ;;  %v869_v38 = vmax.f32 %v787_v32, 0.0  ;;  %v1060_v40 = vadd.f32 %v1059_v35, %v1058_v33  ;;  %v1061_v41 = vpop.f32.mrb[34].mxu0  ;;  %v1165_v42 = vpop.f32.mrb[34].mxu1  ;;  %v687_v32 = vadd.f32 %v1533_v54, %v1537_v60 }
 0x138   :  { %v1062_v45 = vpop.f32.mrb[35].mxu0  ;;  %v794_v46 = vpop.f32.mrb[35].mxu1 }
 0x139   :  { %901 = vst [vmem:[%s1684_s3 + $0x78] sm:$0xff] %v869_v38  ;;  %v631_v37 = vadd.f32 %v1060_v40, %v1537_v60  ;;  %v1063_v47 = vadd.f32 %v1062_v45, %v1061_v41  ;;  %v679_v38 = vadd.f32 %v1526_v39, %v1537_v60  ;;  %v690_v45 = vadd.f32 %v1535_v59, %v1537_v60 }
 0x13b   :  { %v792_v43 = vadd.f32 %v791_v36, %v631_v37  ;;  %v634_v48 = vadd.f32 %v1063_v47, %v1537_v60 }
 0x13d   :  { %v870_v49 = vmax.f32 %v792_v43, 0.0  ;;  %v795_v50 = vadd.f32 %v794_v46, %v634_v48  ;;  %v1064_v51 = vpop.f32.mrb[36].mxu0  ;;  %v1605_v52 = vpop.f32.mrb[36].mxu1  ;;  %v682_v48 = vadd.f32 %v1528_v44, %v1537_v60 }
 0x13e   :  { %v1065_v53 = vpop.f32.mrb[37].mxu0  ;;  %v807_v55 = vpop.f32.mrb[37].mxu1 }
 0x13f   :  { %902 = vst [vmem:[%s1684_s3 + $0x80] sm:$0xff] %v870_v49  ;;  %v871_v56 = vmax.f32 %v795_v50, 0.0  ;;  %v1066_v57 = vadd.f32 %v1065_v53, %v1064_v51  ;;  %v1067_v58 = vpop.f32.mrb[38].mxu0  ;;  %v1610_v61 = vpop.f32.mrb[38].mxu1 }
 0x140   :  { %v1068_v62 = vpop.f32.mrb[39].mxu0  ;;  %v810_v63 = vpop.f32.mrb[39].mxu1 }
 0x141   :  { %903 = vst [vmem:[%s1684_s3 + $0x88] sm:$0xff] %v871_v56  ;;  %v639_v0 = vadd.f32 %v1066_v57, %v1537_v60  ;;  %v1069_v1 = vadd.f32 %v1068_v62, %v1067_v58 }
 0x143   :  { %v800_v2 = vadd.f32 %v1164_v34, %v639_v0  ;;  %v642_v3 = vadd.f32 %v1069_v1, %v1537_v60 }
 0x145   :  { %v872_v6 = vmax.f32 %v800_v2, 0.0  ;;  %v803_v5 = vadd.f32 %v1165_v42, %v642_v3  ;;  %v1070_v7 = vpop.f32.mrb[40].mxu0  ;;  %v1172_v8 = vpop.f32.mrb[40].mxu1 }
 0x146   :  { %v832_v10 = vadd.f32 %v1172_v8, %v671_v4  ;;  %v1071_v11 = vpop.f32.mrb[41].mxu0  ;;  %v823_v13 = vpop.f32.mrb[41].mxu1 }
 0x147   :  { %904 = vst [vmem:[%s1684_s3 + $0x90] sm:$0xff] %v872_v6  ;;  %v873_v16 = vmax.f32 %v803_v5, 0.0  ;;  %v1072_v17 = vadd.f32 %v1071_v11, %v1070_v7  ;;  %v824_v26 = vadd.f32 %v823_v13, %v663_v9  ;;  %v1073_v20 = vpop.f32.mrb[42].mxu0  ;;  %v1173_v12 = vpop.f32.mrb[42].mxu1 }
 0x148   :  { %v880_v18 = vmax.f32 %v832_v10, 0.0  ;;  %v835_v14 = vadd.f32 %v1173_v12, %v674_v15  ;;  %v1074_v22 = vpop.f32.mrb[43].mxu0  ;;  %v826_v23 = vpop.f32.mrb[43].mxu1 }
 0x149   :  { %905 = vst [vmem:[%s1684_s3 + $0x98] sm:$0xff] %v873_v16  ;;  %v647_v31 = vadd.f32 %v1072_v17, %v1537_v60  ;;  %v878_v24 = vmax.f32 %v824_v26, 0.0  ;;  %v1075_v25 = vadd.f32 %v1074_v22, %v1073_v20  ;;  %v827_v27 = vadd.f32 %v826_v23, %v666_v21 }
 0x14a   :  { %912 = vst [vmem:[%s1684_s3 + $0xd0] sm:$0xff] %v880_v18  ;;  %v881_v28 = vmax.f32 %v835_v14, 0.0 }
 0x14b   :  { %v808_v29 = vadd.f32 %v807_v55, %v647_v31  ;;  %910 = vst [vmem:[%s1684_s3 + $0xc0] sm:$0xff] %v878_v24  ;;  %v650_v19 = vadd.f32 %v1075_v25, %v1537_v60  ;;  %v879_v30 = vmax.f32 %v827_v27, 0.0 }
 0x14c   :  { %913 = vst [vmem:[%s1684_s3 + $0xd8] sm:$0xff] %v881_v28 }
 0x14d   :  { %v874_v33 = vmax.f32 %v808_v29, 0.0  ;;  %v811_v34 = vadd.f32 %v810_v63, %v650_v19  ;;  %911 = vst [vmem:[%s1684_s3 + $0xc8] sm:$0xff] %v879_v30  ;;  %v1076_v35 = vpop.f32.mrb[44].mxu0  ;;  %v1176_v36 = vpop.f32.mrb[44].mxu1 }
 0x14e   :  { %v848_v40 = vadd.f32 %v1176_v36, %v687_v32  ;;  %v1077_v41 = vpop.f32.mrb[45].mxu0  ;;  %v839_v42 = vpop.f32.mrb[45].mxu1 }
 0x14f   :  { %906 = vst [vmem:[%s1684_s3 + $0xa0] sm:$0xff] %v874_v33  ;;  %v875_v54 = vmax.f32 %v811_v34, 0.0  ;;  %v1078_v46 = vadd.f32 %v1077_v41, %v1076_v35  ;;  %v840_v37 = vadd.f32 %v839_v42, %v679_v38  ;;  %v1079_v47 = vpop.f32.mrb[46].mxu0  ;;  %v1177_v43 = vpop.f32.mrb[46].mxu1 }
 0x150   :  { %v884_v49 = vmax.f32 %v848_v40, 0.0  ;;  %v851_v39 = vadd.f32 %v1177_v43, %v690_v45  ;;  %v1080_v50 = vpop.f32.mrb[47].mxu0  ;;  %v842_v51 = vpop.f32.mrb[47].mxu1 }
 0x151   :  { %907 = vst [vmem:[%s1684_s3 + $0xa8] sm:$0xff] %v875_v54  ;;  %v655_v59 = vadd.f32 %v1078_v46, %v1537_v60  ;;  %v882_v53 = vmax.f32 %v840_v37, 0.0  ;;  %v1081_v55 = vadd.f32 %v1080_v50, %v1079_v47  ;;  %v843_v56 = vadd.f32 %v842_v51, %v682_v48 }
 0x152   :  { %916 = vst [vmem:[%s1684_s3 + $0xf0] sm:$0xff] %v884_v49  ;;  %v885_v57 = vmax.f32 %v851_v39, 0.0 }
 0x153   :  { %v816_v44 = vadd.f32 %v1605_v52, %v655_v59  ;;  %914 = vst [vmem:[%s1684_s3 + $0xe0] sm:$0xff] %v882_v53  ;;  %v658_v58 = vadd.f32 %v1081_v55, %v1537_v60  ;;  %v883_v62 = vmax.f32 %v843_v56, 0.0 }
 0x154   :  { %917 = vst [vmem:[%s1684_s3 + $0xf8] sm:$0xff] %v885_v57 }
 0x155   :  { %v876_v63 = vmax.f32 %v816_v44, 0.0  ;;  %v819_v0 = vadd.f32 %v1610_v61, %v658_v58  ;;  %915 = vst [vmem:[%s1684_s3 + $0xe8] sm:$0xff] %v883_v62 }
 0x157   :  { %908 = vst [vmem:[%s1684_s3 + $0xb0] sm:$0xff] %v876_v63  ;;  %v877_v52 = vmax.f32 %v819_v0, 0.0 }
 0x159   :  { %909 = vst [vmem:[%s1684_s3 + $0xb8] sm:$0xff] %v877_v52 }

// kernel: _forward.9
= control target key start
LH: loop header
LB: loop body
LE: loop exit
PB: predicated region body
PF: predicated region fallthrough
CT: control target
= control target key end

     0   :  { %v590_v3 = vmov 0   ;;  %vm206_vm0 = vcmask 1041408   ;;  %vm196_vm1 = vcmask 293888   ;;  %v49_v52 = vlaneseq  ;;  %s954_s1 = inlined_call_operand.vmem [shape: bf16[36,1024], index: 1, kind: input, shape index: {}]   ;;  %s955_s0 = inlined_call_operand.vmem [shape: bf16[48,36], index: 0, kind: input, shape index: {}]   ;;  %s956_s2 = inlined_call_operand.vmem [shape: f32[8,1024], index: 2, kind: input, shape index: {}]   ;;  %s957_s3 = inlined_call_operand.vmem [shape: f32[48,1024], index: 3, kind: output, shape index: {}]  }
   0x1   :  { %v21_v0 = vld [vmem:[%s954_s1] sm:$0xff]  ;;  %v22_v2 = vld [vmem:[%s954_s1 + $0x8] sm:$0xff]  ;;  %263 = vmatprep.mubr.bf16.mxu0 %v590_v3  ;;  %326 = vmatprep.mubr.bf16.mxu1 %v590_v3  ;;  %v23_v23 = vld [vmem:[%s954_s1 + $0x10] sm:$0xff] }
   0x2   :  { %v25_v1 = vld [vmem:[%s954_s1 + $0x20] sm:$0xff]  ;;  %v26_v5 = vld [vmem:[%s954_s1 + $0x28] sm:$0xff]  ;;  %v27_v24 = vld [vmem:[%s954_s1 + $0x30] sm:$0xff]  ;;  %v50_v53 = vshrl.u32 %v49_v52, 7 }
   0x3   :  { %v539_v4 = vcombine.high %v21_v0, %v25_v1  ;;  %v538_v6 = vcombine.low %v21_v0, %v25_v1  ;;  %v29_v7 = vld [vmem:[%s954_s1 + $0x40] sm:$0xff]  ;;  %v541_v9 = vcombine.high %v22_v2, %v26_v5  ;;  %v540_v10 = vcombine.low %v22_v2, %v26_v5  ;;  %v30_v12 = vld [vmem:[%s954_s1 + $0x48] sm:$0xff]  ;;  %v24_v25 = vld [vmem:[%s954_s1 + $0x18] sm:$0xff] }
   0x4   :  { %v33_v8 = vld [vmem:[%s954_s1 + $0x60] sm:$0xff]  ;;  %v34_v13 = vld [vmem:[%s954_s1 + $0x68] sm:$0xff]  ;;  %v28_v26 = vld [vmem:[%s954_s1 + $0x38] sm:$0xff]  ;;  %v543_v28 = vcombine.high %v23_v23, %v27_v24  ;;  %v542_v34 = vcombine.low %v23_v23, %v27_v24  ;;  %v712_v54 = vsub.s32 0, %v50_v53 }
   0x5   :  { %v547_v11 = vcombine.high %v29_v7, %v33_v8  ;;  %v37_v14 = vld [vmem:[%s954_s1 + $0x80] sm:$0x33]  ;;  %231 = vmatprep.subr.bf16.mxu0 %v539_v4  ;;  %v549_v15 = vcombine.high %v30_v12, %v34_v13  ;;  %v38_v16 = vld [vmem:[%s954_s1 + $0x88] sm:$0x33]  ;;  %294 = vmatprep.subr.bf16.mxu1 %v541_v9  ;;  %v546_v17 = vcombine.low %v29_v7, %v33_v8  ;;  %v31_v32 = vld [vmem:[%s954_s1 + $0x50] sm:$0xff] }
   0x6   :  { %232 = vmatpush1.bf16.msra.mxu0 %v538_v6  ;;  %295 = vmatpush1.bf16.msra.mxu1 %v540_v10  ;;  %v548_v18 = vcombine.low %v30_v12, %v34_v13  ;;  %v555_v19 = vcombine.high %v37_v14, %v37_v14  ;;  %v554_v20 = vcombine.low %v37_v14, %v37_v14  ;;  %v583_v31 = vld [vmem:[%s955_s0] sm:$0xff]   ;;  %v35_v33 = vld [vmem:[%s954_s1 + $0x70] sm:$0xff]  ;;  %v32_v35 = vld [vmem:[%s954_s1 + $0x58] sm:$0xff] }
   0x7   :  { %233 = vmatprep.subr.bf16.mxu0 %v547_v11  ;;  %296 = vmatprep.subr.bf16.mxu1 %v549_v15  ;;  %v557_v21 = vcombine.high %v38_v16, %v38_v16  ;;  %v556_v22 = vcombine.low %v38_v16, %v38_v16  ;;  %v545_v30 = vcombine.high %v24_v25, %v28_v26  ;;  %v36_v36 = vld [vmem:[%s954_s1 + $0x78] sm:$0xff]  ;;  %v39_v39 = vld [vmem:[%s954_s1 + $0x90] sm:$0x33]  ;;  %v584_v47 = vld [vmem:[%s955_s0 + $0x8] sm:$0xff]  }
   0x8   :  { %v208_v27 = vsel %vm206_vm0, %v554_v20, 0  ;;  %v544_v37 = vcombine.low %v24_v25, %v28_v26  ;;  %v551_v38 = vcombine.high %v31_v32, %v35_v33  ;;  %v553_v40 = vcombine.high %v32_v35, %v36_v36  ;;  %v40_v41 = vld [vmem:[%s954_s1 + $0x98] sm:$0x33]  ;;  %v585_v51 = vld [vmem:[%s955_s0 + $0x10] sm:$0xff]   ;;  %v41_v55 = vld [vmem:[%s956_s2] sm:$0xff] }
   0x9   :  { %v214_v29 = vsel %vm206_vm0, %v556_v22, 0  ;;  %v550_v42 = vcombine.low %v31_v32, %v35_v33  ;;  %v552_v43 = vcombine.low %v32_v35, %v36_v36  ;;  %v559_v44 = vcombine.high %v39_v39, %v39_v39  ;;  %v43_v56 = vld [vmem:[%s956_s2 + $0x10] sm:$0xff]  ;;  %v42_v57 = vld [vmem:[%s956_s2 + $0x8] sm:$0xff]  ;;  %v44_v58 = vld [vmem:[%s956_s2 + $0x18] sm:$0xff] }
   0xa   :  { %234 = vmatpush1.bf16.msra.mxu0 %v546_v17  ;;  %297 = vmatpush1.bf16.msra.mxu1 %v548_v18  ;;  %v561_v45 = vcombine.high %v40_v41, %v40_v41  ;;  %v558_v46 = vcombine.low %v39_v39, %v39_v39  ;;  %v560_v48 = vcombine.low %v40_v41, %v40_v41  ;;  %v45_v39 = vld [vmem:[%s956_s2 + $0x20] sm:$0xff] }
   0xb   :  { %562 = vmatprep.subr.msk.bf16.mxu0 %vm206_vm0, %v555_v19  ;;  %566 = vmatprep.subr.msk.bf16.mxu1 %vm206_vm0, %v557_v21  ;;  %v727_v59 = vrot.slane %v41_v55, %v712_v54  ;;  %v730_v60 = vrot.slane %v43_v56, %v712_v54  ;;  %v733_v61 = vrot.slane %v42_v57, %v712_v54 }
   0xc   :  { %v220_v49 = vsel %vm206_vm0, %v558_v46, 0  ;;  %v226_v50 = vsel %vm206_vm0, %v560_v48, 0  ;;  %v736_v62 = vrot.slane %v44_v58, %v712_v54 }
   0xe   :  { %236 = vmatpush1.bf16.msra.mxu0 %v208_v27  ;;  %299 = vmatpush1.bf16.msra.mxu1 %v214_v29 }
   0xf   :  { %357 = vmatprep.subr.bf16.mxu0 %v543_v28  ;;  %420 = vmatprep.subr.bf16.mxu1 %v545_v30 }
  0x11   :  { %563 = vmatmul.mubr.msk.bf16.vlgmr.msra.gmra.mrb[0].mxu0 %vm196_vm1, %v583_v31  ;;  %567 = vmatmul.mubr.msk.bf16.vlgmr.msra.gmra.mrb[0].mxu1 %vm196_vm1, %v583_v31 }
  0x12   :  { %358 = vmatpush1.bf16.msra.mxu0 %v542_v34  ;;  %421 = vmatpush1.bf16.msra.mxu1 %v544_v37 }
  0x13   :  { %273 = vmatprep.mubr.bf16.mxu0 %v590_v3  ;;  %336 = vmatprep.mubr.bf16.mxu1 %v590_v3 }
  0x14   :  { %359 = vmatprep.subr.bf16.mxu0 %v551_v38  ;;  %422 = vmatprep.subr.bf16.mxu1 %v553_v40 }
  0x16   :  { %360 = vmatpush1.bf16.msra.mxu0 %v550_v42  ;;  %423 = vmatpush1.bf16.msra.mxu1 %v552_v43 }
  0x17   :  { %570 = vmatprep.subr.msk.bf16.mxu0 %vm206_vm0, %v559_v44  ;;  %574 = vmatprep.subr.msk.bf16.mxu1 %vm206_vm0, %v561_v45  ;;  %v47_v44 = vld [vmem:[%s956_s2 + $0x30] sm:$0xff]  ;;  %v46_v45 = vld [vmem:[%s956_s2 + $0x28] sm:$0xff] }
  0x18   :  { %v847_v52 = vrot.slane %v47_v44, %v712_v54  ;;  %v850_v53 = vrot.slane %v46_v45, %v712_v54 }
  0x19   :  { %564 = vmatmul.mubr.msk.bf16.gmra.mrb[4].mxu0 %vm196_vm1, %v584_v47  ;;  %568 = vmatmul.mubr.msk.bf16.gmra.mrb[4].mxu1 %vm196_vm1, %v584_v47 }
  0x1a   :  { %283 = vmatprep.mubr.bf16.mxu0 %v590_v3  ;;  %346 = vmatprep.mubr.bf16.mxu1 %v590_v3 }
  0x1b   :  { %362 = vmatpush1.bf16.msra.mxu0 %v220_v49  ;;  %425 = vmatpush1.bf16.msra.mxu1 %v226_v50  ;;  %v48_v49 = vld [vmem:[%s956_s2 + $0x38] sm:$0xff] }
  0x1c   :  { %v856_v55 = vrot.slane %v48_v49, %v712_v54 }
  0x21   :  { %565 = vmatmul.mubr.msk.bf16.gmra.mrb[8].mxu0 %vm196_vm1, %v585_v51  ;;  %569 = vmatmul.mubr.msk.bf16.gmra.mrb[8].mxu1 %vm196_vm1, %v585_v51 }
  0x22   :  { %389 = vmatprep.mubr.bf16.mxu0 %v590_v3  ;;  %452 = vmatprep.mubr.bf16.mxu1 %v590_v3 }
  0x29   :  { %571 = vmatmul.mubr.msk.bf16.vlgmr.msra.gmra.mrb[12].mxu0 %vm196_vm1, %v583_v31  ;;  %575 = vmatmul.mubr.msk.bf16.vlgmr.msra.gmra.mrb[12].mxu1 %vm196_vm1, %v583_v31 }
  0x2a   :  { %399 = vmatprep.mubr.bf16.mxu0 %v590_v3  ;;  %462 = vmatprep.mubr.bf16.mxu1 %v590_v3 }
  0x31   :  { %572 = vmatmul.mubr.msk.bf16.gmra.mrb[16].mxu0 %vm196_vm1, %v584_v47  ;;  %576 = vmatmul.mubr.msk.bf16.gmra.mrb[16].mxu1 %vm196_vm1, %v584_v47 }
  0x32   :  { %409 = vmatprep.mubr.bf16.mxu0 %v590_v3  ;;  %472 = vmatprep.mubr.bf16.mxu1 %v590_v3 }
  0x39   :  { %573 = vmatmul.mubr.msk.bf16.gmra.mrb[20].mxu0 %vm196_vm1, %v585_v51  ;;  %577 = vmatmul.mubr.msk.bf16.gmra.mrb[20].mxu1 %vm196_vm1, %v585_v51  ;;  %v838_v51 = vrot.slane %v45_v39, %v712_v54 }
  0xe4   :  { %v265_v63 = vpop.f32.mrb[0].mxu0  ;;  %v328_v1 = vpop.f32.mrb[0].mxu1 }
  0xe5   :  { %v266_v0 = vadd.f32 %v265_v63, %v727_v59  ;;  %v267_v2 = vpop.f32.mrb[1].mxu0  ;;  %v329_v3 = vadd.f32 %v328_v1, %v730_v60  ;;  %v330_v5 = vpop.f32.mrb[1].mxu1 }
  0xe6   :  { %v268_v4 = vadd.f32 %v267_v2, %v733_v61  ;;  %v269_v6 = vpop.f32.mrb[2].mxu0  ;;  %v331_v7 = vadd.f32 %v330_v5, %v736_v62  ;;  %v332_v9 = vpop.f32.mrb[2].mxu1 }
  0xe7   :  { %483 = vst [vmem:[%s957_s3] sm:$0xff] %v266_v0  ;;  %v270_v8 = vadd.f32 %v269_v6, %v727_v59  ;;  %v271_v10 = vpop.f32.mrb[3].mxu0  ;;  %485 = vst [vmem:[%s957_s3 + $0x10] sm:$0xff] %v329_v3  ;;  %v333_v11 = vadd.f32 %v332_v9, %v730_v60  ;;  %v334_v13 = vpop.f32.mrb[3].mxu1 }
  0xe8   :  { %484 = vst [vmem:[%s957_s3 + $0x8] sm:$0xff] %v268_v4  ;;  %v272_v12 = vadd.f32 %v271_v10, %v733_v61  ;;  %486 = vst [vmem:[%s957_s3 + $0x18] sm:$0xff] %v331_v7  ;;  %v335_v14 = vadd.f32 %v334_v13, %v736_v62 }
  0xe9   :  { %491 = vst [vmem:[%s957_s3 + $0x40] sm:$0xff] %v270_v8  ;;  %493 = vst [vmem:[%s957_s3 + $0x50] sm:$0xff] %v333_v11 }
  0xea   :  { %492 = vst [vmem:[%s957_s3 + $0x48] sm:$0xff] %v272_v12  ;;  %494 = vst [vmem:[%s957_s3 + $0x58] sm:$0xff] %v335_v14 }
  0xec   :  { %v275_v15 = vpop.f32.mrb[4].mxu0  ;;  %v338_v17 = vpop.f32.mrb[4].mxu1 }
  0xed   :  { %v276_v16 = vadd.f32 %v275_v15, %v727_v59  ;;  %v277_v18 = vpop.f32.mrb[5].mxu0  ;;  %v339_v19 = vadd.f32 %v338_v17, %v730_v60  ;;  %v340_v21 = vpop.f32.mrb[5].mxu1 }
  0xee   :  { %v278_v20 = vadd.f32 %v277_v18, %v733_v61  ;;  %v279_v22 = vpop.f32.mrb[6].mxu0  ;;  %v341_v23 = vadd.f32 %v340_v21, %v736_v62  ;;  %v342_v25 = vpop.f32.mrb[6].mxu1 }
  0xef   :  { %499 = vst [vmem:[%s957_s3 + $0x80] sm:$0xff] %v276_v16  ;;  %v280_v24 = vadd.f32 %v279_v22, %v727_v59  ;;  %v281_v26 = vpop.f32.mrb[7].mxu0  ;;  %501 = vst [vmem:[%s957_s3 + $0x90] sm:$0xff] %v339_v19  ;;  %v343_v27 = vadd.f32 %v342_v25, %v730_v60  ;;  %v344_v29 = vpop.f32.mrb[7].mxu1 }
  0xf0   :  { %500 = vst [vmem:[%s957_s3 + $0x88] sm:$0xff] %v278_v20  ;;  %v282_v28 = vadd.f32 %v281_v26, %v733_v61  ;;  %502 = vst [vmem:[%s957_s3 + $0x98] sm:$0xff] %v341_v23  ;;  %v345_v30 = vadd.f32 %v344_v29, %v736_v62 }
  0xf1   :  { %507 = vst [vmem:[%s957_s3 + $0xc0] sm:$0xff] %v280_v24  ;;  %509 = vst [vmem:[%s957_s3 + $0xd0] sm:$0xff] %v343_v27 }
  0xf2   :  { %508 = vst [vmem:[%s957_s3 + $0xc8] sm:$0xff] %v282_v28  ;;  %510 = vst [vmem:[%s957_s3 + $0xd8] sm:$0xff] %v345_v30 }
  0xf4   :  { %v285_v31 = vpop.f32.mrb[8].mxu0  ;;  %v348_v33 = vpop.f32.mrb[8].mxu1 }
  0xf5   :  { %v286_v32 = vadd.f32 %v285_v31, %v727_v59  ;;  %v287_v34 = vpop.f32.mrb[9].mxu0  ;;  %v349_v35 = vadd.f32 %v348_v33, %v730_v60  ;;  %v350_v37 = vpop.f32.mrb[9].mxu1 }
  0xf6   :  { %v288_v36 = vadd.f32 %v287_v34, %v733_v61  ;;  %v289_v38 = vpop.f32.mrb[10].mxu0  ;;  %v351_v40 = vadd.f32 %v350_v37, %v736_v62  ;;  %v352_v42 = vpop.f32.mrb[10].mxu1 }
  0xf7   :  { %515 = vst [vmem:[%s957_s3 + $0x100] sm:$0xff] %v286_v32  ;;  %v290_v41 = vadd.f32 %v289_v38, %v727_v59  ;;  %v291_v43 = vpop.f32.mrb[11].mxu0  ;;  %517 = vst [vmem:[%s957_s3 + $0x110] sm:$0xff] %v349_v35  ;;  %v353_v46 = vadd.f32 %v352_v42, %v730_v60  ;;  %v354_v48 = vpop.f32.mrb[11].mxu1 }
  0xf8   :  { %516 = vst [vmem:[%s957_s3 + $0x108] sm:$0xff] %v288_v36  ;;  %v292_v47 = vadd.f32 %v291_v43, %v733_v61  ;;  %518 = vst [vmem:[%s957_s3 + $0x118] sm:$0xff] %v351_v40  ;;  %v355_v50 = vadd.f32 %v354_v48, %v736_v62 }
  0xf9   :  { %523 = vst [vmem:[%s957_s3 + $0x140] sm:$0xff] %v290_v41  ;;  %525 = vst [vmem:[%s957_s3 + $0x150] sm:$0xff] %v353_v46 }
  0xfa   :  { %524 = vst [vmem:[%s957_s3 + $0x148] sm:$0xff] %v292_v47  ;;  %526 = vst [vmem:[%s957_s3 + $0x158] sm:$0xff] %v355_v50 }
  0xfc   :  { %v391_v56 = vpop.f32.mrb[12].mxu0  ;;  %v454_v58 = vpop.f32.mrb[12].mxu1 }
  0xfd   :  { %v392_v57 = vadd.f32 %v391_v56, %v838_v51  ;;  %v393_v59 = vpop.f32.mrb[13].mxu0  ;;  %v455_v60 = vadd.f32 %v454_v58, %v847_v52  ;;  %v456_v62 = vpop.f32.mrb[13].mxu1 }
  0xfe   :  { %v394_v61 = vadd.f32 %v393_v59, %v850_v53  ;;  %v395_v63 = vpop.f32.mrb[14].mxu0  ;;  %v457_v0 = vadd.f32 %v456_v62, %v856_v55  ;;  %v458_v1 = vpop.f32.mrb[14].mxu1 }
  0xff   :  { %487 = vst [vmem:[%s957_s3 + $0x20] sm:$0xff] %v392_v57  ;;  %v396_v54 = vadd.f32 %v395_v63, %v838_v51  ;;  %v397_v2 = vpop.f32.mrb[15].mxu0  ;;  %489 = vst [vmem:[%s957_s3 + $0x30] sm:$0xff] %v455_v60  ;;  %v459_v3 = vadd.f32 %v458_v1, %v847_v52  ;;  %v460_v5 = vpop.f32.mrb[15].mxu1 }
 0x100   :  { %488 = vst [vmem:[%s957_s3 + $0x28] sm:$0xff] %v394_v61  ;;  %v398_v4 = vadd.f32 %v397_v2, %v850_v53  ;;  %490 = vst [vmem:[%s957_s3 + $0x38] sm:$0xff] %v457_v0  ;;  %v461_v6 = vadd.f32 %v460_v5, %v856_v55 }
 0x101   :  { %495 = vst [vmem:[%s957_s3 + $0x60] sm:$0xff] %v396_v54  ;;  %497 = vst [vmem:[%s957_s3 + $0x70] sm:$0xff] %v459_v3 }
 0x102   :  { %496 = vst [vmem:[%s957_s3 + $0x68] sm:$0xff] %v398_v4  ;;  %498 = vst [vmem:[%s957_s3 + $0x78] sm:$0xff] %v461_v6 }
 0x104   :  { %v401_v7 = vpop.f32.mrb[16].mxu0  ;;  %v464_v9 = vpop.f32.mrb[16].mxu1 }
 0x105   :  { %v402_v8 = vadd.f32 %v401_v7, %v838_v51  ;;  %v403_v10 = vpop.f32.mrb[17].mxu0  ;;  %v465_v11 = vadd.f32 %v464_v9, %v847_v52  ;;  %v466_v13 = vpop.f32.mrb[17].mxu1 }
 0x106   :  { %v404_v12 = vadd.f32 %v403_v10, %v850_v53  ;;  %v405_v14 = vpop.f32.mrb[18].mxu0  ;;  %v467_v15 = vadd.f32 %v466_v13, %v856_v55  ;;  %v468_v17 = vpop.f32.mrb[18].mxu1 }
 0x107   :  { %503 = vst [vmem:[%s957_s3 + $0xa0] sm:$0xff] %v402_v8  ;;  %v406_v16 = vadd.f32 %v405_v14, %v838_v51  ;;  %v407_v18 = vpop.f32.mrb[19].mxu0  ;;  %505 = vst [vmem:[%s957_s3 + $0xb0] sm:$0xff] %v465_v11  ;;  %v469_v19 = vadd.f32 %v468_v17, %v847_v52  ;;  %v470_v21 = vpop.f32.mrb[19].mxu1 }
 0x108   :  { %504 = vst [vmem:[%s957_s3 + $0xa8] sm:$0xff] %v404_v12  ;;  %v408_v20 = vadd.f32 %v407_v18, %v850_v53  ;;  %506 = vst [vmem:[%s957_s3 + $0xb8] sm:$0xff] %v467_v15  ;;  %v471_v22 = vadd.f32 %v470_v21, %v856_v55 }
 0x109   :  { %511 = vst [vmem:[%s957_s3 + $0xe0] sm:$0xff] %v406_v16  ;;  %513 = vst [vmem:[%s957_s3 + $0xf0] sm:$0xff] %v469_v19 }
 0x10a   :  { %512 = vst [vmem:[%s957_s3 + $0xe8] sm:$0xff] %v408_v20  ;;  %514 = vst [vmem:[%s957_s3 + $0xf8] sm:$0xff] %v471_v22 }
 0x10c   :  { %v411_v23 = vpop.f32.mrb[20].mxu0  ;;  %v474_v25 = vpop.f32.mrb[20].mxu1 }
 0x10d   :  { %v412_v24 = vadd.f32 %v411_v23, %v838_v51  ;;  %v413_v26 = vpop.f32.mrb[21].mxu0  ;;  %v475_v27 = vadd.f32 %v474_v25, %v847_v52  ;;  %v476_v29 = vpop.f32.mrb[21].mxu1 }
 0x10e   :  { %v414_v28 = vadd.f32 %v413_v26, %v850_v53  ;;  %v415_v30 = vpop.f32.mrb[22].mxu0  ;;  %v477_v31 = vadd.f32 %v476_v29, %v856_v55  ;;  %v478_v33 = vpop.f32.mrb[22].mxu1 }
 0x10f   :  { %519 = vst [vmem:[%s957_s3 + $0x120] sm:$0xff] %v412_v24  ;;  %v416_v32 = vadd.f32 %v415_v30, %v838_v51  ;;  %v417_v34 = vpop.f32.mrb[23].mxu0  ;;  %521 = vst [vmem:[%s957_s3 + $0x130] sm:$0xff] %v475_v27  ;;  %v479_v35 = vadd.f32 %v478_v33, %v847_v52  ;;  %v480_v37 = vpop.f32.mrb[23].mxu1 }
 0x110   :  { %520 = vst [vmem:[%s957_s3 + $0x128] sm:$0xff] %v414_v28  ;;  %v418_v36 = vadd.f32 %v417_v34, %v850_v53  ;;  %522 = vst [vmem:[%s957_s3 + $0x138] sm:$0xff] %v477_v31  ;;  %v481_v38 = vadd.f32 %v480_v37, %v856_v55 }
 0x111   :  { %527 = vst [vmem:[%s957_s3 + $0x160] sm:$0xff] %v416_v32  ;;  %529 = vst [vmem:[%s957_s3 + $0x170] sm:$0xff] %v479_v35 }
 0x112   :  { %528 = vst [vmem:[%s957_s3 + $0x168] sm:$0xff] %v418_v36  ;;  %530 = vst [vmem:[%s957_s3 + $0x178] sm:$0xff] %v481_v38 }

// kernel: _forward.8
= control target key start
LH: loop header
LB: loop body
LE: loop exit
PB: predicated region body
PF: predicated region fallthrough
CT: control target
= control target key end

     0   :  { %vm2939_vm0 = vmmov 0   ;;  %s3884_s1 = inlined_call_operand.vmem [shape: bf16[512,256], index: 1, kind: input, shape index: {}]   ;;  %s3885_s0 = inlined_call_operand.vmem [shape: bf16[8,512], index: 0, kind: input, shape index: {}]   ;;  %s3886_s3 = inlined_call_operand.vmem [shape: bf16[256,128], index: 3, kind: input, shape index: {}]   ;;  %s3887_s6 = inlined_call_operand.vmem [shape: bf16[128,384], index: 6, kind: input, shape index: {}]   ;;  %s3888_s2 = inlined_call_operand.vmem [shape: f32[8,256], index: 2, kind: input, shape index: {}]   ;;  %s3889_s8 = inlined_call_operand.vmem [shape: bf16[384,768], index: 8, kind: input, shape index: {}]   ;;  %s3890_s4 = inlined_call_operand.vmem [shape: f32[8,128], index: 4, kind: input, shape index: {}]   ;;  %s3891_s5 = inlined_call_operand.vmem [shape: f32[8,128], index: 5, kind: input, shape index: {}]   ;;  %s3892_s10 = inlined_call_operand.vmem [shape: f32[8,128], index: 10, kind: output, shape index: {0}]   ;;  %s3893_s7 = inlined_call_operand.vmem [shape: f32[8,384], index: 7, kind: input, shape index: {}]   ;;  %s3894_s9 = inlined_call_operand.vmem [shape: f32[8,768], index: 9, kind: input, shape index: {}]   ;;  %s3895_s11 = inlined_call_operand.vmem [shape: f32[8,768], index: 11, kind: output, shape index: {1}]  }
   0x1   :  { %v2573_v0 = vld [vmem:[%s3884_s1 + $0x4] ss:$8 sps:$4 sm:$0xff]   ;;  %v2575_v1 = vld [vmem:[%s3884_s1] ss:$8 sps:$4 sm:$0xff]   ;;  %v2576_v2 = vld [vmem:[%s3884_s1 + $0x14] ss:$8 sps:$4 sm:$0xff]  }
   0x2   :  { %448 = vmatprep.subr.bf16.mxu0 %v2573_v0  ;;  %v2578_v3 = vld [vmem:[%s3884_s1 + $0x10] ss:$8 sps:$4 sm:$0xff]   ;;  %v2579_v4 = vld [vmem:[%s3884_s1 + $0x24] ss:$8 sps:$4 sm:$0xff]   ;;  %v2581_v5 = vld [vmem:[%s3884_s1 + $0x20] ss:$8 sps:$4 sm:$0xff]  }
   0x3   :  { %449 = vmatpush1.bf16.msra.mxu0 %v2575_v1  ;;  %v2582_v6 = vld [vmem:[%s3884_s1 + $0x34] ss:$8 sps:$4 sm:$0xff]   ;;  %v2584_v7 = vld [vmem:[%s3884_s1 + $0x30] ss:$8 sps:$4 sm:$0xff]   ;;  %v2585_v8 = vld [vmem:[%s3884_s1 + $0x44] ss:$8 sps:$4 sm:$0xff]  }
   0x4   :  { %450 = vmatprep.subr.bf16.mxu0 %v2576_v2  ;;  %v2587_v9 = vld [vmem:[%s3884_s1 + $0x40] ss:$8 sps:$4 sm:$0xff]   ;;  %v2588_v10 = vld [vmem:[%s3884_s1 + $0x54] ss:$8 sps:$4 sm:$0xff]   ;;  %v2590_v11 = vld [vmem:[%s3884_s1 + $0x50] ss:$8 sps:$4 sm:$0xff]  }
   0x5   :  { %v2591_v12 = vld [vmem:[%s3884_s1 + $0x64] ss:$8 sps:$4 sm:$0xff]   ;;  %v2593_v15 = vld [vmem:[%s3884_s1 + $0x60] ss:$8 sps:$4 sm:$0xff]   ;;  %v2594_v16 = vld [vmem:[%s3884_s1 + $0x74] ss:$8 sps:$4 sm:$0xff]  }
   0x6   :  { %v38_v13 = vld [vmem:[%s3885_s0] sm:$0xff]  ;;  %v2596_v17 = vld [vmem:[%s3884_s1 + $0x70] ss:$8 sps:$4 sm:$0xff]   ;;  %v2600_v20 = vld [vmem:[%s3884_s1 + $0x94] ss:$8 sps:$4 sm:$0xff]  }
   0x7   :  { %451 = vmatpush1.bf16.msra.mxu0 %v2578_v3  ;;  %v2244_v14 = vcombine.high %v38_v13, %v38_v13  ;;  %v2597_v18 = vld [vmem:[%s3884_s1 + $0x84] ss:$8 sps:$4 sm:$0xff]   ;;  %v2599_v19 = vld [vmem:[%s3884_s1 + $0x80] ss:$8 sps:$4 sm:$0xff]   ;;  %v2602_v21 = vld [vmem:[%s3884_s1 + $0x90] ss:$8 sps:$4 sm:$0xff]   ;;  %v2243_v36 = vcombine.low %v38_v13, %v38_v13 }
   0x8   :  { %452 = vmatprep.subr.bf16.mxu0 %v2579_v4  ;;  %v2603_v22 = vld [vmem:[%s3884_s1 + $0xa4] ss:$8 sps:$4 sm:$0xff]   ;;  %v2605_v23 = vld [vmem:[%s3884_s1 + $0xa0] ss:$8 sps:$4 sm:$0xff]   ;;  %v2606_v24 = vld [vmem:[%s3884_s1 + $0xb4] ss:$8 sps:$4 sm:$0xff]  }
   0x9   :  { %480 = vmatprep.mubr.bf16.mxu0 %v2244_v14  ;;  %v2608_v25 = vld [vmem:[%s3884_s1 + $0xb0] ss:$8 sps:$4 sm:$0xff]   ;;  %v2609_v26 = vld [vmem:[%s3884_s1 + $0xc4] ss:$8 sps:$4 sm:$0xff]   ;;  %v2611_v27 = vld [vmem:[%s3884_s1 + $0xc0] ss:$8 sps:$4 sm:$0xff]  }
   0xa   :  { %v2612_v28 = vld [vmem:[%s3884_s1 + $0xd4] ss:$8 sps:$4 sm:$0xff]   ;;  %v2614_v29 = vld [vmem:[%s3884_s1 + $0xd0] ss:$8 sps:$4 sm:$0xff]   ;;  %v2615_v30 = vld [vmem:[%s3884_s1 + $0xe4] ss:$8 sps:$4 sm:$0xff]  }
   0xb   :  { %453 = vmatpush1.bf16.msra.mxu0 %v2581_v5  ;;  %v2617_v31 = vld [vmem:[%s3884_s1 + $0xe0] ss:$8 sps:$4 sm:$0xff]   ;;  %v2618_v32 = vld [vmem:[%s3884_s1 + $0xf4] ss:$8 sps:$4 sm:$0xff]   ;;  %v2620_v33 = vld [vmem:[%s3884_s1 + $0xf0] ss:$8 sps:$4 sm:$0xff]  }
   0xc   :  { %454 = vmatprep.subr.bf16.mxu0 %v2582_v6  ;;  %v3102_v34 = vld [vmem:[%s3885_s0 + $0x8] sm:$0xff]  ;;  %v2629_v39 = vld [vmem:[%s3884_s1 + $0x114] ss:$8 sps:$4 sm:$0xff]   ;;  %v2627_v40 = vld [vmem:[%s3884_s1 + $0x110] ss:$8 sps:$4 sm:$0xff]  }
   0xd   :  { %v2626_v35 = vld [vmem:[%s3884_s1 + $0x104] ss:$8 sps:$4 sm:$0xff]   ;;  %v2624_v37 = vld [vmem:[%s3884_s1 + $0x100] ss:$8 sps:$4 sm:$0xff]   ;;  %v2246_v38 = vcombine.high %v3102_v34, %v3102_v34  ;;  %v2635_v43 = vld [vmem:[%s3884_s1 + $0x134] ss:$8 sps:$4 sm:$0xff]   ;;  %v2245_v6 = vcombine.low %v3102_v34, %v3102_v34  ;;  %v106_v34 = vlaneseq }
   0xe   :  { %v2632_v41 = vld [vmem:[%s3884_s1 + $0x124] ss:$8 sps:$4 sm:$0xff]   ;;  %v2630_v42 = vld [vmem:[%s3884_s1 + $0x120] ss:$8 sps:$4 sm:$0xff]   ;;  %v2633_v44 = vld [vmem:[%s3884_s1 + $0x130] ss:$8 sps:$4 sm:$0xff]  }
   0xf   :  { %455 = vmatpush1.bf16.msra.mxu0 %v2584_v7  ;;  %v2638_v45 = vld [vmem:[%s3884_s1 + $0x144] ss:$8 sps:$4 sm:$0xff]   ;;  %v2636_v46 = vld [vmem:[%s3884_s1 + $0x140] ss:$8 sps:$4 sm:$0xff]   ;;  %v2641_v47 = vld [vmem:[%s3884_s1 + $0x154] ss:$8 sps:$4 sm:$0xff]  }
  0x10   :  { %456 = vmatprep.subr.bf16.mxu0 %v2585_v8  ;;  %v2639_v48 = vld [vmem:[%s3884_s1 + $0x150] ss:$8 sps:$4 sm:$0xff]   ;;  %v2644_v49 = vld [vmem:[%s3884_s1 + $0x164] ss:$8 sps:$4 sm:$0xff]   ;;  %v2642_v50 = vld [vmem:[%s3884_s1 + $0x160] ss:$8 sps:$4 sm:$0xff]  }
  0x11   :  { %v2647_v51 = vld [vmem:[%s3884_s1 + $0x174] ss:$8 sps:$4 sm:$0xff]   ;;  %v2645_v52 = vld [vmem:[%s3884_s1 + $0x170] ss:$8 sps:$4 sm:$0xff]   ;;  %v2650_v53 = vld [vmem:[%s3884_s1 + $0x184] ss:$8 sps:$4 sm:$0xff]  }
  0x12   :  { %v2648_v54 = vld [vmem:[%s3884_s1 + $0x180] ss:$8 sps:$4 sm:$0xff]   ;;  %v2653_v55 = vld [vmem:[%s3884_s1 + $0x194] ss:$8 sps:$4 sm:$0xff]   ;;  %v2651_v56 = vld [vmem:[%s3884_s1 + $0x190] ss:$8 sps:$4 sm:$0xff]  }
  0x13   :  { %457 = vmatpush1.bf16.msra.mxu0 %v2587_v9  ;;  %v2656_v57 = vld [vmem:[%s3884_s1 + $0x1a4] ss:$8 sps:$4 sm:$0xff]   ;;  %v2654_v58 = vld [vmem:[%s3884_s1 + $0x1a0] ss:$8 sps:$4 sm:$0xff]   ;;  %v2659_v59 = vld [vmem:[%s3884_s1 + $0x1b4] ss:$8 sps:$4 sm:$0xff]  }
  0x14   :  { %458 = vmatprep.subr.bf16.mxu0 %v2588_v10  ;;  %v2657_v60 = vld [vmem:[%s3884_s1 + $0x1b0] ss:$8 sps:$4 sm:$0xff]   ;;  %v2662_v61 = vld [vmem:[%s3884_s1 + $0x1c4] ss:$8 sps:$4 sm:$0xff]   ;;  %v2660_v62 = vld [vmem:[%s3884_s1 + $0x1c0] ss:$8 sps:$4 sm:$0xff]  }
  0x15   :  { %v2665_v63 = vld [vmem:[%s3884_s1 + $0x1d4] ss:$8 sps:$4 sm:$0xff]   ;;  %v2663_v0 = vld [vmem:[%s3884_s1 + $0x1d0] ss:$8 sps:$4 sm:$0xff]   ;;  %v2668_v1 = vld [vmem:[%s3884_s1 + $0x1e4] ss:$8 sps:$4 sm:$0xff]  }
  0x16   :  { %v2666_v2 = vld [vmem:[%s3884_s1 + $0x1e0] ss:$8 sps:$4 sm:$0xff]   ;;  %v2671_v3 = vld [vmem:[%s3884_s1 + $0x1f4] ss:$8 sps:$4 sm:$0xff]   ;;  %v2669_v4 = vld [vmem:[%s3884_s1 + $0x1f0] ss:$8 sps:$4 sm:$0xff]  }
  0x17   :  { %459 = vmatpush1.bf16.msra.mxu0 %v2590_v11  ;;  %v2673_v5 = vld [vmem:[%s3886_s3 + $0x40] sm:$0xff]   ;;  %v2675_v8 = vld [vmem:[%s3886_s3 + $0x48] sm:$0xff]   ;;  %v2677_v10 = vld [vmem:[%s3886_s3 + $0x50] sm:$0xff]  }
  0x18   :  { %460 = vmatprep.subr.bf16.mxu0 %v2591_v12  ;;  %v2674_v7 = vld [vmem:[%s3886_s3] sm:$0xff]   ;;  %v2676_v9 = vld [vmem:[%s3886_s3 + $0x8] sm:$0xff]   ;;  %v2678_v11 = vld [vmem:[%s3886_s3 + $0x10] sm:$0xff]  }
  0x19   :  { %v2679_v12 = vld [vmem:[%s3886_s3 + $0x58] sm:$0xff]   ;;  %v2681_v14 = vld [vmem:[%s3886_s3 + $0x60] sm:$0xff]  }
  0x1a   :  { %v2680_v13 = vld [vmem:[%s3886_s3 + $0x18] sm:$0xff]  }
  0x1b   :  { %461 = vmatpush1.bf16.msra.mxu0 %v2593_v15  ;;  %v2682_v15 = vld [vmem:[%s3886_s3 + $0x20] sm:$0xff]  }
  0x1c   :  { %462 = vmatprep.subr.bf16.mxu0 %v2594_v16  ;;  %v2683_v16 = vld [vmem:[%s3886_s3 + $0x68] sm:$0xff]  }
  0x1f   :  { %463 = vmatpush1.bf16.msra.mxu0 %v2596_v17  ;;  %v2684_v17 = vld [vmem:[%s3886_s3 + $0x28] sm:$0xff]  }
  0x20   :  { %464 = vmatprep.subr.bf16.mxu0 %v2597_v18  ;;  %v2685_v18 = vld [vmem:[%s3886_s3 + $0x70] sm:$0xff]  }
  0x23   :  { %465 = vmatpush1.bf16.msra.mxu0 %v2599_v19  ;;  %v2686_v19 = vld [vmem:[%s3886_s3 + $0x30] sm:$0xff]  }
  0x24   :  { %466 = vmatprep.subr.bf16.mxu0 %v2600_v20  ;;  %v2687_v20 = vld [vmem:[%s3886_s3 + $0x78] sm:$0xff]  }
  0x27   :  { %467 = vmatpush1.bf16.msra.mxu0 %v2602_v21  ;;  %v2688_v21 = vld [vmem:[%s3886_s3 + $0x38] sm:$0xff]  }
  0x28   :  { %468 = vmatprep.subr.bf16.mxu0 %v2603_v22  ;;  %v2689_v22 = vld [vmem:[%s3887_s6 + $0x4] ss:$12 sps:$4 sm:$0xff]  }
  0x29   :  { %906 = vmatprep.subr.bf16.mxu1 %v2689_v22  ;;  %v2778_v22 = vld [vmem:[%s3889_s8 + $0x1b8] ss:$24 sps:$4 sm:$0xff]  }
  0x2b   :  { %469 = vmatpush1.bf16.msra.mxu0 %v2605_v23  ;;  %v2691_v23 = vld [vmem:[%s3887_s6] ss:$12 sps:$4 sm:$0xff]  }
  0x2c   :  { %470 = vmatprep.subr.bf16.mxu0 %v2606_v24  ;;  %v2692_v24 = vld [vmem:[%s3887_s6 + $0x1c] ss:$12 sps:$4 sm:$0xff]   ;;  %907 = vmatpush1.bf16.msra.mxu1 %v2691_v23  ;;  %v2786_v23 = vld [vmem:[%s3889_s8 + $0x1ec] ss:$24 sps:$4 sm:$0xff]  }
  0x2d   :  { %908 = vmatprep.subr.bf16.mxu1 %v2692_v24  ;;  %v2784_v24 = vld [vmem:[%s3889_s8 + $0x1e8] ss:$24 sps:$4 sm:$0xff]  }
  0x2f   :  { %471 = vmatpush1.bf16.msra.mxu0 %v2608_v25  ;;  %v2694_v25 = vld [vmem:[%s3887_s6 + $0x18] ss:$12 sps:$4 sm:$0xff]  }
  0x30   :  { %472 = vmatprep.subr.bf16.mxu0 %v2609_v26  ;;  %v2695_v26 = vld [vmem:[%s3887_s6 + $0x34] ss:$12 sps:$4 sm:$0xff]   ;;  %909 = vmatpush1.bf16.msra.mxu1 %v2694_v25 }
  0x31   :  { %910 = vmatprep.subr.bf16.mxu1 %v2695_v26  ;;  %v2792_v25 = vld [vmem:[%s3889_s8 + $0x21c] ss:$24 sps:$4 sm:$0xff]   ;;  %v2790_v26 = vld [vmem:[%s3889_s8 + $0x218] ss:$24 sps:$4 sm:$0xff]  }
  0x33   :  { %473 = vmatpush1.bf16.msra.mxu0 %v2611_v27  ;;  %v2697_v27 = vld [vmem:[%s3887_s6 + $0x30] ss:$12 sps:$4 sm:$0xff]  }
  0x34   :  { %474 = vmatprep.subr.bf16.mxu0 %v2612_v28  ;;  %v2698_v28 = vld [vmem:[%s3887_s6 + $0x4c] ss:$12 sps:$4 sm:$0xff]   ;;  %911 = vmatpush1.bf16.msra.mxu1 %v2697_v27 }
  0x35   :  { %912 = vmatprep.subr.bf16.mxu1 %v2698_v28  ;;  %v2798_v27 = vld [vmem:[%s3889_s8 + $0x24c] ss:$24 sps:$4 sm:$0xff]   ;;  %v2796_v28 = vld [vmem:[%s3889_s8 + $0x248] ss:$24 sps:$4 sm:$0xff]  }
  0x37   :  { %475 = vmatpush1.bf16.msra.mxu0 %v2614_v29  ;;  %v2700_v29 = vld [vmem:[%s3887_s6 + $0x48] ss:$12 sps:$4 sm:$0xff]  }
  0x38   :  { %476 = vmatprep.subr.bf16.mxu0 %v2615_v30  ;;  %v2701_v30 = vld [vmem:[%s3887_s6 + $0x64] ss:$12 sps:$4 sm:$0xff]   ;;  %913 = vmatpush1.bf16.msra.mxu1 %v2700_v29 }
  0x39   :  { %914 = vmatprep.subr.bf16.mxu1 %v2701_v30  ;;  %v586_v29 = vld [vmem:[%s3890_s4] sm:$0xff] }
  0x3b   :  { %477 = vmatpush1.bf16.msra.mxu0 %v2617_v31  ;;  %v2703_v31 = vld [vmem:[%s3887_s6 + $0x60] ss:$12 sps:$4 sm:$0xff]  }
  0x3c   :  { %478 = vmatprep.subr.bf16.mxu0 %v2618_v32  ;;  %v2704_v32 = vld [vmem:[%s3887_s6 + $0x7c] ss:$12 sps:$4 sm:$0xff]   ;;  %915 = vmatpush1.bf16.msra.mxu1 %v2703_v31 }
  0x3d   :  { %916 = vmatprep.subr.bf16.mxu1 %v2704_v32 }
  0x3f   :  { %479 = vmatpush1.bf16.msra.mxu0 %v2620_v33  ;;  %v2706_v33 = vld [vmem:[%s3887_s6 + $0x78] ss:$12 sps:$4 sm:$0xff]  }
  0x40   :  { %489 = vmatprep.subr.bf16.mxu0 %v2626_v35  ;;  %917 = vmatpush1.bf16.msra.mxu1 %v2706_v33  ;;  %v107_v35 = vshrl.u32 %v106_v34, 7 }
  0x42   :  { %481 = vmatmul.mubr.bf16.vlgmr.msra.gmra.mrb[0].mxu0 %v2243_v36  ;;  %v3288_v36 = vsub.s32 0, %v107_v35 }
  0x43   :  { %490 = vmatpush1.bf16.msra.mxu0 %v2624_v37  ;;  %521 = vmatprep.mubr.bf16.mxu0 %v2246_v38  ;;  %v104_v37 = vld [vmem:[%s3888_s2] sm:$0xff]  ;;  %v105_v38 = vld [vmem:[%s3888_s2 + $0x8] sm:$0xff] }
  0x44   :  { %491 = vmatprep.subr.bf16.mxu0 %v2629_v39  ;;  %v109_v39 = vrot.slane %v104_v37, %v3288_v36  ;;  %v590_v31 = vrot.slane %v586_v29, %v3288_v36  ;;  %v764_v29 = vld [vmem:[%s3893_s7 + $0x8] sm:$0xff] }
  0x47   :  { %492 = vmatpush1.bf16.msra.mxu0 %v2627_v40  ;;  %v3297_v40 = vsub.s32 1, %v107_v35 }
  0x48   :  { %493 = vmatprep.subr.bf16.mxu0 %v2632_v41  ;;  %v113_v41 = vrot.slane %v105_v38, %v3288_v36 }
  0x4b   :  { %494 = vmatpush1.bf16.msra.mxu0 %v2630_v42  ;;  %v3300_v42 = vsub.s32 2, %v107_v35 }
  0x4c   :  { %495 = vmatprep.subr.bf16.mxu0 %v2635_v43 }
  0x4f   :  { %496 = vmatpush1.bf16.msra.mxu0 %v2633_v44 }
  0x50   :  { %497 = vmatprep.subr.bf16.mxu0 %v2638_v45  ;;  %v535_v45 = vrot.slane %v104_v37, %v3297_v40 }
  0x53   :  { %498 = vmatpush1.bf16.msra.mxu0 %v2636_v46 }
  0x54   :  { %499 = vmatprep.subr.bf16.mxu0 %v2641_v47 }
  0x57   :  { %500 = vmatpush1.bf16.msra.mxu0 %v2639_v48  ;;  %v539_v48 = vrot.slane %v105_v38, %v3297_v40 }
  0x58   :  { %501 = vmatprep.subr.bf16.mxu0 %v2644_v49 }
  0x5b   :  { %502 = vmatpush1.bf16.msra.mxu0 %v2642_v50 }
  0x5c   :  { %503 = vmatprep.subr.bf16.mxu0 %v2647_v51  ;;  %v545_v51 = vrot.slane %v104_v37, %v3300_v42  ;;  %v728_v37 = vld [vmem:[%s3891_s5] sm:$0xff] }
  0x5f   :  { %504 = vmatpush1.bf16.msra.mxu0 %v2645_v52 }
  0x60   :  { %505 = vmatprep.subr.bf16.mxu0 %v2650_v53 }
  0x63   :  { %506 = vmatpush1.bf16.msra.mxu0 %v2648_v54  ;;  %v549_v54 = vrot.slane %v105_v38, %v3300_v42 }
  0x64   :  { %507 = vmatprep.subr.bf16.mxu0 %v2653_v55 }
  0x67   :  { %508 = vmatpush1.bf16.msra.mxu0 %v2651_v56 }
  0x68   :  { %509 = vmatprep.subr.bf16.mxu0 %v2656_v57 }
  0x6b   :  { %510 = vmatpush1.bf16.msra.mxu0 %v2654_v58 }
  0x6c   :  { %511 = vmatprep.subr.bf16.mxu0 %v2659_v59 }
  0x6f   :  { %512 = vmatpush1.bf16.msra.mxu0 %v2657_v60 }
  0x70   :  { %513 = vmatprep.subr.bf16.mxu0 %v2662_v61  ;;  %v2707_v61 = vld [vmem:[%s3887_s6 + $0x94] ss:$12 sps:$4 sm:$0xff]  }
  0x71   :  { %918 = vmatprep.subr.bf16.mxu1 %v2707_v61  ;;  %v2753_v61 = vld [vmem:[%s3889_s8 + $0xf4] ss:$24 sps:$4 sm:$0xff]  }
  0x73   :  { %514 = vmatpush1.bf16.msra.mxu0 %v2660_v62  ;;  %v2709_v62 = vld [vmem:[%s3887_s6 + $0x90] ss:$12 sps:$4 sm:$0xff]  }
  0x74   :  { %515 = vmatprep.subr.bf16.mxu0 %v2665_v63  ;;  %919 = vmatpush1.bf16.msra.mxu1 %v2709_v62  ;;  %v2710_v63 = vld [vmem:[%s3887_s6 + $0xac] ss:$12 sps:$4 sm:$0xff]   ;;  %v2751_v62 = vld [vmem:[%s3889_s8 + $0xf0] ss:$24 sps:$4 sm:$0xff]  }
  0x75   :  { %920 = vmatprep.subr.bf16.mxu1 %v2710_v63  ;;  %v2759_v63 = vld [vmem:[%s3889_s8 + $0x124] ss:$24 sps:$4 sm:$0xff]  }
  0x77   :  { %516 = vmatpush1.bf16.msra.mxu0 %v2663_v0  ;;  %v2712_v0 = vld [vmem:[%s3887_s6 + $0xa8] ss:$12 sps:$4 sm:$0xff]  }
  0x78   :  { %517 = vmatprep.subr.bf16.mxu0 %v2668_v1  ;;  %921 = vmatpush1.bf16.msra.mxu1 %v2712_v0  ;;  %v2937_v1 = vmov 0   ;;  %v2757_v0 = vld [vmem:[%s3889_s8 + $0x120] ss:$24 sps:$4 sm:$0xff]  }
  0x79   :  { %938 = vmatprep.mubr.bf16.mxu1 %v2937_v1 }
  0x7b   :  { %518 = vmatpush1.bf16.msra.mxu0 %v2666_v2  ;;  %v2938_v2 = vmov 0.0  }
  0x7c   :  { %519 = vmatprep.subr.bf16.mxu0 %v2671_v3  ;;  %2526 = vmatprep.subr.bf16.mxu1 %v2938_v2  ;;  %v2724_v3 = vld [vmem:[%s3889_s8 + $0x8] ss:$24 sps:$4 sm:$0xff]  }
  0x7f   :  { %520 = vmatpush1.bf16.msra.mxu0 %v2669_v4  ;;  %v2726_v4 = vld [vmem:[%s3889_s8 + $0xc] ss:$24 sps:$4 sm:$0xff]  }
  0x80   :  { %2495 = vmatprep.subr.bf16.mxu0 %v2673_v5  ;;  %v2730_v5 = vld [vmem:[%s3889_s8 + $0x38] ss:$24 sps:$4 sm:$0xff]  }
  0x82   :  { %522 = vmatmul.mubr.bf16.vlgmr.msra.gmra.mrb[0].mxu0 %v2245_v6  ;;  %v2732_v6 = vld [vmem:[%s3889_s8 + $0x3c] ss:$24 sps:$4 sm:$0xff]  }
  0x83   :  { %2496 = vmatpush3.bf16.msra.mxu0 %v2674_v7  ;;  %v2738_v7 = vld [vmem:[%s3889_s8 + $0x6c] ss:$24 sps:$4 sm:$0xff]  }
  0x84   :  { %2497 = vmatprep.subr.bf16.mxu0 %v2675_v8  ;;  %v2736_v8 = vld [vmem:[%s3889_s8 + $0x68] ss:$24 sps:$4 sm:$0xff]  }
  0x87   :  { %2498 = vmatpush3.bf16.msra.mxu0 %v2676_v9  ;;  %v2744_v9 = vld [vmem:[%s3889_s8 + $0x9c] ss:$24 sps:$4 sm:$0xff]  }
  0x88   :  { %2499 = vmatprep.subr.bf16.mxu0 %v2677_v10  ;;  %v2742_v10 = vld [vmem:[%s3889_s8 + $0x98] ss:$24 sps:$4 sm:$0xff]  }
  0x8b   :  { %2500 = vmatpush3.bf16.msra.mxu0 %v2678_v11  ;;  %v2750_v11 = vld [vmem:[%s3889_s8 + $0xcc] ss:$24 sps:$4 sm:$0xff]  }
  0x8c   :  { %2501 = vmatprep.subr.bf16.mxu0 %v2679_v12  ;;  %v2748_v12 = vld [vmem:[%s3889_s8 + $0xc8] ss:$24 sps:$4 sm:$0xff]  }
  0x8f   :  { %2502 = vmatpush3.bf16.msra.mxu0 %v2680_v13  ;;  %v2756_v13 = vld [vmem:[%s3889_s8 + $0xfc] ss:$24 sps:$4 sm:$0xff]  }
  0x90   :  { %2503 = vmatprep.subr.bf16.mxu0 %v2681_v14  ;;  %v2754_v14 = vld [vmem:[%s3889_s8 + $0xf8] ss:$24 sps:$4 sm:$0xff]  }
  0x93   :  { %2504 = vmatpush3.bf16.msra.mxu0 %v2682_v15  ;;  %v2762_v15 = vld [vmem:[%s3889_s8 + $0x12c] ss:$24 sps:$4 sm:$0xff]  }
  0x94   :  { %2505 = vmatprep.subr.bf16.mxu0 %v2683_v16  ;;  %v2760_v16 = vld [vmem:[%s3889_s8 + $0x128] ss:$24 sps:$4 sm:$0xff]  }
  0x97   :  { %2506 = vmatpush3.bf16.msra.mxu0 %v2684_v17  ;;  %v2768_v17 = vld [vmem:[%s3889_s8 + $0x15c] ss:$24 sps:$4 sm:$0xff]  }
  0x98   :  { %2507 = vmatprep.subr.bf16.mxu0 %v2685_v18  ;;  %v2766_v18 = vld [vmem:[%s3889_s8 + $0x158] ss:$24 sps:$4 sm:$0xff]  }
  0x9b   :  { %2508 = vmatpush3.bf16.msra.mxu0 %v2686_v19  ;;  %v2774_v19 = vld [vmem:[%s3889_s8 + $0x18c] ss:$24 sps:$4 sm:$0xff]  }
  0x9c   :  { %2509 = vmatprep.subr.bf16.mxu0 %v2687_v20  ;;  %v2772_v20 = vld [vmem:[%s3889_s8 + $0x188] ss:$24 sps:$4 sm:$0xff]  }
  0x9f   :  { %2510 = vmatpush3.bf16.msra.mxu0 %v2688_v21  ;;  %v2780_v21 = vld [vmem:[%s3889_s8 + $0x1bc] ss:$24 sps:$4 sm:$0xff]  }
  0xa0   :  { %1999 = vmatprep.subr.bf16.mxu0 %v2726_v4  ;;  %v2771_v4 = vld [vmem:[%s3889_s8 + $0x184] ss:$24 sps:$4 sm:$0xff]  }
 0x155   :  { %v523_v43 = vpop.f32.mrb[0].mxu0 }
 0x156   :  { %v2546_v44 = vadd.f32 %v523_v43, %v109_v39  ;;  %v525_v46 = vpop.f32.mrb[1].mxu0 }
 0x157   :  { %v2547_v47 = vadd.f32 %v525_v46, %v113_v41  ;;  %v527_v49 = vpop.f32.mrb[2].mxu0  ;;  %v2713_v41 = vld [vmem:[%s3887_s6 + $0x8] ss:$12 sps:$4 sm:$0xff]   ;;  %v2716_v46 = vld [vmem:[%s3887_s6 + $0x50] ss:$12 sps:$4 sm:$0xff]  }
 0x158   :  { %v530_v50 = vmax.f32 %v2546_v44, 0.0  ;;  %v528_v52 = vpop.f32.mrb[3].mxu0  ;;  %v2714_v44 = vld [vmem:[%s3887_s6 + $0x20] ss:$12 sps:$4 sm:$0xff]   ;;  %v2719_v49 = vld [vmem:[%s3887_s6 + $0x98] ss:$12 sps:$4 sm:$0xff]  }
 0x159   :  { %v531_v53 = vmax.f32 %v2547_v47, 0.0  ;;  %v2717_v47 = vld [vmem:[%s3887_s6 + $0x68] ss:$12 sps:$4 sm:$0xff]   ;;  %v2721_v52 = vld [vmem:[%s3889_s8] ss:$24 sps:$4 sm:$0xff]  }
 0x15a   :  { %v540_v55 = vmul.f32 %v535_v45, %v530_v50  ;;  %v2715_v45 = vld [vmem:[%s3887_s6 + $0x38] ss:$12 sps:$4 sm:$0xff]   ;;  %v2720_v50 = vld [vmem:[%s3887_s6 + $0xb0] ss:$12 sps:$4 sm:$0xff]  }
 0x15b   :  { %v541_v56 = vmul.f32 %v539_v48, %v531_v53  ;;  %v2718_v48 = vld [vmem:[%s3887_s6 + $0x80] ss:$12 sps:$4 sm:$0xff]  }
 0x15c   :  { %v550_v57 = vadd.f32 %v545_v51, %v540_v55  ;;  %v2723_v51 = vld [vmem:[%s3889_s8 + $0x4] ss:$24 sps:$4 sm:$0xff]   ;;  %v2729_v53 = vld [vmem:[%s3889_s8 + $0x34] ss:$24 sps:$4 sm:$0xff]  }
 0x15d   :  { %v551_v58 = vadd.f32 %v549_v54, %v541_v56  ;;  %v2727_v54 = vld [vmem:[%s3889_s8 + $0x30] ss:$24 sps:$4 sm:$0xff]   ;;  %v2735_v55 = vld [vmem:[%s3889_s8 + $0x64] ss:$24 sps:$4 sm:$0xff]   ;;  %v2733_v56 = vld [vmem:[%s3889_s8 + $0x60] ss:$24 sps:$4 sm:$0xff]  }
 0x15e   :  { %v552_v60 = vpack.c.bf16 %v550_v57, %v550_v57  ;;  %v2741_v57 = vld [vmem:[%s3889_s8 + $0x94] ss:$24 sps:$4 sm:$0xff]  }
 0x15f   :  { %v553_v59 = vpack.c.bf16 %v551_v58, %v551_v58  ;;  %v2739_v58 = vld [vmem:[%s3889_s8 + $0x90] ss:$24 sps:$4 sm:$0xff]  }
 0x161   :  { %719 = vmatprep.mubr.bf16.mxu0 %v553_v59  ;;  %v2747_v59 = vld [vmem:[%s3889_s8 + $0xc4] ss:$24 sps:$4 sm:$0xff]  }
 0x162   :  { %720 = vmatmul.mubr.bf16.vlgmr.msra.gmra.mrb[4].mxu0 %v552_v60  ;;  %v2745_v60 = vld [vmem:[%s3889_s8 + $0xc0] ss:$24 sps:$4 sm:$0xff]  }
 0x163   :  { %2000 = vmatpush1.bf16.msra.mxu0 %v2724_v3  ;;  %v2763_v3 = vld [vmem:[%s3889_s8 + $0x150] ss:$24 sps:$4 sm:$0xff]  }
 0x164   :  { %2001 = vmatprep.subr.bf16.mxu0 %v2732_v6  ;;  %v2777_v6 = vld [vmem:[%s3889_s8 + $0x1b4] ss:$24 sps:$4 sm:$0xff]  }
 0x167   :  { %2002 = vmatpush1.bf16.msra.mxu0 %v2730_v5  ;;  %v2769_v5 = vld [vmem:[%s3889_s8 + $0x180] ss:$24 sps:$4 sm:$0xff]  }
 0x168   :  { %2003 = vmatprep.subr.bf16.mxu0 %v2738_v7  ;;  %v2775_v7 = vld [vmem:[%s3889_s8 + $0x1b0] ss:$24 sps:$4 sm:$0xff]  }
 0x16b   :  { %2004 = vmatpush1.bf16.msra.mxu0 %v2736_v8  ;;  %v2783_v8 = vld [vmem:[%s3889_s8 + $0x1e4] ss:$24 sps:$4 sm:$0xff]  }
 0x16c   :  { %2005 = vmatprep.subr.bf16.mxu0 %v2744_v9  ;;  %v2781_v9 = vld [vmem:[%s3889_s8 + $0x1e0] ss:$24 sps:$4 sm:$0xff]  }
 0x16f   :  { %2006 = vmatpush1.bf16.msra.mxu0 %v2742_v10  ;;  %v2789_v10 = vld [vmem:[%s3889_s8 + $0x214] ss:$24 sps:$4 sm:$0xff]  }
 0x170   :  { %2007 = vmatprep.subr.bf16.mxu0 %v2750_v11  ;;  %v2787_v11 = vld [vmem:[%s3889_s8 + $0x210] ss:$24 sps:$4 sm:$0xff]  }
 0x173   :  { %2008 = vmatpush1.bf16.msra.mxu0 %v2748_v12  ;;  %v2795_v12 = vld [vmem:[%s3889_s8 + $0x244] ss:$24 sps:$4 sm:$0xff]  }
 0x174   :  { %2009 = vmatprep.subr.bf16.mxu0 %v2756_v13  ;;  %v2793_v13 = vld [vmem:[%s3889_s8 + $0x240] ss:$24 sps:$4 sm:$0xff]  }
 0x177   :  { %2010 = vmatpush1.bf16.msra.mxu0 %v2754_v14  ;;  %v2801_v14 = vld [vmem:[%s3889_s8 + $0x274] ss:$24 sps:$4 sm:$0xff]  }
 0x178   :  { %2011 = vmatprep.subr.bf16.mxu0 %v2762_v15  ;;  %v2804_v15 = vld [vmem:[%s3889_s8 + $0x27c] ss:$24 sps:$4 sm:$0xff]  }
 0x17b   :  { %2012 = vmatpush1.bf16.msra.mxu0 %v2760_v16  ;;  %v2799_v16 = vld [vmem:[%s3889_s8 + $0x270] ss:$24 sps:$4 sm:$0xff]  }
 0x17c   :  { %2013 = vmatprep.subr.bf16.mxu0 %v2768_v17  ;;  %v2802_v17 = vld [vmem:[%s3889_s8 + $0x278] ss:$24 sps:$4 sm:$0xff]  }
 0x17f   :  { %2014 = vmatpush1.bf16.msra.mxu0 %v2766_v18  ;;  %v2807_v18 = vld [vmem:[%s3889_s8 + $0x2a4] ss:$24 sps:$4 sm:$0xff]  }
 0x180   :  { %2015 = vmatprep.subr.bf16.mxu0 %v2774_v19  ;;  %v2810_v19 = vld [vmem:[%s3889_s8 + $0x2ac] ss:$24 sps:$4 sm:$0xff]  }
 0x183   :  { %2016 = vmatpush1.bf16.msra.mxu0 %v2772_v20  ;;  %v2805_v20 = vld [vmem:[%s3889_s8 + $0x2a0] ss:$24 sps:$4 sm:$0xff]  }
 0x184   :  { %2017 = vmatprep.subr.bf16.mxu0 %v2780_v21  ;;  %v2808_v21 = vld [vmem:[%s3889_s8 + $0x2a8] ss:$24 sps:$4 sm:$0xff]  }
 0x187   :  { %2018 = vmatpush1.bf16.msra.mxu0 %v2778_v22  ;;  %v2813_v22 = vld [vmem:[%s3889_s8 + $0x2d4] ss:$24 sps:$4 sm:$0xff]  }
 0x188   :  { %2019 = vmatprep.subr.bf16.mxu0 %v2786_v23  ;;  %v2816_v23 = vld [vmem:[%s3889_s8 + $0x2dc] ss:$24 sps:$4 sm:$0xff]  }
 0x18b   :  { %2020 = vmatpush1.bf16.msra.mxu0 %v2784_v24  ;;  %v2811_v24 = vld [vmem:[%s3889_s8 + $0x2d0] ss:$24 sps:$4 sm:$0xff]  }
 0x18c   :  { %2021 = vmatprep.subr.bf16.mxu0 %v2792_v25  ;;  %v2814_v25 = vld [vmem:[%s3889_s8 + $0x2d8] ss:$24 sps:$4 sm:$0xff]  }
 0x18f   :  { %2022 = vmatpush1.bf16.msra.mxu0 %v2790_v26  ;;  %v2819_v26 = vld [vmem:[%s3889_s8 + $0x304] ss:$24 sps:$4 sm:$0xff]  }
 0x190   :  { %2023 = vmatprep.subr.bf16.mxu0 %v2798_v27  ;;  %v2822_v27 = vld [vmem:[%s3889_s8 + $0x30c] ss:$24 sps:$4 sm:$0xff]  }
 0x193   :  { %2024 = vmatpush1.bf16.msra.mxu0 %v2796_v28  ;;  %v763_v28 = vld [vmem:[%s3893_s7] sm:$0xff] }
 0x194   :  { %2025 = vmatprep.subr.bf16.mxu0 %v2804_v15  ;;  %v2858_v15 = vld [vmem:[%s3889_s8 + $0x42c] ss:$24 sps:$4 sm:$0xff]  }
 0x197   :  { %2026 = vmatpush1.bf16.msra.mxu0 %v2802_v17 }
 0x198   :  { %2027 = vmatprep.subr.bf16.mxu0 %v2810_v19 }
 0x19b   :  { %2028 = vmatpush1.bf16.msra.mxu0 %v2808_v21  ;;  %v2853_v21 = vld [vmem:[%s3889_s8 + $0x420] ss:$24 sps:$4 sm:$0xff]  }
 0x19c   :  { %2029 = vmatprep.subr.bf16.mxu0 %v2816_v23 }
 0x19f   :  { %2030 = vmatpush1.bf16.msra.mxu0 %v2814_v25 }
 0x1a0   :  { %2040 = vmatprep.subr.bf16.mxu0 %v2822_v27  ;;  %v2864_v27 = vld [vmem:[%s3889_s8 + $0x45c] ss:$24 sps:$4 sm:$0xff]  }
 0x235   :  { %v2511_v30 = vpop.f32.mrb[4].mxu0 }
 0x236   :  { %v2512_v32 = vpop.f32.mrb[5].mxu0 }
 0x237   :  { %v2513_v33 = vadd.f32 %v2512_v32, %v2511_v30  ;;  %v2514_v34 = vpop.f32.mrb[6].mxu0  ;;  %v769_v30 = vrot.slane %v763_v28, %v3288_v36 }
 0x238   :  { %v2515_v35 = vpop.f32.mrb[7].mxu0  ;;  %v993_v34 = vrot.slane %v763_v28, %v3297_v40 }
 0x239   :  { %v722_v38 = vadd.f32 %v2513_v33, %v590_v31  ;;  %v773_v31 = vrot.slane %v764_v29, %v3288_v36 }
 0x23b   :  { %727 = vst [vmem:[%s3892_s10] sm:$0xff] %v722_v38  ;;  %v729_v39 = vadd.f32 %v728_v37, %v722_v38  ;;  %v997_v38 = vrot.slane %v764_v29, %v3297_v40 }
 0x23d   :  { %v730_v43 = vpack.c.bf16 %v729_v39, %v729_v39 }
 0x23f   :  { %939 = vmatmul.mubr.bf16.vlgmr.msra.gmra.mrb[0].mxu1 %v730_v43 }
 0x240   :  { %2527 = vmatpush3.bf16.msra.mxu1 %v2713_v41  ;;  %2542 = vmatprep.mubr.msk.bf16.mxu1 %vm2939_vm0, %v2938_v2 }
 0x241   :  { %2528 = vmatprep.subr.bf16.mxu1 %v2938_v2 }
 0x244   :  { %2529 = vmatpush3.bf16.msra.mxu1 %v2714_v44 }
 0x245   :  { %2530 = vmatprep.subr.bf16.mxu1 %v2938_v2 }
 0x248   :  { %2531 = vmatpush3.bf16.msra.mxu1 %v2715_v45 }
 0x249   :  { %2532 = vmatprep.subr.bf16.mxu1 %v2938_v2 }
 0x24c   :  { %2533 = vmatpush3.bf16.msra.mxu1 %v2716_v46  ;;  %v1012_v46 = vrot.slane %v764_v29, %v3300_v42  ;;  %v2859_v29 = vld [vmem:[%s3889_s8 + $0x450] ss:$24 sps:$4 sm:$0xff]  }
 0x24d   :  { %2534 = vmatprep.subr.bf16.mxu1 %v2938_v2 }
 0x250   :  { %2535 = vmatpush3.bf16.msra.mxu1 %v2717_v47 }
 0x251   :  { %2536 = vmatprep.subr.bf16.mxu1 %v2938_v2 }
 0x254   :  { %2537 = vmatpush3.bf16.msra.mxu1 %v2718_v48 }
 0x255   :  { %2538 = vmatprep.subr.bf16.mxu1 %v2938_v2 }
 0x258   :  { %2539 = vmatpush3.bf16.msra.mxu1 %v2719_v49 }
 0x259   :  { %2540 = vmatprep.subr.bf16.mxu1 %v2938_v2  ;;  %v2765_v2 = vld [vmem:[%s3889_s8 + $0x154] ss:$24 sps:$4 sm:$0xff]  }
 0x25c   :  { %2541 = vmatpush3.bf16.msra.mxu1 %v2720_v50 }
 0x25d   :  { %1917 = vmatprep.subr.bf16.mxu1 %v2723_v51 }
 0x25f   :  { %2543 = vmatmul.mubr.bf16.vlgmr.msra.gmra.mrb[4].mxu1 %v730_v43  ;;  %v1008_v43 = vrot.slane %v763_v28, %v3300_v42 }
 0x260   :  { %1918 = vmatpush1.bf16.msra.mxu1 %v2721_v52  ;;  %v2817_v52 = vld [vmem:[%s3889_s8 + $0x300] ss:$24 sps:$4 sm:$0xff]  }
 0x261   :  { %1919 = vmatprep.subr.bf16.mxu1 %v2729_v53  ;;  %v2820_v53 = vld [vmem:[%s3889_s8 + $0x308] ss:$24 sps:$4 sm:$0xff]  }
 0x264   :  { %1920 = vmatpush1.bf16.msra.mxu1 %v2727_v54 }
 0x265   :  { %1921 = vmatprep.subr.bf16.mxu1 %v2735_v55  ;;  %v2825_v55 = vld [vmem:[%s3889_s8 + $0x334] ss:$24 sps:$4 sm:$0xff]  }
 0x268   :  { %1922 = vmatpush1.bf16.msra.mxu1 %v2733_v56  ;;  %v2828_v56 = vld [vmem:[%s3889_s8 + $0x33c] ss:$24 sps:$4 sm:$0xff]  }
 0x269   :  { %1923 = vmatprep.subr.bf16.mxu1 %v2741_v57  ;;  %v2823_v57 = vld [vmem:[%s3889_s8 + $0x330] ss:$24 sps:$4 sm:$0xff]  }
 0x26c   :  { %1924 = vmatpush1.bf16.msra.mxu1 %v2739_v58  ;;  %v2826_v58 = vld [vmem:[%s3889_s8 + $0x338] ss:$24 sps:$4 sm:$0xff]  }
 0x26d   :  { %1925 = vmatprep.subr.bf16.mxu1 %v2747_v59  ;;  %v2831_v59 = vld [vmem:[%s3889_s8 + $0x364] ss:$24 sps:$4 sm:$0xff]  }
 0x270   :  { %1926 = vmatpush1.bf16.msra.mxu1 %v2745_v60  ;;  %v2834_v60 = vld [vmem:[%s3889_s8 + $0x36c] ss:$24 sps:$4 sm:$0xff]  }
 0x271   :  { %1927 = vmatprep.subr.bf16.mxu1 %v2753_v61  ;;  %v2829_v61 = vld [vmem:[%s3889_s8 + $0x360] ss:$24 sps:$4 sm:$0xff]  }
 0x274   :  { %1928 = vmatpush1.bf16.msra.mxu1 %v2751_v62  ;;  %v2832_v62 = vld [vmem:[%s3889_s8 + $0x368] ss:$24 sps:$4 sm:$0xff]  }
 0x275   :  { %1929 = vmatprep.subr.bf16.mxu1 %v2759_v63  ;;  %v2837_v63 = vld [vmem:[%s3889_s8 + $0x394] ss:$24 sps:$4 sm:$0xff]  }
 0x278   :  { %1930 = vmatpush1.bf16.msra.mxu1 %v2757_v0  ;;  %v2840_v0 = vld [vmem:[%s3889_s8 + $0x39c] ss:$24 sps:$4 sm:$0xff]  }
 0x279   :  { %1931 = vmatprep.subr.bf16.mxu1 %v2765_v2  ;;  %v2835_v2 = vld [vmem:[%s3889_s8 + $0x390] ss:$24 sps:$4 sm:$0xff]  }
 0x27c   :  { %1932 = vmatpush1.bf16.msra.mxu1 %v2763_v3  ;;  %v2838_v3 = vld [vmem:[%s3889_s8 + $0x398] ss:$24 sps:$4 sm:$0xff]  }
 0x27d   :  { %1933 = vmatprep.subr.bf16.mxu1 %v2771_v4  ;;  %v2843_v4 = vld [vmem:[%s3889_s8 + $0x3c4] ss:$24 sps:$4 sm:$0xff]  }
 0x280   :  { %1934 = vmatpush1.bf16.msra.mxu1 %v2769_v5  ;;  %v2846_v5 = vld [vmem:[%s3889_s8 + $0x3cc] ss:$24 sps:$4 sm:$0xff]  }
 0x281   :  { %1935 = vmatprep.subr.bf16.mxu1 %v2777_v6  ;;  %v2841_v6 = vld [vmem:[%s3889_s8 + $0x3c0] ss:$24 sps:$4 sm:$0xff]  }
 0x284   :  { %1936 = vmatpush1.bf16.msra.mxu1 %v2775_v7  ;;  %v2844_v7 = vld [vmem:[%s3889_s8 + $0x3c8] ss:$24 sps:$4 sm:$0xff]  }
 0x285   :  { %1937 = vmatprep.subr.bf16.mxu1 %v2783_v8  ;;  %v765_v8 = vld [vmem:[%s3893_s7 + $0x10] sm:$0xff] }
 0x288   :  { %1938 = vmatpush1.bf16.msra.mxu1 %v2781_v9  ;;  %v2849_v9 = vld [vmem:[%s3889_s8 + $0x3f4] ss:$24 sps:$4 sm:$0xff]  }
 0x289   :  { %1939 = vmatprep.subr.bf16.mxu1 %v2789_v10  ;;  %v2852_v10 = vld [vmem:[%s3889_s8 + $0x3fc] ss:$24 sps:$4 sm:$0xff]  }
 0x28c   :  { %1940 = vmatpush1.bf16.msra.mxu1 %v2787_v11  ;;  %v777_v11 = vrot.slane %v765_v8, %v3288_v36 }
 0x28d   :  { %1941 = vmatprep.subr.bf16.mxu1 %v2795_v12  ;;  %v2847_v12 = vld [vmem:[%s3889_s8 + $0x3f0] ss:$24 sps:$4 sm:$0xff]  }
 0x290   :  { %1942 = vmatpush1.bf16.msra.mxu1 %v2793_v13  ;;  %v2850_v13 = vld [vmem:[%s3889_s8 + $0x3f8] ss:$24 sps:$4 sm:$0xff]  }
 0x291   :  { %1943 = vmatprep.subr.bf16.mxu1 %v2801_v14  ;;  %v2855_v14 = vld [vmem:[%s3889_s8 + $0x424] ss:$24 sps:$4 sm:$0xff]  }
 0x294   :  { %1944 = vmatpush1.bf16.msra.mxu1 %v2799_v16 }
 0x295   :  { %1945 = vmatprep.subr.bf16.mxu1 %v2807_v18  ;;  %v1001_v18 = vrot.slane %v765_v8, %v3297_v40 }
 0x298   :  { %1946 = vmatpush1.bf16.msra.mxu1 %v2805_v20 }
 0x299   :  { %1947 = vmatprep.subr.bf16.mxu1 %v2813_v22  ;;  %v2856_v22 = vld [vmem:[%s3889_s8 + $0x428] ss:$24 sps:$4 sm:$0xff]  }
 0x29c   :  { %1948 = vmatpush1.bf16.msra.mxu1 %v2811_v24  ;;  %v1016_v24 = vrot.slane %v765_v8, %v3300_v42  ;;  %v2918_v8 = vld [vmem:[%s3889_s8 + $0x344] ss:$24 sps:$4 sm:$0xff]  }
 0x29d   :  { %1958 = vmatprep.subr.bf16.mxu1 %v2819_v26  ;;  %v2861_v26 = vld [vmem:[%s3889_s8 + $0x454] ss:$24 sps:$4 sm:$0xff]  }
 0x312   :  { %v940_v32 = vpop.f32.mrb[0].mxu1 }
 0x313   :  { %v941_v33 = vadd.f32 %v940_v32, %v769_v30  ;;  %v942_v35 = vpop.f32.mrb[1].mxu1  ;;  %v2862_v30 = vld [vmem:[%s3889_s8 + $0x458] ss:$24 sps:$4 sm:$0xff]   ;;  %v2867_v32 = vld [vmem:[%s3889_s8 + $0x14] ss:$24 sps:$4 sm:$0xff]  }
 0x314   :  { %v943_v37 = vadd.f32 %v942_v35, %v773_v31  ;;  %v944_v39 = vpop.f32.mrb[2].mxu1  ;;  %v2870_v35 = vld [vmem:[%s3889_s8 + $0x44] ss:$24 sps:$4 sm:$0xff]  }
 0x315   :  { %v987_v41 = vmax.f32 %v941_v33, 0.0  ;;  %v945_v44 = vpop.f32.mrb[3].mxu1  ;;  %v2865_v33 = vld [vmem:[%s3889_s8 + $0x10] ss:$24 sps:$4 sm:$0xff]  }
 0x316   :  { %v988_v45 = vmax.f32 %v943_v37, 0.0  ;;  %v2868_v37 = vld [vmem:[%s3889_s8 + $0x40] ss:$24 sps:$4 sm:$0xff]   ;;  %v2871_v39 = vld [vmem:[%s3889_s8 + $0x70] ss:$24 sps:$4 sm:$0xff]  }
 0x317   :  { %v1002_v47 = vmul.f32 %v993_v34, %v987_v41  ;;  %v2876_v41 = vld [vmem:[%s3889_s8 + $0xa4] ss:$24 sps:$4 sm:$0xff]   ;;  %v2879_v44 = vld [vmem:[%s3889_s8 + $0xd4] ss:$24 sps:$4 sm:$0xff]  }
 0x318   :  { %v1003_v48 = vmul.f32 %v997_v38, %v988_v45  ;;  %v2873_v38 = vld [vmem:[%s3889_s8 + $0x74] ss:$24 sps:$4 sm:$0xff]   ;;  %v2877_v45 = vld [vmem:[%s3889_s8 + $0xd0] ss:$24 sps:$4 sm:$0xff]  }
 0x319   :  { %v1017_v49 = vadd.f32 %v1008_v43, %v1002_v47  ;;  %v2874_v43 = vld [vmem:[%s3889_s8 + $0xa0] ss:$24 sps:$4 sm:$0xff]  }
 0x31a   :  { %v1018_v50 = vadd.f32 %v1012_v46, %v1003_v48  ;;  %v2882_v46 = vld [vmem:[%s3889_s8 + $0x104] ss:$24 sps:$4 sm:$0xff]   ;;  %v2880_v47 = vld [vmem:[%s3889_s8 + $0x100] ss:$24 sps:$4 sm:$0xff]   ;;  %v2885_v48 = vld [vmem:[%s3889_s8 + $0x134] ss:$24 sps:$4 sm:$0xff]  }
 0x31b   :  { %v3580_v54 = vpack.c.bf16 %v1017_v49, %v1017_v49  ;;  %v2883_v49 = vld [vmem:[%s3889_s8 + $0x130] ss:$24 sps:$4 sm:$0xff]  }
 0x31c   :  { %v3572_v51 = vpack.c.bf16 %v1018_v50, %v1018_v50  ;;  %v2888_v50 = vld [vmem:[%s3889_s8 + $0x164] ss:$24 sps:$4 sm:$0xff]  }
 0x31e   :  { %1949 = vmatprep.mubr.bf16.mxu1 %v3572_v51  ;;  %2031 = vmatprep.mubr.bf16.mxu0 %v3572_v51 }
 0x31f   :  { %1950 = vmatmul.mubr.bf16.vlgmr.msra.gmra.mrb[8].mxu1 %v3580_v54  ;;  %2032 = vmatmul.mubr.bf16.vlgmr.msra.gmra.mrb[8].mxu0 %v3580_v54 }
 0x320   :  { %1959 = vmatpush1.bf16.msra.mxu1 %v2817_v52  ;;  %2041 = vmatpush1.bf16.msra.mxu0 %v2820_v53  ;;  %v2891_v52 = vld [vmem:[%s3889_s8 + $0x194] ss:$24 sps:$4 sm:$0xff]   ;;  %v2889_v53 = vld [vmem:[%s3889_s8 + $0x190] ss:$24 sps:$4 sm:$0xff]  }
 0x321   :  { %1960 = vmatprep.subr.bf16.mxu1 %v2825_v55  ;;  %2042 = vmatprep.subr.bf16.mxu0 %v2828_v56  ;;  %v2894_v55 = vld [vmem:[%s3889_s8 + $0x1c4] ss:$24 sps:$4 sm:$0xff]   ;;  %v2892_v56 = vld [vmem:[%s3889_s8 + $0x1c0] ss:$24 sps:$4 sm:$0xff]  }
 0x322   :  { %1990 = vmatprep.mubr.bf16.mxu1 %v2937_v1  ;;  %2072 = vmatprep.mubr.bf16.mxu0 %v2937_v1 }
 0x324   :  { %1961 = vmatpush1.bf16.msra.mxu1 %v2823_v57  ;;  %2043 = vmatpush1.bf16.msra.mxu0 %v2826_v58  ;;  %v2897_v57 = vld [vmem:[%s3889_s8 + $0x1f4] ss:$24 sps:$4 sm:$0xff]   ;;  %v2895_v58 = vld [vmem:[%s3889_s8 + $0x1f0] ss:$24 sps:$4 sm:$0xff]  }
 0x325   :  { %1962 = vmatprep.subr.bf16.mxu1 %v2831_v59  ;;  %2044 = vmatprep.subr.bf16.mxu0 %v2834_v60  ;;  %v2900_v59 = vld [vmem:[%s3889_s8 + $0x224] ss:$24 sps:$4 sm:$0xff]   ;;  %v2898_v60 = vld [vmem:[%s3889_s8 + $0x220] ss:$24 sps:$4 sm:$0xff]  }
 0x328   :  { %1963 = vmatpush1.bf16.msra.mxu1 %v2829_v61  ;;  %2045 = vmatpush1.bf16.msra.mxu0 %v2832_v62  ;;  %v2903_v61 = vld [vmem:[%s3889_s8 + $0x254] ss:$24 sps:$4 sm:$0xff]   ;;  %v2901_v62 = vld [vmem:[%s3889_s8 + $0x250] ss:$24 sps:$4 sm:$0xff]  }
 0x329   :  { %1964 = vmatprep.subr.bf16.mxu1 %v2837_v63  ;;  %2046 = vmatprep.subr.bf16.mxu0 %v2840_v0  ;;  %v2906_v63 = vld [vmem:[%s3889_s8 + $0x284] ss:$24 sps:$4 sm:$0xff]   ;;  %v2904_v0 = vld [vmem:[%s3889_s8 + $0x280] ss:$24 sps:$4 sm:$0xff]  }
 0x32c   :  { %1965 = vmatpush1.bf16.msra.mxu1 %v2835_v2  ;;  %2047 = vmatpush1.bf16.msra.mxu0 %v2838_v3  ;;  %v2909_v2 = vld [vmem:[%s3889_s8 + $0x2b4] ss:$24 sps:$4 sm:$0xff]   ;;  %v2907_v3 = vld [vmem:[%s3889_s8 + $0x2b0] ss:$24 sps:$4 sm:$0xff]  }
 0x32d   :  { %1966 = vmatprep.subr.bf16.mxu1 %v2843_v4  ;;  %2048 = vmatprep.subr.bf16.mxu0 %v2846_v5  ;;  %v2912_v4 = vld [vmem:[%s3889_s8 + $0x2e4] ss:$24 sps:$4 sm:$0xff]   ;;  %v2910_v5 = vld [vmem:[%s3889_s8 + $0x2e0] ss:$24 sps:$4 sm:$0xff]  }
 0x330   :  { %1967 = vmatpush1.bf16.msra.mxu1 %v2841_v6  ;;  %2049 = vmatpush1.bf16.msra.mxu0 %v2844_v7  ;;  %v2915_v6 = vld [vmem:[%s3889_s8 + $0x314] ss:$24 sps:$4 sm:$0xff]   ;;  %v2913_v7 = vld [vmem:[%s3889_s8 + $0x310] ss:$24 sps:$4 sm:$0xff]  }
 0x331   :  { %1968 = vmatprep.subr.bf16.mxu1 %v2849_v9  ;;  %2050 = vmatprep.subr.bf16.mxu0 %v2852_v10  ;;  %v2916_v9 = vld [vmem:[%s3889_s8 + $0x340] ss:$24 sps:$4 sm:$0xff]   ;;  %v2921_v10 = vld [vmem:[%s3889_s8 + $0x374] ss:$24 sps:$4 sm:$0xff]  }
 0x332   :  { %v981_v16 = vpop.f32.mrb[4].mxu1 }
 0x333   :  { %v982_v17 = vadd.f32 %v981_v16, %v777_v11  ;;  %v2544_v19 = vpop.f32.mrb[5].mxu1  ;;  %v2919_v11 = vld [vmem:[%s3889_s8 + $0x370] ss:$24 sps:$4 sm:$0xff]   ;;  %v2933_v16 = vld [vmem:[%s3889_s8 + $0x434] ss:$24 sps:$4 sm:$0xff]  }
 0x334   :  { %v984_v20 = vpop.f32.mrb[6].mxu1  ;;  %1969 = vmatpush1.bf16.msra.mxu1 %v2847_v12  ;;  %2051 = vmatpush1.bf16.msra.mxu0 %v2850_v13  ;;  %v2927_v12 = vld [vmem:[%s3889_s8 + $0x3d4] ss:$24 sps:$4 sm:$0xff]   ;;  %v2925_v13 = vld [vmem:[%s3889_s8 + $0x3d0] ss:$24 sps:$4 sm:$0xff]  }
 0x335   :  { %v989_v23 = vmax.f32 %v982_v17, 0.0  ;;  %v2545_v25 = vpop.f32.mrb[7].mxu1  ;;  %1970 = vmatprep.subr.bf16.mxu1 %v2855_v14  ;;  %2052 = vmatprep.subr.bf16.mxu0 %v2858_v15  ;;  %v2930_v14 = vld [vmem:[%s3889_s8 + $0x404] ss:$24 sps:$4 sm:$0xff]   ;;  %v2928_v15 = vld [vmem:[%s3889_s8 + $0x400] ss:$24 sps:$4 sm:$0xff]  }
 0x336   :  { %v2931_v17 = vld [vmem:[%s3889_s8 + $0x430] ss:$24 sps:$4 sm:$0xff]   ;;  %v2934_v19 = vld [vmem:[%s3889_s8 + $0x460] ss:$24 sps:$4 sm:$0xff]  }
 0x337   :  { %v1004_v28 = vmul.f32 %v1001_v18, %v989_v23  ;;  %v2936_v18 = vld [vmem:[%s3889_s8 + $0x464] ss:$24 sps:$4 sm:$0xff]  }
 0x338   :  { %1971 = vmatpush1.bf16.msra.mxu1 %v2853_v21  ;;  %2053 = vmatpush1.bf16.msra.mxu0 %v2856_v22  ;;  %v1167_v20 = vld [vmem:[%s3894_s9] sm:$0xff]  ;;  %v1169_v21 = vld [vmem:[%s3894_s9 + $0x10] sm:$0xff]  ;;  %v1168_v22 = vld [vmem:[%s3894_s9 + $0x8] sm:$0xff] }
 0x339   :  { %v1019_v31 = vadd.f32 %v1016_v24, %v1004_v28  ;;  %1972 = vmatprep.subr.bf16.mxu1 %v2861_v26  ;;  %2054 = vmatprep.subr.bf16.mxu0 %v2864_v27  ;;  %v1170_v23 = vld [vmem:[%s3894_s9 + $0x18] sm:$0xff]  ;;  %v1176_v24 = vrot.slane %v1167_v20, %v3288_v36  ;;  %v1184_v25 = vrot.slane %v1169_v21, %v3288_v36 }
 0x33a   :  { %v1180_v26 = vrot.slane %v1168_v22, %v3288_v36  ;;  %v1188_v27 = vrot.slane %v1170_v23, %v3288_v36 }
 0x33b   :  { %v3684_v34 = vpack.c.bf16 %v1019_v31, %v1019_v31  ;;  %v2172_v31 = vrot.slane %v1167_v20, %v3297_v40 }
 0x33c   :  { %1973 = vmatpush1.bf16.msra.mxu1 %v2859_v29  ;;  %2055 = vmatpush1.bf16.msra.mxu0 %v2862_v30 }
 0x33d   :  { %2081 = vmatprep.subr.bf16.mxu1 %v2867_v32 }
 0x33f   :  { %1991 = vmatmul.mubr.bf16.vlgmr.msra.gmra.mrb[8].mxu1 %v3684_v34  ;;  %2073 = vmatmul.mubr.bf16.vlgmr.msra.gmra.mrb[8].mxu0 %v3684_v34 }
 0x340   :  { %2082 = vmatpush1.bf16.msra.mxu1 %v2865_v33  ;;  %2113 = vmatprep.mubr.bf16.mxu1 %v3572_v51  ;;  %v2886_v51 = vld [vmem:[%s3889_s8 + $0x160] ss:$24 sps:$4 sm:$0xff]   ;;  %v2180_v33 = vrot.slane %v1169_v21, %v3297_v40 }
 0x341   :  { %2083 = vmatprep.subr.bf16.mxu1 %v2870_v35 }
 0x344   :  { %2084 = vmatpush1.bf16.msra.mxu1 %v2868_v37 }
 0x345   :  { %2085 = vmatprep.subr.bf16.mxu1 %v2873_v38  ;;  %v2176_v38 = vrot.slane %v1168_v22, %v3297_v40 }
 0x348   :  { %2086 = vmatpush1.bf16.msra.mxu1 %v2871_v39 }
 0x349   :  { %2087 = vmatprep.subr.bf16.mxu1 %v2876_v41  ;;  %v2184_v41 = vrot.slane %v1170_v23, %v3297_v40 }
 0x34c   :  { %2088 = vmatpush1.bf16.msra.mxu1 %v2874_v43 }
 0x34d   :  { %2089 = vmatprep.subr.bf16.mxu1 %v2879_v44 }
 0x350   :  { %2090 = vmatpush1.bf16.msra.mxu1 %v2877_v45 }
 0x351   :  { %2091 = vmatprep.subr.bf16.mxu1 %v2882_v46  ;;  %v2202_v46 = vrot.slane %v1167_v20, %v3300_v42 }
 0x354   :  { %2092 = vmatpush1.bf16.msra.mxu1 %v2880_v47 }
 0x355   :  { %2093 = vmatprep.subr.bf16.mxu1 %v2885_v48  ;;  %v2210_v48 = vrot.slane %v1169_v21, %v3300_v42 }
 0x358   :  { %2094 = vmatpush1.bf16.msra.mxu1 %v2883_v49 }
 0x359   :  { %2095 = vmatprep.subr.bf16.mxu1 %v2888_v50 }
 0x35c   :  { %2096 = vmatpush1.bf16.msra.mxu1 %v2886_v51 }
 0x35d   :  { %2097 = vmatprep.subr.bf16.mxu1 %v2891_v52  ;;  %v2206_v52 = vrot.slane %v1168_v22, %v3300_v42 }
 0x360   :  { %2098 = vmatpush1.bf16.msra.mxu1 %v2889_v53 }
 0x361   :  { %2099 = vmatprep.subr.bf16.mxu1 %v2894_v55  ;;  %v2214_v55 = vrot.slane %v1170_v23, %v3300_v42 }
 0x364   :  { %2100 = vmatpush1.bf16.msra.mxu1 %v2892_v56 }
 0x365   :  { %2101 = vmatprep.subr.bf16.mxu1 %v2897_v57 }
 0x368   :  { %2102 = vmatpush1.bf16.msra.mxu1 %v2895_v58 }
 0x369   :  { %2103 = vmatprep.subr.bf16.mxu1 %v2900_v59 }
 0x36c   :  { %2104 = vmatpush1.bf16.msra.mxu1 %v2898_v60 }
 0x36d   :  { %2105 = vmatprep.subr.bf16.mxu1 %v2903_v61 }
 0x370   :  { %2106 = vmatpush1.bf16.msra.mxu1 %v2901_v62 }
 0x371   :  { %2107 = vmatprep.subr.bf16.mxu1 %v2906_v63 }
 0x374   :  { %2108 = vmatpush1.bf16.msra.mxu1 %v2904_v0  ;;  %v1171_v0 = vld [vmem:[%s3894_s9 + $0x20] sm:$0xff] }
 0x375   :  { %2109 = vmatprep.subr.bf16.mxu1 %v2909_v2  ;;  %v1172_v2 = vld [vmem:[%s3894_s9 + $0x28] sm:$0xff] }
 0x378   :  { %2110 = vmatpush1.bf16.msra.mxu1 %v2907_v3  ;;  %v1192_v3 = vrot.slane %v1171_v0, %v3288_v36 }
 0x379   :  { %2111 = vmatprep.subr.bf16.mxu1 %v2912_v4  ;;  %v1196_v4 = vrot.slane %v1172_v2, %v3288_v36 }
 0x37c   :  { %2112 = vmatpush1.bf16.msra.mxu1 %v2910_v5 }
 0x37d   :  { %2122 = vmatprep.subr.bf16.mxu1 %v2915_v6 }
 0x37f   :  { %2114 = vmatmul.mubr.bf16.vlgmr.msra.gmra.mrb[12].mxu1 %v3580_v54  ;;  %v2924_v54 = vld [vmem:[%s3889_s8 + $0x3a4] ss:$24 sps:$4 sm:$0xff]  }
 0x380   :  { %2123 = vmatpush1.bf16.msra.mxu1 %v2913_v7  ;;  %2154 = vmatprep.mubr.bf16.mxu1 %v2937_v1  ;;  %v2922_v1 = vld [vmem:[%s3889_s8 + $0x3a0] ss:$24 sps:$4 sm:$0xff]   ;;  %v2188_v7 = vrot.slane %v1171_v0, %v3297_v40 }
 0x381   :  { %2124 = vmatprep.subr.bf16.mxu1 %v2918_v8 }
 0x384   :  { %2125 = vmatpush1.bf16.msra.mxu1 %v2916_v9 }
 0x385   :  { %2126 = vmatprep.subr.bf16.mxu1 %v2921_v10  ;;  %v2192_v10 = vrot.slane %v1172_v2, %v3297_v40 }
 0x388   :  { %2127 = vmatpush1.bf16.msra.mxu1 %v2919_v11 }
 0x389   :  { %2128 = vmatprep.subr.bf16.mxu1 %v2924_v54 }
 0x38c   :  { %2129 = vmatpush1.bf16.msra.mxu1 %v2922_v1  ;;  %v2218_v1 = vrot.slane %v1171_v0, %v3300_v42 }
 0x38d   :  { %2130 = vmatprep.subr.bf16.mxu1 %v2927_v12 }
 0x390   :  { %2131 = vmatpush1.bf16.msra.mxu1 %v2925_v13 }
 0x391   :  { %2132 = vmatprep.subr.bf16.mxu1 %v2930_v14  ;;  %v2222_v14 = vrot.slane %v1172_v2, %v3300_v42 }
 0x394   :  { %2133 = vmatpush1.bf16.msra.mxu1 %v2928_v15 }
 0x395   :  { %2134 = vmatprep.subr.bf16.mxu1 %v2933_v16 }
 0x398   :  { %2135 = vmatpush1.bf16.msra.mxu1 %v2931_v17 }
 0x399   :  { %2136 = vmatprep.subr.bf16.mxu1 %v2936_v18 }
 0x39c   :  { %2137 = vmatpush1.bf16.msra.mxu1 %v2934_v19 }
 0x39f   :  { %2155 = vmatmul.mubr.bf16.vlgmr.msra.gmra.mrb[12].mxu1 %v3684_v34 }
 0x412   :  { %v1992_v28 = vpop.f32.mrb[8].mxu1  ;;  %v2074_v29 = vpop.f32.mrb[8].mxu0 }
 0x413   :  { %v2548_v30 = vadd.f32 %v1992_v28, %v1176_v24  ;;  %v2550_v32 = vadd.f32 %v2074_v29, %v1184_v25  ;;  %v1994_v34 = vpop.f32.mrb[9].mxu1  ;;  %v2076_v35 = vpop.f32.mrb[9].mxu0 }
 0x414   :  { %v2549_v37 = vadd.f32 %v1994_v34, %v1180_v26  ;;  %v2551_v39 = vadd.f32 %v2076_v35, %v1188_v27  ;;  %v1996_v43 = vpop.f32.mrb[10].mxu1  ;;  %v2078_v44 = vpop.f32.mrb[10].mxu0 }
 0x415   :  { %v2163_v45 = vmax.f32 %v2548_v30, 0.0  ;;  %v2165_v47 = vmax.f32 %v2550_v32, 0.0  ;;  %v1997_v49 = vpop.f32.mrb[11].mxu1  ;;  %v2079_v50 = vpop.f32.mrb[11].mxu0 }
 0x416   :  { %v2164_v51 = vmax.f32 %v2549_v37, 0.0  ;;  %v2166_v53 = vmax.f32 %v2551_v39, 0.0 }
 0x417   :  { %v2193_v56 = vmul.f32 %v2172_v31, %v2163_v45  ;;  %v2195_v57 = vmul.f32 %v2180_v33, %v2165_v47 }
 0x418   :  { %v2194_v58 = vmul.f32 %v2176_v38, %v2164_v51  ;;  %v2196_v59 = vmul.f32 %v2184_v41, %v2166_v53 }
 0x419   :  { %v2223_v60 = vadd.f32 %v2202_v46, %v2193_v56  ;;  %v2225_v61 = vadd.f32 %v2210_v48, %v2195_v57 }
 0x41a   :  { %v2224_v62 = vadd.f32 %v2206_v52, %v2194_v58  ;;  %v2226_v63 = vadd.f32 %v2214_v55, %v2196_v59 }
 0x41b   :  { %2229 = vst [vmem:[%s3895_s11] sm:$0xff] %v2223_v60  ;;  %2231 = vst [vmem:[%s3895_s11 + $0x10] sm:$0xff] %v2225_v61 }
 0x41c   :  { %2230 = vst [vmem:[%s3895_s11 + $0x8] sm:$0xff] %v2224_v62  ;;  %2232 = vst [vmem:[%s3895_s11 + $0x18] sm:$0xff] %v2226_v63 }
 0x472   :  { %v2156_v5 = vpop.f32.mrb[12].mxu1 }
 0x473   :  { %v2552_v6 = vadd.f32 %v2156_v5, %v1192_v3  ;;  %v2158_v8 = vpop.f32.mrb[13].mxu1 }
 0x474   :  { %v2553_v9 = vadd.f32 %v2158_v8, %v1196_v4  ;;  %v2160_v11 = vpop.f32.mrb[14].mxu1 }
 0x475   :  { %v2167_v54 = vmax.f32 %v2552_v6, 0.0  ;;  %v2161_v12 = vpop.f32.mrb[15].mxu1 }
 0x476   :  { %v2168_v13 = vmax.f32 %v2553_v9, 0.0 }
 0x477   :  { %v2197_v15 = vmul.f32 %v2188_v7, %v2167_v54 }
 0x478   :  { %v2198_v16 = vmul.f32 %v2192_v10, %v2168_v13 }
 0x479   :  { %v2227_v17 = vadd.f32 %v2218_v1, %v2197_v15 }
 0x47a   :  { %v2228_v36 = vadd.f32 %v2222_v14, %v2198_v16 }
 0x47b   :  { %2233 = vst [vmem:[%s3895_s11 + $0x20] sm:$0xff] %v2227_v17 }
 0x47c   :  { %2234 = vst [vmem:[%s3895_s11 + $0x28] sm:$0xff] %v2228_v36 }

// kernel: _forward.10
= control target key start
LH: loop header
LB: loop body
LE: loop exit
PB: predicated region body
PF: predicated region fallthrough
CT: control target
= control target key end

     0   :  { %v5363_v0 = vmov 0   ;;  %s7921_s1 = inlined_call_operand.vmem [shape: bf16[384,128], index: 1, kind: input, shape index: {}]   ;;  %s7922_s0 = inlined_call_operand.vmem [shape: bf16[1472,384], index: 0, kind: input, shape index: {}]   ;;  %s7923_s2 = inlined_call_operand.vmem [shape: f32[8,128], index: 2, kind: input, shape index: {}]   ;;  %s7924_s3 = inlined_call_operand.vmem [shape: f32[1472,128], index: 3, kind: output, shape index: {}]  }
   0x1   :  { %2052 = vmatprep.subr.bf16.mxu0 %v5363_v0  ;;  %4938 = vmatprep.subr.bf16.mxu1 %v5363_v0  ;;  %v4971_v1 = vld [vmem:[%s7921_s1] sm:$0xff]   ;;  %v4972_v2 = vld [vmem:[%s7921_s1 + $0x8] sm:$0xff]   ;;  %v4973_v3 = vld [vmem:[%s7921_s1 + $0x10] sm:$0xff]  }
   0x2   :  { %2053 = vmatpush1.bf16.msra.mxu0 %v4971_v1  ;;  %4954 = vmatpush1.bf16.msra.mxu1 %v4971_v1  ;;  %v4974_v4 = vld [vmem:[%s7921_s1 + $0x18] sm:$0xff]   ;;  %v4975_v5 = vld [vmem:[%s7921_s1 + $0x20] sm:$0xff]   ;;  %v4976_v7 = vld [vmem:[%s7921_s1 + $0x28] sm:$0xff]  }
   0x3   :  { %2054 = vmatprep.subr.bf16.mxu0 %v5363_v0  ;;  %4939 = vmatprep.subr.bf16.mxu1 %v5363_v0  ;;  %v4989_v6 = vld [vmem:[%s7922_s0 + $0x4] ss:$12 sps:$4 sm:$0xff]   ;;  %v4992_v8 = vld [vmem:[%s7922_s0 + $0x67c] ss:$12 sps:$4 sm:$0xff]   ;;  %v4987_v20 = vld [vmem:[%s7922_s0] ss:$12 sps:$4 sm:$0xff]  }
   0x4   :  { %2084 = vmatprep.mubr.bf16.mxu0 %v4989_v6  ;;  %2636 = vmatprep.mubr.bf16.mxu1 %v4992_v8  ;;  %v4977_v9 = vld [vmem:[%s7921_s1 + $0x30] sm:$0xff]   ;;  %v4978_v10 = vld [vmem:[%s7921_s1 + $0x38] sm:$0xff]   ;;  %v4979_v11 = vld [vmem:[%s7921_s1 + $0x40] sm:$0xff]  }
   0x5   :  { %v4980_v12 = vld [vmem:[%s7921_s1 + $0x48] sm:$0xff]   ;;  %v4981_v13 = vld [vmem:[%s7921_s1 + $0x50] sm:$0xff]   ;;  %v4982_v14 = vld [vmem:[%s7921_s1 + $0x58] sm:$0xff]  }
   0x6   :  { %2055 = vmatpush1.bf16.msra.mxu0 %v4972_v2  ;;  %4955 = vmatpush1.bf16.msra.mxu1 %v4972_v2  ;;  %v4983_v15 = vld [vmem:[%s7921_s1 + $0x60] sm:$0xff]   ;;  %v4984_v16 = vld [vmem:[%s7921_s1 + $0x68] sm:$0xff]   ;;  %v4985_v17 = vld [vmem:[%s7921_s1 + $0x70] sm:$0xff]  }
   0x7   :  { %2056 = vmatprep.subr.bf16.mxu0 %v5363_v0  ;;  %4940 = vmatprep.subr.bf16.mxu1 %v5363_v0  ;;  %v4986_v18 = vld [vmem:[%s7921_s1 + $0x78] sm:$0xff]   ;;  %v4993_v19 = vld [vmem:[%s7921_s1 + $0x80] sm:$0xff]   ;;  %v5010_v24 = vld [vmem:[%s7921_s1 + $0x88] sm:$0xff]  }
   0x8   :  { %v4990_v21 = vld [vmem:[%s7922_s0 + $0x678] ss:$12 sps:$4 sm:$0xff]   ;;  %v4994_v22 = vld [vmem:[%s7922_s0 + $0x1c] ss:$12 sps:$4 sm:$0xff]   ;;  %v4996_v23 = vld [vmem:[%s7922_s0 + $0x694] ss:$12 sps:$4 sm:$0xff]  }
   0x9   :  { %v4998_v25 = vld [vmem:[%s7922_s0 + $0x18] ss:$12 sps:$4 sm:$0xff]   ;;  %v5025_v26 = vld [vmem:[%s7921_s1 + $0x90] sm:$0xff]   ;;  %v5082_v36 = vld [vmem:[%s7921_s1 + $0xa8] sm:$0xff]  }
   0xa   :  { %2057 = vmatpush1.bf16.msra.mxu0 %v4973_v3  ;;  %4956 = vmatpush1.bf16.msra.mxu1 %v4973_v3  ;;  %v4999_v27 = vld [vmem:[%s7922_s0 + $0x690] ss:$12 sps:$4 sm:$0xff]   ;;  %v5000_v28 = vld [vmem:[%s7922_s0 + $0x34] ss:$12 sps:$4 sm:$0xff]   ;;  %v5002_v29 = vld [vmem:[%s7922_s0 + $0x6ac] ss:$12 sps:$4 sm:$0xff]  }
   0xb   :  { %2058 = vmatprep.subr.bf16.mxu0 %v5363_v0  ;;  %4941 = vmatprep.subr.bf16.mxu1 %v5363_v0  ;;  %v5044_v30 = vld [vmem:[%s7921_s1 + $0x98] sm:$0xff]   ;;  %v5063_v31 = vld [vmem:[%s7921_s1 + $0xa0] sm:$0xff]   ;;  %v5005_v33 = vld [vmem:[%s7922_s0 + $0x6a8] ss:$12 sps:$4 sm:$0xff]  }
   0xc   :  { %v5004_v32 = vld [vmem:[%s7922_s0 + $0x30] ss:$12 sps:$4 sm:$0xff]   ;;  %v5006_v34 = vld [vmem:[%s7922_s0 + $0x4c] ss:$12 sps:$4 sm:$0xff]   ;;  %v5011_v38 = vld [vmem:[%s7922_s0 + $0x48] ss:$12 sps:$4 sm:$0xff]  }
   0xd   :  { %v5008_v35 = vld [vmem:[%s7922_s0 + $0x6c4] ss:$12 sps:$4 sm:$0xff]   ;;  %v5012_v39 = vld [vmem:[%s7922_s0 + $0x6c0] ss:$12 sps:$4 sm:$0xff]   ;;  %v5015_v41 = vld [vmem:[%s7922_s0 + $0x6dc] ss:$12 sps:$4 sm:$0xff]  }
   0xe   :  { %2059 = vmatpush1.bf16.msra.mxu0 %v4974_v4  ;;  %4957 = vmatpush1.bf16.msra.mxu1 %v4974_v4  ;;  %v5101_v37 = vld [vmem:[%s7921_s1 + $0xb0] sm:$0xff]   ;;  %v5017_v42 = vld [vmem:[%s7922_s0 + $0x60] ss:$12 sps:$4 sm:$0xff]   ;;  %v5018_v43 = vld [vmem:[%s7922_s0 + $0x6d8] ss:$12 sps:$4 sm:$0xff]  }
   0xf   :  { %2060 = vmatprep.subr.bf16.mxu0 %v5363_v0  ;;  %4942 = vmatprep.subr.bf16.mxu1 %v5363_v0  ;;  %v5013_v40 = vld [vmem:[%s7922_s0 + $0x64] ss:$12 sps:$4 sm:$0xff]   ;;  %v5019_v44 = vld [vmem:[%s7922_s0 + $0x7c] ss:$12 sps:$4 sm:$0xff]   ;;  %v5021_v45 = vld [vmem:[%s7922_s0 + $0x6f4] ss:$12 sps:$4 sm:$0xff]  }
  0x10   :  { %v5120_v46 = vld [vmem:[%s7921_s1 + $0xb8] sm:$0xff]   ;;  %v5026_v49 = vld [vmem:[%s7922_s0 + $0x94] ss:$12 sps:$4 sm:$0xff]   ;;  %v5034_v54 = vld [vmem:[%s7922_s0 + $0x724] ss:$12 sps:$4 sm:$0xff]  }
  0x11   :  { %v5023_v47 = vld [vmem:[%s7922_s0 + $0x78] ss:$12 sps:$4 sm:$0xff]   ;;  %v5024_v48 = vld [vmem:[%s7922_s0 + $0x6f0] ss:$12 sps:$4 sm:$0xff]   ;;  %v5031_v52 = vld [vmem:[%s7922_s0 + $0x708] ss:$12 sps:$4 sm:$0xff]  }
  0x12   :  { %2061 = vmatpush1.bf16.msra.mxu0 %v4975_v5  ;;  %4958 = vmatpush1.bf16.msra.mxu1 %v4975_v5  ;;  %v5028_v50 = vld [vmem:[%s7922_s0 + $0x70c] ss:$12 sps:$4 sm:$0xff]   ;;  %v5030_v51 = vld [vmem:[%s7922_s0 + $0x90] ss:$12 sps:$4 sm:$0xff]   ;;  %v5036_v55 = vld [vmem:[%s7922_s0 + $0xa8] ss:$12 sps:$4 sm:$0xff]  }
  0x13   :  { %2062 = vmatprep.subr.bf16.mxu0 %v5363_v0  ;;  %4943 = vmatprep.subr.bf16.mxu1 %v5363_v0  ;;  %v5032_v53 = vld [vmem:[%s7922_s0 + $0xac] ss:$12 sps:$4 sm:$0xff]   ;;  %v5038_v57 = vld [vmem:[%s7922_s0 + $0xc4] ss:$12 sps:$4 sm:$0xff]   ;;  %v5040_v58 = vld [vmem:[%s7922_s0 + $0x73c] ss:$12 sps:$4 sm:$0xff]  }
  0x14   :  { %v5037_v56 = vld [vmem:[%s7922_s0 + $0x720] ss:$12 sps:$4 sm:$0xff]   ;;  %v5043_v60 = vld [vmem:[%s7922_s0 + $0x738] ss:$12 sps:$4 sm:$0xff]   ;;  %v5045_v61 = vld [vmem:[%s7922_s0 + $0xdc] ss:$12 sps:$4 sm:$0xff]  }
  0x15   :  { %v5042_v59 = vld [vmem:[%s7922_s0 + $0xc0] ss:$12 sps:$4 sm:$0xff]   ;;  %v5049_v63 = vld [vmem:[%s7922_s0 + $0xd8] ss:$12 sps:$4 sm:$0xff]   ;;  %v5055_v3 = vld [vmem:[%s7922_s0 + $0xf0] ss:$12 sps:$4 sm:$0xff]  }
  0x16   :  { %2063 = vmatpush1.bf16.msra.mxu0 %v4976_v7  ;;  %4959 = vmatpush1.bf16.msra.mxu1 %v4976_v7  ;;  %v5047_v62 = vld [vmem:[%s7922_s0 + $0x754] ss:$12 sps:$4 sm:$0xff]   ;;  %v5053_v2 = vld [vmem:[%s7922_s0 + $0x76c] ss:$12 sps:$4 sm:$0xff]   ;;  %v5059_v6 = vld [vmem:[%s7922_s0 + $0x784] ss:$12 sps:$4 sm:$0xff]  }
  0x17   :  { %2064 = vmatprep.subr.bf16.mxu0 %v5363_v0  ;;  %4944 = vmatprep.subr.bf16.mxu1 %v5363_v0  ;;  %v5051_v1 = vld [vmem:[%s7922_s0 + $0xf4] ss:$12 sps:$4 sm:$0xff]   ;;  %v5057_v5 = vld [vmem:[%s7922_s0 + $0x10c] ss:$12 sps:$4 sm:$0xff]  }
  0x18   :  { %v5056_v4 = vld [vmem:[%s7922_s0 + $0x768] ss:$12 sps:$4 sm:$0xff]   ;;  %v5062_v8 = vld [vmem:[%s7922_s0 + $0x780] ss:$12 sps:$4 sm:$0xff]  }
  0x19   :  { %v5061_v7 = vld [vmem:[%s7922_s0 + $0x108] ss:$12 sps:$4 sm:$0xff]  }
  0x1a   :  { %2065 = vmatpush1.bf16.msra.mxu0 %v4977_v9  ;;  %4960 = vmatpush1.bf16.msra.mxu1 %v4977_v9  ;;  %v5064_v9 = vld [vmem:[%s7922_s0 + $0x124] ss:$12 sps:$4 sm:$0xff]  }
  0x1b   :  { %2066 = vmatprep.subr.bf16.mxu0 %v5363_v0  ;;  %4945 = vmatprep.subr.bf16.mxu1 %v5363_v0 }
  0x1e   :  { %2067 = vmatpush1.bf16.msra.mxu0 %v4978_v10  ;;  %4961 = vmatpush1.bf16.msra.mxu1 %v4978_v10  ;;  %v5066_v10 = vld [vmem:[%s7922_s0 + $0x79c] ss:$12 sps:$4 sm:$0xff]  }
  0x1f   :  { %2068 = vmatprep.subr.bf16.mxu0 %v5363_v0  ;;  %4946 = vmatprep.subr.bf16.mxu1 %v5363_v0 }
  0x22   :  { %2069 = vmatpush1.bf16.msra.mxu0 %v4979_v11  ;;  %4962 = vmatpush1.bf16.msra.mxu1 %v4979_v11  ;;  %v5068_v11 = vld [vmem:[%s7922_s0 + $0x120] ss:$12 sps:$4 sm:$0xff]  }
  0x23   :  { %2070 = vmatprep.subr.bf16.mxu0 %v5363_v0  ;;  %4947 = vmatprep.subr.bf16.mxu1 %v5363_v0 }
  0x26   :  { %2071 = vmatpush1.bf16.msra.mxu0 %v4980_v12  ;;  %4963 = vmatpush1.bf16.msra.mxu1 %v4980_v12  ;;  %v5069_v12 = vld [vmem:[%s7922_s0 + $0x798] ss:$12 sps:$4 sm:$0xff]  }
  0x27   :  { %2072 = vmatprep.subr.bf16.mxu0 %v5363_v0  ;;  %4948 = vmatprep.subr.bf16.mxu1 %v5363_v0 }
  0x2a   :  { %2073 = vmatpush1.bf16.msra.mxu0 %v4981_v13  ;;  %4964 = vmatpush1.bf16.msra.mxu1 %v4981_v13  ;;  %v5070_v13 = vld [vmem:[%s7922_s0 + $0x13c] ss:$12 sps:$4 sm:$0xff]  }
  0x2b   :  { %2074 = vmatprep.subr.bf16.mxu0 %v5363_v0  ;;  %4949 = vmatprep.subr.bf16.mxu1 %v5363_v0 }
  0x2e   :  { %2075 = vmatpush1.bf16.msra.mxu0 %v4982_v14  ;;  %4965 = vmatpush1.bf16.msra.mxu1 %v4982_v14  ;;  %v5072_v14 = vld [vmem:[%s7922_s0 + $0x7b4] ss:$12 sps:$4 sm:$0xff]  }
  0x2f   :  { %2076 = vmatprep.subr.bf16.mxu0 %v5363_v0  ;;  %4950 = vmatprep.subr.bf16.mxu1 %v5363_v0 }
  0x32   :  { %2077 = vmatpush1.bf16.msra.mxu0 %v4983_v15  ;;  %4966 = vmatpush1.bf16.msra.mxu1 %v4983_v15  ;;  %v5074_v15 = vld [vmem:[%s7922_s0 + $0x138] ss:$12 sps:$4 sm:$0xff]  }
  0x33   :  { %2078 = vmatprep.subr.bf16.mxu0 %v5363_v0  ;;  %4951 = vmatprep.subr.bf16.mxu1 %v5363_v0 }
  0x36   :  { %2079 = vmatpush1.bf16.msra.mxu0 %v4984_v16  ;;  %4967 = vmatpush1.bf16.msra.mxu1 %v4984_v16  ;;  %v5075_v16 = vld [vmem:[%s7922_s0 + $0x7b0] ss:$12 sps:$4 sm:$0xff]  }
  0x37   :  { %2080 = vmatprep.subr.bf16.mxu0 %v5363_v0  ;;  %4952 = vmatprep.subr.bf16.mxu1 %v5363_v0 }
  0x3a   :  { %2081 = vmatpush1.bf16.msra.mxu0 %v4985_v17  ;;  %4968 = vmatpush1.bf16.msra.mxu1 %v4985_v17  ;;  %v5076_v17 = vld [vmem:[%s7922_s0 + $0x154] ss:$12 sps:$4 sm:$0xff]  }
  0x3b   :  { %2082 = vmatprep.subr.bf16.mxu0 %v5363_v0  ;;  %4953 = vmatprep.subr.bf16.mxu1 %v5363_v0  ;;  %v5050_v0 = vld [vmem:[%s7922_s0 + $0x750] ss:$12 sps:$4 sm:$0xff]  }
  0x3e   :  { %2083 = vmatpush1.bf16.msra.mxu0 %v4986_v18  ;;  %4969 = vmatpush1.bf16.msra.mxu1 %v4986_v18  ;;  %v5078_v18 = vld [vmem:[%s7922_s0 + $0x7cc] ss:$12 sps:$4 sm:$0xff]  }
  0x3f   :  { %4738 = vmatprep.subr.bf16.mxu1 %v4993_v19 }
  0x41   :  { %2085 = vmatmul.mubr.bf16.vlgmr.msra.gmra.mrb[0].mxu0 %v4987_v20  ;;  %2637 = vmatmul.mubr.bf16.vlgmr.msra.gmra.mrb[0].mxu1 %v4990_v21  ;;  %v5081_v20 = vld [vmem:[%s7922_s0 + $0x7c8] ss:$12 sps:$4 sm:$0xff]   ;;  %v5083_v21 = vld [vmem:[%s7922_s0 + $0x16c] ss:$12 sps:$4 sm:$0xff]  }
  0x42   :  { %4739 = vmatpush3.bf16.msra.mxu1 %v4993_v19  ;;  %2092 = vmatprep.mubr.bf16.mxu0 %v4994_v22  ;;  %v5080_v19 = vld [vmem:[%s7922_s0 + $0x150] ss:$12 sps:$4 sm:$0xff]  }
  0x43   :  { %2644 = vmatprep.mubr.bf16.mxu1 %v4996_v23  ;;  %4740 = vmatprep.subr.bf16.mxu1 %v5010_v24  ;;  %v5085_v22 = vld [vmem:[%s7922_s0 + $0x7e4] ss:$12 sps:$4 sm:$0xff]   ;;  %v5087_v23 = vld [vmem:[%s7922_s0 + $0x168] ss:$12 sps:$4 sm:$0xff]  }
  0x46   :  { %4741 = vmatpush3.bf16.msra.mxu1 %v5010_v24  ;;  %v5088_v24 = vld [vmem:[%s7922_s0 + $0x7e0] ss:$12 sps:$4 sm:$0xff]  }
  0x47   :  { %4742 = vmatprep.subr.bf16.mxu1 %v5025_v26 }
  0x49   :  { %2093 = vmatmul.mubr.bf16.gmra.mrb[4].mxu0 %v4998_v25  ;;  %2645 = vmatmul.mubr.bf16.gmra.mrb[4].mxu1 %v4999_v27  ;;  %v5089_v25 = vld [vmem:[%s7922_s0 + $0x184] ss:$12 sps:$4 sm:$0xff]   ;;  %v5093_v27 = vld [vmem:[%s7922_s0 + $0x180] ss:$12 sps:$4 sm:$0xff]  }
  0x4a   :  { %2100 = vmatprep.mubr.bf16.mxu0 %v5000_v28  ;;  %2652 = vmatprep.mubr.bf16.mxu1 %v5002_v29  ;;  %v5094_v28 = vld [vmem:[%s7922_s0 + $0x7f8] ss:$12 sps:$4 sm:$0xff]   ;;  %v5095_v29 = vld [vmem:[%s7922_s0 + $0x19c] ss:$12 sps:$4 sm:$0xff]  }
  0x4b   :  { %4743 = vmatpush3.bf16.msra.mxu1 %v5025_v26  ;;  %v5091_v26 = vld [vmem:[%s7922_s0 + $0x7fc] ss:$12 sps:$4 sm:$0xff]  }
  0x4c   :  { %4744 = vmatprep.subr.bf16.mxu1 %v5044_v30 }
  0x4f   :  { %4745 = vmatpush3.bf16.msra.mxu1 %v5044_v30  ;;  %v5097_v30 = vld [vmem:[%s7922_s0 + $0x814] ss:$12 sps:$4 sm:$0xff]  }
  0x50   :  { %4746 = vmatprep.subr.bf16.mxu1 %v5063_v31 }
  0x51   :  { %2101 = vmatmul.mubr.bf16.gmra.mrb[8].mxu0 %v5004_v32  ;;  %2653 = vmatmul.mubr.bf16.gmra.mrb[8].mxu1 %v5005_v33  ;;  %v5100_v32 = vld [vmem:[%s7922_s0 + $0x810] ss:$12 sps:$4 sm:$0xff]   ;;  %v5102_v33 = vld [vmem:[%s7922_s0 + $0x1b4] ss:$12 sps:$4 sm:$0xff]  }
  0x52   :  { %2108 = vmatprep.mubr.bf16.mxu0 %v5006_v34  ;;  %2660 = vmatprep.mubr.bf16.mxu1 %v5008_v35  ;;  %v5104_v34 = vld [vmem:[%s7922_s0 + $0x82c] ss:$12 sps:$4 sm:$0xff]   ;;  %v5106_v35 = vld [vmem:[%s7922_s0 + $0x1b0] ss:$12 sps:$4 sm:$0xff]  }
  0x53   :  { %4747 = vmatpush3.bf16.msra.mxu1 %v5063_v31  ;;  %v5099_v31 = vld [vmem:[%s7922_s0 + $0x198] ss:$12 sps:$4 sm:$0xff]  }
  0x54   :  { %4748 = vmatprep.subr.bf16.mxu1 %v5082_v36 }
  0x57   :  { %4749 = vmatpush3.bf16.msra.mxu1 %v5082_v36  ;;  %v5107_v36 = vld [vmem:[%s7922_s0 + $0x828] ss:$12 sps:$4 sm:$0xff]  }
  0x58   :  { %4750 = vmatprep.subr.bf16.mxu1 %v5101_v37 }
  0x59   :  { %2109 = vmatmul.mubr.bf16.gmra.mrb[12].mxu0 %v5011_v38  ;;  %2661 = vmatmul.mubr.bf16.gmra.mrb[12].mxu1 %v5012_v39  ;;  %v5110_v38 = vld [vmem:[%s7922_s0 + $0x844] ss:$12 sps:$4 sm:$0xff]   ;;  %v5112_v39 = vld [vmem:[%s7922_s0 + $0x1c8] ss:$12 sps:$4 sm:$0xff]  }
  0x5a   :  { %2116 = vmatprep.mubr.bf16.mxu0 %v5013_v40  ;;  %2668 = vmatprep.mubr.bf16.mxu1 %v5015_v41  ;;  %v5113_v40 = vld [vmem:[%s7922_s0 + $0x840] ss:$12 sps:$4 sm:$0xff]   ;;  %v5114_v41 = vld [vmem:[%s7922_s0 + $0x1e4] ss:$12 sps:$4 sm:$0xff]  }
  0x5b   :  { %4751 = vmatpush3.bf16.msra.mxu1 %v5101_v37  ;;  %v5108_v37 = vld [vmem:[%s7922_s0 + $0x1cc] ss:$12 sps:$4 sm:$0xff]  }
  0x5c   :  { %4752 = vmatprep.subr.bf16.mxu1 %v5120_v46 }
  0x5f   :  { %4753 = vmatpush3.bf16.msra.mxu1 %v5120_v46  ;;  %v5123_v46 = vld [vmem:[%s7922_s0 + $0x874] ss:$12 sps:$4 sm:$0xff]  }
  0x61   :  { %2117 = vmatmul.mubr.bf16.gmra.mrb[16].mxu0 %v5017_v42  ;;  %2669 = vmatmul.mubr.bf16.gmra.mrb[16].mxu1 %v5018_v43  ;;  %v5116_v42 = vld [vmem:[%s7922_s0 + $0x85c] ss:$12 sps:$4 sm:$0xff]   ;;  %v5118_v43 = vld [vmem:[%s7922_s0 + $0x1e0] ss:$12 sps:$4 sm:$0xff]  }
  0x62   :  { %2124 = vmatprep.mubr.bf16.mxu0 %v5019_v44  ;;  %2676 = vmatprep.mubr.bf16.mxu1 %v5021_v45  ;;  %v5119_v44 = vld [vmem:[%s7922_s0 + $0x858] ss:$12 sps:$4 sm:$0xff]   ;;  %v5121_v45 = vld [vmem:[%s7922_s0 + $0x1fc] ss:$12 sps:$4 sm:$0xff]  }
  0x69   :  { %2125 = vmatmul.mubr.bf16.gmra.mrb[20].mxu0 %v5023_v47  ;;  %2677 = vmatmul.mubr.bf16.gmra.mrb[20].mxu1 %v5024_v48  ;;  %v5125_v47 = vld [vmem:[%s7922_s0 + $0x1f8] ss:$12 sps:$4 sm:$0xff]   ;;  %v5126_v48 = vld [vmem:[%s7922_s0 + $0x870] ss:$12 sps:$4 sm:$0xff]  }
  0x6a   :  { %2132 = vmatprep.mubr.bf16.mxu0 %v5026_v49  ;;  %2684 = vmatprep.mubr.bf16.mxu1 %v5028_v50  ;;  %v5127_v49 = vld [vmem:[%s7922_s0 + $0x214] ss:$12 sps:$4 sm:$0xff]   ;;  %v5129_v50 = vld [vmem:[%s7922_s0 + $0x88c] ss:$12 sps:$4 sm:$0xff]  }
  0x71   :  { %2133 = vmatmul.mubr.bf16.gmra.mrb[24].mxu0 %v5030_v51  ;;  %2685 = vmatmul.mubr.bf16.gmra.mrb[24].mxu1 %v5031_v52  ;;  %v5131_v51 = vld [vmem:[%s7922_s0 + $0x210] ss:$12 sps:$4 sm:$0xff]   ;;  %v5132_v52 = vld [vmem:[%s7922_s0 + $0x888] ss:$12 sps:$4 sm:$0xff]  }
  0x72   :  { %2140 = vmatprep.mubr.bf16.mxu0 %v5032_v53  ;;  %2692 = vmatprep.mubr.bf16.mxu1 %v5034_v54  ;;  %v5133_v53 = vld [vmem:[%s7922_s0 + $0x22c] ss:$12 sps:$4 sm:$0xff]   ;;  %v5135_v54 = vld [vmem:[%s7922_s0 + $0x8] ss:$12 sps:$4 sm:$0xff]  }
  0x79   :  { %2141 = vmatmul.mubr.bf16.gmra.mrb[28].mxu0 %v5036_v55  ;;  %2693 = vmatmul.mubr.bf16.gmra.mrb[28].mxu1 %v5037_v56  ;;  %v5136_v55 = vld [vmem:[%s7922_s0 + $0x228] ss:$12 sps:$4 sm:$0xff]   ;;  %v5137_v56 = vld [vmem:[%s7922_s0 + $0x20] ss:$12 sps:$4 sm:$0xff]  }
  0x7a   :  { %2148 = vmatprep.mubr.bf16.mxu0 %v5038_v57  ;;  %2700 = vmatprep.mubr.bf16.mxu1 %v5040_v58  ;;  %v5138_v57 = vld [vmem:[%s7922_s0 + $0x244] ss:$12 sps:$4 sm:$0xff]  }
  0x7b   :  { %v5140_v58 = vld [vmem:[%s7922_s0 + $0x38] ss:$12 sps:$4 sm:$0xff]  }
  0x81   :  { %2149 = vmatmul.mubr.bf16.gmra.mrb[32].mxu0 %v5042_v59  ;;  %2701 = vmatmul.mubr.bf16.gmra.mrb[32].mxu1 %v5043_v60  ;;  %v5141_v59 = vld [vmem:[%s7922_s0 + $0x240] ss:$12 sps:$4 sm:$0xff]   ;;  %v5142_v60 = vld [vmem:[%s7922_s0 + $0x50] ss:$12 sps:$4 sm:$0xff]  }
  0x82   :  { %2156 = vmatprep.mubr.bf16.mxu0 %v5045_v61  ;;  %2708 = vmatprep.mubr.bf16.mxu1 %v5047_v62  ;;  %v5143_v61 = vld [vmem:[%s7922_s0 + $0x25c] ss:$12 sps:$4 sm:$0xff]  }
  0x83   :  { %v5145_v62 = vld [vmem:[%s7922_s0 + $0x68] ss:$12 sps:$4 sm:$0xff]  }
  0x89   :  { %2157 = vmatmul.mubr.bf16.gmra.mrb[36].mxu0 %v5049_v63  ;;  %2709 = vmatmul.mubr.bf16.gmra.mrb[36].mxu1 %v5050_v0  ;;  %v5146_v63 = vld [vmem:[%s7922_s0 + $0x258] ss:$12 sps:$4 sm:$0xff]   ;;  %v5147_v0 = vld [vmem:[%s7922_s0 + $0x80] ss:$12 sps:$4 sm:$0xff]  }
  0x8a   :  { %2164 = vmatprep.mubr.bf16.mxu0 %v5051_v1  ;;  %2716 = vmatprep.mubr.bf16.mxu1 %v5053_v2  ;;  %v5148_v1 = vld [vmem:[%s7922_s0 + $0x274] ss:$12 sps:$4 sm:$0xff]   ;;  %v5150_v2 = vld [vmem:[%s7922_s0 + $0x98] ss:$12 sps:$4 sm:$0xff]  }
  0x91   :  { %2165 = vmatmul.mubr.bf16.gmra.mrb[40].mxu0 %v5055_v3  ;;  %2717 = vmatmul.mubr.bf16.gmra.mrb[40].mxu1 %v5056_v4  ;;  %v5151_v3 = vld [vmem:[%s7922_s0 + $0x270] ss:$12 sps:$4 sm:$0xff]  }
  0x92   :  { %2172 = vmatprep.mubr.bf16.mxu0 %v5057_v5  ;;  %2724 = vmatprep.mubr.bf16.mxu1 %v5059_v6  ;;  %v5152_v4 = vld [vmem:[%s7922_s0 + $0xb0] ss:$12 sps:$4 sm:$0xff]   ;;  %v5153_v5 = vld [vmem:[%s7922_s0 + $0x28c] ss:$12 sps:$4 sm:$0xff]   ;;  %v5155_v6 = vld [vmem:[%s7922_s0 + $0xc8] ss:$12 sps:$4 sm:$0xff]  }
  0x99   :  { %2173 = vmatmul.mubr.bf16.gmra.mrb[44].mxu0 %v5061_v7  ;;  %2725 = vmatmul.mubr.bf16.gmra.mrb[44].mxu1 %v5062_v8 }
  0x9a   :  { %2180 = vmatprep.mubr.bf16.mxu0 %v5064_v9  ;;  %2732 = vmatprep.mubr.bf16.mxu1 %v5066_v10 }
  0xa1   :  { %2181 = vmatmul.mubr.bf16.gmra.mrb[48].mxu0 %v5068_v11  ;;  %2733 = vmatmul.mubr.bf16.gmra.mrb[48].mxu1 %v5069_v12  ;;  %v5156_v11 = vld [vmem:[%s7922_s0 + $0x288] ss:$12 sps:$4 sm:$0xff]   ;;  %v5157_v12 = vld [vmem:[%s7922_s0 + $0xe0] ss:$12 sps:$4 sm:$0xff]  }
  0xa2   :  { %2188 = vmatprep.mubr.bf16.mxu0 %v5070_v13  ;;  %2740 = vmatprep.mubr.bf16.mxu1 %v5072_v14 }
  0xa9   :  { %2189 = vmatmul.mubr.bf16.gmra.mrb[52].mxu0 %v5074_v15  ;;  %2741 = vmatmul.mubr.bf16.gmra.mrb[52].mxu1 %v5075_v16  ;;  %v5158_v15 = vld [vmem:[%s7922_s0 + $0x2a4] ss:$12 sps:$4 sm:$0xff]  }
  0xaa   :  { %2196 = vmatprep.mubr.bf16.mxu0 %v5076_v17  ;;  %2748 = vmatprep.mubr.bf16.mxu1 %v5078_v18  ;;  %v5160_v16 = vld [vmem:[%s7922_s0 + $0xf8] ss:$12 sps:$4 sm:$0xff]  }
  0xb1   :  { %2197 = vmatmul.mubr.bf16.gmra.mrb[56].mxu0 %v5080_v19  ;;  %2749 = vmatmul.mubr.bf16.gmra.mrb[56].mxu1 %v5081_v20 }
  0xb2   :  { %2204 = vmatprep.mubr.bf16.mxu0 %v5083_v21  ;;  %2756 = vmatprep.mubr.bf16.mxu1 %v5085_v22 }
  0xb9   :  { %2205 = vmatmul.mubr.bf16.gmra.mrb[60].mxu0 %v5087_v23  ;;  %2757 = vmatmul.mubr.bf16.gmra.mrb[60].mxu1 %v5088_v24  ;;  %v5161_v23 = vld [vmem:[%s7922_s0 + $0x2a0] ss:$12 sps:$4 sm:$0xff]   ;;  %v5162_v24 = vld [vmem:[%s7922_s0 + $0x110] ss:$12 sps:$4 sm:$0xff]  }
  0xba   :  { %2212 = vmatprep.mubr.bf16.mxu0 %v5089_v25  ;;  %2764 = vmatprep.mubr.bf16.mxu1 %v5091_v26 }
  0xc1   :  { %2213 = vmatmul.mubr.bf16.gmra.mrb[64].mxu0 %v5093_v27  ;;  %2765 = vmatmul.mubr.bf16.gmra.mrb[64].mxu1 %v5094_v28  ;;  %v5163_v27 = vld [vmem:[%s7922_s0 + $0x2bc] ss:$12 sps:$4 sm:$0xff]  }
  0xc2   :  { %2220 = vmatprep.mubr.bf16.mxu0 %v5095_v29  ;;  %2772 = vmatprep.mubr.bf16.mxu1 %v5097_v30  ;;  %v5165_v28 = vld [vmem:[%s7922_s0 + $0x128] ss:$12 sps:$4 sm:$0xff]  }
  0xc9   :  { %2221 = vmatmul.mubr.bf16.gmra.mrb[68].mxu0 %v5099_v31  ;;  %2773 = vmatmul.mubr.bf16.gmra.mrb[68].mxu1 %v5100_v32 }
  0xca   :  { %2228 = vmatprep.mubr.bf16.mxu0 %v5102_v33  ;;  %2780 = vmatprep.mubr.bf16.mxu1 %v5104_v34 }
  0xd1   :  { %2229 = vmatmul.mubr.bf16.gmra.mrb[72].mxu0 %v5106_v35  ;;  %2781 = vmatmul.mubr.bf16.gmra.mrb[72].mxu1 %v5107_v36  ;;  %v5166_v35 = vld [vmem:[%s7922_s0 + $0x2b8] ss:$12 sps:$4 sm:$0xff]   ;;  %v5167_v36 = vld [vmem:[%s7922_s0 + $0x140] ss:$12 sps:$4 sm:$0xff]  }
  0xd2   :  { %2236 = vmatprep.mubr.bf16.mxu0 %v5108_v37  ;;  %2788 = vmatprep.mubr.bf16.mxu1 %v5110_v38 }
  0xd9   :  { %2237 = vmatmul.mubr.bf16.gmra.mrb[76].mxu0 %v5112_v39  ;;  %2789 = vmatmul.mubr.bf16.gmra.mrb[76].mxu1 %v5113_v40  ;;  %v5168_v39 = vld [vmem:[%s7922_s0 + $0x2d4] ss:$12 sps:$4 sm:$0xff]   ;;  %v5170_v40 = vld [vmem:[%s7922_s0 + $0x158] ss:$12 sps:$4 sm:$0xff]  }
  0xda   :  { %2244 = vmatprep.mubr.bf16.mxu0 %v5114_v41  ;;  %2796 = vmatprep.mubr.bf16.mxu1 %v5116_v42 }
  0xe1   :  { %2245 = vmatmul.mubr.bf16.gmra.mrb[80].mxu0 %v5118_v43  ;;  %2797 = vmatmul.mubr.bf16.gmra.mrb[80].mxu1 %v5119_v44 }
  0xe2   :  { %2252 = vmatprep.mubr.bf16.mxu0 %v5121_v45  ;;  %2804 = vmatprep.mubr.bf16.mxu1 %v5123_v46 }
  0xe9   :  { %2253 = vmatmul.mubr.bf16.gmra.mrb[84].mxu0 %v5125_v47  ;;  %2805 = vmatmul.mubr.bf16.gmra.mrb[84].mxu1 %v5126_v48  ;;  %v5171_v47 = vld [vmem:[%s7922_s0 + $0x2d0] ss:$12 sps:$4 sm:$0xff]  }
  0xea   :  { %2260 = vmatprep.mubr.bf16.mxu0 %v5127_v49  ;;  %2812 = vmatprep.mubr.bf16.mxu1 %v5129_v50  ;;  %v5172_v48 = vld [vmem:[%s7922_s0 + $0x170] ss:$12 sps:$4 sm:$0xff]  }
  0xf1   :  { %2261 = vmatmul.mubr.bf16.gmra.mrb[88].mxu0 %v5131_v51  ;;  %2813 = vmatmul.mubr.bf16.gmra.mrb[88].mxu1 %v5132_v52  ;;  %v5173_v51 = vld [vmem:[%s7922_s0 + $0x2ec] ss:$12 sps:$4 sm:$0xff]   ;;  %v5175_v52 = vld [vmem:[%s7922_s0 + $0x188] ss:$12 sps:$4 sm:$0xff]  }
  0xf2   :  { %2268 = vmatprep.mubr.bf16.mxu0 %v5133_v53  ;;  %4754 = vmatprep.mubr.bf16.mxu1 %v5135_v54 }
  0xf9   :  { %2269 = vmatmul.mubr.bf16.gmra.mrb[92].mxu0 %v5136_v55  ;;  %4755 = vmatmul.mubr.bf16.vlgmr.msra.gmra.mrb[92].mxu1 %v5137_v56 }
  0xfa   :  { %2276 = vmatprep.mubr.bf16.mxu0 %v5138_v57  ;;  %4758 = vmatprep.mubr.bf16.mxu1 %v5140_v58 }
 0x101   :  { %2277 = vmatmul.mubr.bf16.gmra.mrb[96].mxu0 %v5141_v59  ;;  %4759 = vmatmul.mubr.bf16.gmra.mrb[96].mxu1 %v5142_v60  ;;  %v5176_v59 = vld [vmem:[%s7922_s0 + $0x2e8] ss:$12 sps:$4 sm:$0xff]   ;;  %v5177_v60 = vld [vmem:[%s7922_s0 + $0x1a0] ss:$12 sps:$4 sm:$0xff]  }
 0x102   :  { %2284 = vmatprep.mubr.bf16.mxu0 %v5143_v61  ;;  %4762 = vmatprep.mubr.bf16.mxu1 %v5145_v62 }
 0x109   :  { %2285 = vmatmul.mubr.bf16.gmra.mrb[100].mxu0 %v5146_v63  ;;  %4763 = vmatmul.mubr.bf16.gmra.mrb[100].mxu1 %v5147_v0  ;;  %v5178_v63 = vld [vmem:[%s7922_s0 + $0x304] ss:$12 sps:$4 sm:$0xff]  }
 0x10a   :  { %2292 = vmatprep.mubr.bf16.mxu0 %v5148_v1  ;;  %4766 = vmatprep.mubr.bf16.mxu1 %v5150_v2  ;;  %v5180_v0 = vld [vmem:[%s7922_s0 + $0x1b8] ss:$12 sps:$4 sm:$0xff]  }
 0x111   :  { %2293 = vmatmul.mubr.bf16.gmra.mrb[104].mxu0 %v5151_v3  ;;  %4767 = vmatmul.mubr.bf16.gmra.mrb[104].mxu1 %v5152_v4 }
 0x112   :  { %2300 = vmatprep.mubr.bf16.mxu0 %v5153_v5  ;;  %4770 = vmatprep.mubr.bf16.mxu1 %v5155_v6 }
 0x114   :  { %v5818_v7 = vpop.f32.mrb[0].mxu0  ;;  %v5820_v8 = vpop.f32.mrb[0].mxu1 }
 0x115   :  { %7925 = vst [vmem:[#allocation2_spill] sm:$0xff] %v5820_v8  ;;  %v2088_v9 = vpop.f32.mrb[1].mxu0  ;;  %v2640_v10 = vpop.f32.mrb[1].mxu1 }
 0x116   :  { %v5828_v13 = vpop.f32.mrb[2].mxu0  ;;  %v5830_v14 = vpop.f32.mrb[2].mxu1  ;;  %v5181_v9 = vld [vmem:[%s7922_s0 + $0x300] ss:$12 sps:$4 sm:$0xff]   ;;  %v5182_v10 = vld [vmem:[%s7922_s0 + $0x1d0] ss:$12 sps:$4 sm:$0xff]  }
 0x117   :  { %7926 = vst [vmem:[#allocation3_spill] sm:$0xff] %v5830_v14  ;;  %v2091_v17 = vpop.f32.mrb[3].mxu0  ;;  %v2643_v18 = vpop.f32.mrb[3].mxu1 }
 0x119   :  { %2301 = vmatmul.mubr.bf16.gmra.mrb[108].mxu0 %v5156_v11  ;;  %4771 = vmatmul.mubr.bf16.gmra.mrb[108].mxu1 %v5157_v12 }
 0x11a   :  { %2308 = vmatprep.mubr.bf16.mxu0 %v5158_v15  ;;  %4774 = vmatprep.mubr.bf16.mxu1 %v5160_v16  ;;  %v5183_v15 = vld [vmem:[%s7922_s0 + $0x31c] ss:$12 sps:$4 sm:$0xff]  }
 0x11b   :  { %v5185_v16 = vld [vmem:[%s7922_s0 + $0x1e8] ss:$12 sps:$4 sm:$0xff]  }
 0x11c   :  { %v5838_v19 = vpop.f32.mrb[4].mxu0  ;;  %v5840_v20 = vpop.f32.mrb[4].mxu1 }
 0x11d   :  { %7927 = vst [vmem:[#allocation4_spill] sm:$0xff] %v5840_v20  ;;  %v2096_v21 = vpop.f32.mrb[5].mxu0  ;;  %v2648_v22 = vpop.f32.mrb[5].mxu1 }
 0x11e   :  { %v5848_v25 = vpop.f32.mrb[6].mxu0  ;;  %v5850_v26 = vpop.f32.mrb[6].mxu1 }
 0x11f   :  { %7928 = vst [vmem:[#allocation5_spill] sm:$0xff] %v5850_v26  ;;  %v2099_v29 = vpop.f32.mrb[7].mxu0  ;;  %v2651_v30 = vpop.f32.mrb[7].mxu1 }
 0x121   :  { %2309 = vmatmul.mubr.bf16.gmra.mrb[112].mxu0 %v5161_v23  ;;  %4775 = vmatmul.mubr.bf16.gmra.mrb[112].mxu1 %v5162_v24 }
 0x122   :  { %2316 = vmatprep.mubr.bf16.mxu0 %v5163_v27  ;;  %4778 = vmatprep.mubr.bf16.mxu1 %v5165_v28  ;;  %v5186_v27 = vld [vmem:[%s7922_s0 + $0x318] ss:$12 sps:$4 sm:$0xff]   ;;  %v5187_v28 = vld [vmem:[%s7922_s0 + $0x200] ss:$12 sps:$4 sm:$0xff]  }
 0x124   :  { %v5858_v31 = vpop.f32.mrb[8].mxu0  ;;  %v5860_v32 = vpop.f32.mrb[8].mxu1 }
 0x125   :  { %7929 = vst [vmem:[#allocation6_spill] sm:$0xff] %v5860_v32  ;;  %v2104_v33 = vpop.f32.mrb[9].mxu0  ;;  %v2656_v34 = vpop.f32.mrb[9].mxu1 }
 0x126   :  { %v5868_v37 = vpop.f32.mrb[10].mxu0  ;;  %v5870_v38 = vpop.f32.mrb[10].mxu1  ;;  %v5188_v33 = vld [vmem:[%s7922_s0 + $0x334] ss:$12 sps:$4 sm:$0xff]   ;;  %v5190_v34 = vld [vmem:[%s7922_s0 + $0x218] ss:$12 sps:$4 sm:$0xff]  }
 0x127   :  { %7930 = vst [vmem:[#allocation7_spill] sm:$0xff] %v5870_v38  ;;  %v2107_v41 = vpop.f32.mrb[11].mxu0  ;;  %v2659_v42 = vpop.f32.mrb[11].mxu1 }
 0x129   :  { %2317 = vmatmul.mubr.bf16.gmra.mrb[116].mxu0 %v5166_v35  ;;  %4779 = vmatmul.mubr.bf16.gmra.mrb[116].mxu1 %v5167_v36 }
 0x12a   :  { %2324 = vmatprep.mubr.bf16.mxu0 %v5168_v39  ;;  %4782 = vmatprep.mubr.bf16.mxu1 %v5170_v40 }
 0x12c   :  { %v5878_v43 = vpop.f32.mrb[12].mxu0  ;;  %v5880_v44 = vpop.f32.mrb[12].mxu1 }
 0x12d   :  { %7931 = vst [vmem:[#allocation8_spill] sm:$0xff] %v5880_v44  ;;  %v2112_v45 = vpop.f32.mrb[13].mxu0  ;;  %v2664_v46 = vpop.f32.mrb[13].mxu1 }
 0x12e   :  { %v5888_v49 = vpop.f32.mrb[14].mxu0  ;;  %v5890_v50 = vpop.f32.mrb[14].mxu1  ;;  %v5191_v45 = vld [vmem:[%s7922_s0 + $0x330] ss:$12 sps:$4 sm:$0xff]  }
 0x12f   :  { %7932 = vst [vmem:[#allocation9_spill] sm:$0xff] %v5890_v50  ;;  %v2115_v53 = vpop.f32.mrb[15].mxu0  ;;  %v2667_v54 = vpop.f32.mrb[15].mxu1  ;;  %v5192_v46 = vld [vmem:[%s7922_s0 + $0x230] ss:$12 sps:$4 sm:$0xff]  }
 0x131   :  { %2325 = vmatmul.mubr.bf16.gmra.mrb[120].mxu0 %v5171_v47  ;;  %4783 = vmatmul.mubr.bf16.gmra.mrb[120].mxu1 %v5172_v48 }
 0x132   :  { %2332 = vmatprep.mubr.bf16.mxu0 %v5173_v51  ;;  %4786 = vmatprep.mubr.bf16.mxu1 %v5175_v52  ;;  %v5193_v51 = vld [vmem:[%s7922_s0 + $0x34c] ss:$12 sps:$4 sm:$0xff]   ;;  %v5195_v52 = vld [vmem:[%s7922_s0 + $0x248] ss:$12 sps:$4 sm:$0xff]  }
 0x134   :  { %v5898_v55 = vpop.f32.mrb[16].mxu0  ;;  %v5900_v56 = vpop.f32.mrb[16].mxu1 }
 0x135   :  { %7933 = vst [vmem:[#allocation10_spill] sm:$0xff] %v5900_v56  ;;  %v2120_v57 = vpop.f32.mrb[17].mxu0  ;;  %v2672_v58 = vpop.f32.mrb[17].mxu1 }
 0x136   :  { %v5908_v61 = vpop.f32.mrb[18].mxu0  ;;  %v5910_v62 = vpop.f32.mrb[18].mxu1 }
 0x137   :  { %7934 = vst [vmem:[#allocation11_spill] sm:$0xff] %v5910_v62  ;;  %v2123_v1 = vpop.f32.mrb[19].mxu0  ;;  %v2675_v2 = vpop.f32.mrb[19].mxu1 }
 0x139   :  { %2333 = vmatmul.mubr.bf16.gmra.mrb[124].mxu0 %v5176_v59  ;;  %4787 = vmatmul.mubr.bf16.gmra.mrb[124].mxu1 %v5177_v60 }
 0x13a   :  { %2340 = vmatprep.mubr.bf16.mxu0 %v5178_v63  ;;  %4790 = vmatprep.mubr.bf16.mxu1 %v5180_v0  ;;  %v5196_v63 = vld [vmem:[%s7922_s0 + $0x348] ss:$12 sps:$4 sm:$0xff]   ;;  %v5197_v0 = vld [vmem:[%s7922_s0 + $0x260] ss:$12 sps:$4 sm:$0xff]  }
 0x13c   :  { %v5918_v3 = vpop.f32.mrb[20].mxu0  ;;  %v5920_v4 = vpop.f32.mrb[20].mxu1 }
 0x13d   :  { %7935 = vst [vmem:[#allocation12_spill] sm:$0xff] %v5920_v4  ;;  %v2128_v5 = vpop.f32.mrb[21].mxu0  ;;  %v2680_v6 = vpop.f32.mrb[21].mxu1  ;;  %v5261_v4 = vld [vmem:[%s7922_s0 + $0x480] ss:$12 sps:$4 sm:$0xff]  }
 0x13e   :  { %v5928_v11 = vpop.f32.mrb[22].mxu0  ;;  %v5930_v12 = vpop.f32.mrb[22].mxu1  ;;  %v5198_v5 = vld [vmem:[%s7922_s0 + $0x364] ss:$12 sps:$4 sm:$0xff]  }
 0x13f   :  { %7936 = vst [vmem:[#allocation13_spill] sm:$0xff] %v5930_v12  ;;  %v2131_v17 = vpop.f32.mrb[23].mxu0  ;;  %v2683_v18 = vpop.f32.mrb[23].mxu1  ;;  %v5200_v6 = vld [vmem:[%s7922_s0 + $0x278] ss:$12 sps:$4 sm:$0xff]  }
 0x140   :  { %v5257_v12 = vld [vmem:[%s7922_s0 + $0x4a0] ss:$12 sps:$4 sm:$0xff]  }
 0x141   :  { %2341 = vmatmul.mubr.bf16.gmra.mrb[128].mxu0 %v5181_v9  ;;  %4791 = vmatmul.mubr.bf16.gmra.mrb[128].mxu1 %v5182_v10 }
 0x142   :  { %2348 = vmatprep.mubr.bf16.mxu0 %v5183_v15  ;;  %4794 = vmatprep.mubr.bf16.mxu1 %v5185_v16 }
 0x144   :  { %v5938_v21 = vpop.f32.mrb[24].mxu0  ;;  %v5940_v22 = vpop.f32.mrb[24].mxu1 }
 0x145   :  { %7937 = vst [vmem:[#allocation14_spill] sm:$0xff] %v5940_v22  ;;  %v2136_v23 = vpop.f32.mrb[25].mxu0  ;;  %v2688_v24 = vpop.f32.mrb[25].mxu1 }
 0x146   :  { %v5948_v29 = vpop.f32.mrb[26].mxu0  ;;  %v5950_v30 = vpop.f32.mrb[26].mxu1  ;;  %v5201_v23 = vld [vmem:[%s7922_s0 + $0x360] ss:$12 sps:$4 sm:$0xff]   ;;  %v5202_v24 = vld [vmem:[%s7922_s0 + $0x290] ss:$12 sps:$4 sm:$0xff]  }
 0x147   :  { %7938 = vst [vmem:[#allocation15_spill] sm:$0xff] %v5950_v30  ;;  %v2139_v35 = vpop.f32.mrb[27].mxu0  ;;  %v2691_v36 = vpop.f32.mrb[27].mxu1  ;;  %v5256_v30 = vld [vmem:[%s7922_s0 + $0x468] ss:$12 sps:$4 sm:$0xff]  }
 0x149   :  { %2349 = vmatmul.mubr.bf16.gmra.mrb[132].mxu0 %v5186_v27  ;;  %4795 = vmatmul.mubr.bf16.gmra.mrb[132].mxu1 %v5187_v28 }
 0x14a   :  { %2356 = vmatprep.mubr.bf16.mxu0 %v5188_v33  ;;  %4798 = vmatprep.mubr.bf16.mxu1 %v5190_v34  ;;  %v5203_v33 = vld [vmem:[%s7922_s0 + $0x37c] ss:$12 sps:$4 sm:$0xff]  }
 0x14b   :  { %v5205_v34 = vld [vmem:[%s7922_s0 + $0x2a8] ss:$12 sps:$4 sm:$0xff]  }
 0x14c   :  { %v5958_v39 = vpop.f32.mrb[28].mxu0  ;;  %v5960_v40 = vpop.f32.mrb[28].mxu1 }
 0x14d   :  { %7939 = vst [vmem:[#allocation16_spill] sm:$0xff] %v5960_v40  ;;  %v2144_v41 = vpop.f32.mrb[29].mxu0  ;;  %v2696_v42 = vpop.f32.mrb[29].mxu1  ;;  %v5252_v40 = vld [vmem:[%s7922_s0 + $0x470] ss:$12 sps:$4 sm:$0xff]  }
 0x14e   :  { %v5968_v47 = vpop.f32.mrb[30].mxu0  ;;  %v5970_v48 = vpop.f32.mrb[30].mxu1 }
 0x14f   :  { %7940 = vst [vmem:[#allocation17_spill] sm:$0xff] %v5970_v48  ;;  %v2147_v53 = vpop.f32.mrb[31].mxu0  ;;  %v2699_v54 = vpop.f32.mrb[31].mxu1  ;;  %v5247_v48 = vld [vmem:[%s7922_s0 + $0x440] ss:$12 sps:$4 sm:$0xff]  }
 0x151   :  { %2357 = vmatmul.mubr.bf16.gmra.mrb[136].mxu0 %v5191_v45  ;;  %4799 = vmatmul.mubr.bf16.gmra.mrb[136].mxu1 %v5192_v46 }
 0x152   :  { %2364 = vmatprep.mubr.bf16.mxu0 %v5193_v51  ;;  %4802 = vmatprep.mubr.bf16.mxu1 %v5195_v52  ;;  %v5206_v51 = vld [vmem:[%s7922_s0 + $0x378] ss:$12 sps:$4 sm:$0xff]   ;;  %v5207_v52 = vld [vmem:[%s7922_s0 + $0x2c0] ss:$12 sps:$4 sm:$0xff]  }
 0x154   :  { %v5978_v57 = vpop.f32.mrb[32].mxu0  ;;  %v5980_v58 = vpop.f32.mrb[32].mxu1 }
 0x155   :  { %7941 = vst [vmem:[#allocation18_spill] sm:$0xff] %v5980_v58  ;;  %v2152_v59 = vpop.f32.mrb[33].mxu0  ;;  %v2704_v60 = vpop.f32.mrb[33].mxu1  ;;  %v5251_v58 = vld [vmem:[%s7922_s0 + $0x450] ss:$12 sps:$4 sm:$0xff]  }
 0x156   :  { %v5988_v1 = vpop.f32.mrb[34].mxu0  ;;  %v5990_v2 = vpop.f32.mrb[34].mxu1  ;;  %v5208_v59 = vld [vmem:[%s7922_s0 + $0x394] ss:$12 sps:$4 sm:$0xff]   ;;  %v5210_v60 = vld [vmem:[%s7922_s0 + $0x2d8] ss:$12 sps:$4 sm:$0xff]  }
 0x157   :  { %7942 = vst [vmem:[#allocation19_spill] sm:$0xff] %v5990_v2  ;;  %v2155_v9 = vpop.f32.mrb[35].mxu0  ;;  %v2707_v10 = vpop.f32.mrb[35].mxu1  ;;  %v5246_v2 = vld [vmem:[%s7922_s0 + $0x438] ss:$12 sps:$4 sm:$0xff]  }
 0x159   :  { %2365 = vmatmul.mubr.bf16.gmra.mrb[140].mxu0 %v5196_v63  ;;  %4803 = vmatmul.mubr.bf16.gmra.mrb[140].mxu1 %v5197_v0 }
 0x15a   :  { %2372 = vmatprep.mubr.bf16.mxu0 %v5198_v5  ;;  %4806 = vmatprep.mubr.bf16.mxu1 %v5200_v6 }
 0x15c   :  { %v5998_v15 = vpop.f32.mrb[36].mxu0  ;;  %v6000_v16 = vpop.f32.mrb[36].mxu1 }
 0x15d   :  { %7943 = vst [vmem:[#allocation20_spill] sm:$0xff] %v6000_v16  ;;  %v2160_v17 = vpop.f32.mrb[37].mxu0  ;;  %v2712_v18 = vpop.f32.mrb[37].mxu1  ;;  %v5242_v16 = vld [vmem:[%s7922_s0 + $0x410] ss:$12 sps:$4 sm:$0xff]  }
 0x15e   :  { %v6008_v27 = vpop.f32.mrb[38].mxu0  ;;  %v6010_v28 = vpop.f32.mrb[38].mxu1  ;;  %v5211_v17 = vld [vmem:[%s7922_s0 + $0x390] ss:$12 sps:$4 sm:$0xff]  }
 0x15f   :  { %7944 = vst [vmem:[#allocation21_spill] sm:$0xff] %v6010_v28  ;;  %v2163_v35 = vpop.f32.mrb[39].mxu0  ;;  %v2715_v36 = vpop.f32.mrb[39].mxu1  ;;  %v5212_v18 = vld [vmem:[%s7922_s0 + $0x2f0] ss:$12 sps:$4 sm:$0xff]  }
 0x160   :  { %v5237_v28 = vld [vmem:[%s7922_s0 + $0x3e0] ss:$12 sps:$4 sm:$0xff]  }
 0x161   :  { %2373 = vmatmul.mubr.bf16.gmra.mrb[144].mxu0 %v5201_v23  ;;  %4807 = vmatmul.mubr.bf16.gmra.mrb[144].mxu1 %v5202_v24 }
 0x162   :  { %2380 = vmatprep.mubr.bf16.mxu0 %v5203_v33  ;;  %4810 = vmatprep.mubr.bf16.mxu1 %v5205_v34  ;;  %v5213_v33 = vld [vmem:[%s7922_s0 + $0x3ac] ss:$12 sps:$4 sm:$0xff]   ;;  %v5215_v34 = vld [vmem:[%s7922_s0 + $0x308] ss:$12 sps:$4 sm:$0xff]  }
 0x164   :  { %v6018_v41 = vpop.f32.mrb[40].mxu0  ;;  %v6020_v42 = vpop.f32.mrb[40].mxu1 }
 0x165   :  { %7945 = vst [vmem:[#allocation22_spill] sm:$0xff] %v6020_v42  ;;  %v2168_v45 = vpop.f32.mrb[41].mxu0  ;;  %v2720_v46 = vpop.f32.mrb[41].mxu1  ;;  %v5241_v42 = vld [vmem:[%s7922_s0 + $0x420] ss:$12 sps:$4 sm:$0xff]  }
 0x166   :  { %v6028_v53 = vpop.f32.mrb[42].mxu0  ;;  %v6030_v54 = vpop.f32.mrb[42].mxu1 }
 0x167   :  { %7946 = vst [vmem:[#allocation23_spill] sm:$0xff] %v6030_v54  ;;  %v2171_v63 = vpop.f32.mrb[43].mxu0  ;;  %v2723_v0 = vpop.f32.mrb[43].mxu1  ;;  %v5236_v54 = vld [vmem:[%s7922_s0 + $0x408] ss:$12 sps:$4 sm:$0xff]  }
 0x169   :  { %2381 = vmatmul.mubr.bf16.gmra.mrb[148].mxu0 %v5206_v51  ;;  %4811 = vmatmul.mubr.bf16.gmra.mrb[148].mxu1 %v5207_v52 }
 0x16a   :  { %2388 = vmatprep.mubr.bf16.mxu0 %v5208_v59  ;;  %4814 = vmatprep.mubr.bf16.mxu1 %v5210_v60  ;;  %v5216_v59 = vld [vmem:[%s7922_s0 + $0x3a8] ss:$12 sps:$4 sm:$0xff]   ;;  %v5217_v60 = vld [vmem:[%s7922_s0 + $0x320] ss:$12 sps:$4 sm:$0xff]  }
 0x16c   :  { %v6038_v5 = vpop.f32.mrb[44].mxu0  ;;  %v6040_v6 = vpop.f32.mrb[44].mxu1 }
 0x16d   :  { %7947 = vst [vmem:[#allocation24_spill] sm:$0xff] %v6040_v6  ;;  %v2176_v9 = vpop.f32.mrb[45].mxu0  ;;  %v2728_v10 = vpop.f32.mrb[45].mxu1  ;;  %v5232_v6 = vld [vmem:[%s7922_s0 + $0x3b0] ss:$12 sps:$4 sm:$0xff]  }
 0x16e   :  { %v6048_v23 = vpop.f32.mrb[46].mxu0  ;;  %v6050_v24 = vpop.f32.mrb[46].mxu1  ;;  %v5218_v9 = vld [vmem:[%s7922_s0 + $0x3c4] ss:$12 sps:$4 sm:$0xff]  }
 0x16f   :  { %7948 = vst [vmem:[#allocation25_spill] sm:$0xff] %v6050_v24  ;;  %v2179_v35 = vpop.f32.mrb[47].mxu0  ;;  %v2731_v36 = vpop.f32.mrb[47].mxu1  ;;  %v5220_v10 = vld [vmem:[%s7922_s0 + $0x338] ss:$12 sps:$4 sm:$0xff]  }
 0x170   :  { %v5227_v24 = vld [vmem:[%s7922_s0 + $0x380] ss:$12 sps:$4 sm:$0xff]  }
 0x171   :  { %2389 = vmatmul.mubr.bf16.gmra.mrb[152].mxu0 %v5211_v17  ;;  %4815 = vmatmul.mubr.bf16.gmra.mrb[152].mxu1 %v5212_v18 }
 0x172   :  { %2396 = vmatprep.mubr.bf16.mxu0 %v5213_v33  ;;  %4818 = vmatprep.mubr.bf16.mxu1 %v5215_v34 }
 0x174   :  { %v6058_v45 = vpop.f32.mrb[48].mxu0  ;;  %v6060_v46 = vpop.f32.mrb[48].mxu1 }
 0x175   :  { %7949 = vst [vmem:[#allocation26_spill] sm:$0xff] %v6060_v46  ;;  %v2184_v51 = vpop.f32.mrb[49].mxu0  ;;  %v2736_v52 = vpop.f32.mrb[49].mxu1  ;;  %v5231_v46 = vld [vmem:[%s7922_s0 + $0x3f0] ss:$12 sps:$4 sm:$0xff]  }
 0x176   :  { %v6068_v63 = vpop.f32.mrb[50].mxu0  ;;  %v6070_v0 = vpop.f32.mrb[50].mxu1  ;;  %v5221_v51 = vld [vmem:[%s7922_s0 + $0x3c0] ss:$12 sps:$4 sm:$0xff]   ;;  %v5222_v52 = vld [vmem:[%s7922_s0 + $0x350] ss:$12 sps:$4 sm:$0xff]  }
 0x177   :  { %7950 = vst [vmem:[#allocation27_spill] sm:$0xff] %v6070_v0  ;;  %v2187_v17 = vpop.f32.mrb[51].mxu0  ;;  %v2739_v18 = vpop.f32.mrb[51].mxu1  ;;  %v5226_v0 = vld [vmem:[%s7922_s0 + $0x3d8] ss:$12 sps:$4 sm:$0xff]  }
 0x179   :  { %2397 = vmatmul.mubr.bf16.gmra.mrb[156].mxu0 %v5216_v59  ;;  %4819 = vmatmul.mubr.bf16.gmra.mrb[156].mxu1 %v5217_v60  ;;  %v5223_v60 = vld [vmem:[%s7922_s0 + $0x3dc] ss:$12 sps:$4 sm:$0xff]  }
 0x17a   :  { %2404 = vmatprep.mubr.bf16.mxu0 %v5218_v9  ;;  %4822 = vmatprep.mubr.bf16.mxu1 %v5220_v10  ;;  %v5225_v9 = vld [vmem:[%s7922_s0 + $0x368] ss:$12 sps:$4 sm:$0xff]  }
 0x17c   :  { %v6078_v33 = vpop.f32.mrb[52].mxu0  ;;  %v6080_v34 = vpop.f32.mrb[52].mxu1 }
 0x17d   :  { %7951 = vst [vmem:[#allocation28_spill] sm:$0xff] %v6080_v34  ;;  %v2192_v35 = vpop.f32.mrb[53].mxu0  ;;  %v2744_v36 = vpop.f32.mrb[53].mxu1 }
 0x17e   :  { %v6088_v17 = vpop.f32.mrb[54].mxu0  ;;  %v6090_v59 = vpop.f32.mrb[54].mxu1 }
 0x17f   :  { %7952 = vst [vmem:[#allocation29_spill] sm:$0xff] %v6090_v59  ;;  %v2195_v10 = vpop.f32.mrb[55].mxu0  ;;  %v2747_v18 = vpop.f32.mrb[55].mxu1 }
 0x181   :  { %2405 = vmatmul.mubr.bf16.gmra.mrb[160].mxu0 %v5221_v51  ;;  %4823 = vmatmul.mubr.bf16.gmra.mrb[160].mxu1 %v5222_v52  ;;  %v5228_v52 = vld [vmem:[%s7922_s0 + $0x3f4] ss:$12 sps:$4 sm:$0xff]  }
 0x182   :  { %2412 = vmatprep.mubr.bf16.mxu0 %v5223_v60  ;;  %4826 = vmatprep.mubr.bf16.mxu1 %v5225_v9 }
 0x184   :  { %v6098_v35 = vpop.f32.mrb[56].mxu0  ;;  %v6100_v36 = vpop.f32.mrb[56].mxu1 }
 0x185   :  { %7953 = vst [vmem:[#allocation30_spill] sm:$0xff] %v6100_v36  ;;  %v2200_v34 = vpop.f32.mrb[57].mxu0  ;;  %v2752_v59 = vpop.f32.mrb[57].mxu1 }
 0x186   :  { %v6108_v10 = vpop.f32.mrb[58].mxu0  ;;  %v6110_v51 = vpop.f32.mrb[58].mxu1  ;;  %v5230_v34 = vld [vmem:[%s7922_s0 + $0x398] ss:$12 sps:$4 sm:$0xff]  }
 0x187   :  { %7954 = vst [vmem:[#allocation31_spill] sm:$0xff] %v6110_v51  ;;  %v2203_v59 = vpop.f32.mrb[59].mxu0  ;;  %v2755_v60 = vpop.f32.mrb[59].mxu1 }
 0x189   :  { %2413 = vmatmul.mubr.bf16.gmra.mrb[164].mxu0 %v5226_v0  ;;  %4827 = vmatmul.mubr.bf16.gmra.mrb[164].mxu1 %v5227_v24  ;;  %v5233_v24 = vld [vmem:[%s7922_s0 + $0x40c] ss:$12 sps:$4 sm:$0xff]  }
 0x18a   :  { %2420 = vmatprep.mubr.bf16.mxu0 %v5228_v52  ;;  %4830 = vmatprep.mubr.bf16.mxu1 %v5230_v34 }
 0x18c   :  { %v6118_v9 = vpop.f32.mrb[60].mxu0  ;;  %v6120_v18 = vpop.f32.mrb[60].mxu1 }
 0x18d   :  { %7955 = vst [vmem:[#allocation32_spill] sm:$0xff] %v6120_v18  ;;  %v2208_v36 = vpop.f32.mrb[61].mxu0  ;;  %v2760_v51 = vpop.f32.mrb[61].mxu1 }
 0x18e   :  { %v6128_v59 = vpop.f32.mrb[62].mxu0  ;;  %v6130_v0 = vpop.f32.mrb[62].mxu1  ;;  %v5235_v36 = vld [vmem:[%s7922_s0 + $0x3c8] ss:$12 sps:$4 sm:$0xff]  }
 0x18f   :  { %7956 = vst [vmem:[#allocation33_spill] sm:$0xff] %v6130_v0  ;;  %v2211_v51 = vpop.f32.mrb[63].mxu0  ;;  %v2763_v52 = vpop.f32.mrb[63].mxu1 }
 0x191   :  { %2421 = vmatmul.mubr.bf16.gmra.mrb[168].mxu0 %v5231_v46  ;;  %4831 = vmatmul.mubr.bf16.gmra.mrb[168].mxu1 %v5232_v6  ;;  %v5238_v6 = vld [vmem:[%s7922_s0 + $0x424] ss:$12 sps:$4 sm:$0xff]  }
 0x192   :  { %2428 = vmatprep.mubr.bf16.mxu0 %v5233_v24  ;;  %4834 = vmatprep.mubr.bf16.mxu1 %v5235_v36 }
 0x194   :  { %v6138_v34 = vpop.f32.mrb[64].mxu0  ;;  %v6140_v60 = vpop.f32.mrb[64].mxu1 }
 0x195   :  { %7957 = vst [vmem:[#allocation34_spill] sm:$0xff] %v6140_v60  ;;  %v2216_v18 = vpop.f32.mrb[65].mxu0  ;;  %v2768_v0 = vpop.f32.mrb[65].mxu1 }
 0x196   :  { %v6148_v51 = vpop.f32.mrb[66].mxu0  ;;  %v6150_v46 = vpop.f32.mrb[66].mxu1  ;;  %v5240_v18 = vld [vmem:[%s7922_s0 + $0x3f8] ss:$12 sps:$4 sm:$0xff]  }
 0x197   :  { %7958 = vst [vmem:[#allocation35_spill] sm:$0xff] %v6150_v46  ;;  %v2219_v0 = vpop.f32.mrb[67].mxu0  ;;  %v2771_v24 = vpop.f32.mrb[67].mxu1 }
 0x199   :  { %2429 = vmatmul.mubr.bf16.gmra.mrb[172].mxu0 %v5236_v54  ;;  %4835 = vmatmul.mubr.bf16.gmra.mrb[172].mxu1 %v5237_v28  ;;  %v5243_v28 = vld [vmem:[%s7922_s0 + $0x43c] ss:$12 sps:$4 sm:$0xff]  }
 0x19a   :  { %2436 = vmatprep.mubr.bf16.mxu0 %v5238_v6  ;;  %4838 = vmatprep.mubr.bf16.mxu1 %v5240_v18 }
 0x19c   :  { %v6158_v36 = vpop.f32.mrb[68].mxu0  ;;  %v6160_v52 = vpop.f32.mrb[68].mxu1 }
 0x19d   :  { %7959 = vst [vmem:[#allocation36_spill] sm:$0xff] %v6160_v52  ;;  %v2224_v60 = vpop.f32.mrb[69].mxu0  ;;  %v2776_v46 = vpop.f32.mrb[69].mxu1 }
 0x19e   :  { %v6168_v0 = vpop.f32.mrb[70].mxu0  ;;  %v6170_v54 = vpop.f32.mrb[70].mxu1  ;;  %v5245_v60 = vld [vmem:[%s7922_s0 + $0x428] ss:$12 sps:$4 sm:$0xff]  }
 0x19f   :  { %7960 = vst [vmem:[#allocation37_spill] sm:$0xff] %v6170_v54  ;;  %v2227_v46 = vpop.f32.mrb[71].mxu0  ;;  %v2779_v6 = vpop.f32.mrb[71].mxu1 }
 0x1a1   :  { %2437 = vmatmul.mubr.bf16.gmra.mrb[176].mxu0 %v5241_v42  ;;  %4839 = vmatmul.mubr.bf16.gmra.mrb[176].mxu1 %v5242_v16  ;;  %v5248_v16 = vld [vmem:[%s7922_s0 + $0x454] ss:$12 sps:$4 sm:$0xff]  }
 0x1a2   :  { %2444 = vmatprep.mubr.bf16.mxu0 %v5243_v28  ;;  %4842 = vmatprep.mubr.bf16.mxu1 %v5245_v60 }
 0x1a4   :  { %v6178_v18 = vpop.f32.mrb[72].mxu0  ;;  %v6180_v24 = vpop.f32.mrb[72].mxu1 }
 0x1a5   :  { %7961 = vst [vmem:[#allocation38_spill] sm:$0xff] %v6180_v24  ;;  %v2232_v52 = vpop.f32.mrb[73].mxu0  ;;  %v2784_v54 = vpop.f32.mrb[73].mxu1 }
 0x1a6   :  { %v6188_v46 = vpop.f32.mrb[74].mxu0  ;;  %v6190_v42 = vpop.f32.mrb[74].mxu1  ;;  %v5250_v52 = vld [vmem:[%s7922_s0 + $0x458] ss:$12 sps:$4 sm:$0xff]  }
 0x1a7   :  { %7962 = vst [vmem:[#allocation39_spill] sm:$0xff] %v6190_v42  ;;  %v2235_v54 = vpop.f32.mrb[75].mxu0  ;;  %v2787_v28 = vpop.f32.mrb[75].mxu1 }
 0x1a9   :  { %2445 = vmatmul.mubr.bf16.gmra.mrb[180].mxu0 %v5246_v2  ;;  %4843 = vmatmul.mubr.bf16.gmra.mrb[180].mxu1 %v5247_v48  ;;  %v5253_v48 = vld [vmem:[%s7922_s0 + $0x46c] ss:$12 sps:$4 sm:$0xff]  }
 0x1aa   :  { %2452 = vmatprep.mubr.bf16.mxu0 %v5248_v16  ;;  %4846 = vmatprep.mubr.bf16.mxu1 %v5250_v52 }
 0x1ac   :  { %v6198_v60 = vpop.f32.mrb[76].mxu0  ;;  %v6200_v6 = vpop.f32.mrb[76].mxu1 }
 0x1ad   :  { %7963 = vst [vmem:[#allocation40_spill] sm:$0xff] %v6200_v6  ;;  %v2240_v24 = vpop.f32.mrb[77].mxu0  ;;  %v2792_v42 = vpop.f32.mrb[77].mxu1 }
 0x1ae   :  { %v6208_v54 = vpop.f32.mrb[78].mxu0  ;;  %v6210_v2 = vpop.f32.mrb[78].mxu1  ;;  %v5255_v24 = vld [vmem:[%s7922_s0 + $0x488] ss:$12 sps:$4 sm:$0xff]  }
 0x1af   :  { %7964 = vst [vmem:[#allocation41_spill] sm:$0xff] %v6210_v2  ;;  %v2243_v42 = vpop.f32.mrb[79].mxu0  ;;  %v2795_v16 = vpop.f32.mrb[79].mxu1 }
 0x1b1   :  { %2453 = vmatmul.mubr.bf16.gmra.mrb[184].mxu0 %v5251_v58  ;;  %4847 = vmatmul.mubr.bf16.gmra.mrb[184].mxu1 %v5252_v40  ;;  %v5258_v40 = vld [vmem:[%s7922_s0 + $0x484] ss:$12 sps:$4 sm:$0xff]  }
 0x1b2   :  { %2460 = vmatprep.mubr.bf16.mxu0 %v5253_v48  ;;  %4850 = vmatprep.mubr.bf16.mxu1 %v5255_v24  ;;  %v432_v24 = vlaneseq }
 0x1b4   :  { %v6218_v52 = vpop.f32.mrb[80].mxu0  ;;  %v6220_v28 = vpop.f32.mrb[80].mxu1 }
 0x1b5   :  { %7965 = vst [vmem:[#allocation42_spill] sm:$0xff] %v6220_v28  ;;  %v2248_v6 = vpop.f32.mrb[81].mxu0  ;;  %v2800_v2 = vpop.f32.mrb[81].mxu1 }
 0x1b6   :  { %v6228_v42 = vpop.f32.mrb[82].mxu0  ;;  %v6230_v58 = vpop.f32.mrb[82].mxu1  ;;  %v5260_v6 = vld [vmem:[%s7922_s0 + $0x4b8] ss:$12 sps:$4 sm:$0xff]  }
 0x1b7   :  { %7966 = vst [vmem:[#allocation43_spill] sm:$0xff] %v6228_v42  ;;  %7967 = vst [vmem:[#allocation44_spill] sm:$0xff] %v6230_v58  ;;  %v2251_v2 = vpop.f32.mrb[83].mxu0  ;;  %v2803_v48 = vpop.f32.mrb[83].mxu1 }
 0x1b8   :  { %v5262_v2 = vld [vmem:[%s7922_s0 + $0x4d0] ss:$12 sps:$4 sm:$0xff]  }
 0x1b9   :  { %2461 = vmatmul.mubr.bf16.gmra.mrb[188].mxu0 %v5256_v30  ;;  %4851 = vmatmul.mubr.bf16.gmra.mrb[188].mxu1 %v5257_v12  ;;  %v5263_v30 = vld [vmem:[%s7922_s0 + $0x49c] ss:$12 sps:$4 sm:$0xff]  }
 0x1ba   :  { %2468 = vmatprep.mubr.bf16.mxu0 %v5258_v40  ;;  %4854 = vmatprep.mubr.bf16.mxu1 %v5260_v6  ;;  %v433_v6 = vshrl.u32 %v432_v24, 7 }
 0x1bc   :  { %v6238_v16 = vpop.f32.mrb[84].mxu0  ;;  %v6240_v28 = vpop.f32.mrb[84].mxu1  ;;  %v3964_v26 = vsub.s32 2, %v433_v6 }
 0x1bd   :  { %7968 = vst [vmem:[#allocation45_spill] sm:$0xff] %v6240_v28  ;;  %v2256_v58 = vpop.f32.mrb[85].mxu0  ;;  %v2808_v22 = vpop.f32.mrb[85].mxu1  ;;  %v431_v28 = vld [vmem:[%s7923_s2] sm:$0xff] }
 0x1be   :  { %v6248_v48 = vpop.f32.mrb[86].mxu0  ;;  %v6250_v12 = vpop.f32.mrb[86].mxu1  ;;  %v5265_v22 = vld [vmem:[%s7922_s0 + $0x4e8] ss:$12 sps:$4 sm:$0xff]  }
 0x1bf   :  { %7969 = vst [vmem:[#allocation46_spill] sm:$0xff] %v6250_v12  ;;  %v2259_v58 = vpop.f32.mrb[87].mxu0  ;;  %v2811_v40 = vpop.f32.mrb[87].mxu1  ;;  %v434_v12 = vsub.s32 0, %v433_v6 }
 0x1c0   :  { %v5266_v58 = vld [vmem:[%s7922_s0 + $0x498] ss:$12 sps:$4 sm:$0xff]  }
 0x1c1   :  { %2469 = vmatmul.mubr.bf16.gmra.mrb[192].mxu0 %v5261_v4  ;;  %4855 = vmatmul.mubr.bf16.gmra.mrb[192].mxu1 %v5262_v2  ;;  %v5267_v4 = vld [vmem:[%s7922_s0 + $0x500] ss:$12 sps:$4 sm:$0xff]   ;;  %v6281_v40 = vrot.slane %v431_v28, %v434_v12 }
 0x1c2   :  { %2476 = vmatprep.mubr.bf16.mxu0 %v5263_v30  ;;  %4858 = vmatprep.mubr.bf16.mxu1 %v5265_v22  ;;  %v5268_v30 = vld [vmem:[%s7922_s0 + $0x4b4] ss:$12 sps:$4 sm:$0xff]  }
 0x1c3   :  { %v2087_v32 = vadd.f32 %v5818_v7, %v6281_v40 }
 0x1c4   :  { %v6261_v62 = vpop.f32.mrb[88].mxu0  ;;  %v6263_v50 = vpop.f32.mrb[88].mxu1 }
 0x1c5   :  { %7970 = vst [vmem:[#allocation47_spill] sm:$0xff] %v6261_v62  ;;  %7971 = vst [vmem:[#allocation48_spill] sm:$0xff] %v6263_v50  ;;  %v2264_v56 = vpop.f32.mrb[89].mxu0  ;;  %v2816_v44 = vpop.f32.mrb[89].mxu1  ;;  %v3776_v50 = vsub.s32 1, %v433_v6 }
 0x1c6   :  { %v6271_v24 = vpop.f32.mrb[90].mxu0  ;;  %v6273_v2 = vpop.f32.mrb[90].mxu1  ;;  %v5270_v44 = vld [vmem:[%s7922_s0 + $0x518] ss:$12 sps:$4 sm:$0xff]  }
 0x1c7   :  { %7972 = vst [vmem:[#allocation49_spill] sm:$0xff] %v6271_v24  ;;  %7973 = vst [vmem:[#allocation50_spill] sm:$0xff] %v6273_v2  ;;  %v2267_v56 = vpop.f32.mrb[91].mxu0  ;;  %v2819_v22 = vpop.f32.mrb[91].mxu1  ;;  %v2095_v2 = vadd.f32 %v5838_v19, %v6281_v40  ;;  %v5272_v19 = vld [vmem:[%s7922_s0 + $0x530] ss:$12 sps:$4 sm:$0xff]  }
 0x1c8   :  { %v6289_v56 = vrot.slane %v431_v28, %v3776_v50  ;;  %v5273_v50 = vld [vmem:[%s7922_s0 + $0x4cc] ss:$12 sps:$4 sm:$0xff]  }
 0x1c9   :  { %2477 = vmatmul.mubr.bf16.gmra.mrb[196].mxu0 %v5266_v58  ;;  %4859 = vmatmul.mubr.bf16.gmra.mrb[196].mxu1 %v5267_v4  ;;  %v2098_v58 = vadd.f32 %v5848_v25, %v6281_v40  ;;  %v5271_v4 = vld [vmem:[%s7922_s0 + $0x4b0] ss:$12 sps:$4 sm:$0xff]   ;;  %v5275_v25 = vld [vmem:[%s7922_s0 + $0x548] ss:$12 sps:$4 sm:$0xff]  }
 0x1ca   :  { %2484 = vmatprep.mubr.bf16.mxu0 %v5268_v30  ;;  %4862 = vmatprep.mubr.bf16.mxu1 %v5270_v44  ;;  %v6309_v44 = vrot.slane %v431_v28, %v3964_v26 }
 0x1cc   :  { %v6285_v38 = vpop.f32.mrb[92].mxu0  ;;  %v4756_v20 = vpop.f32.mrb[92].mxu1 }
 0x1cd   :  { %7974 = vst [vmem:[#allocation51_spill] sm:$0xff] %v6285_v38  ;;  %v2864_v14 = vadd.f32 %v4756_v20, %v2095_v2  ;;  %v2272_v12 = vpop.f32.mrb[93].mxu0  ;;  %v2855_v22 = vpop.f32.mrb[93].mxu1  ;;  %v2090_v20 = vadd.f32 %v5828_v13, %v6281_v40 }
 0x1ce   :  { %v2856_v6 = vadd.f32 %v2855_v22, %v2087_v32  ;;  %v6299_v30 = vpop.f32.mrb[94].mxu0  ;;  %v4757_v7 = vpop.f32.mrb[94].mxu1 }
 0x1cf   :  { %7975 = vst [vmem:[#allocation52_spill] sm:$0xff] %v6299_v30  ;;  %v3592_v2 = vmax.f32 %v2864_v14, 0.0  ;;  %v2867_v12 = vadd.f32 %v4757_v7, %v2098_v58  ;;  %v2275_v8 = vpop.f32.mrb[95].mxu0  ;;  %v2858_v32 = vpop.f32.mrb[95].mxu1 }
 0x1d0   :  { %v3590_v22 = vmax.f32 %v2856_v6, 0.0  ;;  %v2859_v24 = vadd.f32 %v2858_v32, %v2090_v20  ;;  %v2111_v8 = vadd.f32 %v5878_v43, %v6281_v40  ;;  %v2114_v43 = vadd.f32 %v5888_v49, %v6281_v40 }
 0x1d1   :  { %v3780_v30 = vmul.f32 %v6289_v56, %v3592_v2  ;;  %v3593_v62 = vmax.f32 %v2867_v12, 0.0  ;;  %2485 = vmatmul.mubr.bf16.gmra.mrb[200].mxu0 %v5271_v4  ;;  %4863 = vmatmul.mubr.bf16.gmra.mrb[200].mxu1 %v5272_v19  ;;  %v2103_v19 = vadd.f32 %v5858_v31, %v6281_v40  ;;  %v5277_v31 = vld [vmem:[%s7922_s0 + $0x560] ss:$12 sps:$4 sm:$0xff]   ;;  %v2106_v49 = vadd.f32 %v5868_v37, %v6281_v40  ;;  %v5280_v2 = vld [vmem:[%s7922_s0 + $0x578] ss:$12 sps:$4 sm:$0xff]  }
 0x1d2   :  { %v3778_v13 = vmul.f32 %v6289_v56, %v3590_v22  ;;  %v3591_v38 = vmax.f32 %v2859_v24, 0.0  ;;  %2492 = vmatprep.mubr.bf16.mxu0 %v5273_v50  ;;  %4866 = vmatprep.mubr.bf16.mxu1 %v5275_v25  ;;  %v5278_v25 = vld [vmem:[%s7922_s0 + $0x4e4] ss:$12 sps:$4 sm:$0xff]  }
 0x1d3   :  { %v3968_v42 = vadd.f32 %v6309_v44, %v3780_v30  ;;  %v3781_v14 = vmul.f32 %v6289_v56, %v3593_v62 }
 0x1d4   :  { %v3966_v26 = vadd.f32 %v6309_v44, %v3778_v13  ;;  %v3779_v28 = vmul.f32 %v6289_v56, %v3591_v38  ;;  %v6319_v58 = vpop.f32.mrb[96].mxu0  ;;  %v4760_v4 = vpop.f32.mrb[96].mxu1  ;;  %v5276_v38 = vld [vmem:[%s7922_s0 + $0x4c8] ss:$12 sps:$4 sm:$0xff]  }
 0x1d5   :  { %4152 = vst [vmem:[%s7924_s3 + $0x10] sm:$0xff] %v3968_v42  ;;  %v3969_v24 = vadd.f32 %v6309_v44, %v3781_v14  ;;  %v2880_v62 = vadd.f32 %v4760_v4, %v2111_v8  ;;  %v2280_v6 = vpop.f32.mrb[97].mxu0  ;;  %v2871_v30 = vpop.f32.mrb[97].mxu1 }
 0x1d6   :  { %4150 = vst [vmem:[%s7924_s3] sm:$0xff] %v3966_v26  ;;  %v3967_v42 = vadd.f32 %v6309_v44, %v3779_v28  ;;  %v2872_v7 = vadd.f32 %v2871_v30, %v2103_v19  ;;  %v6339_v20 = vpop.f32.mrb[98].mxu0  ;;  %v4761_v50 = vpop.f32.mrb[98].mxu1  ;;  %v2127_v19 = vadd.f32 %v5918_v3, %v6281_v40 }
 0x1d7   :  { %4153 = vst [vmem:[%s7924_s3 + $0x18] sm:$0xff] %v3969_v24  ;;  %v3596_v12 = vmax.f32 %v2880_v62, 0.0  ;;  %v2883_v32 = vadd.f32 %v4761_v50, %v2114_v43  ;;  %v2283_v22 = vpop.f32.mrb[99].mxu0  ;;  %v2874_v13 = vpop.f32.mrb[99].mxu1 }
 0x1d8   :  { %4151 = vst [vmem:[%s7924_s3 + $0x8] sm:$0xff] %v3967_v42  ;;  %v3594_v37 = vmax.f32 %v2872_v7, 0.0  ;;  %v2875_v14 = vadd.f32 %v2874_v13, %v2106_v49  ;;  %v2130_v42 = vadd.f32 %v5928_v11, %v6281_v40  ;;  %v2122_v22 = vadd.f32 %v5908_v61, %v6281_v40  ;;  %v5283_v13 = vld [vmem:[%s7922_s0 + $0x4fc] ss:$12 sps:$4 sm:$0xff]  }
 0x1d9   :  { %v3784_v8 = vmul.f32 %v6289_v56, %v3596_v12  ;;  %v3597_v26 = vmax.f32 %v2883_v32, 0.0  ;;  %2493 = vmatmul.mubr.bf16.gmra.mrb[204].mxu0 %v5276_v38  ;;  %4867 = vmatmul.mubr.bf16.gmra.mrb[204].mxu1 %v5277_v31  ;;  %v2119_v31 = vadd.f32 %v5898_v55, %v6281_v40  ;;  %v5282_v55 = vld [vmem:[%s7922_s0 + $0x590] ss:$12 sps:$4 sm:$0xff]  }
 0x1da   :  { %v3782_v28 = vmul.f32 %v6289_v56, %v3594_v37  ;;  %v3595_v4 = vmax.f32 %v2875_v14, 0.0  ;;  %2500 = vmatprep.mubr.bf16.mxu0 %v5278_v25  ;;  %4870 = vmatprep.mubr.bf16.mxu1 %v5280_v2  ;;  %v5281_v25 = vld [vmem:[%s7922_s0 + $0x4e0] ss:$12 sps:$4 sm:$0xff]   ;;  %v5285_v37 = vld [vmem:[%s7922_s0 + $0x5a8] ss:$12 sps:$4 sm:$0xff]  }
 0x1db   :  { %v3972_v24 = vadd.f32 %v6309_v44, %v3784_v8  ;;  %v3785_v62 = vmul.f32 %v6289_v56, %v3597_v26 }
 0x1dc   :  { %v3970_v6 = vadd.f32 %v6309_v44, %v3782_v28  ;;  %v3783_v30 = vmul.f32 %v6289_v56, %v3595_v4  ;;  %v6363_v43 = vpop.f32.mrb[100].mxu0  ;;  %v4764_v38 = vpop.f32.mrb[100].mxu1 }
 0x1dd   :  { %4156 = vst [vmem:[%s7924_s3 + $0x30] sm:$0xff] %v3972_v24  ;;  %v3973_v3 = vadd.f32 %v6309_v44, %v3785_v62  ;;  %v2896_v7 = vadd.f32 %v4764_v38, %v2127_v19  ;;  %v2288_v50 = vpop.f32.mrb[101].mxu0  ;;  %v2887_v49 = vpop.f32.mrb[101].mxu1 }
 0x1de   :  { %4154 = vst [vmem:[%s7924_s3 + $0x20] sm:$0xff] %v3970_v6  ;;  %v3971_v11 = vadd.f32 %v6309_v44, %v3783_v30  ;;  %v2888_v2 = vadd.f32 %v2887_v49, %v2119_v31  ;;  %v6383_v12 = vpop.f32.mrb[102].mxu0  ;;  %v4765_v32 = vpop.f32.mrb[102].mxu1  ;;  %v2143_v30 = vadd.f32 %v5958_v39, %v6281_v40 }
 0x1df   :  { %4157 = vst [vmem:[%s7924_s3 + $0x38] sm:$0xff] %v3973_v3  ;;  %v3600_v14 = vmax.f32 %v2896_v7, 0.0  ;;  %v2899_v8 = vadd.f32 %v4765_v32, %v2130_v42  ;;  %v2291_v26 = vpop.f32.mrb[103].mxu0  ;;  %v2890_v28 = vpop.f32.mrb[103].mxu1  ;;  %v2135_v42 = vadd.f32 %v5938_v21, %v6281_v40  ;;  %v5286_v21 = vld [vmem:[%s7922_s0 + $0x4f8] ss:$12 sps:$4 sm:$0xff]  }
 0x1e0   :  { %4155 = vst [vmem:[%s7924_s3 + $0x28] sm:$0xff] %v3971_v11  ;;  %v3598_v61 = vmax.f32 %v2888_v2, 0.0  ;;  %v2891_v4 = vadd.f32 %v2890_v28, %v2122_v22  ;;  %v5287_v32 = vld [vmem:[%s7922_s0 + $0x5c0] ss:$12 sps:$4 sm:$0xff]   ;;  %v5290_v26 = vld [vmem:[%s7922_s0 + $0x5d8] ss:$12 sps:$4 sm:$0xff]  }
 0x1e1   :  { %v3788_v19 = vmul.f32 %v6289_v56, %v3600_v14  ;;  %v3601_v24 = vmax.f32 %v2899_v8, 0.0  ;;  %2501 = vmatmul.mubr.bf16.gmra.mrb[208].mxu0 %v5281_v25  ;;  %4871 = vmatmul.mubr.bf16.gmra.mrb[208].mxu1 %v5282_v55  ;;  %v2146_v25 = vadd.f32 %v5968_v47, %v6281_v40  ;;  %v2138_v47 = vadd.f32 %v5948_v29, %v6281_v40  ;;  %v5288_v8 = vld [vmem:[%s7922_s0 + $0x514] ss:$12 sps:$4 sm:$0xff]  }
 0x1e2   :  { %v3786_v62 = vmul.f32 %v6289_v56, %v3598_v61  ;;  %v3599_v6 = vmax.f32 %v2891_v4, 0.0  ;;  %2508 = vmatprep.mubr.bf16.mxu0 %v5283_v13  ;;  %4874 = vmatprep.mubr.bf16.mxu1 %v5285_v37 }
 0x1e3   :  { %v3976_v38 = vadd.f32 %v6309_v44, %v3788_v19  ;;  %v3789_v31 = vmul.f32 %v6289_v56, %v3601_v24 }
 0x1e4   :  { %v3974_v3 = vadd.f32 %v6309_v44, %v3786_v62  ;;  %v3787_v7 = vmul.f32 %v6289_v56, %v3599_v6  ;;  %v6409_v50 = vpop.f32.mrb[104].mxu0  ;;  %v4768_v49 = vpop.f32.mrb[104].mxu1 }
 0x1e5   :  { %4160 = vst [vmem:[%s7924_s3 + $0x50] sm:$0xff] %v3976_v38  ;;  %v3977_v39 = vadd.f32 %v6309_v44, %v3789_v31  ;;  %v2912_v55 = vadd.f32 %v4768_v49, %v2143_v30  ;;  %v2296_v11 = vpop.f32.mrb[105].mxu0  ;;  %v2903_v2 = vpop.f32.mrb[105].mxu1  ;;  %v2159_v31 = vadd.f32 %v5998_v15, %v6281_v40 }
 0x1e6   :  { %4158 = vst [vmem:[%s7924_s3 + $0x40] sm:$0xff] %v3974_v3  ;;  %v3975_v22 = vadd.f32 %v6309_v44, %v3787_v7  ;;  %v2904_v13 = vadd.f32 %v2903_v2, %v2135_v42  ;;  %v6429_v37 = vpop.f32.mrb[106].mxu0  ;;  %v4769_v14 = vpop.f32.mrb[106].mxu1  ;;  %v2151_v7 = vadd.f32 %v5978_v57, %v6281_v40  ;;  %v2162_v11 = vadd.f32 %v6008_v27, %v6281_v40  ;;  %v5291_v57 = vld [vmem:[%s7922_s0 + $0x510] ss:$12 sps:$4 sm:$0xff]  }
 0x1e7   :  { %4161 = vst [vmem:[%s7924_s3 + $0x58] sm:$0xff] %v3977_v39  ;;  %v3604_v29 = vmax.f32 %v2912_v55, 0.0  ;;  %v2915_v28 = vadd.f32 %v4769_v14, %v2146_v25  ;;  %v2299_v61 = vpop.f32.mrb[107].mxu0  ;;  %v2906_v4 = vpop.f32.mrb[107].mxu1  ;;  %v2154_v27 = vadd.f32 %v5988_v1, %v6281_v40 }
 0x1e8   :  { %4159 = vst [vmem:[%s7924_s3 + $0x48] sm:$0xff] %v3975_v22  ;;  %v3602_v19 = vmax.f32 %v2904_v13, 0.0  ;;  %v2907_v24 = vadd.f32 %v2906_v4, %v2138_v47  ;;  %v5292_v47 = vld [vmem:[%s7922_s0 + $0x5f0] ss:$12 sps:$4 sm:$0xff]  }
 0x1e9   :  { %v3792_v62 = vmul.f32 %v6289_v56, %v3604_v29  ;;  %v3605_v6 = vmax.f32 %v2915_v28, 0.0  ;;  %2509 = vmatmul.mubr.bf16.gmra.mrb[212].mxu0 %v5286_v21  ;;  %4875 = vmatmul.mubr.bf16.gmra.mrb[212].mxu1 %v5287_v32  ;;  %v5295_v29 = vld [vmem:[%s7922_s0 + $0x608] ss:$12 sps:$4 sm:$0xff]  }
 0x1ea   :  { %v3790_v30 = vmul.f32 %v6289_v56, %v3602_v19  ;;  %v3603_v38 = vmax.f32 %v2907_v24, 0.0  ;;  %2516 = vmatprep.mubr.bf16.mxu0 %v5288_v8  ;;  %4878 = vmatprep.mubr.bf16.mxu1 %v5290_v26  ;;  %v5293_v26 = vld [vmem:[%s7922_s0 + $0x52c] ss:$12 sps:$4 sm:$0xff]  }
 0x1eb   :  { %v3980_v42 = vadd.f32 %v6309_v44, %v3792_v62  ;;  %v3793_v3 = vmul.f32 %v6289_v56, %v3605_v6 }
 0x1ec   :  { %v3978_v49 = vadd.f32 %v6309_v44, %v3790_v30  ;;  %v3791_v25 = vmul.f32 %v6289_v56, %v3603_v38  ;;  %v6453_v39 = vpop.f32.mrb[108].mxu0  ;;  %v4772_v55 = vpop.f32.mrb[108].mxu1 }
 0x1ed   :  { %4164 = vst [vmem:[%s7924_s3 + $0x70] sm:$0xff] %v3980_v42  ;;  %v3981_v15 = vadd.f32 %v6309_v44, %v3793_v3  ;;  %v2928_v2 = vadd.f32 %v4772_v55, %v2159_v31  ;;  %v2304_v21 = vpop.f32.mrb[109].mxu0  ;;  %v2919_v32 = vpop.f32.mrb[109].mxu1  ;;  %v2175_v31 = vadd.f32 %v6038_v5, %v6281_v40 }
 0x1ee   :  { %4162 = vst [vmem:[%s7924_s3 + $0x60] sm:$0xff] %v3978_v49  ;;  %v3979_v22 = vadd.f32 %v6309_v44, %v3791_v25  ;;  %v2920_v13 = vadd.f32 %v2919_v32, %v2151_v7  ;;  %v6473_v14 = vpop.f32.mrb[110].mxu0  ;;  %v4773_v8 = vpop.f32.mrb[110].mxu1  ;;  %v2167_v7 = vadd.f32 %v6018_v41, %v6281_v40  ;;  %v5296_v41 = vld [vmem:[%s7922_s0 + $0x528] ss:$12 sps:$4 sm:$0xff]  }
 0x1ef   :  { %4165 = vst [vmem:[%s7924_s3 + $0x78] sm:$0xff] %v3981_v15  ;;  %v3608_v1 = vmax.f32 %v2928_v2, 0.0  ;;  %v2931_v28 = vadd.f32 %v4773_v8, %v2162_v11  ;;  %v2307_v61 = vpop.f32.mrb[111].mxu0  ;;  %v2922_v4 = vpop.f32.mrb[111].mxu1  ;;  %v2178_v15 = vadd.f32 %v6048_v23, %v6281_v40  ;;  %v2170_v23 = vadd.f32 %v6028_v53, %v6281_v40  ;;  %v5298_v8 = vld [vmem:[%s7922_s0 + $0x544] ss:$12 sps:$4 sm:$0xff]  }
 0x1f0   :  { %4163 = vst [vmem:[%s7924_s3 + $0x68] sm:$0xff] %v3979_v22  ;;  %v3606_v19 = vmax.f32 %v2920_v13, 0.0  ;;  %v2923_v24 = vadd.f32 %v2922_v4, %v2154_v27 }
 0x1f1   :  { %v3796_v62 = vmul.f32 %v6289_v56, %v3608_v1  ;;  %v3609_v6 = vmax.f32 %v2931_v28, 0.0  ;;  %2517 = vmatmul.mubr.bf16.gmra.mrb[216].mxu0 %v5291_v57  ;;  %4879 = vmatmul.mubr.bf16.gmra.mrb[216].mxu1 %v5292_v47  ;;  %v5297_v57 = vld [vmem:[%s7922_s0 + $0x620] ss:$12 sps:$4 sm:$0xff]  }
 0x1f2   :  { %v3794_v30 = vmul.f32 %v6289_v56, %v3606_v19  ;;  %v3607_v38 = vmax.f32 %v2923_v24, 0.0  ;;  %2524 = vmatprep.mubr.bf16.mxu0 %v5293_v26  ;;  %4882 = vmatprep.mubr.bf16.mxu1 %v5295_v29  ;;  %v5300_v26 = vld [vmem:[%s7922_s0 + $0x638] ss:$12 sps:$4 sm:$0xff]  }
 0x1f3   :  { %v3984_v42 = vadd.f32 %v6309_v44, %v3796_v62  ;;  %v3797_v3 = vmul.f32 %v6289_v56, %v3609_v6 }
 0x1f4   :  { %v3982_v49 = vadd.f32 %v6309_v44, %v3794_v30  ;;  %v3795_v25 = vmul.f32 %v6289_v56, %v3607_v38  ;;  %v6497_v55 = vpop.f32.mrb[112].mxu0  ;;  %v4776_v11 = vpop.f32.mrb[112].mxu1  ;;  %v2191_v30 = vadd.f32 %v6078_v33, %v6281_v40 }
 0x1f5   :  { %4168 = vst [vmem:[%s7924_s3 + $0x90] sm:$0xff] %v3984_v42  ;;  %v3985_v5 = vadd.f32 %v6309_v44, %v3797_v3  ;;  %v2944_v2 = vadd.f32 %v4776_v11, %v2175_v31  ;;  %v2312_v21 = vpop.f32.mrb[113].mxu0  ;;  %v2935_v32 = vpop.f32.mrb[113].mxu1  ;;  %v2183_v42 = vadd.f32 %v6058_v45, %v6281_v40  ;;  %v2194_v11 = vadd.f32 %v6088_v17, %v6281_v40  ;;  %v5301_v45 = vld [vmem:[%s7922_s0 + $0x540] ss:$12 sps:$4 sm:$0xff]  }
 0x1f6   :  { %4166 = vst [vmem:[%s7924_s3 + $0x80] sm:$0xff] %v3982_v49  ;;  %v3983_v47 = vadd.f32 %v6309_v44, %v3795_v25  ;;  %v2936_v27 = vadd.f32 %v2935_v32, %v2167_v7  ;;  %v6517_v22 = vpop.f32.mrb[114].mxu0  ;;  %v4777_v13 = vpop.f32.mrb[114].mxu1  ;;  %v5302_v21 = vld [vmem:[%s7922_s0 + $0x650] ss:$12 sps:$4 sm:$0xff]   ;;  %v2186_v17 = vadd.f32 %v6068_v63, %v6281_v40 }
 0x1f7   :  { %4169 = vst [vmem:[%s7924_s3 + $0x98] sm:$0xff] %v3985_v5  ;;  %v3612_v53 = vmax.f32 %v2944_v2, 0.0  ;;  %v2947_v29 = vadd.f32 %v4777_v13, %v2178_v15  ;;  %v2315_v1 = vpop.f32.mrb[115].mxu0  ;;  %v2938_v28 = vpop.f32.mrb[115].mxu1 }
 0x1f8   :  { %4167 = vst [vmem:[%s7924_s3 + $0x88] sm:$0xff] %v3983_v47  ;;  %v3610_v61 = vmax.f32 %v2936_v27, 0.0  ;;  %v2939_v4 = vadd.f32 %v2938_v28, %v2170_v23  ;;  %v5303_v47 = vld [vmem:[%s7922_s0 + $0x55c] ss:$12 sps:$4 sm:$0xff]  }
 0x1f9   :  { %v3800_v19 = vmul.f32 %v6289_v56, %v3612_v53  ;;  %v3613_v24 = vmax.f32 %v2947_v29, 0.0  ;;  %2525 = vmatmul.mubr.bf16.gmra.mrb[220].mxu0 %v5296_v41  ;;  %4883 = vmatmul.mubr.bf16.gmra.mrb[220].mxu1 %v5297_v57  ;;  %v5305_v27 = vld [vmem:[%s7922_s0 + $0x668] ss:$12 sps:$4 sm:$0xff]  }
 0x1fa   :  { %v3798_v62 = vmul.f32 %v6289_v56, %v3610_v61  ;;  %v3611_v6 = vmax.f32 %v2939_v4, 0.0  ;;  %2532 = vmatprep.mubr.bf16.mxu0 %v5298_v8  ;;  %4886 = vmatprep.mubr.bf16.mxu1 %v5300_v26 }
 0x1fb   :  { %v3988_v38 = vadd.f32 %v6309_v44, %v3800_v19  ;;  %v3801_v31 = vmul.f32 %v6289_v56, %v3613_v24  ;;  %v2207_v19 = vadd.f32 %v6118_v9, %v6281_v40 }
 0x1fc   :  { %v3986_v3 = vadd.f32 %v6309_v44, %v3798_v62  ;;  %v3799_v7 = vmul.f32 %v6289_v56, %v3611_v6  ;;  %v6541_v49 = vpop.f32.mrb[116].mxu0  ;;  %v4780_v25 = vpop.f32.mrb[116].mxu1  ;;  %v2199_v6 = vadd.f32 %v6098_v35, %v6281_v40  ;;  %v5306_v35 = vld [vmem:[%s7922_s0 + $0x558] ss:$12 sps:$4 sm:$0xff]  }
 0x1fd   :  { %4172 = vst [vmem:[%s7924_s3 + $0xb0] sm:$0xff] %v3988_v38  ;;  %v3989_v33 = vadd.f32 %v6309_v44, %v3801_v31  ;;  %v2960_v15 = vadd.f32 %v4780_v25, %v2191_v30  ;;  %v2320_v5 = vpop.f32.mrb[117].mxu0  ;;  %v2951_v2 = vpop.f32.mrb[117].mxu1 }
 0x1fe   :  { %4170 = vst [vmem:[%s7924_s3 + $0xa0] sm:$0xff] %v3986_v3  ;;  %v3987_v32 = vadd.f32 %v6309_v44, %v3799_v7  ;;  %v2952_v41 = vadd.f32 %v2951_v2, %v2183_v42  ;;  %v6561_v57 = vpop.f32.mrb[118].mxu0  ;;  %v4781_v23 = vpop.f32.mrb[118].mxu1  ;;  %v2210_v3 = vadd.f32 %v6128_v59, %v6281_v40  ;;  %v2202_v59 = vadd.f32 %v6108_v10, %v6281_v40 }
 0x1ff   :  { %4173 = vst [vmem:[%s7924_s3 + $0xb8] sm:$0xff] %v3989_v33  ;;  %v3616_v63 = vmax.f32 %v2960_v15, 0.0  ;;  %v2963_v13 = vadd.f32 %v4781_v23, %v2194_v11  ;;  %v2323_v8 = vpop.f32.mrb[119].mxu0  ;;  %v2954_v26 = vpop.f32.mrb[119].mxu1  ;;  %v5307_v33 = vld [vmem:[%s7922_s0 + $0x680] ss:$12 sps:$4 sm:$0xff]  }
 0x200   :  { %4171 = vst [vmem:[%s7924_s3 + $0xa8] sm:$0xff] %v3987_v32  ;;  %v3614_v53 = vmax.f32 %v2952_v41, 0.0  ;;  %v2955_v29 = vadd.f32 %v2954_v26, %v2186_v17  ;;  %v5310_v17 = vld [vmem:[%s7922_s0 + $0x698] ss:$12 sps:$4 sm:$0xff]  }
 0x201   :  { %v3804_v1 = vmul.f32 %v6289_v56, %v3616_v63  ;;  %v3617_v28 = vmax.f32 %v2963_v13, 0.0  ;;  %2533 = vmatmul.mubr.bf16.gmra.mrb[224].mxu0 %v5301_v45  ;;  %4887 = vmatmul.mubr.bf16.gmra.mrb[224].mxu1 %v5302_v21  ;;  %v5308_v21 = vld [vmem:[%s7922_s0 + $0x574] ss:$12 sps:$4 sm:$0xff]  }
 0x202   :  { %v3802_v61 = vmul.f32 %v6289_v56, %v3614_v53  ;;  %v3615_v4 = vmax.f32 %v2955_v29, 0.0  ;;  %2540 = vmatprep.mubr.bf16.mxu0 %v5303_v47  ;;  %4890 = vmatprep.mubr.bf16.mxu1 %v5305_v27  ;;  %v2223_v53 = vadd.f32 %v6158_v36, %v6281_v40 }
 0x203   :  { %v3992_v24 = vadd.f32 %v6309_v44, %v3804_v1  ;;  %v3805_v62 = vmul.f32 %v6289_v56, %v3617_v28  ;;  %v2215_v28 = vadd.f32 %v6138_v34, %v6281_v40  ;;  %v5311_v34 = vld [vmem:[%s7922_s0 + $0x570] ss:$12 sps:$4 sm:$0xff]  }
 0x204   :  { %v3990_v30 = vadd.f32 %v6309_v44, %v3802_v61  ;;  %v3803_v38 = vmul.f32 %v6289_v56, %v3615_v4  ;;  %v6585_v31 = vpop.f32.mrb[120].mxu0  ;;  %v4784_v42 = vpop.f32.mrb[120].mxu1 }
 0x205   :  { %4176 = vst [vmem:[%s7924_s3 + $0xd0] sm:$0xff] %v3992_v24  ;;  %v3993_v9 = vadd.f32 %v6309_v44, %v3805_v62  ;;  %v2976_v7 = vadd.f32 %v4784_v42, %v2207_v19  ;;  %v2328_v25 = vpop.f32.mrb[121].mxu0  ;;  %v2967_v11 = vpop.f32.mrb[121].mxu1  ;;  %v2226_v62 = vadd.f32 %v6168_v0, %v6281_v40  ;;  %v5312_v42 = vld [vmem:[%s7922_s0 + $0x6b0] ss:$12 sps:$4 sm:$0xff]   ;;  %v2218_v0 = vadd.f32 %v6148_v51, %v6281_v40 }
 0x206   :  { %4174 = vst [vmem:[%s7924_s3 + $0xc0] sm:$0xff] %v3990_v30  ;;  %v3991_v15 = vadd.f32 %v6309_v44, %v3803_v38  ;;  %v2968_v5 = vadd.f32 %v2967_v11, %v2199_v6  ;;  %v6605_v2 = vpop.f32.mrb[122].mxu0  ;;  %v4785_v45 = vpop.f32.mrb[122].mxu1  ;;  %v5313_v11 = vld [vmem:[%s7922_s0 + $0x58c] ss:$12 sps:$4 sm:$0xff]  }
 0x207   :  { %4177 = vst [vmem:[%s7924_s3 + $0xd8] sm:$0xff] %v3993_v9  ;;  %v3620_v10 = vmax.f32 %v2976_v7, 0.0  ;;  %v2979_v32 = vadd.f32 %v4785_v45, %v2210_v3  ;;  %v2331_v41 = vpop.f32.mrb[123].mxu0  ;;  %v2970_v23 = vpop.f32.mrb[123].mxu1 }
 0x208   :  { %4175 = vst [vmem:[%s7924_s3 + $0xc8] sm:$0xff] %v3991_v15  ;;  %v3618_v47 = vmax.f32 %v2968_v5, 0.0  ;;  %v2971_v27 = vadd.f32 %v2970_v23, %v2202_v59  ;;  %v2239_v41 = vadd.f32 %v6198_v60, %v6281_v40 }
 0x209   :  { %v3808_v63 = vmul.f32 %v6289_v56, %v3620_v10  ;;  %v3621_v13 = vmax.f32 %v2979_v32, 0.0  ;;  %2541 = vmatmul.mubr.bf16.gmra.mrb[228].mxu0 %v5306_v35  ;;  %4891 = vmatmul.mubr.bf16.gmra.mrb[228].mxu1 %v5307_v33  ;;  %v5315_v35 = vld [vmem:[%s7922_s0 + $0x6c8] ss:$12 sps:$4 sm:$0xff]  }
 0x20a   :  { %v3806_v8 = vmul.f32 %v6289_v56, %v3618_v47  ;;  %v3619_v26 = vmax.f32 %v2971_v27, 0.0  ;;  %2548 = vmatprep.mubr.bf16.mxu0 %v5308_v21  ;;  %4894 = vmatprep.mubr.bf16.mxu1 %v5310_v17  ;;  %v2231_v27 = vadd.f32 %v6178_v18, %v6281_v40  ;;  %v5316_v18 = vld [vmem:[%s7922_s0 + $0x588] ss:$12 sps:$4 sm:$0xff]  }
 0x20b   :  { %v3996_v29 = vadd.f32 %v6309_v44, %v3808_v63  ;;  %v3809_v1 = vmul.f32 %v6289_v56, %v3621_v13 }
 0x20c   :  { %v3994_v61 = vadd.f32 %v6309_v44, %v3806_v8  ;;  %v3807_v4 = vmul.f32 %v6289_v56, %v3619_v26  ;;  %v6629_v19 = vpop.f32.mrb[124].mxu0  ;;  %v4788_v24 = vpop.f32.mrb[124].mxu1 }
 0x20d   :  { %4180 = vst [vmem:[%s7924_s3 + $0xf0] sm:$0xff] %v3996_v29  ;;  %v3997_v36 = vadd.f32 %v6309_v44, %v3809_v1  ;;  %v2992_v6 = vadd.f32 %v4788_v24, %v2223_v53  ;;  %v2336_v30 = vpop.f32.mrb[125].mxu0  ;;  %v2983_v38 = vpop.f32.mrb[125].mxu1  ;;  %v2242_v53 = vadd.f32 %v6208_v54, %v6281_v40  ;;  %v2234_v54 = vadd.f32 %v6188_v46, %v6281_v40 }
 0x20e   :  { %4178 = vst [vmem:[%s7924_s3 + $0xe0] sm:$0xff] %v3994_v61  ;;  %v3995_v3 = vadd.f32 %v6309_v44, %v3807_v4  ;;  %v2984_v9 = vadd.f32 %v2983_v38, %v2215_v28  ;;  %v6649_v7 = vpop.f32.mrb[126].mxu0  ;;  %v4789_v25 = vpop.f32.mrb[126].mxu1  ;;  %v5317_v61 = vld [vmem:[%s7922_s0 + $0x6e0] ss:$12 sps:$4 sm:$0xff]  }
 0x20f   :  { %4181 = vst [vmem:[%s7924_s3 + $0xf8] sm:$0xff] %v3997_v36  ;;  %v3624_v51 = vmax.f32 %v2992_v6, 0.0  ;;  %v2995_v33 = vadd.f32 %v4789_v25, %v2226_v62  ;;  %v2339_v59 = vpop.f32.mrb[127].mxu0  ;;  %v2986_v15 = vpop.f32.mrb[127].mxu1  ;;  %v5318_v6 = vld [vmem:[%s7922_s0 + $0x5a4] ss:$12 sps:$4 sm:$0xff]  }
 0x210   :  { %4179 = vst [vmem:[%s7924_s3 + $0xe8] sm:$0xff] %v3995_v3  ;;  %v3622_v5 = vmax.f32 %v2984_v9, 0.0  ;;  %v2987_v45 = vadd.f32 %v2986_v15, %v2218_v0  ;;  %v5320_v30 = vld [vmem:[%s7922_s0 + $0x6f8] ss:$12 sps:$4 sm:$0xff]   ;;  %v2247_v15 = vadd.f32 %v6218_v52, %v6281_v40  ;;  %v5321_v52 = vld [vmem:[%s7922_s0 + $0x5a0] ss:$12 sps:$4 sm:$0xff]  }
 0x211   :  { %v3812_v21 = vmul.f32 %v6289_v56, %v3624_v51  ;;  %v3625_v17 = vmax.f32 %v2995_v33, 0.0  ;;  %2549 = vmatmul.mubr.bf16.gmra.mrb[232].mxu0 %v5311_v34  ;;  %4895 = vmatmul.mubr.bf16.gmra.mrb[232].mxu1 %v5312_v42  ;;  %v2255_v51 = vadd.f32 %v6238_v16, %v6281_v40 }
 0x212   :  { %v3810_v10 = vmul.f32 %v6289_v56, %v3622_v5  ;;  %v3623_v32 = vmax.f32 %v2987_v45, 0.0  ;;  %2556 = vmatprep.mubr.bf16.mxu0 %v5313_v11  ;;  %4898 = vmatprep.mubr.bf16.mxu1 %v5315_v35 }
 0x213   :  { %v4000_v23 = vadd.f32 %v6309_v44, %v3812_v21  ;;  %v3813_v47 = vmul.f32 %v6289_v56, %v3625_v17 }
 0x214   :  { %v3998_v63 = vadd.f32 %v6309_v44, %v3810_v10  ;;  %v3811_v13 = vmul.f32 %v6289_v56, %v3623_v32  ;;  %v6673_v8 = vpop.f32.mrb[128].mxu0  ;;  %v4792_v26 = vpop.f32.mrb[128].mxu1  ;;  %v2258_v10 = vadd.f32 %v6248_v48, %v6281_v40 }
 0x215   :  { %4184 = vst [vmem:[%s7924_s3 + $0x110] sm:$0xff] %v4000_v23  ;;  %v4001_v60 = vadd.f32 %v6309_v44, %v3813_v47  ;;  %v3008_v29 = vadd.f32 %v4792_v26, %v2239_v41  ;;  %v2344_v1 = vpop.f32.mrb[129].mxu0  ;;  %v2999_v28 = vpop.f32.mrb[129].mxu1  ;;  %v5322_v47 = vld [vmem:[%s7922_s0 + $0x710] ss:$12 sps:$4 sm:$0xff]  }
 0x216   :  { %4182 = vst [vmem:[%s7924_s3 + $0x100] sm:$0xff] %v3998_v63  ;;  %v3999_v4 = vadd.f32 %v6309_v44, %v3811_v13  ;;  %v3000_v24 = vadd.f32 %v2999_v28, %v2231_v27  ;;  %v6693_v62 = vpop.f32.mrb[130].mxu0  ;;  %v4793_v36 = vpop.f32.mrb[130].mxu1  ;;  %v7976_v27 = vld [vmem:[#allocation43_spill] sm:$0xff] }
 0x217   :  { %4185 = vst [vmem:[%s7924_s3 + $0x118] sm:$0xff] %v4001_v60  ;;  %v3628_v46 = vmax.f32 %v3008_v29, 0.0  ;;  %v3011_v38 = vadd.f32 %v4793_v36, %v2242_v53  ;;  %v2347_v34 = vpop.f32.mrb[131].mxu0  ;;  %v3002_v42 = vpop.f32.mrb[131].mxu1  ;;  %v2250_v48 = vadd.f32 %v7976_v27, %v6281_v40  ;;  %v5323_v60 = vld [vmem:[%s7922_s0 + $0x5bc] ss:$12 sps:$4 sm:$0xff]  }
 0x218   :  { %4183 = vst [vmem:[%s7924_s3 + $0x108] sm:$0xff] %v3999_v4  ;;  %v3626_v0 = vmax.f32 %v3000_v24, 0.0  ;;  %v3003_v3 = vadd.f32 %v3002_v42, %v2234_v54  ;;  %v5325_v29 = vld [vmem:[%s7922_s0 + $0x728] ss:$12 sps:$4 sm:$0xff]  }
 0x219   :  { %v3816_v9 = vmul.f32 %v6289_v56, %v3628_v46  ;;  %v3629_v25 = vmax.f32 %v3011_v38, 0.0  ;;  %2557 = vmatmul.mubr.bf16.gmra.mrb[236].mxu0 %v5316_v18  ;;  %4899 = vmatmul.mubr.bf16.gmra.mrb[236].mxu1 %v5317_v61  ;;  %v7977_v46 = vld [vmem:[#allocation51_spill] sm:$0xff]  ;;  %v5328_v27 = vld [vmem:[%s7922_s0 + $0x5d4] ss:$12 sps:$4 sm:$0xff]  }
 0x21a   :  { %v3814_v11 = vmul.f32 %v6289_v56, %v3626_v0  ;;  %v3627_v35 = vmax.f32 %v3003_v3, 0.0  ;;  %2564 = vmatprep.mubr.bf16.mxu0 %v5318_v6  ;;  %4902 = vmatprep.mubr.bf16.mxu1 %v5320_v30  ;;  %v2271_v38 = vadd.f32 %v7977_v46, %v6281_v40  ;;  %v7978_v0 = vld [vmem:[#allocation47_spill] sm:$0xff] }
 0x21b   :  { %v4004_v33 = vadd.f32 %v6309_v44, %v3816_v9  ;;  %v3817_v59 = vmul.f32 %v6289_v56, %v3629_v25  ;;  %v2263_v3 = vadd.f32 %v7978_v0, %v6281_v40 }
 0x21c   :  { %v4002_v5 = vadd.f32 %v6309_v44, %v3814_v11  ;;  %v3815_v45 = vmul.f32 %v6289_v56, %v3627_v35  ;;  %v6717_v21 = vpop.f32.mrb[132].mxu0  ;;  %v4796_v17 = vpop.f32.mrb[132].mxu1 }
 0x21d   :  { %4188 = vst [vmem:[%s7924_s3 + $0x130] sm:$0xff] %v4004_v33  ;;  %v4005_v16 = vadd.f32 %v6309_v44, %v3817_v59  ;;  %v3024_v32 = vadd.f32 %v4796_v17, %v2255_v51  ;;  %v2352_v41 = vpop.f32.mrb[133].mxu0  ;;  %v3015_v23 = vpop.f32.mrb[133].mxu1  ;;  %v7979_v51 = vld [vmem:[#allocation52_spill] sm:$0xff]  ;;  %v5326_v17 = vld [vmem:[%s7922_s0 + $0x5b8] ss:$12 sps:$4 sm:$0xff]  }
 0x21e   :  { %4186 = vst [vmem:[%s7924_s3 + $0x120] sm:$0xff] %v4002_v5  ;;  %v4003_v63 = vadd.f32 %v6309_v44, %v3815_v45  ;;  %v3016_v13 = vadd.f32 %v3015_v23, %v2247_v15  ;;  %v6737_v26 = vpop.f32.mrb[134].mxu0  ;;  %v4797_v53 = vpop.f32.mrb[134].mxu1  ;;  %v2274_v33 = vadd.f32 %v7979_v51, %v6281_v40 }
 0x21f   :  { %4189 = vst [vmem:[%s7924_s3 + $0x138] sm:$0xff] %v4005_v16  ;;  %v3632_v1 = vmax.f32 %v3024_v32, 0.0  ;;  %v3027_v28 = vadd.f32 %v4797_v53, %v2258_v10  ;;  %v2355_v18 = vpop.f32.mrb[135].mxu0  ;;  %v3018_v61 = vpop.f32.mrb[135].mxu1  ;;  %v5327_v10 = vld [vmem:[%s7922_s0 + $0x740] ss:$12 sps:$4 sm:$0xff]  }
 0x220   :  { %4187 = vst [vmem:[%s7924_s3 + $0x128] sm:$0xff] %v4003_v63  ;;  %v3630_v54 = vmax.f32 %v3016_v13, 0.0  ;;  %v3019_v4 = vadd.f32 %v3018_v61, %v2250_v48  ;;  %v7980_v16 = vld [vmem:[#allocation49_spill] sm:$0xff] }
 0x221   :  { %v3820_v24 = vmul.f32 %v6289_v56, %v3632_v1  ;;  %v3633_v36 = vmax.f32 %v3027_v28, 0.0  ;;  %2565 = vmatmul.mubr.bf16.gmra.mrb[240].mxu0 %v5321_v52  ;;  %4903 = vmatmul.mubr.bf16.gmra.mrb[240].mxu1 %v5322_v47  ;;  %v2266_v32 = vadd.f32 %v7980_v16, %v6281_v40  ;;  %v5330_v48 = vld [vmem:[%s7922_s0 + $0x758] ss:$12 sps:$4 sm:$0xff]  }
 0x222   :  { %v3818_v6 = vmul.f32 %v6289_v56, %v3630_v54  ;;  %v3631_v30 = vmax.f32 %v3019_v4, 0.0  ;;  %2572 = vmatprep.mubr.bf16.mxu0 %v5323_v60  ;;  %4906 = vmatprep.mubr.bf16.mxu1 %v5325_v29  ;;  %v2287_v4 = vadd.f32 %v6363_v43, %v6281_v40 }
 0x223   :  { %v4008_v34 = vadd.f32 %v6309_v44, %v3820_v24  ;;  %v3821_v42 = vmul.f32 %v6289_v56, %v3633_v36 }
 0x224   :  { %v4006_v9 = vadd.f32 %v6309_v44, %v3818_v6  ;;  %v3819_v25 = vmul.f32 %v6289_v56, %v3631_v30  ;;  %v6761_v11 = vpop.f32.mrb[136].mxu0  ;;  %v4800_v35 = vpop.f32.mrb[136].mxu1  ;;  %v2279_v6 = vadd.f32 %v6319_v58, %v6281_v40  ;;  %v5331_v58 = vld [vmem:[%s7922_s0 + $0x5d0] ss:$12 sps:$4 sm:$0xff]  }
 0x225   :  { %4192 = vst [vmem:[%s7924_s3 + $0x150] sm:$0xff] %v4008_v34  ;;  %v4009_v59 = vadd.f32 %v6309_v44, %v3821_v42  ;;  %v3040_v15 = vadd.f32 %v4800_v35, %v2271_v38  ;;  %v2360_v5 = vpop.f32.mrb[137].mxu0  ;;  %v3031_v45 = vpop.f32.mrb[137].mxu1  ;;  %v2290_v42 = vadd.f32 %v6383_v12, %v6281_v40  ;;  %v2282_v12 = vadd.f32 %v6339_v20, %v6281_v40 }
 0x226   :  { %4190 = vst [vmem:[%s7924_s3 + $0x140] sm:$0xff] %v4006_v9  ;;  %v4007_v41 = vadd.f32 %v6309_v44, %v3819_v25  ;;  %v3032_v23 = vadd.f32 %v3031_v45, %v2263_v3  ;;  %v6781_v52 = vpop.f32.mrb[138].mxu0  ;;  %v4801_v47 = vpop.f32.mrb[138].mxu1  ;;  %v5332_v25 = vld [vmem:[%s7922_s0 + $0x770] ss:$12 sps:$4 sm:$0xff]  }
 0x227   :  { %4193 = vst [vmem:[%s7924_s3 + $0x158] sm:$0xff] %v4009_v59  ;;  %v3636_v63 = vmax.f32 %v3040_v15, 0.0  ;;  %v3043_v13 = vadd.f32 %v4801_v47, %v2274_v33  ;;  %v2363_v53 = vpop.f32.mrb[139].mxu0  ;;  %v3034_v60 = vpop.f32.mrb[139].mxu1  ;;  %v5333_v15 = vld [vmem:[%s7922_s0 + $0x5ec] ss:$12 sps:$4 sm:$0xff]  }
 0x228   :  { %4191 = vst [vmem:[%s7924_s3 + $0x148] sm:$0xff] %v4007_v41  ;;  %v3634_v29 = vmax.f32 %v3032_v23, 0.0  ;;  %v3035_v1 = vadd.f32 %v3034_v60, %v2266_v32  ;;  %v5335_v5 = vld [vmem:[%s7922_s0 + $0x788] ss:$12 sps:$4 sm:$0xff]   ;;  %v2295_v53 = vadd.f32 %v6409_v50, %v6281_v40 }
 0x229   :  { %v3824_v28 = vmul.f32 %v6289_v56, %v3636_v63  ;;  %v3637_v18 = vmax.f32 %v3043_v13, 0.0  ;;  %2573 = vmatmul.mubr.bf16.gmra.mrb[244].mxu0 %v5326_v17  ;;  %4907 = vmatmul.mubr.bf16.gmra.mrb[244].mxu1 %v5327_v10  ;;  %v5336_v50 = vld [vmem:[%s7922_s0 + $0x5e8] ss:$12 sps:$4 sm:$0xff]  }
 0x22a   :  { %v3822_v61 = vmul.f32 %v6289_v56, %v3634_v29  ;;  %v3635_v54 = vmax.f32 %v3035_v1, 0.0  ;;  %2580 = vmatprep.mubr.bf16.mxu0 %v5328_v27  ;;  %4910 = vmatprep.mubr.bf16.mxu1 %v5330_v48  ;;  %v2303_v48 = vadd.f32 %v6453_v39, %v6281_v40 }
 0x22b   :  { %v4012_v24 = vadd.f32 %v6309_v44, %v3824_v28  ;;  %v3825_v36 = vmul.f32 %v6289_v56, %v3637_v18  ;;  %v2306_v18 = vadd.f32 %v6473_v14, %v6281_v40  ;;  %v2298_v14 = vadd.f32 %v6429_v37, %v6281_v40 }
 0x22c   :  { %v4010_v30 = vadd.f32 %v6309_v44, %v3822_v61  ;;  %v3823_v46 = vmul.f32 %v6289_v56, %v3635_v54  ;;  %v6805_v38 = vpop.f32.mrb[140].mxu0  ;;  %v4804_v34 = vpop.f32.mrb[140].mxu1 }
 0x22d   :  { %4196 = vst [vmem:[%s7924_s3 + $0x170] sm:$0xff] %v4012_v24  ;;  %v4013_v43 = vadd.f32 %v6309_v44, %v3825_v36  ;;  %v3056_v0 = vadd.f32 %v4804_v34, %v2287_v4  ;;  %v2368_v3 = vpop.f32.mrb[141].mxu0  ;;  %v3047_v9 = vpop.f32.mrb[141].mxu1  ;;  %v5337_v24 = vld [vmem:[%s7922_s0 + $0x7a0] ss:$12 sps:$4 sm:$0xff]  }
 0x22e   :  { %4194 = vst [vmem:[%s7924_s3 + $0x160] sm:$0xff] %v4010_v30  ;;  %v4011_v35 = vadd.f32 %v6309_v44, %v3823_v46  ;;  %v3048_v51 = vadd.f32 %v3047_v9, %v2279_v6  ;;  %v6825_v33 = vpop.f32.mrb[142].mxu0  ;;  %v4805_v59 = vpop.f32.mrb[142].mxu1  ;;  %v5340_v34 = vld [vmem:[%s7922_s0 + $0x604] ss:$12 sps:$4 sm:$0xff]  }
 0x22f   :  { %4197 = vst [vmem:[%s7924_s3 + $0x178] sm:$0xff] %v4013_v43  ;;  %v3640_v20 = vmax.f32 %v3056_v0, 0.0  ;;  %v3059_v45 = vadd.f32 %v4805_v59, %v2290_v42  ;;  %v2371_v17 = vpop.f32.mrb[143].mxu0  ;;  %v3050_v10 = vpop.f32.mrb[143].mxu1  ;;  %v5341_v42 = vld [vmem:[%s7922_s0 + $0x7b8] ss:$12 sps:$4 sm:$0xff]   ;;  %v2319_v59 = vadd.f32 %v6541_v49, %v6281_v40 }
 0x230   :  { %4195 = vst [vmem:[%s7924_s3 + $0x168] sm:$0xff] %v4011_v35  ;;  %v3638_v16 = vmax.f32 %v3048_v51, 0.0  ;;  %v3051_v32 = vadd.f32 %v3050_v10, %v2282_v12 }
 0x231   :  { %v3828_v41 = vmul.f32 %v6289_v56, %v3640_v20  ;;  %v3641_v23 = vmax.f32 %v3059_v45, 0.0  ;;  %2581 = vmatmul.mubr.bf16.gmra.mrb[248].mxu0 %v5331_v58  ;;  %4911 = vmatmul.mubr.bf16.gmra.mrb[248].mxu1 %v5332_v25  ;;  %v2311_v20 = vadd.f32 %v6497_v55, %v6281_v40  ;;  %v5338_v55 = vld [vmem:[%s7922_s0 + $0x600] ss:$12 sps:$4 sm:$0xff]  }
 0x232   :  { %v3826_v47 = vmul.f32 %v6289_v56, %v3638_v16  ;;  %v3639_v27 = vmax.f32 %v3051_v32, 0.0  ;;  %2588 = vmatprep.mubr.bf16.mxu0 %v5333_v15  ;;  %4914 = vmatprep.mubr.bf16.mxu1 %v5335_v5  ;;  %v2322_v32 = vadd.f32 %v6561_v57, %v6281_v40  ;;  %v2314_v57 = vadd.f32 %v6517_v22, %v6281_v40 }
 0x233   :  { %v4016_v63 = vadd.f32 %v6309_v44, %v3828_v41  ;;  %v3829_v13 = vmul.f32 %v6289_v56, %v3641_v23 }
 0x234   :  { %v4014_v60 = vadd.f32 %v6309_v44, %v3826_v47  ;;  %v3827_v29 = vmul.f32 %v6289_v56, %v3639_v27  ;;  %v6849_v1 = vpop.f32.mrb[144].mxu0  ;;  %v4808_v28 = vpop.f32.mrb[144].mxu1  ;;  %v5342_v27 = vld [vmem:[%s7922_s0 + $0x7d0] ss:$12 sps:$4 sm:$0xff]  }
 0x235   :  { %4200 = vst [vmem:[%s7924_s3 + $0x190] sm:$0xff] %v4016_v63  ;;  %v4017_v39 = vadd.f32 %v6309_v44, %v3829_v13  ;;  %v3072_v61 = vadd.f32 %v4808_v28, %v2303_v48  ;;  %v2376_v54 = vpop.f32.mrb[145].mxu0  ;;  %v3063_v4 = vpop.f32.mrb[145].mxu1 }
 0x236   :  { %4198 = vst [vmem:[%s7924_s3 + $0x180] sm:$0xff] %v4014_v60  ;;  %v4015_v36 = vadd.f32 %v6309_v44, %v3827_v29  ;;  %v3064_v6 = vadd.f32 %v3063_v4, %v2295_v53  ;;  %v6869_v30 = vpop.f32.mrb[146].mxu0  ;;  %v4809_v46 = vpop.f32.mrb[146].mxu1  ;;  %v5345_v60 = vld [vmem:[%s7922_s0 + $0x61c] ss:$12 sps:$4 sm:$0xff]  }
 0x237   :  { %4201 = vst [vmem:[%s7924_s3 + $0x198] sm:$0xff] %v4017_v39  ;;  %v3644_v37 = vmax.f32 %v3072_v61, 0.0  ;;  %v3075_v43 = vadd.f32 %v4809_v46, %v2306_v18  ;;  %v2379_v0 = vpop.f32.mrb[147].mxu0  ;;  %v3066_v3 = vpop.f32.mrb[147].mxu1  ;;  %v5346_v29 = vld [vmem:[%s7922_s0 + $0x7e8] ss:$12 sps:$4 sm:$0xff]  }
 0x238   :  { %4199 = vst [vmem:[%s7924_s3 + $0x188] sm:$0xff] %v4015_v36  ;;  %v3642_v9 = vmax.f32 %v3064_v6, 0.0  ;;  %v3067_v58 = vadd.f32 %v3066_v3, %v2298_v14  ;;  %v2335_v36 = vadd.f32 %v6629_v19, %v6281_v40  ;;  %v2338_v3 = vadd.f32 %v6649_v7, %v6281_v40 }
 0x239   :  { %v3832_v25 = vmul.f32 %v6289_v56, %v3644_v37  ;;  %v3645_v12 = vmax.f32 %v3075_v43, 0.0  ;;  %2589 = vmatmul.mubr.bf16.gmra.mrb[252].mxu0 %v5336_v50  ;;  %4915 = vmatmul.mubr.bf16.gmra.mrb[252].mxu1 %v5337_v24  ;;  %v2330_v7 = vadd.f32 %v6605_v2, %v6281_v40 }
 0x23a   :  { %v3830_v35 = vmul.f32 %v6289_v56, %v3642_v9  ;;  %v3643_v51 = vmax.f32 %v3067_v58, 0.0  ;;  %2596 = vmatprep.mubr.bf16.mxu0 %v5340_v34  ;;  %4918 = vmatprep.mubr.bf16.mxu1 %v5341_v42  ;;  %v2327_v34 = vadd.f32 %v6585_v31, %v6281_v40  ;;  %v5343_v31 = vld [vmem:[%s7922_s0 + $0x618] ss:$12 sps:$4 sm:$0xff]  }
 0x23b   :  { %v4020_v15 = vadd.f32 %v6309_v44, %v3832_v25  ;;  %v3833_v5 = vmul.f32 %v6289_v56, %v3645_v12  ;;  %v5347_v12 = vld [vmem:[%s7922_s0 + $0x800] ss:$12 sps:$4 sm:$0xff]  }
 0x23c   :  { %v4018_v45 = vadd.f32 %v6309_v44, %v3830_v35  ;;  %v3831_v17 = vmul.f32 %v6289_v56, %v3643_v51  ;;  %v6893_v10 = vpop.f32.mrb[148].mxu0  ;;  %v4812_v16 = vpop.f32.mrb[148].mxu1 }
 0x23d   :  { %4204 = vst [vmem:[%s7924_s3 + $0x1b0] sm:$0xff] %v4020_v15  ;;  %v4021_v49 = vadd.f32 %v6309_v44, %v3833_v5  ;;  %v3088_v41 = vadd.f32 %v4812_v16, %v2319_v59  ;;  %v2384_v23 = vpop.f32.mrb[149].mxu0  ;;  %v3079_v47 = vpop.f32.mrb[149].mxu1  ;;  %v5350_v5 = vld [vmem:[%s7922_s0 + $0x634] ss:$12 sps:$4 sm:$0xff]  }
 0x23e   :  { %4202 = vst [vmem:[%s7924_s3 + $0x1a0] sm:$0xff] %v4018_v45  ;;  %v4019_v48 = vadd.f32 %v6309_v44, %v3831_v17  ;;  %v3080_v63 = vadd.f32 %v3079_v47, %v2311_v20  ;;  %v6913_v13 = vpop.f32.mrb[150].mxu0  ;;  %v4813_v53 = vpop.f32.mrb[150].mxu1  ;;  %v5351_v20 = vld [vmem:[%s7922_s0 + $0x818] ss:$12 sps:$4 sm:$0xff]  }
 0x23f   :  { %4205 = vst [vmem:[%s7924_s3 + $0x1b8] sm:$0xff] %v4021_v49  ;;  %v3648_v22 = vmax.f32 %v3088_v41, 0.0  ;;  %v3091_v28 = vadd.f32 %v4813_v53, %v2322_v32  ;;  %v2387_v18 = vpop.f32.mrb[151].mxu0  ;;  %v3082_v39 = vpop.f32.mrb[151].mxu1 }
 0x240   :  { %4203 = vst [vmem:[%s7924_s3 + $0x1a8] sm:$0xff] %v4019_v48  ;;  %v3646_v61 = vmax.f32 %v3080_v63, 0.0  ;;  %v3083_v54 = vadd.f32 %v3082_v39, %v2314_v57  ;;  %v2343_v63 = vadd.f32 %v6673_v8, %v6281_v40  ;;  %v5348_v8 = vld [vmem:[%s7922_s0 + $0x630] ss:$12 sps:$4 sm:$0xff]  }
 0x241   :  { %v3836_v4 = vmul.f32 %v6289_v56, %v3648_v22  ;;  %v3649_v50 = vmax.f32 %v3091_v28, 0.0  ;;  %2597 = vmatmul.mubr.bf16.gmra.mrb[0].mxu0 %v5338_v55  ;;  %4919 = vmatmul.mubr.bf16.gmra.mrb[0].mxu1 %v5342_v27  ;;  %v2351_v27 = vadd.f32 %v6717_v21, %v6281_v40  ;;  %v2354_v28 = vadd.f32 %v6737_v26, %v6281_v40 }
 0x242   :  { %v3834_v24 = vmul.f32 %v6289_v56, %v3646_v61  ;;  %v3647_v14 = vmax.f32 %v3083_v54, 0.0  ;;  %2604 = vmatprep.mubr.bf16.mxu0 %v5345_v60  ;;  %4922 = vmatprep.mubr.bf16.mxu1 %v5346_v29  ;;  %v5352_v54 = vld [vmem:[%s7922_s0 + $0x830] ss:$12 sps:$4 sm:$0xff]   ;;  %v2346_v26 = vadd.f32 %v6693_v62, %v6281_v40 }
 0x243   :  { %v4024_v6 = vadd.f32 %v6309_v44, %v3836_v4  ;;  %v3837_v46 = vmul.f32 %v6289_v56, %v3649_v50 }
 0x244   :  { %v4022_v42 = vadd.f32 %v6309_v44, %v3834_v24  ;;  %v3835_v37 = vmul.f32 %v6289_v56, %v3647_v14  ;;  %v6937_v43 = vpop.f32.mrb[152].mxu0  ;;  %v4816_v0 = vpop.f32.mrb[152].mxu1 }
 0x245   :  { %4208 = vst [vmem:[%s7924_s3 + $0x1d0] sm:$0xff] %v4024_v6  ;;  %v4025_v19 = vadd.f32 %v6309_v44, %v3837_v46  ;;  %v3104_v9 = vadd.f32 %v4816_v0, %v2335_v36  ;;  %v2392_v58 = vpop.f32.mrb[153].mxu0  ;;  %v3095_v25 = vpop.f32.mrb[153].mxu1  ;;  %v5355_v36 = vld [vmem:[%s7922_s0 + $0x64c] ss:$12 sps:$4 sm:$0xff]  }
 0x246   :  { %4206 = vst [vmem:[%s7924_s3 + $0x1c0] sm:$0xff] %v4022_v42  ;;  %v4023_v35 = vadd.f32 %v6309_v44, %v3835_v37  ;;  %v3096_v51 = vadd.f32 %v3095_v25, %v2327_v34  ;;  %v6957_v59 = vpop.f32.mrb[154].mxu0  ;;  %v4817_v15 = vpop.f32.mrb[154].mxu1  ;;  %v5356_v6 = vld [vmem:[%s7922_s0 + $0x848] ss:$12 sps:$4 sm:$0xff]   ;;  %v2367_v25 = vadd.f32 %v6805_v38, %v6281_v40 }
 0x247   :  { %4209 = vst [vmem:[%s7924_s3 + $0x1d8] sm:$0xff] %v4025_v19  ;;  %v3652_v2 = vmax.f32 %v3104_v9, 0.0  ;;  %v3107_v45 = vadd.f32 %v4817_v15, %v2338_v3  ;;  %v2395_v17 = vpop.f32.mrb[155].mxu0  ;;  %v3098_v16 = vpop.f32.mrb[155].mxu1 }
 0x248   :  { %4207 = vst [vmem:[%s7924_s3 + $0x1c8] sm:$0xff] %v4023_v35  ;;  %v3650_v32 = vmax.f32 %v3096_v51, 0.0  ;;  %v3099_v49 = vadd.f32 %v3098_v16, %v2330_v7  ;;  %v2359_v7 = vadd.f32 %v6761_v11, %v6281_v40  ;;  %v5353_v11 = vld [vmem:[%s7922_s0 + $0x648] ss:$12 sps:$4 sm:$0xff]   ;;  %v5357_v16 = vld [vmem:[%s7922_s0 + $0x860] ss:$12 sps:$4 sm:$0xff]  }
 0x249   :  { %v3840_v41 = vmul.f32 %v6289_v56, %v3652_v2  ;;  %v3653_v23 = vmax.f32 %v3107_v45, 0.0  ;;  %2605 = vmatmul.mubr.bf16.gmra.mrb[4].mxu0 %v5343_v31  ;;  %4923 = vmatmul.mubr.bf16.gmra.mrb[4].mxu1 %v5347_v12 }
 0x24a   :  { %v3838_v47 = vmul.f32 %v6289_v56, %v3650_v32  ;;  %v3651_v55 = vmax.f32 %v3099_v49, 0.0  ;;  %2612 = vmatprep.mubr.bf16.mxu0 %v5350_v5  ;;  %4926 = vmatprep.mubr.bf16.mxu1 %v5351_v20  ;;  %v2370_v20 = vadd.f32 %v6825_v33, %v6281_v40  ;;  %v2362_v33 = vadd.f32 %v6781_v52, %v6281_v40 }
 0x24b   :  { %v4028_v57 = vadd.f32 %v6309_v44, %v3840_v41  ;;  %v3841_v48 = vmul.f32 %v6289_v56, %v3653_v23 }
 0x24c   :  { %v4026_v53 = vadd.f32 %v6309_v44, %v3838_v47  ;;  %v3839_v60 = vmul.f32 %v6289_v56, %v3651_v55  ;;  %v6981_v29 = vpop.f32.mrb[156].mxu0  ;;  %v4820_v22 = vpop.f32.mrb[156].mxu1  ;;  %v5360_v47 = vld [vmem:[%s7922_s0 + $0x664] ss:$12 sps:$4 sm:$0xff]  }
 0x24d   :  { %4212 = vst [vmem:[%s7924_s3 + $0x1f0] sm:$0xff] %v4028_v57  ;;  %v4029_v21 = vadd.f32 %v6309_v44, %v3841_v48  ;;  %v3120_v18 = vadd.f32 %v4820_v22, %v2351_v27  ;;  %v2400_v39 = vpop.f32.mrb[157].mxu0  ;;  %v3111_v61 = vpop.f32.mrb[157].mxu1  ;;  %v5361_v55 = vld [vmem:[%s7922_s0 + $0x878] ss:$12 sps:$4 sm:$0xff]  }
 0x24e   :  { %4210 = vst [vmem:[%s7924_s3 + $0x1e0] sm:$0xff] %v4026_v53  ;;  %v4027_v4 = vadd.f32 %v6309_v44, %v3839_v60  ;;  %v3112_v50 = vadd.f32 %v3111_v61, %v2343_v63  ;;  %v7001_v24 = vpop.f32.mrb[158].mxu0  ;;  %v4821_v14 = vpop.f32.mrb[158].mxu1 }
 0x24f   :  { %4213 = vst [vmem:[%s7924_s3 + $0x1f8] sm:$0xff] %v4029_v21  ;;  %v3656_v62 = vmax.f32 %v3120_v18, 0.0  ;;  %v3123_v46 = vadd.f32 %v4821_v14, %v2354_v28  ;;  %v2403_v34 = vpop.f32.mrb[159].mxu0  ;;  %v3114_v42 = vpop.f32.mrb[159].mxu1  ;;  %v2383_v18 = vadd.f32 %v6893_v10, %v6281_v40  ;;  %v2386_v14 = vadd.f32 %v6913_v13, %v6281_v40 }
 0x250   :  { %4211 = vst [vmem:[%s7924_s3 + $0x1e8] sm:$0xff] %v4027_v4  ;;  %v3654_v37 = vmax.f32 %v3112_v50, 0.0  ;;  %v3115_v0 = vadd.f32 %v3114_v42, %v2346_v26  ;;  %v2378_v13 = vadd.f32 %v6869_v30, %v6281_v40 }
 0x251   :  { %v3844_v3 = vmul.f32 %v6289_v56, %v3656_v62  ;;  %v3657_v19 = vmax.f32 %v3123_v46, 0.0  ;;  %2613 = vmatmul.mubr.bf16.gmra.mrb[8].mxu0 %v5348_v8  ;;  %4927 = vmatmul.mubr.bf16.gmra.mrb[8].mxu1 %v5352_v54  ;;  %v2375_v8 = vadd.f32 %v6849_v1, %v6281_v40  ;;  %v5358_v1 = vld [vmem:[%s7922_s0 + $0x660] ss:$12 sps:$4 sm:$0xff]   ;;  %v5362_v46 = vld [vmem:[%s7922_s0 + $0x890] ss:$12 sps:$4 sm:$0xff]  }
 0x252   :  { %v3842_v9 = vmul.f32 %v6289_v56, %v3654_v37  ;;  %v3655_v58 = vmax.f32 %v3115_v0, 0.0  ;;  %2620 = vmatprep.mubr.bf16.mxu0 %v5355_v36  ;;  %4930 = vmatprep.mubr.bf16.mxu1 %v5356_v6 }
 0x253   :  { %v4032_v31 = vadd.f32 %v6309_v44, %v3844_v3  ;;  %v3845_v12 = vmul.f32 %v6289_v56, %v3657_v19 }
 0x254   :  { %v4030_v35 = vadd.f32 %v6309_v44, %v3842_v9  ;;  %v3843_v51 = vmul.f32 %v6289_v56, %v3655_v58  ;;  %v7025_v15 = vpop.f32.mrb[160].mxu0  ;;  %v4824_v5 = vpop.f32.mrb[160].mxu1 }
 0x255   :  { %4216 = vst [vmem:[%s7924_s3 + $0x210] sm:$0xff] %v4032_v31  ;;  %v4033_v38 = vadd.f32 %v6309_v44, %v3845_v12  ;;  %v3136_v2 = vadd.f32 %v4824_v5, %v2367_v25  ;;  %v2408_v45 = vpop.f32.mrb[161].mxu0  ;;  %v3127_v17 = vpop.f32.mrb[161].mxu1 }
 0x256   :  { %4214 = vst [vmem:[%s7924_s3 + $0x200] sm:$0xff] %v4030_v35  ;;  %v4031_v32 = vadd.f32 %v6309_v44, %v3843_v51  ;;  %v3128_v49 = vadd.f32 %v3127_v17, %v2359_v7  ;;  %v7045_v41 = vpop.f32.mrb[162].mxu0  ;;  %v4825_v23 = vpop.f32.mrb[162].mxu1  ;;  %v2399_v51 = vadd.f32 %v6981_v29, %v6281_v40 }
 0x257   :  { %4217 = vst [vmem:[%s7924_s3 + $0x218] sm:$0xff] %v4033_v38  ;;  %v3660_v52 = vmax.f32 %v3136_v2, 0.0  ;;  %v3139_v27 = vadd.f32 %v4825_v23, %v2370_v20  ;;  %v2411_v57 = vpop.f32.mrb[163].mxu0  ;;  %v3130_v48 = vpop.f32.mrb[163].mxu1  ;;  %v2391_v38 = vadd.f32 %v6937_v43, %v6281_v40  ;;  %v2394_v43 = vadd.f32 %v6957_v59, %v6281_v40 }
 0x258   :  { %4215 = vst [vmem:[%s7924_s3 + $0x208] sm:$0xff] %v4031_v32  ;;  %v3658_v63 = vmax.f32 %v3128_v49, 0.0  ;;  %v3131_v53 = vadd.f32 %v3130_v48, %v2362_v33 }
 0x259   :  { %v3848_v60 = vmul.f32 %v6289_v56, %v3660_v52  ;;  %v3661_v22 = vmax.f32 %v3139_v27, 0.0  ;;  %2621 = vmatmul.mubr.bf16.gmra.mrb[12].mxu0 %v5353_v11  ;;  %4931 = vmatmul.mubr.bf16.gmra.mrb[12].mxu1 %v5357_v16  ;;  %v2402_v16 = vadd.f32 %v7001_v24, %v6281_v40 }
 0x25a   :  { %v3846_v28 = vmul.f32 %v6289_v56, %v3658_v63  ;;  %v3659_v21 = vmax.f32 %v3131_v53, 0.0  ;;  %2628 = vmatprep.mubr.bf16.mxu0 %v5360_v47  ;;  %4934 = vmatprep.mubr.bf16.mxu1 %v5361_v55 }
 0x25b   :  { %v4036_v39 = vadd.f32 %v6309_v44, %v3848_v60  ;;  %v3849_v61 = vmul.f32 %v6289_v56, %v3661_v22 }
 0x25c   :  { %v4034_v54 = vadd.f32 %v6309_v44, %v3846_v28  ;;  %v3847_v26 = vmul.f32 %v6289_v56, %v3659_v21  ;;  %v2414_v4 = vpop.f32.mrb[164].mxu0  ;;  %v4828_v50 = vpop.f32.mrb[164].mxu1 }
 0x25d   :  { %4220 = vst [vmem:[%s7924_s3 + $0x230] sm:$0xff] %v4036_v39  ;;  %v4037_v10 = vadd.f32 %v6309_v44, %v3849_v61  ;;  %v3152_v36 = vadd.f32 %v4828_v50, %v2383_v18  ;;  %v2416_v6 = vpop.f32.mrb[165].mxu0  ;;  %v3143_v62 = vpop.f32.mrb[165].mxu1  ;;  %v2415_v21 = vadd.f32 %v2414_v4, %v6281_v40  ;;  %v2407_v61 = vadd.f32 %v7025_v15, %v6281_v40 }
 0x25e   :  { %4218 = vst [vmem:[%s7924_s3 + $0x220] sm:$0xff] %v4034_v54  ;;  %v4035_v34 = vadd.f32 %v6309_v44, %v3847_v26  ;;  %v3144_v42 = vadd.f32 %v3143_v62, %v2375_v8  ;;  %v2417_v37 = vpop.f32.mrb[166].mxu0  ;;  %v4829_v0 = vpop.f32.mrb[166].mxu1  ;;  %v2410_v15 = vadd.f32 %v7045_v41, %v6281_v40 }
 0x25f   :  { %4221 = vst [vmem:[%s7924_s3 + $0x238] sm:$0xff] %v4037_v10  ;;  %v3664_v3 = vmax.f32 %v3152_v36, 0.0  ;;  %v3155_v19 = vadd.f32 %v4829_v0, %v2386_v14  ;;  %v2419_v9 = vpop.f32.mrb[167].mxu0  ;;  %v3146_v58 = vpop.f32.mrb[167].mxu1  ;;  %v2418_v14 = vadd.f32 %v2417_v37, %v6281_v40 }
 0x260   :  { %4219 = vst [vmem:[%s7924_s3 + $0x228] sm:$0xff] %v4035_v34  ;;  %v3662_v30 = vmax.f32 %v3144_v42, 0.0  ;;  %v3147_v25 = vadd.f32 %v3146_v58, %v2378_v13 }
 0x261   :  { %v3852_v31 = vmul.f32 %v6289_v56, %v3664_v3  ;;  %v3665_v12 = vmax.f32 %v3155_v19, 0.0  ;;  %2629 = vmatmul.mubr.bf16.gmra.mrb[16].mxu0 %v5358_v1  ;;  %4935 = vmatmul.mubr.bf16.gmra.mrb[16].mxu1 %v5362_v46 }
 0x262   :  { %v3850_v7 = vmul.f32 %v6289_v56, %v3662_v30  ;;  %v3663_v35 = vmax.f32 %v3147_v25, 0.0 }
 0x263   :  { %v4040_v5 = vadd.f32 %v6309_v44, %v3852_v31  ;;  %v3853_v20 = vmul.f32 %v6289_v56, %v3665_v12 }
 0x264   :  { %v4038_v2 = vadd.f32 %v6309_v44, %v3850_v7  ;;  %v3851_v45 = vmul.f32 %v6289_v56, %v3663_v35  ;;  %v2422_v17 = vpop.f32.mrb[168].mxu0  ;;  %v4832_v11 = vpop.f32.mrb[168].mxu1 }
 0x265   :  { %4224 = vst [vmem:[%s7924_s3 + $0x250] sm:$0xff] %v4040_v5  ;;  %v4041_v29 = vadd.f32 %v6309_v44, %v3853_v20  ;;  %v3168_v33 = vadd.f32 %v4832_v11, %v2399_v51  ;;  %v2424_v32 = vpop.f32.mrb[169].mxu0  ;;  %v3159_v49 = vpop.f32.mrb[169].mxu1  ;;  %v2423_v7 = vadd.f32 %v2422_v17, %v6281_v40 }
 0x266   :  { %4222 = vst [vmem:[%s7924_s3 + $0x240] sm:$0xff] %v4038_v2  ;;  %v4039_v23 = vadd.f32 %v6309_v44, %v3851_v45  ;;  %v3160_v47 = vadd.f32 %v3159_v49, %v2391_v38  ;;  %v2425_v24 = vpop.f32.mrb[170].mxu0  ;;  %v4833_v55 = vpop.f32.mrb[170].mxu1 }
 0x267   :  { %4225 = vst [vmem:[%s7924_s3 + $0x258] sm:$0xff] %v4041_v29  ;;  %v3668_v52 = vmax.f32 %v3168_v33, 0.0  ;;  %v3171_v27 = vadd.f32 %v4833_v55, %v2402_v16  ;;  %v2427_v57 = vpop.f32.mrb[171].mxu0  ;;  %v3162_v48 = vpop.f32.mrb[171].mxu1  ;;  %v2426_v29 = vadd.f32 %v2425_v24, %v6281_v40 }
 0x268   :  { %4223 = vst [vmem:[%s7924_s3 + $0x248] sm:$0xff] %v4039_v23  ;;  %v3666_v59 = vmax.f32 %v3160_v47, 0.0  ;;  %v3163_v63 = vadd.f32 %v3162_v48, %v2394_v43 }
 0x269   :  { %v3856_v53 = vmul.f32 %v6289_v56, %v3668_v52  ;;  %v3669_v60 = vmax.f32 %v3171_v27, 0.0 }
 0x26a   :  { %v3854_v22 = vmul.f32 %v6289_v56, %v3666_v59  ;;  %v3667_v28 = vmax.f32 %v3163_v63, 0.0 }
 0x26b   :  { %v4044_v18 = vadd.f32 %v6309_v44, %v3856_v53  ;;  %v3857_v39 = vmul.f32 %v6289_v56, %v3669_v60 }
 0x26c   :  { %v4042_v8 = vadd.f32 %v6309_v44, %v3854_v22  ;;  %v3855_v54 = vmul.f32 %v6289_v56, %v3667_v28  ;;  %v2430_v26 = vpop.f32.mrb[172].mxu0  ;;  %v4836_v50 = vpop.f32.mrb[172].mxu1 }
 0x26d   :  { %4228 = vst [vmem:[%s7924_s3 + $0x270] sm:$0xff] %v4044_v18  ;;  %v4045_v4 = vadd.f32 %v6309_v44, %v3857_v39  ;;  %v3184_v10 = vadd.f32 %v4836_v50, %v2415_v21  ;;  %v2432_v36 = vpop.f32.mrb[173].mxu0  ;;  %v3175_v6 = vpop.f32.mrb[173].mxu1  ;;  %v2431_v25 = vadd.f32 %v2430_v26, %v6281_v40 }
 0x26e   :  { %4226 = vst [vmem:[%s7924_s3 + $0x260] sm:$0xff] %v4042_v8  ;;  %v4043_v62 = vadd.f32 %v6309_v44, %v3855_v54  ;;  %v3176_v1 = vadd.f32 %v3175_v6, %v2407_v61  ;;  %v2433_v46 = vpop.f32.mrb[174].mxu0  ;;  %v4837_v13 = vpop.f32.mrb[174].mxu1 }
 0x26f   :  { %4229 = vst [vmem:[%s7924_s3 + $0x278] sm:$0xff] %v4045_v4  ;;  %v3672_v34 = vmax.f32 %v3184_v10, 0.0  ;;  %v3187_v42 = vadd.f32 %v4837_v13, %v2418_v14  ;;  %v2435_v37 = vpop.f32.mrb[175].mxu0  ;;  %v3178_v0 = vpop.f32.mrb[175].mxu1  ;;  %v2434_v38 = vadd.f32 %v2433_v46, %v6281_v40 }
 0x270   :  { %4227 = vst [vmem:[%s7924_s3 + $0x268] sm:$0xff] %v4043_v62  ;;  %v3670_v41 = vmax.f32 %v3176_v1, 0.0  ;;  %v3179_v3 = vadd.f32 %v3178_v0, %v2410_v15 }
 0x271   :  { %v3860_v19 = vmul.f32 %v6289_v56, %v3672_v34  ;;  %v3673_v9 = vmax.f32 %v3187_v42, 0.0 }
 0x272   :  { %v3858_v58 = vmul.f32 %v6289_v56, %v3670_v41  ;;  %v3671_v30 = vmax.f32 %v3179_v3, 0.0 }
 0x273   :  { %v4048_v31 = vadd.f32 %v6309_v44, %v3860_v19  ;;  %v3861_v12 = vmul.f32 %v6289_v56, %v3673_v9 }
 0x274   :  { %v4046_v35 = vadd.f32 %v6309_v44, %v3858_v58  ;;  %v3859_v51 = vmul.f32 %v6289_v56, %v3671_v30  ;;  %v2438_v5 = vpop.f32.mrb[176].mxu0  ;;  %v4840_v20 = vpop.f32.mrb[176].mxu1 }
 0x275   :  { %4232 = vst [vmem:[%s7924_s3 + $0x290] sm:$0xff] %v4048_v31  ;;  %v4049_v2 = vadd.f32 %v6309_v44, %v3861_v12  ;;  %v3200_v45 = vadd.f32 %v4840_v20, %v2431_v25  ;;  %v2440_v11 = vpop.f32.mrb[177].mxu0  ;;  %v3191_v16 = vpop.f32.mrb[177].mxu1  ;;  %v2439_v60 = vadd.f32 %v2438_v5, %v6281_v40 }
 0x276   :  { %4230 = vst [vmem:[%s7924_s3 + $0x280] sm:$0xff] %v4046_v35  ;;  %v4047_v17 = vadd.f32 %v6309_v44, %v3859_v51  ;;  %v3192_v33 = vadd.f32 %v3191_v16, %v2423_v7  ;;  %v2441_v32 = vpop.f32.mrb[178].mxu0  ;;  %v4841_v49 = vpop.f32.mrb[178].mxu1 }
 0x277   :  { %4233 = vst [vmem:[%s7924_s3 + $0x298] sm:$0xff] %v4049_v2  ;;  %v3676_v43 = vmax.f32 %v3200_v45, 0.0  ;;  %v3203_v23 = vadd.f32 %v4841_v49, %v2434_v38  ;;  %v2443_v47 = vpop.f32.mrb[179].mxu0  ;;  %v3194_v55 = vpop.f32.mrb[179].mxu1  ;;  %v2442_v26 = vadd.f32 %v2441_v32, %v6281_v40 }
 0x278   :  { %4231 = vst [vmem:[%s7924_s3 + $0x288] sm:$0xff] %v4047_v17  ;;  %v3674_v24 = vmax.f32 %v3192_v33, 0.0  ;;  %v3195_v52 = vadd.f32 %v3194_v55, %v2426_v29 }
 0x279   :  { %v3864_v27 = vmul.f32 %v6289_v56, %v3676_v43  ;;  %v3677_v57 = vmax.f32 %v3203_v23, 0.0 }
 0x27a   :  { %v3862_v48 = vmul.f32 %v6289_v56, %v3674_v24  ;;  %v3675_v59 = vmax.f32 %v3195_v52, 0.0 }
 0x27b   :  { %v4052_v63 = vadd.f32 %v6309_v44, %v3864_v27  ;;  %v3865_v53 = vmul.f32 %v6289_v56, %v3677_v57 }
 0x27c   :  { %v4050_v22 = vadd.f32 %v6309_v44, %v3862_v48  ;;  %v3863_v28 = vmul.f32 %v6289_v56, %v3675_v59  ;;  %v2446_v21 = vpop.f32.mrb[180].mxu0  ;;  %v4844_v18 = vpop.f32.mrb[180].mxu1 }
 0x27d   :  { %4236 = vst [vmem:[%s7924_s3 + $0x2b0] sm:$0xff] %v4052_v63  ;;  %v4053_v39 = vadd.f32 %v6309_v44, %v3865_v53  ;;  %v2447_v61 = vadd.f32 %v2446_v21, %v6281_v40  ;;  %v2448_v8 = vpop.f32.mrb[181].mxu0  ;;  %v3207_v54 = vpop.f32.mrb[181].mxu1 }
 0x27e   :  { %4234 = vst [vmem:[%s7924_s3 + $0x2a0] sm:$0xff] %v4050_v22  ;;  %v4051_v50 = vadd.f32 %v6309_v44, %v3863_v28  ;;  %v3208_v14 = vadd.f32 %v3207_v54, %v2439_v60  ;;  %v2449_v4 = vpop.f32.mrb[182].mxu0  ;;  %v4845_v10 = vpop.f32.mrb[182].mxu1 }
 0x27f   :  { %4237 = vst [vmem:[%s7924_s3 + $0x2b8] sm:$0xff] %v4053_v39  ;;  %v3216_v36 = vadd.f32 %v4844_v18, %v2447_v61  ;;  %v2450_v6 = vadd.f32 %v2449_v4, %v6281_v40  ;;  %v2451_v15 = vpop.f32.mrb[183].mxu0  ;;  %v3210_v62 = vpop.f32.mrb[183].mxu1 }
 0x280   :  { %4235 = vst [vmem:[%s7924_s3 + $0x2a8] sm:$0xff] %v4051_v50  ;;  %v3678_v1 = vmax.f32 %v3208_v14, 0.0  ;;  %v3211_v46 = vadd.f32 %v3210_v62, %v2442_v26 }
 0x281   :  { %v3680_v13 = vmax.f32 %v3216_v36, 0.0  ;;  %v3219_v34 = vadd.f32 %v4845_v10, %v2450_v6 }
 0x282   :  { %v3866_v42 = vmul.f32 %v6289_v56, %v3678_v1  ;;  %v3679_v37 = vmax.f32 %v3211_v46, 0.0 }
 0x283   :  { %v3868_v0 = vmul.f32 %v6289_v56, %v3680_v13  ;;  %v3681_v41 = vmax.f32 %v3219_v34, 0.0 }
 0x284   :  { %v4054_v3 = vadd.f32 %v6309_v44, %v3866_v42  ;;  %v3867_v19 = vmul.f32 %v6289_v56, %v3679_v37  ;;  %v2454_v9 = vpop.f32.mrb[184].mxu0  ;;  %v4848_v58 = vpop.f32.mrb[184].mxu1 }
 0x285   :  { %v4056_v30 = vadd.f32 %v6309_v44, %v3868_v0  ;;  %v3869_v25 = vmul.f32 %v6289_v56, %v3681_v41  ;;  %v2455_v31 = vadd.f32 %v2454_v9, %v6281_v40  ;;  %v2456_v12 = vpop.f32.mrb[185].mxu0  ;;  %v3223_v7 = vpop.f32.mrb[185].mxu1 }
 0x286   :  { %4238 = vst [vmem:[%s7924_s3 + $0x2c0] sm:$0xff] %v4054_v3  ;;  %v4055_v35 = vadd.f32 %v6309_v44, %v3867_v19  ;;  %v2457_v51 = vpop.f32.mrb[186].mxu0  ;;  %v4849_v5 = vpop.f32.mrb[186].mxu1 }
 0x287   :  { %4240 = vst [vmem:[%s7924_s3 + $0x2d0] sm:$0xff] %v4056_v30  ;;  %v4057_v20 = vadd.f32 %v6309_v44, %v3869_v25  ;;  %v3224_v38 = vadd.f32 %v3223_v7, %v2455_v31  ;;  %v2458_v2 = vadd.f32 %v2457_v51, %v6281_v40  ;;  %v2459_v45 = vpop.f32.mrb[187].mxu0  ;;  %v3226_v11 = vpop.f32.mrb[187].mxu1 }
 0x288   :  { %4239 = vst [vmem:[%s7924_s3 + $0x2c8] sm:$0xff] %v4055_v35 }
 0x289   :  { %4241 = vst [vmem:[%s7924_s3 + $0x2d8] sm:$0xff] %v4057_v20  ;;  %v3682_v16 = vmax.f32 %v3224_v38, 0.0  ;;  %v3227_v29 = vadd.f32 %v3226_v11, %v2458_v2 }
 0x28b   :  { %v3870_v17 = vmul.f32 %v6289_v56, %v3682_v16  ;;  %v3683_v33 = vmax.f32 %v3227_v29, 0.0 }
 0x28c   :  { %v2462_v32 = vpop.f32.mrb[188].mxu0  ;;  %v4852_v49 = vpop.f32.mrb[188].mxu1 }
 0x28d   :  { %v4058_v43 = vadd.f32 %v6309_v44, %v3870_v17  ;;  %v3871_v23 = vmul.f32 %v6289_v56, %v3683_v33  ;;  %v2463_v47 = vadd.f32 %v2462_v32, %v6281_v40  ;;  %v2464_v55 = vpop.f32.mrb[189].mxu0  ;;  %v3239_v24 = vpop.f32.mrb[189].mxu1 }
 0x28e   :  { %v2465_v52 = vpop.f32.mrb[190].mxu0  ;;  %v4853_v27 = vpop.f32.mrb[190].mxu1 }
 0x28f   :  { %4242 = vst [vmem:[%s7924_s3 + $0x2e0] sm:$0xff] %v4058_v43  ;;  %v4059_v57 = vadd.f32 %v6309_v44, %v3871_v23  ;;  %v3232_v48 = vadd.f32 %v4848_v58, %v2463_v47  ;;  %v2466_v59 = vadd.f32 %v2465_v52, %v6281_v40  ;;  %v2467_v63 = vpop.f32.mrb[191].mxu0  ;;  %v3242_v53 = vpop.f32.mrb[191].mxu1 }
 0x291   :  { %4243 = vst [vmem:[%s7924_s3 + $0x2e8] sm:$0xff] %v4059_v57  ;;  %v3684_v60 = vmax.f32 %v3232_v48, 0.0  ;;  %v3235_v22 = vadd.f32 %v4849_v5, %v2466_v59 }
 0x293   :  { %v3872_v28 = vmul.f32 %v6289_v56, %v3684_v60  ;;  %v3685_v21 = vmax.f32 %v3235_v22, 0.0 }
 0x294   :  { %v2470_v18 = vpop.f32.mrb[192].mxu0  ;;  %v7230_v39 = vpop.f32.mrb[192].mxu1 }
 0x295   :  { %v4060_v61 = vadd.f32 %v6309_v44, %v3872_v28  ;;  %v3873_v8 = vmul.f32 %v6289_v56, %v3685_v21  ;;  %v2471_v54 = vadd.f32 %v2470_v18, %v6281_v40  ;;  %v2472_v26 = vpop.f32.mrb[193].mxu0  ;;  %v3255_v50 = vpop.f32.mrb[193].mxu1 }
 0x296   :  { %v2473_v14 = vpop.f32.mrb[194].mxu0  ;;  %v7235_v4 = vpop.f32.mrb[194].mxu1 }
 0x297   :  { %4244 = vst [vmem:[%s7924_s3 + $0x2f0] sm:$0xff] %v4060_v61  ;;  %v4061_v10 = vadd.f32 %v6309_v44, %v3873_v8  ;;  %v3240_v36 = vadd.f32 %v3239_v24, %v2471_v54  ;;  %v2474_v6 = vadd.f32 %v2473_v14, %v6281_v40  ;;  %v2475_v15 = vpop.f32.mrb[195].mxu0  ;;  %v3258_v62 = vpop.f32.mrb[195].mxu1 }
 0x299   :  { %4245 = vst [vmem:[%s7924_s3 + $0x2f8] sm:$0xff] %v4061_v10  ;;  %v3686_v1 = vmax.f32 %v3240_v36, 0.0  ;;  %v3243_v46 = vadd.f32 %v3242_v53, %v2474_v6 }
 0x29b   :  { %v3874_v13 = vmul.f32 %v6289_v56, %v3686_v1  ;;  %v3687_v34 = vmax.f32 %v3243_v46, 0.0 }
 0x29c   :  { %v2478_v42 = vpop.f32.mrb[196].mxu0  ;;  %v7246_v37 = vpop.f32.mrb[196].mxu1 }
 0x29d   :  { %v4062_v0 = vadd.f32 %v6309_v44, %v3874_v13  ;;  %v3875_v41 = vmul.f32 %v6289_v56, %v3687_v34  ;;  %v2479_v3 = vadd.f32 %v2478_v42, %v6281_v40  ;;  %v2480_v19 = vpop.f32.mrb[197].mxu0  ;;  %v7251_v9 = vpop.f32.mrb[197].mxu1 }
 0x29e   :  { %v2481_v58 = vpop.f32.mrb[198].mxu0  ;;  %v7253_v30 = vpop.f32.mrb[198].mxu1 }
 0x29f   :  { %4246 = vst [vmem:[%s7924_s3 + $0x300] sm:$0xff] %v4062_v0  ;;  %v4063_v25 = vadd.f32 %v6309_v44, %v3875_v41  ;;  %v3248_v31 = vadd.f32 %v4852_v49, %v2479_v3  ;;  %v2482_v12 = vadd.f32 %v2481_v58, %v6281_v40  ;;  %v2483_v7 = vpop.f32.mrb[199].mxu0  ;;  %v7260_v35 = vpop.f32.mrb[199].mxu1 }
 0x2a1   :  { %4247 = vst [vmem:[%s7924_s3 + $0x308] sm:$0xff] %v4063_v25  ;;  %v3688_v51 = vmax.f32 %v3248_v31, 0.0  ;;  %v3251_v5 = vadd.f32 %v4853_v27, %v2482_v12 }
 0x2a3   :  { %v3876_v20 = vmul.f32 %v6289_v56, %v3688_v51  ;;  %v3689_v38 = vmax.f32 %v3251_v5, 0.0 }
 0x2a4   :  { %v2486_v2 = vpop.f32.mrb[200].mxu0  ;;  %v7266_v45 = vpop.f32.mrb[200].mxu1 }
 0x2a5   :  { %v4064_v11 = vadd.f32 %v6309_v44, %v3876_v20  ;;  %v3877_v16 = vmul.f32 %v6289_v56, %v3689_v38  ;;  %v2487_v29 = vadd.f32 %v2486_v2, %v6281_v40  ;;  %v2488_v17 = vpop.f32.mrb[201].mxu0  ;;  %v7271_v33 = vpop.f32.mrb[201].mxu1 }
 0x2a6   :  { %v2489_v32 = vpop.f32.mrb[202].mxu0  ;;  %v7273_v49 = vpop.f32.mrb[202].mxu1 }
 0x2a7   :  { %4248 = vst [vmem:[%s7924_s3 + $0x310] sm:$0xff] %v4064_v11  ;;  %v4065_v43 = vadd.f32 %v6309_v44, %v3877_v16  ;;  %v3256_v23 = vadd.f32 %v3255_v50, %v2487_v29  ;;  %v2490_v47 = vadd.f32 %v2489_v32, %v6281_v40  ;;  %v2491_v55 = vpop.f32.mrb[203].mxu0  ;;  %v7280_v24 = vpop.f32.mrb[203].mxu1 }
 0x2a9   :  { %4249 = vst [vmem:[%s7924_s3 + $0x318] sm:$0xff] %v4065_v43  ;;  %v3690_v52 = vmax.f32 %v3256_v23, 0.0  ;;  %v3259_v27 = vadd.f32 %v3258_v62, %v2490_v47 }
 0x2ab   :  { %v3878_v57 = vmul.f32 %v6289_v56, %v3690_v52  ;;  %v3691_v48 = vmax.f32 %v3259_v27, 0.0 }
 0x2ac   :  { %v2494_v59 = vpop.f32.mrb[204].mxu0  ;;  %v7286_v63 = vpop.f32.mrb[204].mxu1 }
 0x2ad   :  { %v4066_v53 = vadd.f32 %v6309_v44, %v3878_v57  ;;  %v3879_v60 = vmul.f32 %v6289_v56, %v3691_v48  ;;  %v2495_v22 = vadd.f32 %v2494_v59, %v6281_v40  ;;  %v2496_v28 = vpop.f32.mrb[205].mxu0  ;;  %v7291_v21 = vpop.f32.mrb[205].mxu1 }
 0x2ae   :  { %v2497_v18 = vpop.f32.mrb[206].mxu0  ;;  %v7293_v61 = vpop.f32.mrb[206].mxu1 }
 0x2af   :  { %4250 = vst [vmem:[%s7924_s3 + $0x320] sm:$0xff] %v4066_v53  ;;  %v4067_v8 = vadd.f32 %v6309_v44, %v3879_v60  ;;  %v3264_v54 = vadd.f32 %v7230_v39, %v2495_v22  ;;  %v2498_v26 = vadd.f32 %v2497_v18, %v6281_v40  ;;  %v2499_v50 = vpop.f32.mrb[207].mxu0  ;;  %v7301_v14 = vpop.f32.mrb[207].mxu1 }
 0x2b1   :  { %4251 = vst [vmem:[%s7924_s3 + $0x328] sm:$0xff] %v4067_v8  ;;  %v3692_v10 = vmax.f32 %v3264_v54, 0.0  ;;  %v3267_v36 = vadd.f32 %v7235_v4, %v2498_v26 }
 0x2b3   :  { %v3880_v6 = vmul.f32 %v6289_v56, %v3692_v10  ;;  %v3693_v15 = vmax.f32 %v3267_v36, 0.0 }
 0x2b4   :  { %v2502_v62 = vpop.f32.mrb[208].mxu0  ;;  %v7308_v1 = vpop.f32.mrb[208].mxu1 }
 0x2b5   :  { %v4068_v39 = vadd.f32 %v6309_v44, %v3880_v6  ;;  %v3881_v46 = vmul.f32 %v6289_v56, %v3693_v15  ;;  %v2503_v13 = vadd.f32 %v2502_v62, %v6281_v40  ;;  %v2504_v34 = vpop.f32.mrb[209].mxu0  ;;  %v7313_v42 = vpop.f32.mrb[209].mxu1 }
 0x2b6   :  { %v2505_v0 = vpop.f32.mrb[210].mxu0  ;;  %v7315_v41 = vpop.f32.mrb[210].mxu1 }
 0x2b7   :  { %4252 = vst [vmem:[%s7924_s3 + $0x330] sm:$0xff] %v4068_v39  ;;  %v4069_v4 = vadd.f32 %v6309_v44, %v3881_v46  ;;  %v3272_v3 = vadd.f32 %v7251_v9, %v2503_v13  ;;  %v2506_v19 = vadd.f32 %v2505_v0, %v6281_v40  ;;  %v2507_v58 = vpop.f32.mrb[211].mxu0  ;;  %v7323_v25 = vpop.f32.mrb[211].mxu1 }
 0x2b9   :  { %4253 = vst [vmem:[%s7924_s3 + $0x338] sm:$0xff] %v4069_v4  ;;  %v3694_v31 = vmax.f32 %v3272_v3, 0.0  ;;  %v3275_v12 = vadd.f32 %v7260_v35, %v2506_v19 }
 0x2bb   :  { %v3882_v7 = vmul.f32 %v6289_v56, %v3694_v31  ;;  %v3695_v51 = vmax.f32 %v3275_v12, 0.0 }
 0x2bc   :  { %v2510_v5 = vpop.f32.mrb[212].mxu0  ;;  %v7330_v20 = vpop.f32.mrb[212].mxu1 }
 0x2bd   :  { %v4070_v9 = vadd.f32 %v6309_v44, %v3882_v7  ;;  %v3883_v38 = vmul.f32 %v6289_v56, %v3695_v51  ;;  %v2511_v2 = vadd.f32 %v2510_v5, %v6281_v40  ;;  %v2512_v11 = vpop.f32.mrb[213].mxu0  ;;  %v7335_v16 = vpop.f32.mrb[213].mxu1 }
 0x2be   :  { %v2513_v29 = vpop.f32.mrb[214].mxu0  ;;  %v7337_v17 = vpop.f32.mrb[214].mxu1 }
 0x2bf   :  { %4254 = vst [vmem:[%s7924_s3 + $0x340] sm:$0xff] %v4070_v9  ;;  %v4071_v35 = vadd.f32 %v6309_v44, %v3883_v38  ;;  %v3280_v32 = vadd.f32 %v7246_v37, %v2511_v2  ;;  %v2514_v43 = vadd.f32 %v2513_v29, %v6281_v40  ;;  %v2515_v23 = vpop.f32.mrb[215].mxu0  ;;  %v7345_v47 = vpop.f32.mrb[215].mxu1 }
 0x2c1   :  { %4255 = vst [vmem:[%s7924_s3 + $0x348] sm:$0xff] %v4071_v35  ;;  %v3696_v55 = vmax.f32 %v3280_v32, 0.0  ;;  %v3283_v52 = vadd.f32 %v7253_v30, %v2514_v43 }
 0x2c3   :  { %v3884_v27 = vmul.f32 %v6289_v56, %v3696_v55  ;;  %v3697_v57 = vmax.f32 %v3283_v52, 0.0 }
 0x2c4   :  { %v2518_v48 = vpop.f32.mrb[216].mxu0  ;;  %v7352_v59 = vpop.f32.mrb[216].mxu1 }
 0x2c5   :  { %v4072_v37 = vadd.f32 %v6309_v44, %v3884_v27  ;;  %v3885_v53 = vmul.f32 %v6289_v56, %v3697_v57  ;;  %v2519_v60 = vadd.f32 %v2518_v48, %v6281_v40  ;;  %v2520_v22 = vpop.f32.mrb[217].mxu0  ;;  %v7357_v28 = vpop.f32.mrb[217].mxu1 }
 0x2c6   :  { %v2521_v18 = vpop.f32.mrb[218].mxu0  ;;  %v7359_v8 = vpop.f32.mrb[218].mxu1 }
 0x2c7   :  { %4256 = vst [vmem:[%s7924_s3 + $0x350] sm:$0xff] %v4072_v37  ;;  %v4073_v30 = vadd.f32 %v6309_v44, %v3885_v53  ;;  %v3288_v54 = vadd.f32 %v7271_v33, %v2519_v60  ;;  %v2522_v26 = vadd.f32 %v2521_v18, %v6281_v40  ;;  %v2523_v50 = vpop.f32.mrb[219].mxu0  ;;  %v7367_v10 = vpop.f32.mrb[219].mxu1  ;;  %v7981_v18 = vld [vmem:[#allocation2_spill] sm:$0xff] }
 0x2c9   :  { %4257 = vst [vmem:[%s7924_s3 + $0x358] sm:$0xff] %v4073_v30  ;;  %v3698_v36 = vmax.f32 %v3288_v54, 0.0  ;;  %v3291_v6 = vadd.f32 %v7280_v24, %v2522_v26  ;;  %v2639_v30 = vadd.f32 %v7981_v18, %v6281_v40 }
 0x2cb   :  { %v3886_v15 = vmul.f32 %v6289_v56, %v3698_v36  ;;  %v3699_v62 = vmax.f32 %v3291_v6, 0.0 }
 0x2cc   :  { %v2526_v39 = vpop.f32.mrb[220].mxu0  ;;  %v7374_v46 = vpop.f32.mrb[220].mxu1 }
 0x2cd   :  { %v4074_v33 = vadd.f32 %v6309_v44, %v3886_v15  ;;  %v3887_v13 = vmul.f32 %v6289_v56, %v3699_v62  ;;  %v2527_v34 = vadd.f32 %v2526_v39, %v6281_v40  ;;  %v2528_v0 = vpop.f32.mrb[221].mxu0  ;;  %v7379_v4 = vpop.f32.mrb[221].mxu1 }
 0x2ce   :  { %v2529_v3 = vpop.f32.mrb[222].mxu0  ;;  %v7381_v19 = vpop.f32.mrb[222].mxu1 }
 0x2cf   :  { %4258 = vst [vmem:[%s7924_s3 + $0x360] sm:$0xff] %v4074_v33  ;;  %v4075_v24 = vadd.f32 %v6309_v44, %v3887_v13  ;;  %v3296_v58 = vadd.f32 %v7266_v45, %v2527_v34  ;;  %v2530_v31 = vadd.f32 %v2529_v3, %v6281_v40  ;;  %v2531_v12 = vpop.f32.mrb[223].mxu0  ;;  %v7389_v7 = vpop.f32.mrb[223].mxu1 }
 0x2d1   :  { %4259 = vst [vmem:[%s7924_s3 + $0x368] sm:$0xff] %v4075_v24  ;;  %v3700_v51 = vmax.f32 %v3296_v58, 0.0  ;;  %v3299_v5 = vadd.f32 %v7273_v49, %v2530_v31 }
 0x2d3   :  { %v3888_v9 = vmul.f32 %v6289_v56, %v3700_v51  ;;  %v3701_v38 = vmax.f32 %v3299_v5, 0.0 }
 0x2d4   :  { %v2534_v2 = vpop.f32.mrb[224].mxu0  ;;  %v7396_v11 = vpop.f32.mrb[224].mxu1 }
 0x2d5   :  { %v4076_v45 = vadd.f32 %v6309_v44, %v3888_v9  ;;  %v3889_v29 = vmul.f32 %v6289_v56, %v3701_v38  ;;  %v2535_v35 = vadd.f32 %v2534_v2, %v6281_v40  ;;  %v2536_v32 = vpop.f32.mrb[225].mxu0  ;;  %v7401_v43 = vpop.f32.mrb[225].mxu1 }
 0x2d6   :  { %v2537_v23 = vpop.f32.mrb[226].mxu0  ;;  %v7403_v55 = vpop.f32.mrb[226].mxu1 }
 0x2d7   :  { %4260 = vst [vmem:[%s7924_s3 + $0x370] sm:$0xff] %v4076_v45  ;;  %v4077_v49 = vadd.f32 %v6309_v44, %v3889_v29  ;;  %v3304_v52 = vadd.f32 %v7291_v21, %v2535_v35  ;;  %v2538_v27 = vadd.f32 %v2537_v23, %v6281_v40  ;;  %v2539_v57 = vpop.f32.mrb[227].mxu0  ;;  %v7411_v48 = vpop.f32.mrb[227].mxu1  ;;  %v7983_v29 = vld [vmem:[#allocation6_spill] sm:$0xff] }
 0x2d8   :  { %v2655_v35 = vadd.f32 %v7983_v29, %v6281_v40 }
 0x2d9   :  { %4261 = vst [vmem:[%s7924_s3 + $0x378] sm:$0xff] %v4077_v49  ;;  %v3702_v37 = vmax.f32 %v3304_v52, 0.0  ;;  %v3307_v53 = vadd.f32 %v7301_v14, %v2538_v27  ;;  %v7982_v14 = vld [vmem:[#allocation3_spill] sm:$0xff]  ;;  %v7984_v52 = vld [vmem:[#allocation4_spill] sm:$0xff] }
 0x2da   :  { %v2642_v33 = vadd.f32 %v7982_v14, %v6281_v40  ;;  %v2647_v27 = vadd.f32 %v7984_v52, %v6281_v40 }
 0x2db   :  { %v3890_v60 = vmul.f32 %v6289_v56, %v3702_v37  ;;  %v3703_v22 = vmax.f32 %v3307_v53, 0.0 }
 0x2dc   :  { %v2542_v54 = vpop.f32.mrb[228].mxu0  ;;  %v4892_v21 = vpop.f32.mrb[228].mxu1 }
 0x2dd   :  { %v4078_v26 = vadd.f32 %v6309_v44, %v3890_v60  ;;  %v3891_v50 = vmul.f32 %v6289_v56, %v3703_v22  ;;  %v2543_v36 = vadd.f32 %v2542_v54, %v6281_v40  ;;  %v3408_v6 = vadd.f32 %v4892_v21, %v2639_v30  ;;  %v2544_v15 = vpop.f32.mrb[229].mxu0  ;;  %v7423_v62 = vpop.f32.mrb[229].mxu1  ;;  %v7985_v21 = vld [vmem:[#allocation7_spill] sm:$0xff] }
 0x2de   :  { %v2545_v39 = vpop.f32.mrb[230].mxu0  ;;  %v4893_v13 = vpop.f32.mrb[230].mxu1 }
 0x2df   :  { %4262 = vst [vmem:[%s7924_s3 + $0x380] sm:$0xff] %v4078_v26  ;;  %v4079_v34 = vadd.f32 %v6309_v44, %v3891_v50  ;;  %v3312_v0 = vadd.f32 %v7286_v63, %v2543_v36  ;;  %v3728_v3 = vmax.f32 %v3408_v6, 0.0  ;;  %v2546_v24 = vadd.f32 %v2545_v39, %v6281_v40  ;;  %v2547_v58 = vpop.f32.mrb[231].mxu0  ;;  %v7433_v31 = vpop.f32.mrb[231].mxu1  ;;  %v7986_v36 = vld [vmem:[#allocation5_spill] sm:$0xff] }
 0x2e0   :  { %v3411_v12 = vadd.f32 %v4893_v13, %v2642_v33  ;;  %v2658_v26 = vadd.f32 %v7985_v21, %v6281_v40  ;;  %v2650_v6 = vadd.f32 %v7986_v36, %v6281_v40  ;;  %v7990_v36 = vld [vmem:[#allocation11_spill] sm:$0xff] }
 0x2e1   :  { %4263 = vst [vmem:[%s7924_s3 + $0x388] sm:$0xff] %v4079_v34  ;;  %v3704_v51 = vmax.f32 %v3312_v0, 0.0  ;;  %v3916_v5 = vmul.f32 %v6289_v56, %v3728_v3  ;;  %v3315_v9 = vadd.f32 %v7293_v61, %v2546_v24 }
 0x2e2   :  { %v3729_v38 = vmax.f32 %v3411_v12, 0.0 }
 0x2e3   :  { %v3892_v2 = vmul.f32 %v6289_v56, %v3704_v51  ;;  %v4104_v63 = vadd.f32 %v6309_v44, %v3916_v5  ;;  %v3705_v45 = vmax.f32 %v3315_v9, 0.0 }
 0x2e4   :  { %v3917_v32 = vmul.f32 %v6289_v56, %v3729_v38  ;;  %v2550_v23 = vpop.f32.mrb[232].mxu0  ;;  %v4896_v49 = vpop.f32.mrb[232].mxu1  ;;  %v7987_v38 = vld [vmem:[#allocation8_spill] sm:$0xff] }
 0x2e5   :  { %v4080_v57 = vadd.f32 %v6309_v44, %v3892_v2  ;;  %4288 = vst [vmem:[%s7924_s3 + $0x450] sm:$0xff] %v4104_v63  ;;  %v3893_v61 = vmul.f32 %v6289_v56, %v3705_v45  ;;  %v2551_v37 = vadd.f32 %v2550_v23, %v6281_v40  ;;  %v3424_v53 = vadd.f32 %v4896_v49, %v2655_v35  ;;  %v2552_v60 = vpop.f32.mrb[233].mxu0  ;;  %v3415_v22 = vpop.f32.mrb[233].mxu1  ;;  %v7988_v35 = vld [vmem:[#allocation10_spill] sm:$0xff] }
 0x2e6   :  { %v4105_v18 = vadd.f32 %v6309_v44, %v3917_v32  ;;  %v3416_v30 = vadd.f32 %v3415_v22, %v2647_v27  ;;  %v2553_v54 = vpop.f32.mrb[234].mxu0  ;;  %v4897_v50 = vpop.f32.mrb[234].mxu1  ;;  %v2663_v2 = vadd.f32 %v7987_v38, %v6281_v40  ;;  %v2671_v32 = vadd.f32 %v7988_v35, %v6281_v40 }
 0x2e7   :  { %4264 = vst [vmem:[%s7924_s3 + $0x390] sm:$0xff] %v4080_v57  ;;  %v4081_v15 = vadd.f32 %v6309_v44, %v3893_v61  ;;  %v3320_v39 = vadd.f32 %v7313_v42, %v2551_v37  ;;  %v3732_v14 = vmax.f32 %v3424_v53, 0.0  ;;  %v2554_v33 = vadd.f32 %v2553_v54, %v6281_v40  ;;  %v2555_v13 = vpop.f32.mrb[235].mxu0  ;;  %v3418_v34 = vpop.f32.mrb[235].mxu1  ;;  %v7989_v57 = vld [vmem:[#allocation9_spill] sm:$0xff] }
 0x2e8   :  { %4289 = vst [vmem:[%s7924_s3 + $0x458] sm:$0xff] %v4105_v18  ;;  %v3730_v0 = vmax.f32 %v3416_v30, 0.0  ;;  %v3427_v3 = vadd.f32 %v4897_v50, %v2658_v26  ;;  %v3419_v24 = vadd.f32 %v3418_v34, %v2650_v6  ;;  %v2666_v61 = vadd.f32 %v7989_v57, %v6281_v40 }
 0x2e9   :  { %4265 = vst [vmem:[%s7924_s3 + $0x398] sm:$0xff] %v4081_v15  ;;  %v3706_v58 = vmax.f32 %v3320_v39, 0.0  ;;  %v3920_v12 = vmul.f32 %v6289_v56, %v3732_v14  ;;  %v3323_v42 = vadd.f32 %v7323_v25, %v2554_v33  ;;  %v2674_v6 = vadd.f32 %v7990_v36, %v6281_v40 }
 0x2ea   :  { %v3918_v51 = vmul.f32 %v6289_v56, %v3730_v0  ;;  %v3733_v5 = vmax.f32 %v3427_v3, 0.0  ;;  %v3731_v9 = vmax.f32 %v3419_v24, 0.0 }
 0x2eb   :  { %v3894_v63 = vmul.f32 %v6289_v56, %v3706_v58  ;;  %v4108_v45 = vadd.f32 %v6309_v44, %v3920_v12  ;;  %v3707_v29 = vmax.f32 %v3323_v42, 0.0 }
 0x2ec   :  { %v4106_v23 = vadd.f32 %v6309_v44, %v3918_v51  ;;  %v3921_v49 = vmul.f32 %v6289_v56, %v3733_v5  ;;  %v3919_v25 = vmul.f32 %v6289_v56, %v3731_v9  ;;  %v2558_v52 = vpop.f32.mrb[236].mxu0  ;;  %v4900_v27 = vpop.f32.mrb[236].mxu1  ;;  %v7991_v51 = vld [vmem:[#allocation12_spill] sm:$0xff] }
 0x2ed   :  { %v4082_v37 = vadd.f32 %v6309_v44, %v3894_v63  ;;  %4292 = vst [vmem:[%s7924_s3 + $0x470] sm:$0xff] %v4108_v45  ;;  %v3895_v53 = vmul.f32 %v6289_v56, %v3707_v29  ;;  %v2559_v60 = vadd.f32 %v2558_v52, %v6281_v40  ;;  %v3440_v22 = vadd.f32 %v4900_v27, %v2671_v32  ;;  %v2560_v18 = vpop.f32.mrb[237].mxu0  ;;  %v3431_v30 = vpop.f32.mrb[237].mxu1  ;;  %v7992_v63 = vld [vmem:[#allocation14_spill] sm:$0xff] }
 0x2ee   :  { %4290 = vst [vmem:[%s7924_s3 + $0x460] sm:$0xff] %v4106_v23  ;;  %v4109_v54 = vadd.f32 %v6309_v44, %v3921_v49  ;;  %v4107_v21 = vadd.f32 %v6309_v44, %v3919_v25  ;;  %v3432_v26 = vadd.f32 %v3431_v30, %v2663_v2  ;;  %v2561_v50 = vpop.f32.mrb[238].mxu0  ;;  %v4901_v15 = vpop.f32.mrb[238].mxu1  ;;  %v2679_v5 = vadd.f32 %v7991_v51, %v6281_v40  ;;  %v7993_v23 = vld [vmem:[#allocation13_spill] sm:$0xff]  ;;  %v7994_v30 = vld [vmem:[#allocation15_spill] sm:$0xff] }
 0x2ef   :  { %4266 = vst [vmem:[%s7924_s3 + $0x3a0] sm:$0xff] %v4082_v37  ;;  %v4083_v39 = vadd.f32 %v6309_v44, %v3895_v53  ;;  %v3328_v14 = vadd.f32 %v7308_v1, %v2559_v60  ;;  %v3736_v33 = vmax.f32 %v3440_v22, 0.0  ;;  %v2562_v13 = vadd.f32 %v2561_v50, %v6281_v40  ;;  %v2563_v34 = vpop.f32.mrb[239].mxu0  ;;  %v3434_v0 = vpop.f32.mrb[239].mxu1 }
 0x2f0   :  { %4293 = vst [vmem:[%s7924_s3 + $0x478] sm:$0xff] %v4109_v54  ;;  %4291 = vst [vmem:[%s7924_s3 + $0x468] sm:$0xff] %v4107_v21  ;;  %v3734_v3 = vmax.f32 %v3432_v26, 0.0  ;;  %v3443_v24 = vadd.f32 %v4901_v15, %v2674_v6  ;;  %v3435_v58 = vadd.f32 %v3434_v0, %v2666_v61  ;;  %v2687_v45 = vadd.f32 %v7992_v63, %v6281_v40 }
 0x2f1   :  { %4267 = vst [vmem:[%s7924_s3 + $0x3a8] sm:$0xff] %v4083_v39  ;;  %v3708_v1 = vmax.f32 %v3328_v14, 0.0  ;;  %v3924_v12 = vmul.f32 %v6289_v56, %v3736_v33  ;;  %v3331_v42 = vadd.f32 %v7315_v41, %v2562_v13  ;;  %v2682_v49 = vadd.f32 %v7993_v23, %v6281_v40 }
 0x2f2   :  { %v3922_v9 = vmul.f32 %v6289_v56, %v3734_v3  ;;  %v3737_v38 = vmax.f32 %v3443_v24, 0.0  ;;  %v3735_v2 = vmax.f32 %v3435_v58, 0.0  ;;  %v2690_v54 = vadd.f32 %v7994_v30, %v6281_v40 }
 0x2f3   :  { %v3896_v29 = vmul.f32 %v6289_v56, %v3708_v1  ;;  %v4112_v35 = vadd.f32 %v6309_v44, %v3924_v12  ;;  %v3709_v32 = vmax.f32 %v3331_v42, 0.0  ;;  %v7995_v12 = vld [vmem:[#allocation16_spill] sm:$0xff] }
 0x2f4   :  { %v4110_v41 = vadd.f32 %v6309_v44, %v3922_v9  ;;  %v3925_v25 = vmul.f32 %v6289_v56, %v3737_v38  ;;  %v3923_v52 = vmul.f32 %v6289_v56, %v3735_v2  ;;  %v2566_v27 = vpop.f32.mrb[240].mxu0  ;;  %v4904_v57 = vpop.f32.mrb[240].mxu1  ;;  %v2695_v42 = vadd.f32 %v7995_v12, %v6281_v40  ;;  %v7996_v38 = vld [vmem:[#allocation18_spill] sm:$0xff] }
 0x2f5   :  { %v4084_v61 = vadd.f32 %v6309_v44, %v3896_v29  ;;  %4296 = vst [vmem:[%s7924_s3 + $0x490] sm:$0xff] %v4112_v35  ;;  %v3897_v37 = vmul.f32 %v6289_v56, %v3709_v32  ;;  %v2567_v53 = vadd.f32 %v2566_v27, %v6281_v40  ;;  %v3456_v60 = vadd.f32 %v4904_v57, %v2687_v45  ;;  %v2568_v22 = vpop.f32.mrb[241].mxu0  ;;  %v3447_v18 = vpop.f32.mrb[241].mxu1  ;;  %v7997_v35 = vld [vmem:[#allocation17_spill] sm:$0xff] }
 0x2f6   :  { %4294 = vst [vmem:[%s7924_s3 + $0x480] sm:$0xff] %v4110_v41  ;;  %v4113_v21 = vadd.f32 %v6309_v44, %v3925_v25  ;;  %v4111_v26 = vadd.f32 %v6309_v44, %v3923_v52  ;;  %v3448_v50 = vadd.f32 %v3447_v18, %v2679_v5  ;;  %v2569_v36 = vpop.f32.mrb[242].mxu0  ;;  %v4905_v6 = vpop.f32.mrb[242].mxu1  ;;  %v2703_v2 = vadd.f32 %v7996_v38, %v6281_v40 }
 0x2f7   :  { %4268 = vst [vmem:[%s7924_s3 + $0x3b0] sm:$0xff] %v4084_v61  ;;  %v4085_v15 = vadd.f32 %v6309_v44, %v3897_v37  ;;  %v3336_v39 = vadd.f32 %v7335_v16, %v2567_v53  ;;  %v3740_v14 = vmax.f32 %v3456_v60, 0.0  ;;  %v2570_v33 = vadd.f32 %v2569_v36, %v6281_v40  ;;  %v2571_v13 = vpop.f32.mrb[243].mxu0  ;;  %v3450_v34 = vpop.f32.mrb[243].mxu1  ;;  %v7998_v60 = vld [vmem:[#allocation19_spill] sm:$0xff] }
 0x2f8   :  { %4297 = vst [vmem:[%s7924_s3 + $0x498] sm:$0xff] %v4113_v21  ;;  %4295 = vst [vmem:[%s7924_s3 + $0x488] sm:$0xff] %v4111_v26  ;;  %v3738_v0 = vmax.f32 %v3448_v50, 0.0  ;;  %v3459_v3 = vadd.f32 %v4905_v6, %v2690_v54  ;;  %v3451_v24 = vadd.f32 %v3450_v34, %v2682_v49  ;;  %v2698_v32 = vadd.f32 %v7997_v35, %v6281_v40 }
 0x2f9   :  { %4269 = vst [vmem:[%s7924_s3 + $0x3b8] sm:$0xff] %v4085_v15  ;;  %v3710_v16 = vmax.f32 %v3336_v39, 0.0  ;;  %v3928_v58 = vmul.f32 %v6289_v56, %v3740_v14  ;;  %v3339_v1 = vadd.f32 %v7345_v47, %v2570_v33  ;;  %v2706_v22 = vadd.f32 %v7998_v60, %v6281_v40 }
 0x2fa   :  { %v3926_v51 = vmul.f32 %v6289_v56, %v3738_v0  ;;  %v3741_v5 = vmax.f32 %v3459_v3, 0.0  ;;  %v3739_v9 = vmax.f32 %v3451_v24, 0.0  ;;  %v7999_v24 = vld [vmem:[#allocation20_spill] sm:$0xff] }
 0x2fb   :  { %v3898_v63 = vmul.f32 %v6289_v56, %v3710_v16  ;;  %v4116_v45 = vadd.f32 %v6309_v44, %v3928_v58  ;;  %v3711_v29 = vmax.f32 %v3339_v1, 0.0  ;;  %v2711_v16 = vadd.f32 %v7999_v24, %v6281_v40 }
 0x2fc   :  { %v4114_v47 = vadd.f32 %v6309_v44, %v3926_v51  ;;  %v3929_v23 = vmul.f32 %v6289_v56, %v3741_v5  ;;  %v3927_v49 = vmul.f32 %v6289_v56, %v3739_v9  ;;  %v2574_v41 = vpop.f32.mrb[244].mxu0  ;;  %v4908_v25 = vpop.f32.mrb[244].mxu1 }
 0x2fd   :  { %v4086_v52 = vadd.f32 %v6309_v44, %v3898_v63  ;;  %4300 = vst [vmem:[%s7924_s3 + $0x4b0] sm:$0xff] %v4116_v45  ;;  %v3899_v27 = vmul.f32 %v6289_v56, %v3711_v29  ;;  %v2575_v57 = vadd.f32 %v2574_v41, %v6281_v40  ;;  %v3472_v61 = vadd.f32 %v4908_v25, %v2703_v2  ;;  %v2576_v37 = vpop.f32.mrb[245].mxu0  ;;  %v3463_v53 = vpop.f32.mrb[245].mxu1  ;;  %v8001_v2 = vld [vmem:[#allocation21_spill] sm:$0xff] }
 0x2fe   :  { %4298 = vst [vmem:[%s7924_s3 + $0x4a0] sm:$0xff] %v4114_v47  ;;  %v4117_v18 = vadd.f32 %v6309_v44, %v3929_v23  ;;  %v4115_v30 = vadd.f32 %v6309_v44, %v3927_v49  ;;  %v3464_v54 = vadd.f32 %v3463_v53, %v2695_v42  ;;  %v2577_v21 = vpop.f32.mrb[246].mxu0  ;;  %v4909_v26 = vpop.f32.mrb[246].mxu1  ;;  %v8000_v42 = vld [vmem:[#allocation22_spill] sm:$0xff]  ;;  %v2714_v63 = vadd.f32 %v8001_v2, %v6281_v40 }
 0x2ff   :  { %4270 = vst [vmem:[%s7924_s3 + $0x3c0] sm:$0xff] %v4086_v52  ;;  %v4087_v50 = vadd.f32 %v6309_v44, %v3899_v27  ;;  %v3344_v36 = vadd.f32 %v7330_v20, %v2575_v57  ;;  %v3744_v6 = vmax.f32 %v3472_v61, 0.0  ;;  %v2578_v15 = vadd.f32 %v2577_v21, %v6281_v40  ;;  %v2579_v39 = vpop.f32.mrb[247].mxu0  ;;  %v3466_v14 = vpop.f32.mrb[247].mxu1  ;;  %v8002_v27 = vld [vmem:[#allocation23_spill] sm:$0xff] }
 0x300   :  { %4301 = vst [vmem:[%s7924_s3 + $0x4b8] sm:$0xff] %v4117_v18  ;;  %4299 = vst [vmem:[%s7924_s3 + $0x4a8] sm:$0xff] %v4115_v30  ;;  %v3742_v33 = vmax.f32 %v3464_v54, 0.0  ;;  %v3475_v13 = vadd.f32 %v4909_v26, %v2706_v22  ;;  %v3467_v34 = vadd.f32 %v3466_v14, %v2698_v32  ;;  %v2719_v51 = vadd.f32 %v8000_v42, %v6281_v40 }
 0x301   :  { %4271 = vst [vmem:[%s7924_s3 + $0x3c8] sm:$0xff] %v4087_v50  ;;  %v3712_v20 = vmax.f32 %v3344_v36, 0.0  ;;  %v3932_v0 = vmul.f32 %v6289_v56, %v3744_v6  ;;  %v3347_v3 = vadd.f32 %v7337_v17, %v2578_v15  ;;  %v2722_v57 = vadd.f32 %v8002_v27, %v6281_v40 }
 0x302   :  { %v3930_v58 = vmul.f32 %v6289_v56, %v3742_v33  ;;  %v3745_v1 = vmax.f32 %v3475_v13, 0.0  ;;  %v3743_v12 = vmax.f32 %v3467_v34, 0.0  ;;  %v8003_v33 = vld [vmem:[#allocation24_spill] sm:$0xff] }
 0x303   :  { %v3900_v5 = vmul.f32 %v6289_v56, %v3712_v20  ;;  %v4120_v9 = vadd.f32 %v6309_v44, %v3932_v0  ;;  %v3713_v38 = vmax.f32 %v3347_v3, 0.0  ;;  %v2727_v13 = vadd.f32 %v8003_v33, %v6281_v40  ;;  %v8004_v3 = vld [vmem:[#allocation26_spill] sm:$0xff] }
 0x304   :  { %v4118_v17 = vadd.f32 %v6309_v44, %v3930_v58  ;;  %v3933_v45 = vmul.f32 %v6289_v56, %v3745_v1  ;;  %v3931_v29 = vmul.f32 %v6289_v56, %v3743_v12  ;;  %v2582_v35 = vpop.f32.mrb[248].mxu0  ;;  %v4912_v32 = vpop.f32.mrb[248].mxu1  ;;  %v2735_v24 = vadd.f32 %v8004_v3, %v6281_v40  ;;  %v8005_v12 = vld [vmem:[#allocation25_spill] sm:$0xff] }
 0x305   :  { %v4088_v47 = vadd.f32 %v6309_v44, %v3900_v5  ;;  %4304 = vst [vmem:[%s7924_s3 + $0x4d0] sm:$0xff] %v4120_v9  ;;  %v3901_v23 = vmul.f32 %v6289_v56, %v3713_v38  ;;  %v2583_v49 = vadd.f32 %v2582_v35, %v6281_v40  ;;  %v3488_v41 = vadd.f32 %v4912_v32, %v2719_v51  ;;  %v2584_v25 = vpop.f32.mrb[249].mxu0  ;;  %v3479_v52 = vpop.f32.mrb[249].mxu1  ;;  %v8006_v32 = vld [vmem:[#allocation27_spill] sm:$0xff] }
 0x306   :  { %4302 = vst [vmem:[%s7924_s3 + $0x4c0] sm:$0xff] %v4118_v17  ;;  %v4121_v61 = vadd.f32 %v6309_v44, %v3933_v45  ;;  %v4119_v37 = vadd.f32 %v6309_v44, %v3931_v29  ;;  %v3480_v53 = vadd.f32 %v3479_v52, %v2711_v16  ;;  %v2585_v60 = vpop.f32.mrb[250].mxu0  ;;  %v4913_v22 = vpop.f32.mrb[250].mxu1  ;;  %v2730_v42 = vadd.f32 %v8005_v12, %v6281_v40 }
 0x307   :  { %4272 = vst [vmem:[%s7924_s3 + $0x3d0] sm:$0xff] %v4088_v47  ;;  %v4089_v18 = vadd.f32 %v6309_v44, %v3901_v23  ;;  %v3352_v30 = vadd.f32 %v7357_v28, %v2583_v49  ;;  %v3748_v54 = vmax.f32 %v3488_v41, 0.0  ;;  %v2586_v21 = vadd.f32 %v2585_v60, %v6281_v40  ;;  %v2587_v26 = vpop.f32.mrb[251].mxu0  ;;  %v3482_v50 = vpop.f32.mrb[251].mxu1 }
 0x308   :  { %4305 = vst [vmem:[%s7924_s3 + $0x4d8] sm:$0xff] %v4121_v61  ;;  %4303 = vst [vmem:[%s7924_s3 + $0x4c8] sm:$0xff] %v4119_v37  ;;  %v3746_v36 = vmax.f32 %v3480_v53, 0.0  ;;  %v3491_v6 = vadd.f32 %v4913_v22, %v2722_v57  ;;  %v3483_v15 = vadd.f32 %v3482_v50, %v2714_v63  ;;  %v2738_v47 = vadd.f32 %v8006_v32, %v6281_v40  ;;  %v8007_v26 = vld [vmem:[#allocation28_spill] sm:$0xff] }
 0x309   :  { %4273 = vst [vmem:[%s7924_s3 + $0x3d8] sm:$0xff] %v4089_v18  ;;  %v3714_v28 = vmax.f32 %v3352_v30, 0.0  ;;  %v3936_v39 = vmul.f32 %v6289_v56, %v3748_v54  ;;  %v3355_v14 = vadd.f32 %v7367_v10, %v2586_v21  ;;  %v2743_v50 = vadd.f32 %v8007_v26, %v6281_v40  ;;  %v8013_v26 = vld [vmem:[#allocation33_spill] sm:$0xff] }
 0x30a   :  { %v3934_v34 = vmul.f32 %v6289_v56, %v3746_v36  ;;  %v3749_v20 = vmax.f32 %v3491_v6, 0.0  ;;  %v3747_v0 = vmax.f32 %v3483_v15, 0.0 }
 0x30b   :  { %v3902_v16 = vmul.f32 %v6289_v56, %v3714_v28  ;;  %v4124_v58 = vadd.f32 %v6309_v44, %v3936_v39  ;;  %v3715_v1 = vmax.f32 %v3355_v14, 0.0  ;;  %v8008_v28 = vld [vmem:[#allocation30_spill] sm:$0xff] }
 0x30c   :  { %v4122_v10 = vadd.f32 %v6309_v44, %v3934_v34  ;;  %v3937_v51 = vmul.f32 %v6289_v56, %v3749_v20  ;;  %v3935_v5 = vmul.f32 %v6289_v56, %v3747_v0  ;;  %v2590_v9 = vpop.f32.mrb[252].mxu0  ;;  %v4916_v38 = vpop.f32.mrb[252].mxu1  ;;  %v2751_v39 = vadd.f32 %v8008_v28, %v6281_v40  ;;  %v8009_v34 = vld [vmem:[#allocation29_spill] sm:$0xff] }
 0x30d   :  { %v4090_v2 = vadd.f32 %v6309_v44, %v3902_v16  ;;  %4308 = vst [vmem:[%s7924_s3 + $0x4f0] sm:$0xff] %v4124_v58  ;;  %v3903_v63 = vmul.f32 %v6289_v56, %v3715_v1  ;;  %v2591_v17 = vadd.f32 %v2590_v9, %v6281_v40  ;;  %v3504_v45 = vadd.f32 %v4916_v38, %v2735_v24  ;;  %v2592_v29 = vpop.f32.mrb[253].mxu0  ;;  %v3495_v35 = vpop.f32.mrb[253].mxu1 }
 0x30e   :  { %4306 = vst [vmem:[%s7924_s3 + $0x4e0] sm:$0xff] %v4122_v10  ;;  %v4125_v23 = vadd.f32 %v6309_v44, %v3937_v51  ;;  %v4123_v49 = vadd.f32 %v6309_v44, %v3935_v5  ;;  %v3496_v41 = vadd.f32 %v3495_v35, %v2727_v13  ;;  %v2593_v25 = vpop.f32.mrb[254].mxu0  ;;  %v4917_v52 = vpop.f32.mrb[254].mxu1  ;;  %v2746_v20 = vadd.f32 %v8009_v34, %v6281_v40  ;;  %v8010_v5 = vld [vmem:[#allocation31_spill] sm:$0xff] }
 0x30f   :  { %4274 = vst [vmem:[%s7924_s3 + $0x3e0] sm:$0xff] %v4090_v2  ;;  %v4091_v27 = vadd.f32 %v6309_v44, %v3903_v63  ;;  %v3360_v57 = vadd.f32 %v7352_v59, %v2591_v17  ;;  %v3752_v61 = vmax.f32 %v3504_v45, 0.0  ;;  %v2594_v37 = vadd.f32 %v2593_v25, %v6281_v40  ;;  %v2595_v53 = vpop.f32.mrb[255].mxu0  ;;  %v3498_v60 = vpop.f32.mrb[255].mxu1 }
 0x310   :  { %4309 = vst [vmem:[%s7924_s3 + $0x4f8] sm:$0xff] %v4125_v23  ;;  %4307 = vst [vmem:[%s7924_s3 + $0x4e8] sm:$0xff] %v4123_v49  ;;  %v3750_v22 = vmax.f32 %v3496_v41, 0.0  ;;  %v3507_v18 = vadd.f32 %v4917_v52, %v2738_v47  ;;  %v3499_v30 = vadd.f32 %v3498_v60, %v2730_v42  ;;  %v2754_v9 = vadd.f32 %v8010_v5, %v6281_v40 }
 0x311   :  { %4275 = vst [vmem:[%s7924_s3 + $0x3e8] sm:$0xff] %v4091_v27  ;;  %v3716_v59 = vmax.f32 %v3360_v57, 0.0  ;;  %v3940_v54 = vmul.f32 %v6289_v56, %v3752_v61  ;;  %v3363_v21 = vadd.f32 %v7359_v8, %v2594_v37  ;;  %v8011_v61 = vld [vmem:[#allocation32_spill] sm:$0xff] }
 0x312   :  { %v3938_v36 = vmul.f32 %v6289_v56, %v3750_v22  ;;  %v3753_v6 = vmax.f32 %v3507_v18, 0.0  ;;  %v3751_v15 = vmax.f32 %v3499_v30, 0.0  ;;  %v2759_v37 = vadd.f32 %v8011_v61, %v6281_v40  ;;  %v8012_v18 = vld [vmem:[#allocation34_spill] sm:$0xff] }
 0x313   :  { %v3904_v14 = vmul.f32 %v6289_v56, %v3716_v59  ;;  %v4128_v33 = vadd.f32 %v6309_v44, %v3940_v54  ;;  %v3717_v13 = vmax.f32 %v3363_v21, 0.0  ;;  %v2767_v30 = vadd.f32 %v8012_v18, %v6281_v40 }
 0x314   :  { %v4126_v8 = vadd.f32 %v6309_v44, %v3938_v36  ;;  %v3941_v0 = vmul.f32 %v6289_v56, %v3753_v6  ;;  %v3939_v3 = vmul.f32 %v6289_v56, %v3751_v15  ;;  %v2598_v24 = vpop.f32.mrb[0].mxu0  ;;  %v4920_v16 = vpop.f32.mrb[0].mxu1 }
 0x315   :  { %v4092_v58 = vadd.f32 %v6309_v44, %v3904_v14  ;;  %4312 = vst [vmem:[%s7924_s3 + $0x510] sm:$0xff] %v4128_v33  ;;  %v3905_v1 = vmul.f32 %v6289_v56, %v3717_v13  ;;  %v2599_v12 = vadd.f32 %v2598_v24, %v6281_v40  ;;  %v3520_v42 = vadd.f32 %v4920_v16, %v2751_v39  ;;  %v2600_v10 = vpop.f32.mrb[1].mxu0  ;;  %v3511_v51 = vpop.f32.mrb[1].mxu1 }
 0x316   :  { %4310 = vst [vmem:[%s7924_s3 + $0x500] sm:$0xff] %v4126_v8  ;;  %v4129_v38 = vadd.f32 %v6309_v44, %v3941_v0  ;;  %v4127_v2 = vadd.f32 %v6309_v44, %v3939_v3  ;;  %v3512_v63 = vadd.f32 %v3511_v51, %v2743_v50  ;;  %v2601_v17 = vpop.f32.mrb[2].mxu0  ;;  %v4921_v45 = vpop.f32.mrb[2].mxu1  ;;  %v2762_v50 = vadd.f32 %v8013_v26, %v6281_v40  ;;  %v8014_v8 = vld [vmem:[#allocation35_spill] sm:$0xff] }
 0x317   :  { %4276 = vst [vmem:[%s7924_s3 + $0x3f0] sm:$0xff] %v4092_v58  ;;  %v4093_v29 = vadd.f32 %v6309_v44, %v3905_v1  ;;  %v3368_v35 = vadd.f32 %v7379_v4, %v2599_v12  ;;  %v3756_v32 = vmax.f32 %v3520_v42, 0.0  ;;  %v2602_v47 = vadd.f32 %v2601_v17, %v6281_v40  ;;  %v2603_v23 = vpop.f32.mrb[3].mxu0  ;;  %v3514_v49 = vpop.f32.mrb[3].mxu1  ;;  %v8018_v26 = vld [vmem:[#allocation39_spill] sm:$0xff] }
 0x318   :  { %4313 = vst [vmem:[%s7924_s3 + $0x518] sm:$0xff] %v4129_v38  ;;  %4311 = vst [vmem:[%s7924_s3 + $0x508] sm:$0xff] %v4127_v2  ;;  %v3754_v41 = vmax.f32 %v3512_v63, 0.0  ;;  %v3523_v25 = vadd.f32 %v4921_v45, %v2754_v9  ;;  %v3515_v52 = vadd.f32 %v3514_v49, %v2746_v20  ;;  %v2770_v0 = vadd.f32 %v8014_v8, %v6281_v40  ;;  %v8016_v49 = vld [vmem:[#allocation38_spill] sm:$0xff] }
 0x319   :  { %4277 = vst [vmem:[%s7924_s3 + $0x3f8] sm:$0xff] %v4093_v29  ;;  %v3718_v4 = vmax.f32 %v3368_v35, 0.0  ;;  %v3944_v27 = vmul.f32 %v6289_v56, %v3756_v32  ;;  %v3371_v57 = vadd.f32 %v7389_v7, %v2602_v47  ;;  %v8015_v29 = vld [vmem:[#allocation36_spill] sm:$0xff] }
 0x31a   :  { %v3942_v53 = vmul.f32 %v6289_v56, %v3754_v41  ;;  %v3757_v60 = vmax.f32 %v3523_v25, 0.0  ;;  %v3755_v22 = vmax.f32 %v3515_v52, 0.0  ;;  %v2775_v35 = vadd.f32 %v8015_v29, %v6281_v40 }
 0x31b   :  { %v3906_v59 = vmul.f32 %v6289_v56, %v3718_v4  ;;  %v4132_v54 = vadd.f32 %v6309_v44, %v3944_v27  ;;  %v3719_v21 = vmax.f32 %v3371_v57, 0.0  ;;  %v2783_v41 = vadd.f32 %v8016_v49, %v6281_v40  ;;  %v8017_v27 = vld [vmem:[#allocation37_spill] sm:$0xff] }
 0x31c   :  { %v4130_v7 = vadd.f32 %v6309_v44, %v3942_v53  ;;  %v3945_v36 = vmul.f32 %v6289_v56, %v3757_v60  ;;  %v3943_v6 = vmul.f32 %v6289_v56, %v3755_v22  ;;  %v2606_v15 = vpop.f32.mrb[4].mxu0  ;;  %v4924_v28 = vpop.f32.mrb[4].mxu1  ;;  %v2778_v57 = vadd.f32 %v8017_v27, %v6281_v40 }
 0x31d   :  { %v4094_v39 = vadd.f32 %v6309_v44, %v3906_v59  ;;  %4316 = vst [vmem:[%s7924_s3 + $0x530] sm:$0xff] %v4132_v54  ;;  %v3907_v14 = vmul.f32 %v6289_v56, %v3719_v21  ;;  %v2607_v33 = vadd.f32 %v2606_v15, %v6281_v40  ;;  %v3536_v13 = vadd.f32 %v4924_v28, %v2767_v30  ;;  %v2608_v34 = vpop.f32.mrb[5].mxu0  ;;  %v3527_v20 = vpop.f32.mrb[5].mxu1 }
 0x31e   :  { %4314 = vst [vmem:[%s7924_s3 + $0x520] sm:$0xff] %v4130_v7  ;;  %v4133_v3 = vadd.f32 %v6309_v44, %v3945_v36  ;;  %v4131_v24 = vadd.f32 %v6309_v44, %v3943_v6  ;;  %v3528_v16 = vadd.f32 %v3527_v20, %v2759_v37  ;;  %v2609_v58 = vpop.f32.mrb[6].mxu0  ;;  %v4925_v1 = vpop.f32.mrb[6].mxu1 }
 0x31f   :  { %4278 = vst [vmem:[%s7924_s3 + $0x400] sm:$0xff] %v4094_v39  ;;  %v4095_v12 = vadd.f32 %v6309_v44, %v3907_v14  ;;  %v3376_v42 = vadd.f32 %v7374_v46, %v2607_v33  ;;  %v3760_v10 = vmax.f32 %v3536_v13, 0.0  ;;  %v2610_v51 = vadd.f32 %v2609_v58, %v6281_v40  ;;  %v2611_v5 = vpop.f32.mrb[7].mxu0  ;;  %v3530_v9 = vpop.f32.mrb[7].mxu1  ;;  %v8019_v58 = vld [vmem:[#allocation40_spill] sm:$0xff] }
 0x320   :  { %4317 = vst [vmem:[%s7924_s3 + $0x538] sm:$0xff] %v4133_v3  ;;  %4315 = vst [vmem:[%s7924_s3 + $0x528] sm:$0xff] %v4131_v24  ;;  %v3758_v38 = vmax.f32 %v3528_v16, 0.0  ;;  %v3539_v2 = vadd.f32 %v4925_v1, %v2770_v0  ;;  %v3531_v63 = vadd.f32 %v3530_v9, %v2762_v50  ;;  %v2786_v50 = vadd.f32 %v8018_v26, %v6281_v40 }
 0x321   :  { %4279 = vst [vmem:[%s7924_s3 + $0x408] sm:$0xff] %v4095_v12  ;;  %v3720_v46 = vmax.f32 %v3376_v42, 0.0  ;;  %v3948_v17 = vmul.f32 %v6289_v56, %v3760_v10  ;;  %v3379_v45 = vadd.f32 %v7381_v19, %v2610_v51  ;;  %v2791_v1 = vadd.f32 %v8019_v58, %v6281_v40  ;;  %v8020_v51 = vld [vmem:[#allocation42_spill] sm:$0xff] }
 0x322   :  { %v3946_v32 = vmul.f32 %v6289_v56, %v3758_v38  ;;  %v3761_v47 = vmax.f32 %v3539_v2, 0.0  ;;  %v3759_v23 = vmax.f32 %v3531_v63, 0.0  ;;  %v2799_v5 = vadd.f32 %v8020_v51, %v6281_v40  ;;  %v8021_v63 = vld [vmem:[#allocation41_spill] sm:$0xff] }
 0x323   :  { %v3908_v25 = vmul.f32 %v6289_v56, %v3720_v46  ;;  %v4136_v52 = vadd.f32 %v6309_v44, %v3948_v17  ;;  %v3721_v4 = vmax.f32 %v3379_v45, 0.0  ;;  %v2794_v46 = vadd.f32 %v8021_v63, %v6281_v40 }
 0x324   :  { %v4134_v19 = vadd.f32 %v6309_v44, %v3946_v32  ;;  %v3949_v61 = vmul.f32 %v6289_v56, %v3761_v47  ;;  %v3947_v37 = vmul.f32 %v6289_v56, %v3759_v23  ;;  %v2614_v53 = vpop.f32.mrb[8].mxu0  ;;  %v4928_v60 = vpop.f32.mrb[8].mxu1 }
 0x325   :  { %v4096_v22 = vadd.f32 %v6309_v44, %v3908_v25  ;;  %4320 = vst [vmem:[%s7924_s3 + $0x550] sm:$0xff] %v4136_v52  ;;  %v3909_v18 = vmul.f32 %v6289_v56, %v3721_v4  ;;  %v2615_v30 = vadd.f32 %v2614_v53, %v6281_v40  ;;  %v3552_v59 = vadd.f32 %v4928_v60, %v2783_v41  ;;  %v2616_v54 = vpop.f32.mrb[9].mxu0  ;;  %v3543_v21 = vpop.f32.mrb[9].mxu1  ;;  %v8022_v52 = vld [vmem:[#allocation44_spill] sm:$0xff] }
 0x326   :  { %4318 = vst [vmem:[%s7924_s3 + $0x540] sm:$0xff] %v4134_v19  ;;  %v4137_v7 = vadd.f32 %v6309_v44, %v3949_v61  ;;  %v4135_v36 = vadd.f32 %v6309_v44, %v3947_v37  ;;  %v3544_v6 = vadd.f32 %v3543_v21, %v2775_v35  ;;  %v2617_v15 = vpop.f32.mrb[10].mxu0  ;;  %v4929_v28 = vpop.f32.mrb[10].mxu1  ;;  %v2802_v4 = vadd.f32 %v8022_v52, %v6281_v40 }
 0x327   :  { %4280 = vst [vmem:[%s7924_s3 + $0x410] sm:$0xff] %v4096_v22  ;;  %v4097_v39 = vadd.f32 %v6309_v44, %v3909_v18  ;;  %v3384_v14 = vadd.f32 %v7401_v43, %v2615_v30  ;;  %v3764_v33 = vmax.f32 %v3552_v59, 0.0  ;;  %v2618_v13 = vadd.f32 %v2617_v15, %v6281_v40  ;;  %v2619_v34 = vpop.f32.mrb[11].mxu0  ;;  %v3546_v20 = vpop.f32.mrb[11].mxu1 }
 0x328   :  { %4321 = vst [vmem:[%s7924_s3 + $0x558] sm:$0xff] %v4137_v7  ;;  %4319 = vst [vmem:[%s7924_s3 + $0x548] sm:$0xff] %v4135_v36  ;;  %v3762_v8 = vmax.f32 %v3544_v6, 0.0  ;;  %v3555_v0 = vadd.f32 %v4929_v28, %v2786_v50  ;;  %v3547_v3 = vadd.f32 %v3546_v20, %v2778_v57  ;;  %v8023_v36 = vld [vmem:[#allocation45_spill] sm:$0xff] }
 0x329   :  { %4281 = vst [vmem:[%s7924_s3 + $0x418] sm:$0xff] %v4097_v39  ;;  %v3722_v43 = vmax.f32 %v3384_v14, 0.0  ;;  %v3952_v24 = vmul.f32 %v6289_v56, %v3764_v33  ;;  %v3387_v16 = vadd.f32 %v7411_v48, %v2618_v13  ;;  %v2807_v6 = vadd.f32 %v8023_v36, %v6281_v40  ;;  %v8024_v14 = vld [vmem:[#allocation48_spill] sm:$0xff] }
 0x32a   :  { %v3950_v12 = vmul.f32 %v6289_v56, %v3762_v8  ;;  %v3765_v42 = vmax.f32 %v3555_v0, 0.0  ;;  %v3763_v10 = vmax.f32 %v3547_v3, 0.0  ;;  %v2815_v33 = vadd.f32 %v8024_v14, %v6281_v40  ;;  %v8025_v8 = vld [vmem:[#allocation46_spill] sm:$0xff] }
 0x32b   :  { %v3910_v9 = vmul.f32 %v6289_v56, %v3722_v43  ;;  %v4140_v38 = vadd.f32 %v6309_v44, %v3952_v24  ;;  %v3723_v2 = vmax.f32 %v3387_v16, 0.0  ;;  %v2810_v0 = vadd.f32 %v8025_v8, %v6281_v40 }
 0x32c   :  { %v4138_v48 = vadd.f32 %v6309_v44, %v3950_v12  ;;  %v3953_v17 = vmul.f32 %v6289_v56, %v3765_v42  ;;  %v3951_v45 = vmul.f32 %v6289_v56, %v3763_v10  ;;  %v2622_v29 = vpop.f32.mrb[12].mxu0  ;;  %v4932_v35 = vpop.f32.mrb[12].mxu1 }
 0x32d   :  { %v4098_v32 = vadd.f32 %v6309_v44, %v3910_v9  ;;  %4324 = vst [vmem:[%s7924_s3 + $0x570] sm:$0xff] %v4140_v38  ;;  %v3911_v47 = vmul.f32 %v6289_v56, %v3723_v2  ;;  %v2623_v23 = vadd.f32 %v2622_v29, %v6281_v40  ;;  %v3568_v49 = vadd.f32 %v4932_v35, %v2799_v5  ;;  %v2624_v41 = vpop.f32.mrb[13].mxu0  ;;  %v3559_v25 = vpop.f32.mrb[13].mxu1  ;;  %v8026_v5 = vld [vmem:[#allocation50_spill] sm:$0xff] }
 0x32e   :  { %4322 = vst [vmem:[%s7924_s3 + $0x560] sm:$0xff] %v4138_v48  ;;  %v4141_v27 = vadd.f32 %v6309_v44, %v3953_v17  ;;  %v4139_v57 = vadd.f32 %v6309_v44, %v3951_v45  ;;  %v3560_v19 = vadd.f32 %v3559_v25, %v2791_v1  ;;  %v2625_v61 = vpop.f32.mrb[14].mxu0  ;;  %v4933_v37 = vpop.f32.mrb[14].mxu1  ;;  %v2818_v9 = vadd.f32 %v8026_v5, %v6281_v40 }
 0x32f   :  { %4282 = vst [vmem:[%s7924_s3 + $0x420] sm:$0xff] %v4098_v32  ;;  %v4099_v53 = vadd.f32 %v6309_v44, %v3911_v47  ;;  %v3392_v60 = vadd.f32 %v7396_v11, %v2623_v23  ;;  %v3768_v22 = vmax.f32 %v3568_v49, 0.0  ;;  %v2626_v18 = vadd.f32 %v2625_v61, %v6281_v40  ;;  %v2627_v30 = vpop.f32.mrb[15].mxu0  ;;  %v3562_v59 = vpop.f32.mrb[15].mxu1 }
 0x330   :  { %4325 = vst [vmem:[%s7924_s3 + $0x578] sm:$0xff] %v4141_v27  ;;  %4323 = vst [vmem:[%s7924_s3 + $0x568] sm:$0xff] %v4139_v57  ;;  %v3766_v54 = vmax.f32 %v3560_v19, 0.0  ;;  %v3571_v21 = vadd.f32 %v4933_v37, %v2802_v4  ;;  %v3563_v26 = vadd.f32 %v3562_v59, %v2794_v46 }
 0x331   :  { %4283 = vst [vmem:[%s7924_s3 + $0x428] sm:$0xff] %v4099_v53  ;;  %v3724_v11 = vmax.f32 %v3392_v60, 0.0  ;;  %v3956_v50 = vmul.f32 %v6289_v56, %v3768_v22  ;;  %v3395_v7 = vadd.f32 %v7403_v55, %v2626_v18 }
 0x332   :  { %v3954_v15 = vmul.f32 %v6289_v56, %v3766_v54  ;;  %v3769_v28 = vmax.f32 %v3571_v21, 0.0  ;;  %v3767_v39 = vmax.f32 %v3563_v26, 0.0 }
 0x333   :  { %v3912_v13 = vmul.f32 %v6289_v56, %v3724_v11  ;;  %v4144_v34 = vadd.f32 %v6309_v44, %v3956_v50  ;;  %v3725_v20 = vmax.f32 %v3395_v7, 0.0 }
 0x334   :  { %v4142_v55 = vadd.f32 %v6309_v44, %v3954_v15  ;;  %v3957_v3 = vmul.f32 %v6289_v56, %v3769_v28  ;;  %v3955_v43 = vmul.f32 %v6289_v56, %v3767_v39  ;;  %v2630_v24 = vpop.f32.mrb[16].mxu0  ;;  %v4936_v16 = vpop.f32.mrb[16].mxu1 }
 0x335   :  { %v4100_v58 = vadd.f32 %v6309_v44, %v3912_v13  ;;  %4328 = vst [vmem:[%s7924_s3 + $0x590] sm:$0xff] %v4144_v34  ;;  %v3913_v1 = vmul.f32 %v6289_v56, %v3725_v20  ;;  %v2631_v12 = vadd.f32 %v2630_v24, %v6281_v40  ;;  %v3584_v42 = vadd.f32 %v4936_v16, %v2815_v33  ;;  %v2632_v10 = vpop.f32.mrb[17].mxu0  ;;  %v3575_v51 = vpop.f32.mrb[17].mxu1 }
 0x336   :  { %4326 = vst [vmem:[%s7924_s3 + $0x580] sm:$0xff] %v4142_v55  ;;  %v4145_v38 = vadd.f32 %v6309_v44, %v3957_v3  ;;  %v4143_v2 = vadd.f32 %v6309_v44, %v3955_v43  ;;  %v3576_v63 = vadd.f32 %v3575_v51, %v2807_v6  ;;  %v2633_v46 = vpop.f32.mrb[18].mxu0  ;;  %v4937_v48 = vpop.f32.mrb[18].mxu1 }
 0x337   :  { %4284 = vst [vmem:[%s7924_s3 + $0x430] sm:$0xff] %v4100_v58  ;;  %v4101_v17 = vadd.f32 %v6309_v44, %v3913_v1  ;;  %v3400_v45 = vadd.f32 %v7423_v62, %v2631_v12  ;;  %v3772_v29 = vmax.f32 %v3584_v42, 0.0  ;;  %v2634_v35 = vadd.f32 %v2633_v46, %v6281_v40  ;;  %v2635_v32 = vpop.f32.mrb[19].mxu0  ;;  %v3578_v47 = vpop.f32.mrb[19].mxu1 }
 0x338   :  { %4329 = vst [vmem:[%s7924_s3 + $0x598] sm:$0xff] %v4145_v38  ;;  %4327 = vst [vmem:[%s7924_s3 + $0x588] sm:$0xff] %v4143_v2  ;;  %v3770_v23 = vmax.f32 %v3576_v63, 0.0  ;;  %v3587_v49 = vadd.f32 %v4937_v48, %v2818_v9  ;;  %v3579_v41 = vadd.f32 %v3578_v47, %v2810_v0 }
 0x339   :  { %4285 = vst [vmem:[%s7924_s3 + $0x438] sm:$0xff] %v4101_v17  ;;  %v3726_v62 = vmax.f32 %v3400_v45, 0.0  ;;  %v3960_v40 = vmul.f32 %v6289_v56, %v3772_v29  ;;  %v3403_v25 = vadd.f32 %v7433_v31, %v2634_v35 }
 0x33a   :  { %v3958_v52 = vmul.f32 %v6289_v56, %v3770_v23  ;;  %v3773_v4 = vmax.f32 %v3587_v49, 0.0  ;;  %v3771_v27 = vmax.f32 %v3579_v41, 0.0 }
 0x33b   :  { %v3914_v57 = vmul.f32 %v6289_v56, %v3726_v62  ;;  %v4148_v19 = vadd.f32 %v6309_v44, %v3960_v40  ;;  %v3727_v61 = vmax.f32 %v3403_v25, 0.0 }
 0x33c   :  { %v4146_v37 = vadd.f32 %v6309_v44, %v3958_v52  ;;  %v3961_v53 = vmul.f32 %v6289_v56, %v3773_v4  ;;  %v3959_v60 = vmul.f32 %v6289_v56, %v3771_v27 }
 0x33d   :  { %v4102_v22 = vadd.f32 %v6309_v44, %v3914_v57  ;;  %4332 = vst [vmem:[%s7924_s3 + $0x5b0] sm:$0xff] %v4148_v19  ;;  %v3915_v31 = vmul.f32 %v6289_v56, %v3727_v61 }
 0x33e   :  { %4330 = vst [vmem:[%s7924_s3 + $0x5a0] sm:$0xff] %v4146_v37  ;;  %v4149_v18 = vadd.f32 %v6309_v44, %v3961_v53  ;;  %v4147_v30 = vadd.f32 %v6309_v44, %v3959_v60 }
 0x33f   :  { %4286 = vst [vmem:[%s7924_s3 + $0x440] sm:$0xff] %v4102_v22  ;;  %v4103_v59 = vadd.f32 %v6309_v44, %v3915_v31 }
 0x340   :  { %4333 = vst [vmem:[%s7924_s3 + $0x5b8] sm:$0xff] %v4149_v18  ;;  %4331 = vst [vmem:[%s7924_s3 + $0x5a8] sm:$0xff] %v4147_v30 }
 0x341   :  { %4287 = vst [vmem:[%s7924_s3 + $0x448] sm:$0xff] %v4103_v59 }

// kernel: _forward.11
= control target key start
LH: loop header
LB: loop body
LE: loop exit
PB: predicated region body
PF: predicated region fallthrough
CT: control target
= control target key end

     0   :  { %s4313_s1 = inlined_call_operand.vmem [shape: bf16[2560,128], index: 1, kind: input, shape index: {}]   ;;  %s4314_s0 = inlined_call_operand.vmem [shape: bf16[64,2560], index: 0, kind: input, shape index: {}]   ;;  %s4315_s2 = inlined_call_operand.vmem [shape: f32[8,128], index: 2, kind: input, shape index: {}]   ;;  %s4316_s3 = inlined_call_operand.vmem [shape: f32[64,128], index: 3, kind: input, shape index: {}]   ;;  %s4317_s4 = inlined_call_operand.vmem [shape: f32[64,128], index: 4, kind: output, shape index: {}]  }
   0x1   :  { %v3157_v0 = vld [vmem:[%s4313_s1 + $0x40] sm:$0xff]   ;;  %v3161_v4 = vld [vmem:[%s4313_s1 + $0x48] sm:$0xff]   ;;  %v3165_v8 = vld [vmem:[%s4313_s1 + $0x50] sm:$0xff]  }
   0x2   :  { %v3158_v1 = vld [vmem:[%s4313_s1 + $0xc0] sm:$0xff]   ;;  %2757 = vmatprep.subr.bf16.mxu0 %v3157_v0  ;;  %v3162_v5 = vld [vmem:[%s4313_s1 + $0xc8] sm:$0xff]   ;;  %v3166_v9 = vld [vmem:[%s4313_s1 + $0xd0] sm:$0xff]  }
   0x3   :  { %v3159_v2 = vld [vmem:[%s4313_s1] sm:$0xff]   ;;  %2797 = vmatprep.subr.bf16.mxu1 %v3158_v1  ;;  %v3163_v6 = vld [vmem:[%s4313_s1 + $0x8] sm:$0xff]   ;;  %v3167_v10 = vld [vmem:[%s4313_s1 + $0x10] sm:$0xff]  }
   0x4   :  { %v3160_v3 = vld [vmem:[%s4313_s1 + $0x80] sm:$0xff]   ;;  %2758 = vmatpush3.bf16.msra.mxu0 %v3159_v2  ;;  %v3164_v7 = vld [vmem:[%s4313_s1 + $0x88] sm:$0xff]   ;;  %v3168_v11 = vld [vmem:[%s4313_s1 + $0x90] sm:$0xff]  }
   0x5   :  { %2798 = vmatpush3.bf16.msra.mxu1 %v3160_v3  ;;  %2759 = vmatprep.subr.bf16.mxu0 %v3161_v4  ;;  %v3169_v12 = vld [vmem:[%s4313_s1 + $0x58] sm:$0xff]   ;;  %v3173_v16 = vld [vmem:[%s4313_s1 + $0x60] sm:$0xff]   ;;  %v3177_v20 = vld [vmem:[%s4313_s1 + $0x68] sm:$0xff]  }
   0x6   :  { %2799 = vmatprep.subr.bf16.mxu1 %v3162_v5  ;;  %v3170_v13 = vld [vmem:[%s4313_s1 + $0xd8] sm:$0xff]   ;;  %v3174_v17 = vld [vmem:[%s4313_s1 + $0xe0] sm:$0xff]   ;;  %v3178_v21 = vld [vmem:[%s4313_s1 + $0xe8] sm:$0xff]  }
   0x7   :  { %v3171_v14 = vld [vmem:[%s4313_s1 + $0x18] sm:$0xff]   ;;  %v3175_v18 = vld [vmem:[%s4313_s1 + $0x20] sm:$0xff]   ;;  %v3179_v22 = vld [vmem:[%s4313_s1 + $0x28] sm:$0xff]  }
   0x8   :  { %2760 = vmatpush3.bf16.msra.mxu0 %v3163_v6  ;;  %v3172_v15 = vld [vmem:[%s4313_s1 + $0x98] sm:$0xff]   ;;  %v3176_v19 = vld [vmem:[%s4313_s1 + $0xa0] sm:$0xff]   ;;  %v3180_v23 = vld [vmem:[%s4313_s1 + $0xa8] sm:$0xff]  }
   0x9   :  { %2800 = vmatpush3.bf16.msra.mxu1 %v3164_v7  ;;  %2761 = vmatprep.subr.bf16.mxu0 %v3165_v8  ;;  %v3181_v24 = vld [vmem:[%s4313_s1 + $0x70] sm:$0xff]   ;;  %v3185_v28 = vld [vmem:[%s4313_s1 + $0x78] sm:$0xff]   ;;  %v3195_v36 = vld [vmem:[%s4313_s1 + $0x140] sm:$0xff]  }
   0xa   :  { %2801 = vmatprep.subr.bf16.mxu1 %v3166_v9  ;;  %v3182_v25 = vld [vmem:[%s4313_s1 + $0xf0] sm:$0xff]   ;;  %v3186_v29 = vld [vmem:[%s4313_s1 + $0xf8] sm:$0xff]   ;;  %v3196_v37 = vld [vmem:[%s4313_s1 + $0x1c0] sm:$0xff]  }
   0xb   :  { %v3183_v26 = vld [vmem:[%s4313_s1 + $0x30] sm:$0xff]   ;;  %v3187_v30 = vld [vmem:[%s4313_s1 + $0x38] sm:$0xff]   ;;  %v3197_v38 = vld [vmem:[%s4313_s1 + $0x100] sm:$0xff]  }
   0xc   :  { %2762 = vmatpush3.bf16.msra.mxu0 %v3167_v10  ;;  %v3184_v27 = vld [vmem:[%s4313_s1 + $0xb0] sm:$0xff]   ;;  %v3188_v31 = vld [vmem:[%s4313_s1 + $0xb8] sm:$0xff]   ;;  %v3198_v39 = vld [vmem:[%s4313_s1 + $0x180] sm:$0xff]  }
   0xd   :  { %2802 = vmatpush3.bf16.msra.mxu1 %v3168_v11  ;;  %2763 = vmatprep.subr.bf16.mxu0 %v3169_v12  ;;  %v3189_v32 = vld [vmem:[%s4314_s0] ss:$80 sps:$4 sm:$0xff]   ;;  %v3191_v33 = vld [vmem:[%s4314_s0 + $0x4] ss:$80 sps:$4 sm:$0xff]   ;;  %v3192_v34 = vld [vmem:[%s4314_s0 + $0x8] ss:$80 sps:$4 sm:$0xff]  }
   0xe   :  { %2803 = vmatprep.subr.bf16.mxu1 %v3170_v13  ;;  %v3194_v35 = vld [vmem:[%s4314_s0 + $0xc] ss:$80 sps:$4 sm:$0xff]   ;;  %1815 = vmatprep.mubr.bf16.mxu0 %v3191_v33  ;;  %v3203_v44 = vld [vmem:[%s4314_s0 + $0xa4] ss:$80 sps:$4 sm:$0xff]   ;;  %v3207_v46 = vld [vmem:[%s4314_s0 + $0xa0] ss:$80 sps:$4 sm:$0xff]  }
   0xf   :  { %1880 = vmatprep.mubr.bf16.mxu1 %v3194_v35  ;;  %v3199_v40 = vld [vmem:[%s4313_s1 + $0x148] sm:$0xff]   ;;  %v3209_v48 = vld [vmem:[%s4313_s1 + $0x150] sm:$0xff]   ;;  %v3213_v52 = vld [vmem:[%s4313_s1 + $0x158] sm:$0xff]  }
  0x10   :  { %2764 = vmatpush3.bf16.msra.mxu0 %v3171_v14  ;;  %v3200_v41 = vld [vmem:[%s4313_s1 + $0x1c8] sm:$0xff]   ;;  %v3210_v49 = vld [vmem:[%s4313_s1 + $0x1d0] sm:$0xff]   ;;  %v3214_v53 = vld [vmem:[%s4313_s1 + $0x1d8] sm:$0xff]  }
  0x11   :  { %2804 = vmatpush3.bf16.msra.mxu1 %v3172_v15  ;;  %2765 = vmatprep.subr.bf16.mxu0 %v3173_v16  ;;  %v3201_v42 = vld [vmem:[%s4313_s1 + $0x108] sm:$0xff]   ;;  %v3211_v50 = vld [vmem:[%s4313_s1 + $0x110] sm:$0xff]   ;;  %v3215_v54 = vld [vmem:[%s4313_s1 + $0x118] sm:$0xff]  }
  0x12   :  { %2805 = vmatprep.subr.bf16.mxu1 %v3174_v17  ;;  %v3202_v43 = vld [vmem:[%s4313_s1 + $0x188] sm:$0xff]   ;;  %v3212_v51 = vld [vmem:[%s4313_s1 + $0x190] sm:$0xff]   ;;  %v3216_v55 = vld [vmem:[%s4313_s1 + $0x198] sm:$0xff]  }
  0x13   :  { %v3205_v45 = vld [vmem:[%s4314_s0 + $0xac] ss:$80 sps:$4 sm:$0xff]   ;;  %v3208_v47 = vld [vmem:[%s4314_s0 + $0xa8] ss:$80 sps:$4 sm:$0xff]   ;;  %v3217_v56 = vld [vmem:[%s4314_s0 + $0x144] ss:$80 sps:$4 sm:$0xff]  }
  0x14   :  { %2766 = vmatpush3.bf16.msra.mxu0 %v3175_v18  ;;  %v3219_v57 = vld [vmem:[%s4314_s0 + $0x14c] ss:$80 sps:$4 sm:$0xff]   ;;  %v3221_v58 = vld [vmem:[%s4314_s0 + $0x140] ss:$80 sps:$4 sm:$0xff]   ;;  %v3222_v59 = vld [vmem:[%s4314_s0 + $0x148] ss:$80 sps:$4 sm:$0xff]  }
  0x15   :  { %2806 = vmatpush3.bf16.msra.mxu1 %v3176_v19  ;;  %2767 = vmatprep.subr.bf16.mxu0 %v3177_v20  ;;  %v3223_v60 = vld [vmem:[%s4313_s1 + $0x160] sm:$0xff]   ;;  %v3227_v0 = vld [vmem:[%s4313_s1 + $0x168] sm:$0xff]   ;;  %v3237_v8 = vld [vmem:[%s4313_s1 + $0x170] sm:$0xff]  }
  0x16   :  { %2807 = vmatprep.subr.bf16.mxu1 %v3178_v21  ;;  %v3224_v61 = vld [vmem:[%s4313_s1 + $0x1e0] sm:$0xff]   ;;  %v3228_v1 = vld [vmem:[%s4313_s1 + $0x1e8] sm:$0xff]   ;;  %v3238_v9 = vld [vmem:[%s4313_s1 + $0x1f0] sm:$0xff]  }
  0x17   :  { %v3225_v62 = vld [vmem:[%s4313_s1 + $0x120] sm:$0xff]   ;;  %v3229_v2 = vld [vmem:[%s4313_s1 + $0x128] sm:$0xff]   ;;  %v3239_v10 = vld [vmem:[%s4313_s1 + $0x130] sm:$0xff]  }
  0x18   :  { %2768 = vmatpush3.bf16.msra.mxu0 %v3179_v22  ;;  %v3226_v63 = vld [vmem:[%s4313_s1 + $0x1a0] sm:$0xff]   ;;  %v3230_v3 = vld [vmem:[%s4313_s1 + $0x1a8] sm:$0xff]   ;;  %v3240_v11 = vld [vmem:[%s4313_s1 + $0x1b0] sm:$0xff]  }
  0x19   :  { %2808 = vmatpush3.bf16.msra.mxu1 %v3180_v23  ;;  %2769 = vmatprep.subr.bf16.mxu0 %v3181_v24  ;;  %v3231_v4 = vld [vmem:[%s4314_s0 + $0x1e4] ss:$80 sps:$4 sm:$0xff]   ;;  %v3233_v5 = vld [vmem:[%s4314_s0 + $0x1ec] ss:$80 sps:$4 sm:$0xff]   ;;  %v3235_v6 = vld [vmem:[%s4314_s0 + $0x1e0] ss:$80 sps:$4 sm:$0xff]  }
  0x1a   :  { %2809 = vmatprep.subr.bf16.mxu1 %v3182_v25  ;;  %v3236_v7 = vld [vmem:[%s4314_s0 + $0x1e8] ss:$80 sps:$4 sm:$0xff]   ;;  %v3245_v16 = vld [vmem:[%s4314_s0 + $0x10] ss:$80 sps:$4 sm:$0xff]   ;;  %v3247_v17 = vld [vmem:[%s4314_s0 + $0x14] ss:$80 sps:$4 sm:$0xff]  }
  0x1b   :  { %v3241_v12 = vld [vmem:[%s4313_s1 + $0x178] sm:$0xff]   ;;  %v3251_v20 = vld [vmem:[%s4313_s1 + $0x240] sm:$0xff]   ;;  %v3255_v24 = vld [vmem:[%s4313_s1 + $0x248] sm:$0xff]  }
  0x1c   :  { %2770 = vmatpush3.bf16.msra.mxu0 %v3183_v26  ;;  %v3242_v13 = vld [vmem:[%s4313_s1 + $0x1f8] sm:$0xff]   ;;  %v3252_v21 = vld [vmem:[%s4313_s1 + $0x2c0] sm:$0xff]   ;;  %v3256_v25 = vld [vmem:[%s4313_s1 + $0x2c8] sm:$0xff]  }
  0x1d   :  { %2810 = vmatpush3.bf16.msra.mxu1 %v3184_v27  ;;  %2771 = vmatprep.subr.bf16.mxu0 %v3185_v28  ;;  %v3243_v14 = vld [vmem:[%s4313_s1 + $0x138] sm:$0xff]   ;;  %v3253_v22 = vld [vmem:[%s4313_s1 + $0x200] sm:$0xff]   ;;  %v3257_v26 = vld [vmem:[%s4313_s1 + $0x208] sm:$0xff]  }
  0x1e   :  { %2811 = vmatprep.subr.bf16.mxu1 %v3186_v29  ;;  %v3244_v15 = vld [vmem:[%s4313_s1 + $0x1b8] sm:$0xff]   ;;  %v3254_v23 = vld [vmem:[%s4313_s1 + $0x280] sm:$0xff]   ;;  %v3258_v27 = vld [vmem:[%s4313_s1 + $0x288] sm:$0xff]  }
  0x1f   :  { %v3248_v18 = vld [vmem:[%s4314_s0 + $0x18] ss:$80 sps:$4 sm:$0xff]   ;;  %v3250_v19 = vld [vmem:[%s4314_s0 + $0x1c] ss:$80 sps:$4 sm:$0xff]   ;;  %v3259_v28 = vld [vmem:[%s4314_s0 + $0xb4] ss:$80 sps:$4 sm:$0xff]  }
  0x20   :  { %2772 = vmatpush3.bf16.msra.mxu0 %v3187_v30  ;;  %v3261_v29 = vld [vmem:[%s4314_s0 + $0xbc] ss:$80 sps:$4 sm:$0xff]   ;;  %v3263_v30 = vld [vmem:[%s4314_s0 + $0xb0] ss:$80 sps:$4 sm:$0xff]  }
  0x21   :  { %2812 = vmatpush3.bf16.msra.mxu1 %v3188_v31  ;;  %2837 = vmatprep.subr.bf16.mxu0 %v3195_v36  ;;  %v3264_v31 = vld [vmem:[%s4314_s0 + $0xb8] ss:$80 sps:$4 sm:$0xff]   ;;  %v3266_v33 = vld [vmem:[%s4313_s1 + $0x2d0] sm:$0xff]  }
  0x22   :  { %2877 = vmatprep.subr.bf16.mxu1 %v3196_v37  ;;  %v3268_v35 = vld [vmem:[%s4313_s1 + $0x290] sm:$0xff]   ;;  %v3269_v36 = vld [vmem:[%s4313_s1 + $0x258] sm:$0xff]  }
  0x23   :  { %1816 = vmatmul.mubr.bf16.vlgmr.msra.gmra.mrb[0].mxu0 %v3189_v32  ;;  %v3265_v32 = vld [vmem:[%s4313_s1 + $0x250] sm:$0xff]   ;;  %v3270_v37 = vld [vmem:[%s4313_s1 + $0x2d8] sm:$0xff]  }
  0x24   :  { %1881 = vmatmul.mubr.bf16.vlgmr.msra.gmra.mrb[0].mxu1 %v3192_v34  ;;  %2838 = vmatpush3.bf16.msra.mxu0 %v3197_v38  ;;  %v3267_v34 = vld [vmem:[%s4313_s1 + $0x210] sm:$0xff]   ;;  %v3271_v38 = vld [vmem:[%s4313_s1 + $0x218] sm:$0xff]  }
  0x25   :  { %2878 = vmatpush3.bf16.msra.mxu1 %v3198_v39  ;;  %2839 = vmatprep.subr.bf16.mxu0 %v3199_v40  ;;  %v3272_v39 = vld [vmem:[%s4313_s1 + $0x298] sm:$0xff]   ;;  %v3273_v40 = vld [vmem:[%s4314_s0 + $0x154] ss:$80 sps:$4 sm:$0xff]  }
  0x26   :  { %2879 = vmatprep.subr.bf16.mxu1 %v3200_v41  ;;  %1823 = vmatprep.mubr.bf16.mxu0 %v3203_v44  ;;  %v3275_v41 = vld [vmem:[%s4314_s0 + $0x15c] ss:$80 sps:$4 sm:$0xff]   ;;  %v3279_v44 = vld [vmem:[%s4313_s1 + $0x260] sm:$0xff]  }
  0x27   :  { %1888 = vmatprep.mubr.bf16.mxu1 %v3205_v45  ;;  %v3280_v45 = vld [vmem:[%s4313_s1 + $0x2e0] sm:$0xff]  }
  0x28   :  { %2840 = vmatpush3.bf16.msra.mxu0 %v3201_v42  ;;  %v3277_v42 = vld [vmem:[%s4314_s0 + $0x150] ss:$80 sps:$4 sm:$0xff]  }
  0x29   :  { %2880 = vmatpush3.bf16.msra.mxu1 %v3202_v43  ;;  %2841 = vmatprep.subr.bf16.mxu0 %v3209_v48  ;;  %v3278_v43 = vld [vmem:[%s4314_s0 + $0x158] ss:$80 sps:$4 sm:$0xff]  }
  0x2a   :  { %2881 = vmatprep.subr.bf16.mxu1 %v3210_v49  ;;  %v3283_v48 = vld [vmem:[%s4313_s1 + $0x268] sm:$0xff]  }
  0x2b   :  { %1824 = vmatmul.mubr.bf16.gmra.mrb[4].mxu0 %v3207_v46  ;;  %v3281_v46 = vld [vmem:[%s4313_s1 + $0x220] sm:$0xff]   ;;  %v3284_v49 = vld [vmem:[%s4313_s1 + $0x2e8] sm:$0xff]  }
  0x2c   :  { %1889 = vmatmul.mubr.bf16.gmra.mrb[4].mxu1 %v3208_v47  ;;  %2842 = vmatpush3.bf16.msra.mxu0 %v3211_v50  ;;  %v3282_v47 = vld [vmem:[%s4313_s1 + $0x2a0] sm:$0xff]   ;;  %v3285_v50 = vld [vmem:[%s4313_s1 + $0x228] sm:$0xff]  }
  0x2d   :  { %2882 = vmatpush3.bf16.msra.mxu1 %v3212_v51  ;;  %2843 = vmatprep.subr.bf16.mxu0 %v3213_v52  ;;  %v3286_v51 = vld [vmem:[%s4313_s1 + $0x2a8] sm:$0xff]   ;;  %v3287_v52 = vld [vmem:[%s4314_s0 + $0x1f4] ss:$80 sps:$4 sm:$0xff]  }
  0x2e   :  { %2883 = vmatprep.subr.bf16.mxu1 %v3214_v53  ;;  %1831 = vmatprep.mubr.bf16.mxu0 %v3217_v56  ;;  %v3289_v53 = vld [vmem:[%s4314_s0 + $0x1fc] ss:$80 sps:$4 sm:$0xff]   ;;  %v3293_v56 = vld [vmem:[%s4313_s1 + $0x270] sm:$0xff]  }
  0x2f   :  { %1896 = vmatprep.mubr.bf16.mxu1 %v3219_v57  ;;  %v3294_v57 = vld [vmem:[%s4313_s1 + $0x2f0] sm:$0xff]  }
  0x30   :  { %2844 = vmatpush3.bf16.msra.mxu0 %v3215_v54  ;;  %v3291_v54 = vld [vmem:[%s4314_s0 + $0x1f0] ss:$80 sps:$4 sm:$0xff]  }
  0x31   :  { %2884 = vmatpush3.bf16.msra.mxu1 %v3216_v55  ;;  %2845 = vmatprep.subr.bf16.mxu0 %v3223_v60  ;;  %v3292_v55 = vld [vmem:[%s4314_s0 + $0x1f8] ss:$80 sps:$4 sm:$0xff]  }
  0x32   :  { %2885 = vmatprep.subr.bf16.mxu1 %v3224_v61  ;;  %v3297_v60 = vld [vmem:[%s4313_s1 + $0x278] sm:$0xff]  }
  0x33   :  { %1832 = vmatmul.mubr.bf16.gmra.mrb[8].mxu0 %v3221_v58  ;;  %v3295_v58 = vld [vmem:[%s4313_s1 + $0x230] sm:$0xff]   ;;  %v3298_v61 = vld [vmem:[%s4313_s1 + $0x2f8] sm:$0xff]  }
  0x34   :  { %1897 = vmatmul.mubr.bf16.gmra.mrb[8].mxu1 %v3222_v59  ;;  %2846 = vmatpush3.bf16.msra.mxu0 %v3225_v62  ;;  %v3296_v59 = vld [vmem:[%s4313_s1 + $0x2b0] sm:$0xff]   ;;  %v3299_v62 = vld [vmem:[%s4313_s1 + $0x238] sm:$0xff]  }
  0x35   :  { %2886 = vmatpush3.bf16.msra.mxu1 %v3226_v63  ;;  %2847 = vmatprep.subr.bf16.mxu0 %v3227_v0  ;;  %v3300_v63 = vld [vmem:[%s4313_s1 + $0x2b8] sm:$0xff]   ;;  %v3301_v0 = vld [vmem:[%s4314_s0 + $0x20] ss:$80 sps:$4 sm:$0xff]  }
  0x36   :  { %2887 = vmatprep.subr.bf16.mxu1 %v3228_v1  ;;  %1839 = vmatprep.mubr.bf16.mxu0 %v3231_v4  ;;  %v3303_v1 = vld [vmem:[%s4314_s0 + $0x24] ss:$80 sps:$4 sm:$0xff]  }
  0x37   :  { %1904 = vmatprep.mubr.bf16.mxu1 %v3233_v5  ;;  %v3307_v4 = vld [vmem:[%s4313_s1 + $0x340] sm:$0xff]  }
  0x38   :  { %2848 = vmatpush3.bf16.msra.mxu0 %v3229_v2  ;;  %v3304_v2 = vld [vmem:[%s4314_s0 + $0x28] ss:$80 sps:$4 sm:$0xff]   ;;  %v3308_v5 = vld [vmem:[%s4313_s1 + $0x3c0] sm:$0xff]  }
  0x39   :  { %2888 = vmatpush3.bf16.msra.mxu1 %v3230_v3  ;;  %2849 = vmatprep.subr.bf16.mxu0 %v3237_v8  ;;  %v3306_v3 = vld [vmem:[%s4314_s0 + $0x2c] ss:$80 sps:$4 sm:$0xff]  }
  0x3a   :  { %2889 = vmatprep.subr.bf16.mxu1 %v3238_v9  ;;  %v3311_v8 = vld [vmem:[%s4313_s1 + $0x348] sm:$0xff]  }
  0x3b   :  { %1840 = vmatmul.mubr.bf16.gmra.mrb[12].mxu0 %v3235_v6  ;;  %v3309_v6 = vld [vmem:[%s4313_s1 + $0x300] sm:$0xff]   ;;  %v3312_v9 = vld [vmem:[%s4313_s1 + $0x3c8] sm:$0xff]  }
  0x3c   :  { %1905 = vmatmul.mubr.bf16.gmra.mrb[12].mxu1 %v3236_v7  ;;  %2850 = vmatpush3.bf16.msra.mxu0 %v3239_v10  ;;  %v3310_v7 = vld [vmem:[%s4313_s1 + $0x380] sm:$0xff]   ;;  %v3313_v10 = vld [vmem:[%s4313_s1 + $0x308] sm:$0xff]  }
  0x3d   :  { %2890 = vmatpush3.bf16.msra.mxu1 %v3240_v11  ;;  %2851 = vmatprep.subr.bf16.mxu0 %v3241_v12  ;;  %v3314_v11 = vld [vmem:[%s4313_s1 + $0x388] sm:$0xff]   ;;  %v3315_v12 = vld [vmem:[%s4314_s0 + $0xc4] ss:$80 sps:$4 sm:$0xff]  }
  0x3e   :  { %2891 = vmatprep.subr.bf16.mxu1 %v3242_v13  ;;  %1945 = vmatprep.mubr.bf16.mxu0 %v3247_v17  ;;  %v3317_v13 = vld [vmem:[%s4314_s0 + $0xcc] ss:$80 sps:$4 sm:$0xff]   ;;  %v3322_v17 = vld [vmem:[%s4313_s1 + $0x3d0] sm:$0xff]  }
  0x3f   :  { %2010 = vmatprep.mubr.bf16.mxu1 %v3250_v19  ;;  %v3324_v19 = vld [vmem:[%s4313_s1 + $0x390] sm:$0xff]  }
  0x40   :  { %2852 = vmatpush3.bf16.msra.mxu0 %v3243_v14  ;;  %v3319_v14 = vld [vmem:[%s4314_s0 + $0xc0] ss:$80 sps:$4 sm:$0xff]  }
  0x41   :  { %2892 = vmatpush3.bf16.msra.mxu1 %v3244_v15  ;;  %2917 = vmatprep.subr.bf16.mxu0 %v3251_v20  ;;  %v3320_v15 = vld [vmem:[%s4314_s0 + $0xc8] ss:$80 sps:$4 sm:$0xff]  }
  0x42   :  { %2957 = vmatprep.subr.bf16.mxu1 %v3252_v21  ;;  %v3325_v20 = vld [vmem:[%s4313_s1 + $0x358] sm:$0xff]  }
  0x43   :  { %1946 = vmatmul.mubr.bf16.vlgmr.msra.gmra.mrb[16].mxu0 %v3245_v16  ;;  %v3321_v16 = vld [vmem:[%s4313_s1 + $0x350] sm:$0xff]   ;;  %v3326_v21 = vld [vmem:[%s4313_s1 + $0x3d8] sm:$0xff]  }
  0x44   :  { %2011 = vmatmul.mubr.bf16.vlgmr.msra.gmra.mrb[16].mxu1 %v3248_v18  ;;  %2918 = vmatpush3.bf16.msra.mxu0 %v3253_v22  ;;  %v3323_v18 = vld [vmem:[%s4313_s1 + $0x310] sm:$0xff]   ;;  %v3327_v22 = vld [vmem:[%s4313_s1 + $0x318] sm:$0xff]  }
  0x45   :  { %2958 = vmatpush3.bf16.msra.mxu1 %v3254_v23  ;;  %2919 = vmatprep.subr.bf16.mxu0 %v3255_v24  ;;  %v3328_v23 = vld [vmem:[%s4313_s1 + $0x398] sm:$0xff]   ;;  %v3329_v24 = vld [vmem:[%s4314_s0 + $0x164] ss:$80 sps:$4 sm:$0xff]  }
  0x46   :  { %2959 = vmatprep.subr.bf16.mxu1 %v3256_v25  ;;  %1953 = vmatprep.mubr.bf16.mxu0 %v3259_v28  ;;  %v3331_v25 = vld [vmem:[%s4314_s0 + $0x16c] ss:$80 sps:$4 sm:$0xff]   ;;  %v3335_v28 = vld [vmem:[%s4313_s1 + $0x360] sm:$0xff]  }
  0x47   :  { %2018 = vmatprep.mubr.bf16.mxu1 %v3261_v29  ;;  %v3336_v29 = vld [vmem:[%s4313_s1 + $0x3e0] sm:$0xff]  }
  0x48   :  { %2920 = vmatpush3.bf16.msra.mxu0 %v3257_v26  ;;  %v3333_v26 = vld [vmem:[%s4314_s0 + $0x160] ss:$80 sps:$4 sm:$0xff]  }
  0x49   :  { %2960 = vmatpush3.bf16.msra.mxu1 %v3258_v27  ;;  %2921 = vmatprep.subr.bf16.mxu0 %v3265_v32  ;;  %v3334_v27 = vld [vmem:[%s4314_s0 + $0x168] ss:$80 sps:$4 sm:$0xff]  }
  0x4a   :  { %2961 = vmatprep.subr.bf16.mxu1 %v3266_v33  ;;  %v3339_v32 = vld [vmem:[%s4313_s1 + $0x368] sm:$0xff]  }
  0x4b   :  { %1954 = vmatmul.mubr.bf16.gmra.mrb[20].mxu0 %v3263_v30  ;;  %v3337_v30 = vld [vmem:[%s4313_s1 + $0x320] sm:$0xff]   ;;  %v3340_v33 = vld [vmem:[%s4313_s1 + $0x3e8] sm:$0xff]  }
  0x4c   :  { %2019 = vmatmul.mubr.bf16.gmra.mrb[20].mxu1 %v3264_v31  ;;  %2922 = vmatpush3.bf16.msra.mxu0 %v3267_v34  ;;  %v3338_v31 = vld [vmem:[%s4313_s1 + $0x3a0] sm:$0xff]   ;;  %v3341_v34 = vld [vmem:[%s4313_s1 + $0x328] sm:$0xff]  }
  0x4d   :  { %2962 = vmatpush3.bf16.msra.mxu1 %v3268_v35  ;;  %2923 = vmatprep.subr.bf16.mxu0 %v3269_v36  ;;  %v3342_v35 = vld [vmem:[%s4313_s1 + $0x3a8] sm:$0xff]   ;;  %v3343_v36 = vld [vmem:[%s4314_s0 + $0x204] ss:$80 sps:$4 sm:$0xff]  }
  0x4e   :  { %2963 = vmatprep.subr.bf16.mxu1 %v3270_v37  ;;  %1961 = vmatprep.mubr.bf16.mxu0 %v3273_v40  ;;  %v3345_v37 = vld [vmem:[%s4314_s0 + $0x20c] ss:$80 sps:$4 sm:$0xff]   ;;  %v3349_v40 = vld [vmem:[%s4313_s1 + $0x370] sm:$0xff]  }
  0x4f   :  { %2026 = vmatprep.mubr.bf16.mxu1 %v3275_v41  ;;  %v3350_v41 = vld [vmem:[%s4313_s1 + $0x3f0] sm:$0xff]  }
  0x50   :  { %2924 = vmatpush3.bf16.msra.mxu0 %v3271_v38  ;;  %v3347_v38 = vld [vmem:[%s4314_s0 + $0x200] ss:$80 sps:$4 sm:$0xff]  }
  0x51   :  { %2964 = vmatpush3.bf16.msra.mxu1 %v3272_v39  ;;  %2925 = vmatprep.subr.bf16.mxu0 %v3279_v44  ;;  %v3348_v39 = vld [vmem:[%s4314_s0 + $0x208] ss:$80 sps:$4 sm:$0xff]  }
  0x52   :  { %2965 = vmatprep.subr.bf16.mxu1 %v3280_v45  ;;  %v3353_v44 = vld [vmem:[%s4313_s1 + $0x378] sm:$0xff]  }
  0x53   :  { %1962 = vmatmul.mubr.bf16.gmra.mrb[24].mxu0 %v3277_v42  ;;  %v3351_v42 = vld [vmem:[%s4313_s1 + $0x330] sm:$0xff]   ;;  %v3354_v45 = vld [vmem:[%s4313_s1 + $0x3f8] sm:$0xff]  }
  0x54   :  { %2027 = vmatmul.mubr.bf16.gmra.mrb[24].mxu1 %v3278_v43  ;;  %2926 = vmatpush3.bf16.msra.mxu0 %v3281_v46  ;;  %v3352_v43 = vld [vmem:[%s4313_s1 + $0x3b0] sm:$0xff]   ;;  %v3355_v46 = vld [vmem:[%s4313_s1 + $0x338] sm:$0xff]  }
  0x55   :  { %2966 = vmatpush3.bf16.msra.mxu1 %v3282_v47  ;;  %2927 = vmatprep.subr.bf16.mxu0 %v3283_v48  ;;  %v3356_v47 = vld [vmem:[%s4313_s1 + $0x3b8] sm:$0xff]   ;;  %v3357_v48 = vld [vmem:[%s4314_s0 + $0x30] ss:$80 sps:$4 sm:$0xff]  }
  0x56   :  { %2967 = vmatprep.subr.bf16.mxu1 %v3284_v49  ;;  %1969 = vmatprep.mubr.bf16.mxu0 %v3287_v52  ;;  %v3359_v49 = vld [vmem:[%s4314_s0 + $0x34] ss:$80 sps:$4 sm:$0xff]  }
  0x57   :  { %2034 = vmatprep.mubr.bf16.mxu1 %v3289_v53  ;;  %v3363_v52 = vld [vmem:[%s4313_s1 + $0x440] sm:$0xff]  }
  0x58   :  { %2928 = vmatpush3.bf16.msra.mxu0 %v3285_v50  ;;  %v3360_v50 = vld [vmem:[%s4314_s0 + $0x38] ss:$80 sps:$4 sm:$0xff]   ;;  %v3364_v53 = vld [vmem:[%s4313_s1 + $0x4c0] sm:$0xff]  }
  0x59   :  { %2968 = vmatpush3.bf16.msra.mxu1 %v3286_v51  ;;  %2929 = vmatprep.subr.bf16.mxu0 %v3293_v56  ;;  %v3362_v51 = vld [vmem:[%s4314_s0 + $0x3c] ss:$80 sps:$4 sm:$0xff]  }
  0x5a   :  { %2969 = vmatprep.subr.bf16.mxu1 %v3294_v57  ;;  %v3367_v56 = vld [vmem:[%s4313_s1 + $0x448] sm:$0xff]  }
  0x5b   :  { %1970 = vmatmul.mubr.bf16.gmra.mrb[28].mxu0 %v3291_v54  ;;  %v3365_v54 = vld [vmem:[%s4313_s1 + $0x400] sm:$0xff]   ;;  %v3368_v57 = vld [vmem:[%s4313_s1 + $0x4c8] sm:$0xff]  }
  0x5c   :  { %2035 = vmatmul.mubr.bf16.gmra.mrb[28].mxu1 %v3292_v55  ;;  %2930 = vmatpush3.bf16.msra.mxu0 %v3295_v58  ;;  %v3366_v55 = vld [vmem:[%s4313_s1 + $0x480] sm:$0xff]   ;;  %v3369_v58 = vld [vmem:[%s4313_s1 + $0x408] sm:$0xff]  }
  0x5d   :  { %2970 = vmatpush3.bf16.msra.mxu1 %v3296_v59  ;;  %2931 = vmatprep.subr.bf16.mxu0 %v3297_v60  ;;  %v3370_v59 = vld [vmem:[%s4313_s1 + $0x488] sm:$0xff]   ;;  %v3371_v60 = vld [vmem:[%s4314_s0 + $0xd4] ss:$80 sps:$4 sm:$0xff]  }
  0x5e   :  { %2971 = vmatprep.subr.bf16.mxu1 %v3298_v61  ;;  %2075 = vmatprep.mubr.bf16.mxu0 %v3303_v1  ;;  %v3373_v61 = vld [vmem:[%s4314_s0 + $0xdc] ss:$80 sps:$4 sm:$0xff]   ;;  %v3378_v1 = vld [vmem:[%s4313_s1 + $0x4d0] sm:$0xff]  }
  0x5f   :  { %2140 = vmatprep.mubr.bf16.mxu1 %v3306_v3  ;;  %v3380_v3 = vld [vmem:[%s4313_s1 + $0x490] sm:$0xff]  }
  0x60   :  { %2932 = vmatpush3.bf16.msra.mxu0 %v3299_v62  ;;  %v3375_v62 = vld [vmem:[%s4314_s0 + $0xd0] ss:$80 sps:$4 sm:$0xff]  }
  0x61   :  { %2972 = vmatpush3.bf16.msra.mxu1 %v3300_v63  ;;  %2997 = vmatprep.subr.bf16.mxu0 %v3307_v4  ;;  %v3376_v63 = vld [vmem:[%s4314_s0 + $0xd8] ss:$80 sps:$4 sm:$0xff]  }
  0x62   :  { %3037 = vmatprep.subr.bf16.mxu1 %v3308_v5  ;;  %v3381_v4 = vld [vmem:[%s4313_s1 + $0x458] sm:$0xff]  }
  0x63   :  { %2076 = vmatmul.mubr.bf16.vlgmr.msra.gmra.mrb[32].mxu0 %v3301_v0  ;;  %v3377_v0 = vld [vmem:[%s4313_s1 + $0x450] sm:$0xff]   ;;  %v3382_v5 = vld [vmem:[%s4313_s1 + $0x4d8] sm:$0xff]  }
  0x64   :  { %2141 = vmatmul.mubr.bf16.vlgmr.msra.gmra.mrb[32].mxu1 %v3304_v2  ;;  %2998 = vmatpush3.bf16.msra.mxu0 %v3309_v6  ;;  %v3379_v2 = vld [vmem:[%s4313_s1 + $0x410] sm:$0xff]   ;;  %v3383_v6 = vld [vmem:[%s4313_s1 + $0x418] sm:$0xff]  }
  0x65   :  { %3038 = vmatpush3.bf16.msra.mxu1 %v3310_v7  ;;  %2999 = vmatprep.subr.bf16.mxu0 %v3311_v8  ;;  %v3384_v7 = vld [vmem:[%s4313_s1 + $0x498] sm:$0xff]   ;;  %v3385_v8 = vld [vmem:[%s4314_s0 + $0x174] ss:$80 sps:$4 sm:$0xff]  }
  0x66   :  { %3039 = vmatprep.subr.bf16.mxu1 %v3312_v9  ;;  %2083 = vmatprep.mubr.bf16.mxu0 %v3315_v12  ;;  %v3387_v9 = vld [vmem:[%s4314_s0 + $0x17c] ss:$80 sps:$4 sm:$0xff]   ;;  %v3391_v12 = vld [vmem:[%s4313_s1 + $0x460] sm:$0xff]  }
  0x67   :  { %2148 = vmatprep.mubr.bf16.mxu1 %v3317_v13  ;;  %v3392_v13 = vld [vmem:[%s4313_s1 + $0x4e0] sm:$0xff]  }
  0x68   :  { %3000 = vmatpush3.bf16.msra.mxu0 %v3313_v10  ;;  %v3389_v10 = vld [vmem:[%s4314_s0 + $0x170] ss:$80 sps:$4 sm:$0xff]  }
  0x69   :  { %3040 = vmatpush3.bf16.msra.mxu1 %v3314_v11  ;;  %3001 = vmatprep.subr.bf16.mxu0 %v3321_v16  ;;  %v3390_v11 = vld [vmem:[%s4314_s0 + $0x178] ss:$80 sps:$4 sm:$0xff]  }
  0x6a   :  { %3041 = vmatprep.subr.bf16.mxu1 %v3322_v17  ;;  %v3395_v16 = vld [vmem:[%s4313_s1 + $0x468] sm:$0xff]  }
  0x6b   :  { %2084 = vmatmul.mubr.bf16.gmra.mrb[36].mxu0 %v3319_v14  ;;  %v3393_v14 = vld [vmem:[%s4313_s1 + $0x420] sm:$0xff]   ;;  %v3396_v17 = vld [vmem:[%s4313_s1 + $0x4e8] sm:$0xff]  }
  0x6c   :  { %2149 = vmatmul.mubr.bf16.gmra.mrb[36].mxu1 %v3320_v15  ;;  %3002 = vmatpush3.bf16.msra.mxu0 %v3323_v18  ;;  %v3394_v15 = vld [vmem:[%s4313_s1 + $0x4a0] sm:$0xff]   ;;  %v3397_v18 = vld [vmem:[%s4313_s1 + $0x428] sm:$0xff]  }
  0x6d   :  { %3042 = vmatpush3.bf16.msra.mxu1 %v3324_v19  ;;  %3003 = vmatprep.subr.bf16.mxu0 %v3325_v20  ;;  %v3398_v19 = vld [vmem:[%s4313_s1 + $0x4a8] sm:$0xff]   ;;  %v3399_v20 = vld [vmem:[%s4314_s0 + $0x214] ss:$80 sps:$4 sm:$0xff]  }
  0x6e   :  { %3043 = vmatprep.subr.bf16.mxu1 %v3326_v21  ;;  %2091 = vmatprep.mubr.bf16.mxu0 %v3329_v24  ;;  %v3401_v21 = vld [vmem:[%s4314_s0 + $0x21c] ss:$80 sps:$4 sm:$0xff]   ;;  %v3405_v24 = vld [vmem:[%s4313_s1 + $0x470] sm:$0xff]  }
  0x6f   :  { %2156 = vmatprep.mubr.bf16.mxu1 %v3331_v25  ;;  %v3406_v25 = vld [vmem:[%s4313_s1 + $0x4f0] sm:$0xff]  }
  0x70   :  { %3004 = vmatpush3.bf16.msra.mxu0 %v3327_v22  ;;  %v3403_v22 = vld [vmem:[%s4314_s0 + $0x210] ss:$80 sps:$4 sm:$0xff]  }
  0x71   :  { %3044 = vmatpush3.bf16.msra.mxu1 %v3328_v23  ;;  %3005 = vmatprep.subr.bf16.mxu0 %v3335_v28  ;;  %v3404_v23 = vld [vmem:[%s4314_s0 + $0x218] ss:$80 sps:$4 sm:$0xff]  }
  0x72   :  { %3045 = vmatprep.subr.bf16.mxu1 %v3336_v29  ;;  %v3409_v28 = vld [vmem:[%s4313_s1 + $0x478] sm:$0xff]  }
  0x73   :  { %2092 = vmatmul.mubr.bf16.gmra.mrb[40].mxu0 %v3333_v26  ;;  %v3407_v26 = vld [vmem:[%s4313_s1 + $0x430] sm:$0xff]   ;;  %v3410_v29 = vld [vmem:[%s4313_s1 + $0x4f8] sm:$0xff]  }
  0x74   :  { %2157 = vmatmul.mubr.bf16.gmra.mrb[40].mxu1 %v3334_v27  ;;  %3006 = vmatpush3.bf16.msra.mxu0 %v3337_v30  ;;  %v3408_v27 = vld [vmem:[%s4313_s1 + $0x4b0] sm:$0xff]   ;;  %v3411_v30 = vld [vmem:[%s4313_s1 + $0x438] sm:$0xff]  }
  0x75   :  { %3046 = vmatpush3.bf16.msra.mxu1 %v3338_v31  ;;  %3007 = vmatprep.subr.bf16.mxu0 %v3339_v32  ;;  %v3412_v31 = vld [vmem:[%s4313_s1 + $0x4b8] sm:$0xff]   ;;  %v3413_v32 = vld [vmem:[%s4314_s0 + $0x40] ss:$80 sps:$4 sm:$0xff]  }
  0x76   :  { %3047 = vmatprep.subr.bf16.mxu1 %v3340_v33  ;;  %2099 = vmatprep.mubr.bf16.mxu0 %v3343_v36  ;;  %v3415_v33 = vld [vmem:[%s4314_s0 + $0x44] ss:$80 sps:$4 sm:$0xff]  }
  0x77   :  { %2164 = vmatprep.mubr.bf16.mxu1 %v3345_v37  ;;  %v3419_v36 = vld [vmem:[%s4314_s0 + $0xe4] ss:$80 sps:$4 sm:$0xff]   ;;  %v3421_v37 = vld [vmem:[%s4314_s0 + $0xec] ss:$80 sps:$4 sm:$0xff]  }
  0x78   :  { %3008 = vmatpush3.bf16.msra.mxu0 %v3341_v34  ;;  %v3416_v34 = vld [vmem:[%s4314_s0 + $0x48] ss:$80 sps:$4 sm:$0xff]  }
  0x79   :  { %3048 = vmatpush3.bf16.msra.mxu1 %v3342_v35  ;;  %3009 = vmatprep.subr.bf16.mxu0 %v3349_v40  ;;  %v3418_v35 = vld [vmem:[%s4314_s0 + $0x4c] ss:$80 sps:$4 sm:$0xff]   ;;  %v3424_v40 = vld [vmem:[%s4314_s0 + $0xe8] ss:$80 sps:$4 sm:$0xff]  }
  0x7a   :  { %3049 = vmatprep.subr.bf16.mxu1 %v3350_v41  ;;  %v3427_v41 = vld [vmem:[%s4314_s0 + $0x18c] ss:$80 sps:$4 sm:$0xff]  }
  0x7b   :  { %2100 = vmatmul.mubr.bf16.gmra.mrb[44].mxu0 %v3347_v38  ;;  %v3423_v38 = vld [vmem:[%s4314_s0 + $0xe0] ss:$80 sps:$4 sm:$0xff]  }
  0x7c   :  { %2165 = vmatmul.mubr.bf16.gmra.mrb[44].mxu1 %v3348_v39  ;;  %3010 = vmatpush3.bf16.msra.mxu0 %v3351_v42  ;;  %v3425_v39 = vld [vmem:[%s4314_s0 + $0x184] ss:$80 sps:$4 sm:$0xff]   ;;  %v3429_v42 = vld [vmem:[%s4314_s0 + $0x180] ss:$80 sps:$4 sm:$0xff]  }
  0x7d   :  { %3050 = vmatpush3.bf16.msra.mxu1 %v3352_v43  ;;  %3011 = vmatprep.subr.bf16.mxu0 %v3353_v44  ;;  %v3431_v43 = vld [vmem:[%s4314_s0 + $0x224] ss:$80 sps:$4 sm:$0xff]   ;;  %v3430_v44 = vld [vmem:[%s4314_s0 + $0x188] ss:$80 sps:$4 sm:$0xff]  }
  0x7e   :  { %3051 = vmatprep.subr.bf16.mxu1 %v3354_v45  ;;  %2205 = vmatprep.mubr.bf16.mxu0 %v3359_v49  ;;  %v3433_v45 = vld [vmem:[%s4314_s0 + $0x22c] ss:$80 sps:$4 sm:$0xff]  }
  0x7f   :  { %2270 = vmatprep.mubr.bf16.mxu1 %v3362_v51  ;;  %v418_v51 = vld [vmem:[%s4315_s2] sm:$0xff] }
  0x80   :  { %3012 = vmatpush3.bf16.msra.mxu0 %v3355_v46  ;;  %v3435_v46 = vld [vmem:[%s4314_s0 + $0x220] ss:$80 sps:$4 sm:$0xff]  }
  0x81   :  { %3052 = vmatpush3.bf16.msra.mxu1 %v3356_v47  ;;  %3077 = vmatprep.subr.bf16.mxu0 %v3363_v52  ;;  %v3436_v47 = vld [vmem:[%s4314_s0 + $0x228] ss:$80 sps:$4 sm:$0xff]  }
  0x82   :  { %3117 = vmatprep.subr.bf16.mxu1 %v3364_v53 }
  0x83   :  { %2206 = vmatmul.mubr.bf16.vlgmr.msra.gmra.mrb[48].mxu0 %v3357_v48  ;;  %v419_v48 = vlaneseq }
  0x84   :  { %2271 = vmatmul.mubr.bf16.vlgmr.msra.gmra.mrb[48].mxu1 %v3360_v50  ;;  %3078 = vmatpush3.bf16.msra.mxu0 %v3365_v54 }
  0x85   :  { %3118 = vmatpush3.bf16.msra.mxu1 %v3366_v55  ;;  %3079 = vmatprep.subr.bf16.mxu0 %v3367_v56  ;;  %v420_v49 = vshrl.u32 %v419_v48, 7 }
  0x86   :  { %3119 = vmatprep.subr.bf16.mxu1 %v3368_v57  ;;  %2213 = vmatprep.mubr.bf16.mxu0 %v3371_v60 }
  0x87   :  { %2278 = vmatprep.mubr.bf16.mxu1 %v3373_v61  ;;  %v421_v50 = vsub.s32 0, %v420_v49 }
  0x88   :  { %3080 = vmatpush3.bf16.msra.mxu0 %v3369_v58 }
  0x89   :  { %3120 = vmatpush3.bf16.msra.mxu1 %v3370_v59  ;;  %3081 = vmatprep.subr.bf16.mxu0 %v3377_v0  ;;  %v422_v53 = vrot.slane %v418_v51, %v421_v50 }
  0x8a   :  { %3121 = vmatprep.subr.bf16.mxu1 %v3378_v1 }
  0x8b   :  { %2214 = vmatmul.mubr.bf16.gmra.mrb[52].mxu0 %v3375_v62 }
  0x8c   :  { %2279 = vmatmul.mubr.bf16.gmra.mrb[52].mxu1 %v3376_v63  ;;  %3082 = vmatpush3.bf16.msra.mxu0 %v3379_v2 }
  0x8d   :  { %3122 = vmatpush3.bf16.msra.mxu1 %v3380_v3  ;;  %3083 = vmatprep.subr.bf16.mxu0 %v3381_v4 }
  0x8e   :  { %3123 = vmatprep.subr.bf16.mxu1 %v3382_v5  ;;  %2221 = vmatprep.mubr.bf16.mxu0 %v3385_v8 }
  0x8f   :  { %2286 = vmatprep.mubr.bf16.mxu1 %v3387_v9 }
  0x90   :  { %3084 = vmatpush3.bf16.msra.mxu0 %v3383_v6 }
  0x91   :  { %3124 = vmatpush3.bf16.msra.mxu1 %v3384_v7  ;;  %3085 = vmatprep.subr.bf16.mxu0 %v3391_v12 }
  0x92   :  { %3125 = vmatprep.subr.bf16.mxu1 %v3392_v13 }
  0x93   :  { %2222 = vmatmul.mubr.bf16.gmra.mrb[56].mxu0 %v3389_v10 }
  0x94   :  { %2287 = vmatmul.mubr.bf16.gmra.mrb[56].mxu1 %v3390_v11  ;;  %3086 = vmatpush3.bf16.msra.mxu0 %v3393_v14 }
  0x95   :  { %3126 = vmatpush3.bf16.msra.mxu1 %v3394_v15  ;;  %3087 = vmatprep.subr.bf16.mxu0 %v3395_v16 }
  0x96   :  { %3127 = vmatprep.subr.bf16.mxu1 %v3396_v17  ;;  %2229 = vmatprep.mubr.bf16.mxu0 %v3399_v20 }
  0x97   :  { %2294 = vmatprep.mubr.bf16.mxu1 %v3401_v21 }
  0x98   :  { %3088 = vmatpush3.bf16.msra.mxu0 %v3397_v18 }
  0x99   :  { %3128 = vmatpush3.bf16.msra.mxu1 %v3398_v19  ;;  %3089 = vmatprep.subr.bf16.mxu0 %v3405_v24 }
  0x9a   :  { %3129 = vmatprep.subr.bf16.mxu1 %v3406_v25 }
  0x9b   :  { %2230 = vmatmul.mubr.bf16.gmra.mrb[60].mxu0 %v3403_v22 }
  0x9c   :  { %2295 = vmatmul.mubr.bf16.gmra.mrb[60].mxu1 %v3404_v23  ;;  %3090 = vmatpush3.bf16.msra.mxu0 %v3407_v26 }
  0x9d   :  { %3130 = vmatpush3.bf16.msra.mxu1 %v3408_v27  ;;  %3091 = vmatprep.subr.bf16.mxu0 %v3409_v28 }
  0x9e   :  { %3131 = vmatprep.subr.bf16.mxu1 %v3410_v29  ;;  %2335 = vmatprep.mubr.bf16.mxu0 %v3415_v33 }
  0x9f   :  { %2400 = vmatprep.mubr.bf16.mxu1 %v3418_v35 }
  0xa0   :  { %3092 = vmatpush3.bf16.msra.mxu0 %v3411_v30 }
  0xa1   :  { %3132 = vmatpush3.bf16.msra.mxu1 %v3412_v31 }
  0xa3   :  { %2336 = vmatmul.mubr.bf16.vlgmr.msra.gmra.mrb[64].mxu0 %v3413_v32 }
  0xa4   :  { %2401 = vmatmul.mubr.bf16.vlgmr.msra.gmra.mrb[64].mxu1 %v3416_v34  ;;  %2343 = vmatprep.mubr.bf16.mxu0 %v3419_v36 }
  0xa5   :  { %2408 = vmatprep.mubr.bf16.mxu1 %v3421_v37 }
  0xab   :  { %2344 = vmatmul.mubr.bf16.gmra.mrb[68].mxu0 %v3423_v38 }
  0xac   :  { %2351 = vmatprep.mubr.bf16.mxu0 %v3425_v39  ;;  %2409 = vmatmul.mubr.bf16.gmra.mrb[68].mxu1 %v3424_v40 }
  0xad   :  { %2416 = vmatprep.mubr.bf16.mxu1 %v3427_v41 }
  0xb3   :  { %2352 = vmatmul.mubr.bf16.gmra.mrb[72].mxu0 %v3429_v42 }
  0xb4   :  { %2359 = vmatprep.mubr.bf16.mxu0 %v3431_v43  ;;  %2417 = vmatmul.mubr.bf16.gmra.mrb[72].mxu1 %v3430_v44 }
  0xb5   :  { %2424 = vmatprep.mubr.bf16.mxu1 %v3433_v45 }
  0xbb   :  { %2360 = vmatmul.mubr.bf16.gmra.mrb[76].mxu0 %v3435_v46 }
  0xbc   :  { %2425 = vmatmul.mubr.bf16.gmra.mrb[76].mxu1 %v3436_v47 }
  0xf6   :  { %v2773_v52 = vpop.f32.mrb[0].mxu0 }
  0xf7   :  { %v2813_v54 = vpop.f32.mrb[0].mxu1  ;;  %v2774_v55 = vpop.f32.mrb[1].mxu0 }
  0xf8   :  { %v2775_v56 = vadd.f32 %v2774_v55, %v2773_v52  ;;  %v2814_v57 = vpop.f32.mrb[1].mxu1  ;;  %v2776_v58 = vpop.f32.mrb[2].mxu0 }
  0xf9   :  { %v2815_v59 = vadd.f32 %v2814_v57, %v2813_v54  ;;  %v2816_v60 = vpop.f32.mrb[2].mxu1  ;;  %v2777_v61 = vpop.f32.mrb[3].mxu0 }
  0xfa   :  { %v1818_v62 = vadd.f32 %v2775_v56, %v422_v53  ;;  %v2778_v63 = vadd.f32 %v2777_v61, %v2776_v58  ;;  %v2817_v0 = vpop.f32.mrb[3].mxu1 }
  0xfb   :  { %v2818_v1 = vadd.f32 %v2817_v0, %v2816_v60 }
  0xfc   :  { %v1883_v2 = vadd.f32 %v2815_v59, %v1818_v62  ;;  %v1821_v3 = vadd.f32 %v2778_v63, %v422_v53 }
  0xfe   :  { %v1886_v4 = vadd.f32 %v2818_v1, %v1821_v3  ;;  %v2779_v5 = vpop.f32.mrb[4].mxu0 }
  0xff   :  { %v2819_v6 = vpop.f32.mrb[4].mxu1  ;;  %v2780_v7 = vpop.f32.mrb[5].mxu0 }
 0x100   :  { %v2781_v8 = vadd.f32 %v2780_v7, %v2779_v5  ;;  %v2820_v9 = vpop.f32.mrb[5].mxu1  ;;  %v2782_v10 = vpop.f32.mrb[6].mxu0 }
 0x101   :  { %v2821_v11 = vadd.f32 %v2820_v9, %v2819_v6  ;;  %v2822_v12 = vpop.f32.mrb[6].mxu1  ;;  %v2783_v13 = vpop.f32.mrb[7].mxu0 }
 0x102   :  { %v1826_v14 = vadd.f32 %v2781_v8, %v422_v53  ;;  %v2784_v15 = vadd.f32 %v2783_v13, %v2782_v10  ;;  %v2823_v16 = vpop.f32.mrb[7].mxu1 }
 0x103   :  { %v2824_v17 = vadd.f32 %v2823_v16, %v2822_v12 }
 0x104   :  { %v1891_v18 = vadd.f32 %v2821_v11, %v1826_v14  ;;  %v1829_v19 = vadd.f32 %v2784_v15, %v422_v53 }
 0x106   :  { %v4217_v20 = vadd.f32 %v2824_v17, %v1829_v19  ;;  %v2785_v21 = vpop.f32.mrb[8].mxu0 }
 0x107   :  { %v2825_v22 = vpop.f32.mrb[8].mxu1  ;;  %v2786_v23 = vpop.f32.mrb[9].mxu0 }
 0x108   :  { %v2787_v24 = vadd.f32 %v2786_v23, %v2785_v21  ;;  %v2826_v25 = vpop.f32.mrb[9].mxu1  ;;  %v2788_v26 = vpop.f32.mrb[10].mxu0 }
 0x109   :  { %v2827_v27 = vadd.f32 %v2826_v25, %v2825_v22  ;;  %v2828_v28 = vpop.f32.mrb[10].mxu1  ;;  %v2789_v29 = vpop.f32.mrb[11].mxu0 }
 0x10a   :  { %v1834_v30 = vadd.f32 %v2787_v24, %v422_v53  ;;  %v2790_v31 = vadd.f32 %v2789_v29, %v2788_v26  ;;  %v2829_v32 = vpop.f32.mrb[11].mxu1 }
 0x10b   :  { %v2830_v33 = vadd.f32 %v2829_v32, %v2828_v28 }
 0x10c   :  { %v1899_v34 = vadd.f32 %v2827_v27, %v1834_v30  ;;  %v1837_v35 = vadd.f32 %v2790_v31, %v422_v53 }
 0x10e   :  { %v4219_v36 = vadd.f32 %v2830_v33, %v1837_v35  ;;  %v2791_v37 = vpop.f32.mrb[12].mxu0 }
 0x10f   :  { %v2831_v38 = vpop.f32.mrb[12].mxu1  ;;  %v2792_v39 = vpop.f32.mrb[13].mxu0 }
 0x110   :  { %v2832_v40 = vpop.f32.mrb[13].mxu1  ;;  %v2793_v41 = vadd.f32 %v2792_v39, %v2791_v37  ;;  %v2794_v43 = vpop.f32.mrb[14].mxu0 }
 0x111   :  { %v2833_v42 = vadd.f32 %v2832_v40, %v2831_v38  ;;  %v2834_v44 = vpop.f32.mrb[14].mxu1  ;;  %v2795_v45 = vpop.f32.mrb[15].mxu0 }
 0x112   :  { %v2835_v46 = vpop.f32.mrb[15].mxu1  ;;  %v1842_v47 = vadd.f32 %v2793_v41, %v422_v53  ;;  %v2796_v48 = vadd.f32 %v2795_v45, %v2794_v43 }
 0x113   :  { %v2836_v49 = vadd.f32 %v2835_v46, %v2834_v44 }
 0x114   :  { %v1907_v50 = vadd.f32 %v2833_v42, %v1842_v47  ;;  %v1845_v51 = vadd.f32 %v2796_v48, %v422_v53 }
 0x116   :  { %v4221_v52 = vadd.f32 %v2836_v49, %v1845_v51  ;;  %v2853_v54 = vpop.f32.mrb[16].mxu0 }
 0x117   :  { %v2854_v55 = vpop.f32.mrb[17].mxu0  ;;  %v2893_v56 = vpop.f32.mrb[16].mxu1 }
 0x118   :  { %v2855_v57 = vadd.f32 %v2854_v55, %v2853_v54  ;;  %v2856_v58 = vpop.f32.mrb[18].mxu0  ;;  %v2894_v59 = vpop.f32.mrb[17].mxu1 }
 0x119   :  { %v2857_v60 = vpop.f32.mrb[19].mxu0  ;;  %v2895_v62 = vadd.f32 %v2894_v59, %v2893_v56  ;;  %v2896_v63 = vpop.f32.mrb[18].mxu1 }
 0x11a   :  { %v1948_v61 = vadd.f32 %v2855_v57, %v1883_v2  ;;  %v2858_v0 = vadd.f32 %v2857_v60, %v2856_v58  ;;  %v2897_v1 = vpop.f32.mrb[19].mxu1 }
 0x11b   :  { %v2898_v6 = vadd.f32 %v2897_v1, %v2896_v63 }
 0x11c   :  { %v2013_v3 = vadd.f32 %v2895_v62, %v1948_v61  ;;  %v1951_v5 = vadd.f32 %v2858_v0, %v1886_v4 }
 0x11e   :  { %v4223_v7 = vadd.f32 %v2898_v6, %v1951_v5  ;;  %v2859_v53 = vpop.f32.mrb[20].mxu0 }
 0x11f   :  { %v2899_v8 = vpop.f32.mrb[20].mxu1  ;;  %v2860_v9 = vpop.f32.mrb[21].mxu0 }
 0x120   :  { %v2861_v10 = vadd.f32 %v2860_v9, %v2859_v53  ;;  %v2900_v11 = vpop.f32.mrb[21].mxu1  ;;  %v2862_v12 = vpop.f32.mrb[22].mxu0 }
 0x121   :  { %v2901_v13 = vadd.f32 %v2900_v11, %v2899_v8  ;;  %v2902_v14 = vpop.f32.mrb[22].mxu1  ;;  %v2863_v15 = vpop.f32.mrb[23].mxu0 }
 0x122   :  { %v1956_v16 = vadd.f32 %v2861_v10, %v1891_v18  ;;  %v2864_v2 = vadd.f32 %v2863_v15, %v2862_v12  ;;  %v2903_v17 = vpop.f32.mrb[23].mxu1 }
 0x123   :  { %v2904_v19 = vadd.f32 %v2903_v17, %v2902_v14 }
 0x124   :  { %v2021_v21 = vadd.f32 %v2901_v13, %v1956_v16  ;;  %v1959_v22 = vadd.f32 %v2864_v2, %v4217_v20 }
 0x126   :  { %v4226_v4 = vadd.f32 %v2904_v19, %v1959_v22  ;;  %v2865_v23 = vpop.f32.mrb[24].mxu0 }
 0x127   :  { %v2905_v24 = vpop.f32.mrb[24].mxu1  ;;  %v2866_v25 = vpop.f32.mrb[25].mxu0 }
 0x128   :  { %v2906_v26 = vpop.f32.mrb[25].mxu1  ;;  %v2867_v27 = vadd.f32 %v2866_v25, %v2865_v23  ;;  %v2868_v29 = vpop.f32.mrb[26].mxu0 }
 0x129   :  { %v2907_v28 = vadd.f32 %v2906_v26, %v2905_v24  ;;  %v2908_v30 = vpop.f32.mrb[26].mxu1  ;;  %v2869_v31 = vpop.f32.mrb[27].mxu0 }
 0x12a   :  { %v2909_v32 = vpop.f32.mrb[27].mxu1  ;;  %v1964_v33 = vadd.f32 %v2867_v27, %v1899_v34  ;;  %v2870_v18 = vadd.f32 %v2869_v31, %v2868_v29 }
 0x12b   :  { %v2910_v35 = vadd.f32 %v2909_v32, %v2908_v30 }
 0x12c   :  { %v2029_v37 = vadd.f32 %v2907_v28, %v1964_v33  ;;  %v1967_v38 = vadd.f32 %v2870_v18, %v4219_v36 }
 0x12e   :  { %v4229_v39 = vadd.f32 %v2910_v35, %v1967_v38  ;;  %v2871_v20 = vpop.f32.mrb[28].mxu0 }
 0x12f   :  { %v2911_v40 = vpop.f32.mrb[28].mxu1  ;;  %v2872_v41 = vpop.f32.mrb[29].mxu0 }
 0x130   :  { %v2873_v42 = vadd.f32 %v2872_v41, %v2871_v20  ;;  %v2912_v43 = vpop.f32.mrb[29].mxu1  ;;  %v2874_v44 = vpop.f32.mrb[30].mxu0 }
 0x131   :  { %v2913_v45 = vadd.f32 %v2912_v43, %v2911_v40  ;;  %v2914_v46 = vpop.f32.mrb[30].mxu1  ;;  %v2875_v47 = vpop.f32.mrb[31].mxu0 }
 0x132   :  { %v1972_v48 = vadd.f32 %v2873_v42, %v1907_v50  ;;  %v2876_v49 = vadd.f32 %v2875_v47, %v2874_v44  ;;  %v2915_v51 = vpop.f32.mrb[31].mxu1 }
 0x133   :  { %v2916_v34 = vadd.f32 %v2915_v51, %v2914_v46 }
 0x134   :  { %v2037_v54 = vadd.f32 %v2913_v45, %v1972_v48  ;;  %v1975_v55 = vadd.f32 %v2876_v49, %v4221_v52 }
 0x136   :  { %v4232_v56 = vadd.f32 %v2916_v34, %v1975_v55  ;;  %v2933_v36 = vpop.f32.mrb[32].mxu0 }
 0x137   :  { %v2973_v57 = vpop.f32.mrb[32].mxu1  ;;  %v2934_v58 = vpop.f32.mrb[33].mxu0 }
 0x138   :  { %v2935_v59 = vadd.f32 %v2934_v58, %v2933_v36  ;;  %v2974_v60 = vpop.f32.mrb[33].mxu1  ;;  %v2936_v61 = vpop.f32.mrb[34].mxu0 }
 0x139   :  { %v2975_v62 = vadd.f32 %v2974_v60, %v2973_v57  ;;  %v2976_v63 = vpop.f32.mrb[34].mxu1  ;;  %v2937_v0 = vpop.f32.mrb[35].mxu0 }
 0x13a   :  { %v2078_v1 = vadd.f32 %v2935_v59, %v2013_v3  ;;  %v2938_v5 = vadd.f32 %v2937_v0, %v2936_v61  ;;  %v2977_v50 = vpop.f32.mrb[35].mxu1 }
 0x13b   :  { %v2978_v6 = vadd.f32 %v2977_v50, %v2976_v63 }
 0x13c   :  { %v2143_v53 = vadd.f32 %v2975_v62, %v2078_v1  ;;  %v2081_v8 = vadd.f32 %v2938_v5, %v4223_v7 }
 0x13e   :  { %v4235_v9 = vadd.f32 %v2978_v6, %v2081_v8  ;;  %v2939_v52 = vpop.f32.mrb[36].mxu0 }
 0x13f   :  { %v2979_v10 = vpop.f32.mrb[36].mxu1  ;;  %v2940_v11 = vpop.f32.mrb[37].mxu0 }
 0x140   :  { %v2980_v12 = vpop.f32.mrb[37].mxu1  ;;  %v2941_v13 = vadd.f32 %v2940_v11, %v2939_v52  ;;  %v2942_v15 = vpop.f32.mrb[38].mxu0 }
 0x141   :  { %v2981_v14 = vadd.f32 %v2980_v12, %v2979_v10  ;;  %v2982_v16 = vpop.f32.mrb[38].mxu1  ;;  %v2943_v2 = vpop.f32.mrb[39].mxu0 }
 0x142   :  { %v2983_v17 = vpop.f32.mrb[39].mxu1  ;;  %v2086_v19 = vadd.f32 %v2941_v13, %v2021_v21  ;;  %v2944_v3 = vadd.f32 %v2943_v2, %v2942_v15 }
 0x143   :  { %v2984_v22 = vadd.f32 %v2983_v17, %v2982_v16 }
 0x144   :  { %v2151_v23 = vadd.f32 %v2981_v14, %v2086_v19  ;;  %v2089_v24 = vadd.f32 %v2944_v3, %v4226_v4 }
 0x146   :  { %v4238_v25 = vadd.f32 %v2984_v22, %v2089_v24  ;;  %v2945_v7 = vpop.f32.mrb[40].mxu0 }
 0x147   :  { %v2985_v26 = vpop.f32.mrb[40].mxu1  ;;  %v2946_v27 = vpop.f32.mrb[41].mxu0 }
 0x148   :  { %v2947_v28 = vadd.f32 %v2946_v27, %v2945_v7  ;;  %v2986_v29 = vpop.f32.mrb[41].mxu1  ;;  %v2948_v30 = vpop.f32.mrb[42].mxu0 }
 0x149   :  { %v2987_v31 = vadd.f32 %v2986_v29, %v2985_v26  ;;  %v2988_v32 = vpop.f32.mrb[42].mxu1  ;;  %v2949_v33 = vpop.f32.mrb[43].mxu0 }
 0x14a   :  { %v2094_v18 = vadd.f32 %v2947_v28, %v2029_v37  ;;  %v2950_v35 = vadd.f32 %v2949_v33, %v2948_v30  ;;  %v2989_v38 = vpop.f32.mrb[43].mxu1 }
 0x14b   :  { %v2990_v21 = vadd.f32 %v2989_v38, %v2988_v32 }
 0x14c   :  { %v2159_v20 = vadd.f32 %v2987_v31, %v2094_v18  ;;  %v2097_v40 = vadd.f32 %v2950_v35, %v4229_v39 }
 0x14e   :  { %v4241_v41 = vadd.f32 %v2990_v21, %v2097_v40  ;;  %v2951_v4 = vpop.f32.mrb[44].mxu0 }
 0x14f   :  { %v2991_v42 = vpop.f32.mrb[44].mxu1  ;;  %v2952_v43 = vpop.f32.mrb[45].mxu0 }
 0x150   :  { %v2953_v44 = vadd.f32 %v2952_v43, %v2951_v4  ;;  %v2992_v45 = vpop.f32.mrb[45].mxu1  ;;  %v2954_v46 = vpop.f32.mrb[46].mxu0 }
 0x151   :  { %v2993_v47 = vadd.f32 %v2992_v45, %v2991_v42  ;;  %v2994_v48 = vpop.f32.mrb[46].mxu1  ;;  %v2955_v49 = vpop.f32.mrb[47].mxu0 }
 0x152   :  { %v2102_v51 = vadd.f32 %v2953_v44, %v2037_v54  ;;  %v2956_v34 = vadd.f32 %v2955_v49, %v2954_v46  ;;  %v2995_v37 = vpop.f32.mrb[47].mxu1 }
 0x153   :  { %v2996_v55 = vadd.f32 %v2995_v37, %v2994_v48 }
 0x154   :  { %v2167_v36 = vadd.f32 %v2993_v47, %v2102_v51  ;;  %v2105_v57 = vadd.f32 %v2956_v34, %v4232_v56 }
 0x156   :  { %v4244_v58 = vadd.f32 %v2996_v55, %v2105_v57  ;;  %v3013_v39 = vpop.f32.mrb[48].mxu0 }
 0x157   :  { %v3053_v59 = vpop.f32.mrb[48].mxu1  ;;  %v3014_v60 = vpop.f32.mrb[49].mxu0 }
 0x158   :  { %v3015_v61 = vadd.f32 %v3014_v60, %v3013_v39  ;;  %v3054_v62 = vpop.f32.mrb[49].mxu1  ;;  %v3016_v63 = vpop.f32.mrb[50].mxu0 }
 0x159   :  { %v3055_v0 = vadd.f32 %v3054_v62, %v3053_v59  ;;  %v3056_v1 = vpop.f32.mrb[50].mxu1  ;;  %v3017_v5 = vpop.f32.mrb[51].mxu0 }
 0x15a   :  { %v2208_v50 = vadd.f32 %v3015_v61, %v2143_v53  ;;  %v3018_v6 = vadd.f32 %v3017_v5, %v3016_v63  ;;  %v3057_v54 = vpop.f32.mrb[51].mxu1 }
 0x15b   :  { %v3058_v8 = vadd.f32 %v3057_v54, %v3056_v1 }
 0x15c   :  { %v2273_v52 = vadd.f32 %v3055_v0, %v2208_v50  ;;  %v2211_v10 = vadd.f32 %v3018_v6, %v4235_v9 }
 0x15e   :  { %v2276_v11 = vadd.f32 %v3058_v8, %v2211_v10  ;;  %v3019_v56 = vpop.f32.mrb[52].mxu0 }
 0x15f   :  { %v3059_v12 = vpop.f32.mrb[52].mxu1  ;;  %v3020_v13 = vpop.f32.mrb[53].mxu0 }
 0x160   :  { %v3021_v14 = vadd.f32 %v3020_v13, %v3019_v56  ;;  %v3060_v15 = vpop.f32.mrb[53].mxu1  ;;  %v3022_v16 = vpop.f32.mrb[54].mxu0 }
 0x161   :  { %v3061_v2 = vadd.f32 %v3060_v15, %v3059_v12  ;;  %v3062_v17 = vpop.f32.mrb[54].mxu1  ;;  %v3023_v19 = vpop.f32.mrb[55].mxu0 }
 0x162   :  { %v2216_v3 = vadd.f32 %v3021_v14, %v2151_v23  ;;  %v3024_v22 = vadd.f32 %v3023_v19, %v3022_v16  ;;  %v3063_v24 = vpop.f32.mrb[55].mxu1 }
 0x163   :  { %v3064_v53 = vadd.f32 %v3063_v24, %v3062_v17 }
 0x164   :  { %v2281_v7 = vadd.f32 %v3061_v2, %v2216_v3  ;;  %v2219_v26 = vadd.f32 %v3024_v22, %v4238_v25 }
 0x166   :  { %v4248_v27 = vadd.f32 %v3064_v53, %v2219_v26  ;;  %v3025_v9 = vpop.f32.mrb[56].mxu0 }
 0x167   :  { %v3065_v28 = vpop.f32.mrb[56].mxu1  ;;  %v3026_v29 = vpop.f32.mrb[57].mxu0 }
 0x168   :  { %v3027_v30 = vadd.f32 %v3026_v29, %v3025_v9  ;;  %v3066_v31 = vpop.f32.mrb[57].mxu1  ;;  %v3028_v32 = vpop.f32.mrb[58].mxu0 }
 0x169   :  { %v3067_v33 = vadd.f32 %v3066_v31, %v3065_v28  ;;  %v3068_v18 = vpop.f32.mrb[58].mxu1  ;;  %v3029_v35 = vpop.f32.mrb[59].mxu0 }
 0x16a   :  { %v2224_v38 = vadd.f32 %v3027_v30, %v2159_v20  ;;  %v3030_v21 = vadd.f32 %v3029_v35, %v3028_v32  ;;  %v3069_v23 = vpop.f32.mrb[59].mxu1 }
 0x16b   :  { %v3070_v40 = vadd.f32 %v3069_v23, %v3068_v18 }
 0x16c   :  { %v4250_v4 = vadd.f32 %v3067_v33, %v2224_v38  ;;  %v2227_v42 = vadd.f32 %v3030_v21, %v4241_v41 }
 0x16e   :  { %v4253_v25 = vadd.f32 %v3070_v40, %v2227_v42  ;;  %v3031_v43 = vpop.f32.mrb[60].mxu0 }
 0x16f   :  { %v3071_v44 = vpop.f32.mrb[60].mxu1  ;;  %v3032_v45 = vpop.f32.mrb[61].mxu0 }
 0x170   :  { %v3072_v46 = vpop.f32.mrb[61].mxu1  ;;  %v3033_v47 = vadd.f32 %v3032_v45, %v3031_v43  ;;  %v3034_v49 = vpop.f32.mrb[62].mxu0 }
 0x171   :  { %v3073_v48 = vadd.f32 %v3072_v46, %v3071_v44  ;;  %v3074_v51 = vpop.f32.mrb[62].mxu1  ;;  %v3035_v34 = vpop.f32.mrb[63].mxu0 }
 0x172   :  { %v3075_v37 = vpop.f32.mrb[63].mxu1  ;;  %v2232_v20 = vadd.f32 %v3033_v47, %v2167_v36  ;;  %v3036_v55 = vadd.f32 %v3035_v34, %v3034_v49 }
 0x173   :  { %v3076_v57 = vadd.f32 %v3075_v37, %v3074_v51 }
 0x174   :  { %v4255_v39 = vadd.f32 %v3073_v48, %v2232_v20  ;;  %v2235_v59 = vadd.f32 %v3036_v55, %v4244_v58 }
 0x176   :  { %v4258_v41 = vadd.f32 %v3076_v57, %v2235_v59  ;;  %v3093_v60 = vpop.f32.mrb[64].mxu0 }
 0x177   :  { %v3094_v61 = vpop.f32.mrb[65].mxu0  ;;  %v3133_v62 = vpop.f32.mrb[64].mxu1 }
 0x178   :  { %v3095_v63 = vadd.f32 %v3094_v61, %v3093_v60  ;;  %v3096_v0 = vpop.f32.mrb[66].mxu0  ;;  %v3134_v1 = vpop.f32.mrb[65].mxu1 }
 0x179   :  { %v3097_v5 = vpop.f32.mrb[67].mxu0  ;;  %v3135_v6 = vadd.f32 %v3134_v1, %v3133_v62  ;;  %v3136_v54 = vpop.f32.mrb[66].mxu1 }
 0x17a   :  { %v2338_v50 = vadd.f32 %v3095_v63, %v2273_v52  ;;  %v3098_v8 = vadd.f32 %v3097_v5, %v3096_v0  ;;  %v3137_v36 = vpop.f32.mrb[67].mxu1 }
 0x17b   :  { %v3138_v12 = vadd.f32 %v3137_v36, %v3136_v54 }
 0x17c   :  { %v2403_v10 = vadd.f32 %v3135_v6, %v2338_v50  ;;  %v2341_v56 = vadd.f32 %v3098_v8, %v2276_v11 }
 0x17e   :  { %v2749_v13 = vmul.f32 -1.442695, %v2403_v10  ;;  %v2406_v14 = vadd.f32 %v3138_v12, %v2341_v56  ;;  %v3099_v58 = vpop.f32.mrb[68].mxu0  ;;  %v2481_v12 = vld [vmem:[%s4316_s3] sm:$0xff] }
 0x17f   :  { %v3100_v15 = vpop.f32.mrb[69].mxu0  ;;  %v3139_v2 = vpop.f32.mrb[68].mxu1 }
 0x180   :  { %3437 = vpow2.f32 %v2749_v13  ;;  %v2750_v16 = vmul.f32 -1.442695, %v2406_v14  ;;  %v3101_v17 = vadd.f32 %v3100_v15, %v3099_v58  ;;  %v3102_v19 = vpop.f32.mrb[70].mxu0  ;;  %v3140_v3 = vpop.f32.mrb[69].mxu1 }
 0x181   :  { %v3103_v22 = vpop.f32.mrb[71].mxu0  ;;  %v3141_v24 = vadd.f32 %v3140_v3, %v3139_v2  ;;  %v3142_v53 = vpop.f32.mrb[70].mxu1 }
 0x182   :  { %3439 = vpow2.f32 %v2750_v16  ;;  %v2346_v52 = vadd.f32 %v3101_v17, %v2281_v7  ;;  %v3104_v26 = vadd.f32 %v3103_v22, %v3102_v19  ;;  %v3143_v9 = vpop.f32.mrb[71].mxu1 }
 0x183   :  { %v3144_v29 = vadd.f32 %v3143_v9, %v3142_v53 }
 0x184   :  { %v2411_v28 = vadd.f32 %v3141_v24, %v2346_v52  ;;  %v2349_v11 = vadd.f32 %v3104_v26, %v4248_v27  ;;  %v2483_v52 = vld [vmem:[%s4316_s3 + $0x10] sm:$0xff]  ;;  %v2484_v26 = vld [vmem:[%s4316_s3 + $0x18] sm:$0xff] }
 0x186   :  { %v2751_v30 = vmul.f32 -1.442695, %v2411_v28  ;;  %v2414_v31 = vadd.f32 %v3144_v29, %v2349_v11  ;;  %v3105_v32 = vpop.f32.mrb[72].mxu0 }
 0x187   :  { %v3106_v33 = vpop.f32.mrb[73].mxu0  ;;  %v3145_v35 = vpop.f32.mrb[72].mxu1 }
 0x188   :  { %3441 = vpow2.f32 %v2751_v30  ;;  %v2752_v18 = vmul.f32 -1.442695, %v2414_v31  ;;  %v3107_v38 = vadd.f32 %v3106_v33, %v3105_v32  ;;  %v3108_v21 = vpop.f32.mrb[74].mxu0  ;;  %v3146_v23 = vpop.f32.mrb[73].mxu1  ;;  %v2485_v32 = vld [vmem:[%s4316_s3 + $0x20] sm:$0xff] }
 0x189   :  { %v3109_v40 = vpop.f32.mrb[75].mxu0  ;;  %v3147_v43 = vadd.f32 %v3146_v23, %v3145_v35  ;;  %v3148_v44 = vpop.f32.mrb[74].mxu1  ;;  %v2486_v35 = vld [vmem:[%s4316_s3 + $0x28] sm:$0xff] }
 0x18a   :  { %v3438_v7 = vpop.eup %3437  ;;  %3443 = vpow2.f32 %v2752_v18  ;;  %v2354_v42 = vadd.f32 %v3107_v38, %v4250_v4  ;;  %v3110_v45 = vadd.f32 %v3109_v40, %v3108_v21  ;;  %v3149_v46 = vpop.f32.mrb[75].mxu1  ;;  %v2487_v40 = vld [vmem:[%s4316_s3 + $0x30] sm:$0xff] }
 0x18b   :  { %v2457_v27 = vadd.f32 1.0, %v3438_v7  ;;  %v3150_v51 = vadd.f32 %v3149_v46, %v3148_v44 }
 0x18c   :  { %v3440_v47 = vpop.eup %3439  ;;  %v2419_v48 = vadd.f32 %v3147_v43, %v2354_v42  ;;  %v2357_v49 = vadd.f32 %v3110_v45, %v4253_v25  ;;  %v2488_v42 = vld [vmem:[%s4316_s3 + $0x38] sm:$0xff] }
 0x18d   :  { %3445 = vrcp.f32 %v2457_v27  ;;  %v2458_v34 = vadd.f32 1.0, %v3440_v47 }
 0x18e   :  { %v2753_v37 = vmul.f32 -1.442695, %v2419_v48  ;;  %v2422_v20 = vadd.f32 %v3150_v51, %v2357_v49  ;;  %v3111_v55 = vpop.f32.mrb[76].mxu0 }
 0x18f   :  { %3447 = vrcp.f32 %v2458_v34  ;;  %v3112_v57 = vpop.f32.mrb[77].mxu0  ;;  %v3151_v4 = vpop.f32.mrb[76].mxu1 }
 0x190   :  { %3449 = vpow2.f32 %v2753_v37  ;;  %v2754_v59 = vmul.f32 -1.442695, %v2422_v20  ;;  %v3113_v60 = vadd.f32 %v3112_v57, %v3111_v55  ;;  %v3114_v61 = vpop.f32.mrb[78].mxu0  ;;  %v3152_v62 = vpop.f32.mrb[77].mxu1 }
 0x191   :  { %v3115_v63 = vpop.f32.mrb[79].mxu0  ;;  %v3153_v25 = vadd.f32 %v3152_v62, %v3151_v4  ;;  %v3154_v5 = vpop.f32.mrb[78].mxu1 }
 0x192   :  { %v3442_v0 = vpop.eup %3441  ;;  %3451 = vpow2.f32 %v2754_v59  ;;  %v2362_v1 = vadd.f32 %v3113_v60, %v4255_v39  ;;  %v3116_v50 = vadd.f32 %v3115_v63, %v3114_v61  ;;  %v3155_v54 = vpop.f32.mrb[79].mxu1  ;;  %v2482_v39 = vld [vmem:[%s4316_s3 + $0x8] sm:$0xff] }
 0x193   :  { %v2459_v6 = vadd.f32 1.0, %v3442_v0  ;;  %v3156_v56 = vadd.f32 %v3155_v54, %v3154_v5 }
 0x194   :  { %v3444_v8 = vpop.eup %3443  ;;  %v2427_v36 = vadd.f32 %v3153_v25, %v2362_v1  ;;  %v2365_v10 = vadd.f32 %v3116_v50, %v4258_v41 }
 0x195   :  { %3453 = vrcp.f32 %v2459_v6  ;;  %v2460_v13 = vadd.f32 1.0, %v3444_v8 }
 0x196   :  { %v2755_v14 = vmul.f32 -1.442695, %v2427_v36  ;;  %v2430_v58 = vadd.f32 %v3156_v56, %v2365_v10 }
 0x197   :  { %v3446_v15 = vpop.eup %3445  ;;  %3455 = vrcp.f32 %v2460_v13 }
 0x198   :  { %v2489_v16 = vsub.f32 %v3446_v15, %v2481_v12  ;;  %3457 = vpow2.f32 %v2755_v14  ;;  %v2756_v2 = vmul.f32 -1.442695, %v2430_v58 }
 0x199   :  { %v3448_v17 = vpop.eup %3447 }
 0x19a   :  { %v3450_v41 = vpop.eup %3449  ;;  %2497 = vst [vmem:[%s4317_s4] sm:$0xff] %v2489_v16  ;;  %v2490_v19 = vsub.f32 %v3448_v17, %v2482_v39  ;;  %3459 = vpow2.f32 %v2756_v2 }
 0x19b   :  { %v2461_v3 = vadd.f32 1.0, %v3450_v41 }
 0x19c   :  { %v3452_v22 = vpop.eup %3451  ;;  %2498 = vst [vmem:[%s4317_s4 + $0x8] sm:$0xff] %v2490_v19 }
 0x19d   :  { %3461 = vrcp.f32 %v2461_v3  ;;  %v2462_v24 = vadd.f32 1.0, %v3452_v22 }
 0x19f   :  { %v3454_v53 = vpop.eup %3453  ;;  %3463 = vrcp.f32 %v2462_v24 }
 0x1a0   :  { %v2491_v9 = vsub.f32 %v3454_v53, %v2483_v52 }
 0x1a1   :  { %v3456_v28 = vpop.eup %3455 }
 0x1a2   :  { %v3458_v11 = vpop.eup %3457  ;;  %2499 = vst [vmem:[%s4317_s4 + $0x10] sm:$0xff] %v2491_v9  ;;  %v2492_v29 = vsub.f32 %v3456_v28, %v2484_v26 }
 0x1a3   :  { %v2463_v30 = vadd.f32 1.0, %v3458_v11 }
 0x1a4   :  { %v3460_v31 = vpop.eup %3459  ;;  %2500 = vst [vmem:[%s4317_s4 + $0x18] sm:$0xff] %v2492_v29 }
 0x1a5   :  { %3465 = vrcp.f32 %v2463_v30  ;;  %v2464_v33 = vadd.f32 1.0, %v3460_v31 }
 0x1a7   :  { %v3462_v18 = vpop.eup %3461  ;;  %3467 = vrcp.f32 %v2464_v33 }
 0x1a8   :  { %v2493_v38 = vsub.f32 %v3462_v18, %v2485_v32 }
 0x1a9   :  { %v3464_v21 = vpop.eup %3463 }
 0x1aa   :  { %2501 = vst [vmem:[%s4317_s4 + $0x20] sm:$0xff] %v2493_v38  ;;  %v2494_v23 = vsub.f32 %v3464_v21, %v2486_v35 }
 0x1ac   :  { %2502 = vst [vmem:[%s4317_s4 + $0x28] sm:$0xff] %v2494_v23 }
 0x1af   :  { %v3466_v7 = vpop.eup %3465 }
 0x1b0   :  { %v2495_v43 = vsub.f32 %v3466_v7, %v2487_v40 }
 0x1b1   :  { %v3468_v44 = vpop.eup %3467 }
 0x1b2   :  { %2503 = vst [vmem:[%s4317_s4 + $0x30] sm:$0xff] %v2495_v43  ;;  %v2496_v45 = vsub.f32 %v3468_v44, %v2488_v42 }
 0x1b4   :  { %2504 = vst [vmem:[%s4317_s4 + $0x38] sm:$0xff] %v2496_v45 }

</bundles_post_ra>
